<compile_context>
chip_gen: v5e
topology: v5e:2x2
jax: 0.10.0
libtpu: 0.0.40
codegen_flags: <defaults>
</compile_context>

<pallas_src>
import functools

import numpy as np

import jax
import jax.numpy as jnp
from jax.experimental import pallas as pl
from jax.experimental.pallas import tpu as pltpu

SAMPLE_RATE = 24000
N_FFT = 1024
HOP = 256
N_MELS = 100
N_FREQS = N_FFT // 2 + 1            # 513
CLIP_VAL = 1e-7

F_PAD = 512                         # keep freq bins 0..511 (Nyquist mel row is exactly 0)
M_PAD = 128                         # mel filterbank padded to 128 lanes (sliced in-kernel)
CHUNKS_PER_FRAME = N_FFT // HOP     # 4: each frame = 4 consecutive hop-chunks


# ---------------------------------------------------------------------------
# deterministic "parameters": hann-windowed DFT table and HTK mel filterbank
# ---------------------------------------------------------------------------
def _melscale_fbanks_np(n_freqs, f_min, f_max, n_mels, sample_rate):
    """torchaudio.functional.melscale_fbanks(mel_scale='htk', norm=None), float64."""
    all_freqs = np.linspace(0.0, sample_rate // 2, n_freqs)
    hz_to_mel = lambda f: 2595.0 * np.log10(1.0 + f / 700.0)
    mel_to_hz = lambda m: 700.0 * (10.0 ** (m / 2595.0) - 1.0)
    m_pts = np.linspace(hz_to_mel(f_min), hz_to_mel(f_max), n_mels + 2)
    f_pts = mel_to_hz(m_pts)
    f_diff = f_pts[1:] - f_pts[:-1]                     # (n_mels+1,)
    slopes = f_pts[None, :] - all_freqs[:, None]        # (n_freqs, n_mels+2)
    down = (-1.0 * slopes[:, :-2]) / f_diff[:-1]
    up = slopes[:, 2:] / f_diff[1:]
    return np.maximum(0.0, np.minimum(down, up))        # (n_freqs, n_mels)


@functools.lru_cache(maxsize=1)
def _build_tables_np():
    """[hann*cos | -hann*sin] DFT table and HTK mel filterbank (numpy/float64).

    Exact integer phase reduction ((n*f) mod N_FFT) so the table adds no
    argument-reduction error beyond the bf16 quantization of its entries.
    """
    n = np.arange(N_FFT)
    w = 0.5 - 0.5 * np.cos(2.0 * np.pi * n / N_FFT)          # periodic hann
    f = np.arange(N_FREQS)
    phase = (np.outer(n, f) % N_FFT).astype(np.float64) * (2.0 * np.pi / N_FFT)
    cos_m = w[:, None] * np.cos(phase)                       # (N_FFT, N_FREQS)
    sin_m = -w[:, None] * np.sin(phase)

    fb = _melscale_fbanks_np(N_FREQS, 0.0, SAMPLE_RATE / 2.0, N_MELS, SAMPLE_RATE)
    # With f_max = sr/2, HTK filters, norm=None, the Nyquist row is exactly zero,
    # so dropping freq bin 512 (F_PAD=512) removes dead FLOPs without changing results.
    assert np.all(np.abs(fb[N_FREQS - 1, :]) < 1e-6), "Nyquist mel row is not ~0"

    cs = np.concatenate([cos_m[:, :F_PAD], sin_m[:, :F_PAD]], axis=1)  # (N_FFT, 2*F_PAD)
    fb_p = np.zeros((F_PAD, M_PAD), np.float32)
    fb_p[:, :N_MELS] = fb[:F_PAD, :]
    return cs.astype(np.float32), fb_p


# ---------------------------------------------------------------------------
# Pallas kernel: aligned chunk matmuls -> magnitude -> bf16 mel matmul -> safe_log
# ---------------------------------------------------------------------------
def _make_mel_kernel(tm):
    """Kernel over one tile of `tm` frames.

    blocks_ref : (1, 4, tm, HOP) bf16  tile-aligned 4x hop-chunk layout:
                 blocks_ref[0, k, r, :] = chunk (tile_start + r + k) of the padded wave,
                 i.e. frame r = [chunk r | r+1 | r+2 | r+3].
    cs_ref     : (N_FFT, 2*F_PAD) bf16  fused [hann*cos | -hann*sin] DFT table.
    fb_ref     : (F_PAD, M_PAD)   bf16  HTK mel filterbank (zero-padded to 128 lanes).
    out_ref    : (1, N_MELS, tm)  f32   log-mel output tile, already transposed
                 (mel-major, lane-dense frame axis since tm % 128 == 0).
    """
    def kernel(blocks_ref, cs_ref, fb_ref, out_ref):
        # Windowed DFT as 4 accumulated bf16 MXU matmuls (f32 accumulation); every
        # LHS block and RHS row-slice is (8,128)-tile aligned — no concat temp.
        y = jnp.dot(blocks_ref[0, 0], cs_ref[0:HOP, :],
                    preferred_element_type=jnp.float32)            # (tm, 2*F_PAD)
        for k in range(1, CHUNKS_PER_FRAME):
            y = y + jnp.dot(blocks_ref[0, k], cs_ref[k * HOP:(k + 1) * HOP, :],
                            preferred_element_type=jnp.float32)
        re = y[:, :F_PAD]
        im = y[:, F_PAD:]
        mag = jnp.sqrt(re * re + im * im)                          # power=1 magnitude, f32
        # Mel projection in bf16 (single-pass MXU), f32 accumulation.
        mel = jnp.dot(mag.astype(jnp.bfloat16), fb_ref[...],
                      preferred_element_type=jnp.float32)          # (tm, M_PAD)
        logmel = jnp.log(jnp.maximum(mel, CLIP_VAL))               # vocos safe_log, f32
        # Transpose on the (near-idle) XLU and slice to n_mels; store is lane-dense.
        out_ref[0] = jnp.transpose(logmel)[:N_MELS, :]             # (N_MELS, tm)
    return kernel


def _pick_tile(total_frames):
    """Largest frame tile (512/256/128) that still yields >= 2 tiles of real frames;
    never below 128 rows — small inputs pad a single tile instead of starving the MXU."""
    for tm in (512, 256):
        if total_frames >= 2 * tm:
            return tm
    return 128


@jax.jit
def mel_spectrogram_features(audio):
    """audio: (B, T) float32 -> (B, n_mels, n_frames) float32 log-mel features."""
    B, T = audio.shape
    if T <= N_FFT // 2:
        raise ValueError("audio too short for center reflect padding (need T > n_fft//2)")
    n_frames = T // HOP + 1                     # torch.stft(center=True) frame count
    tm = _pick_tile(B * n_frames)
    n_blocks = -(-n_frames // tm)
    frames_pad = n_blocks * tm
    n_chunks = frames_pad + (CHUNKS_PER_FRAME - 1)
    t_need = n_chunks * HOP                     # samples covered by the framed view

    # center padding: reflect-pad n_fft//2 on both sides, then zero-pad / trim the tail
    # so the hop-chunk view covers exactly the (padded) frames; padded frames only
    # produce log(1e-7) rows and are sliced off below.
    padded = jnp.pad(audio, ((0, 0), (N_FFT // 2, N_FFT // 2)), mode="reflect")
    if padded.shape[1] < t_need:
        padded = jnp.pad(padded, ((0, 0), (0, t_need - padded.shape[1])))
    else:
        padded = padded[:, :t_need]

    # tile-aligned 4x hop-chunk layout built from 4 STATIC contiguous slices (no gather):
    # blocks4[b*n_blocks+i, k, r, :] = chunks[b, i*tm + r + k, :]
    chunks = padded.astype(jnp.bfloat16).reshape(B, n_chunks, HOP)
    slabs = [chunks[:, k:k + frames_pad, :].reshape(B, n_blocks, tm, HOP)
             for k in range(CHUNKS_PER_FRAME)]
    blocks4 = jnp.stack(slabs, axis=2).reshape(B * n_blocks, CHUNKS_PER_FRAME, tm, HOP)

    cs_np, fb_np = _build_tables_np()
    cs = jnp.asarray(cs_np, dtype=jnp.bfloat16)    # bf16 DFT table (f32 accumulation)
    fb = jnp.asarray(fb_np, dtype=jnp.bfloat16)    # bf16 mel filterbank (f32 accumulation)

    out = pl.pallas_call(
        _make_mel_kernel(tm),
        out_shape=jax.ShapeDtypeStruct((B, N_MELS, frames_pad), jnp.float32),
        grid_spec=pltpu.PrefetchScalarGridSpec(
            num_scalar_prefetch=0,
            grid=(B, n_blocks),
            in_specs=[
                pl.BlockSpec((1, CHUNKS_PER_FRAME, tm, HOP),
                             lambda b, i: (b * n_blocks + i, 0, 0, 0)),
                pl.BlockSpec((N_FFT, 2 * F_PAD), lambda b, i: (0, 0)),  # constant table
                pl.BlockSpec((F_PAD, M_PAD), lambda b, i: (0, 0)),      # constant table
            ],
            out_specs=pl.BlockSpec((1, N_MELS, tm), lambda b, i: (b, 0, i)),
        ),
        compiler_params=pltpu.CompilerParams(
            dimension_semantics=("parallel", "parallel"),
            vmem_limit_bytes=32 * 1024 * 1024,
        ),
    )(blocks4, cs, fb)

    return out[:, :, :n_frames]                     # (B, n_mels, n_frames)


# ---------------------------------------------------------------------------
# references for validation
# ---------------------------------------------------------------------------
def _reference_same_math(audio):
    """Plain-XLA reference with the same math/precision as the kernel (bf16 frames,
    bf16 DFT + mel matmuls with f32 accumulation, 4-way partial-sum order)."""
    cs_np, fb_np = _build_tables_np()
    cs = jnp.asarray(cs_np, dtype=jnp.bfloat16)
    fb = jnp.asarray(fb_np, dtype=jnp.bfloat16)[:, :N_MELS]
    B, T = audio.shape
    n_frames = T // HOP + 1
    padded = jnp.pad(audio, ((0, 0), (N_FFT // 2, N_FFT // 2)), mode="reflect")
    idx = jnp.arange(n_frames)[:, None] * HOP + jnp.arange(N_FFT)[None, :]
    frames = padded[:, idx].astype(jnp.bfloat16).reshape(B * n_frames, N_FFT)
    y = jnp.zeros((B * n_frames, 2 * F_PAD), jnp.float32)
    for k in range(CHUNKS_PER_FRAME):
        y = y + jnp.dot(frames[:, k * HOP:(k + 1) * HOP],
                        cs[k * HOP:(k + 1) * HOP, :],
                        preferred_element_type=jnp.float32)
    re, im = y[:, :F_PAD], y[:, F_PAD:]
    mag = jnp.sqrt(re * re + im * im)
    mel = jnp.dot(mag.astype(jnp.bfloat16), fb, preferred_element_type=jnp.float32)
    mel = jnp.log(jnp.maximum(mel, CLIP_VAL)).reshape(B, n_frames, N_MELS)
    return jnp.transpose(mel, (0, 2, 1))


def _reference_fp32(audio):
    """Higher-precision rfft-based reference (f32 frames, float64-built filterbank)."""
    B, T = audio.shape
    n_frames = T // HOP + 1
    padded = jnp.pad(audio, ((0, 0), (N_FFT // 2, N_FFT // 2)), mode="reflect")
    idx = jnp.arange(n_frames)[:, None] * HOP + jnp.arange(N_FFT)[None, :]
    win = jnp.asarray(0.5 - 0.5 * np.cos(2.0 * np.pi * np.arange(N_FFT) / N_FFT),
                      dtype=jnp.float32)
    frames = padded[:, idx] * win[None, None, :]
    spec = jnp.abs(jnp.fft.rfft(frames, axis=-1))                 # (B, n_frames, n_freqs)
    fb = jnp.asarray(
        _melscale_fbanks_np(N_FREQS, 0.0, SAMPLE_RATE / 2.0, N_MELS, SAMPLE_RATE),
        dtype=jnp.float32)
    mel = jnp.einsum("btf,fm->btm", spec, fb, precision=jax.lax.Precision.HIGHEST)
    return jnp.transpose(jnp.log(jnp.maximum(mel, CLIP_VAL)), (0, 2, 1))


if __name__ == "__main__":
    key = jax.random.PRNGKey(0)
    B, T = 2, 2048                                  # 9 frames per batch element
    audio = jax.random.normal(key, (B, T), dtype=jnp.float32)

    feats = jax.block_until_ready(mel_spectrogram_features(audio))
    assert feats.shape == (B, N_MELS, T // HOP + 1), feats.shape

    # (1) kernel-plumbing check vs an (essentially) identical-math XLA reference.
    #     Tolerance 5e-3: f32 partial-sum reassociation can flip rare bf16 roundings
    #     of `mag`, which shows up as up to ~2^-9 on isolated log-mel values.
    ref_same = _reference_same_math(audio)
    assert jnp.allclose(feats, ref_same, rtol=5e-3, atol=5e-3), (
        "kernel does not match identical-math reference")

    # (2) numerical sanity vs a float32 rfft reference: bf16 DFT + bf16 mel matmuls add
    #     ~2^-9..2^-8 relative quantization noise; check robust statistics.
    ref_fp = _reference_fp32(audio)
    diff = jnp.abs(feats - ref_fp)
    assert float(jnp.mean(diff)) < 1e-2, float(jnp.mean(diff))
    assert float(jnp.quantile(diff, 0.99)) < 5e-2, float(jnp.quantile(diff, 0.99))

    print("KERNEL_OK")
</pallas_src>

<mosaic_0001>
module attributes {stable_mosaic.version = 11 : i64} {
  func.func @kernel(%arg0: i32, %arg1: i32, %arg2: memref<1x4x128x256xbf16, #tpu.memory_space<vmem>>, %arg3: memref<1024x1024xbf16, #tpu.memory_space<vmem>>, %arg4: memref<512x128xbf16, #tpu.memory_space<vmem>>, %arg5: memref<1x100x128xf32, #tpu.memory_space<vmem>>) attributes {dimension_semantics = [#tpu.dimension_semantics<parallel>, #tpu.dimension_semantics<parallel>], iteration_bounds = array<i64: 2, 1>, scalar_prefetch = 0 : i64, scratch_operands = 0 : i64, tpu.core_type = #tpu.core_type<tc>, window_params = [{transform_indices = @transform_0, window_bounds = array<i64: 1, 4, 128, 256>}, {pipeline_mode = #tpu.pipeline_mode<synchronous>, transform_indices = @transform_1, window_bounds = array<i64: 1024, 1024>}, {pipeline_mode = #tpu.pipeline_mode<synchronous>, transform_indices = @transform_2, window_bounds = array<i64: 512, 128>}, {transform_indices = @transform_3, window_bounds = array<i64: 1, 100, 128>}]} {
    %c0 = arith.constant 0 : index
    %c0_0 = arith.constant 0 : index
    %c0_1 = arith.constant 0 : index
    %c0_2 = arith.constant 0 : index
    %0 = vector.load %arg2[%c0, %c0_0, %c0_1, %c0_2] : memref<1x4x128x256xbf16, #tpu.memory_space<vmem>>, vector<1x1x128x256xbf16>
    %1 = vector.shape_cast %0 : vector<1x1x128x256xbf16> to vector<128x256xbf16>
    %c0_3 = arith.constant 0 : index
    %c0_4 = arith.constant 0 : index
    %2 = vector.load %arg3[%c0_3, %c0_4] : memref<1024x1024xbf16, #tpu.memory_space<vmem>>, vector<256x1024xbf16>
    %cst = arith.constant dense<0.000000e+00> : vector<128x1024xf32>
    %3 = tpu.matmul %1, %2, %cst {dimension_numbers = #tpu.dot_dimension_numbers<[1], [0], [0], [1], [0, 0, 1, 1], [], []>} : vector<128x256xbf16>, vector<256x1024xbf16>, vector<128x1024xf32> -> vector<128x1024xf32>
    %c0_5 = arith.constant 0 : index
    %c1 = arith.constant 1 : index
    %c0_6 = arith.constant 0 : index
    %c0_7 = arith.constant 0 : index
    %4 = vector.load %arg2[%c0_5, %c1, %c0_6, %c0_7] : memref<1x4x128x256xbf16, #tpu.memory_space<vmem>>, vector<1x1x128x256xbf16>
    %5 = vector.shape_cast %4 : vector<1x1x128x256xbf16> to vector<128x256xbf16>
    %c256 = arith.constant 256 : index
    %c0_8 = arith.constant 0 : index
    %6 = vector.load %arg3[%c256, %c0_8] : memref<1024x1024xbf16, #tpu.memory_space<vmem>>, vector<256x1024xbf16>
    %cst_9 = arith.constant dense<0.000000e+00> : vector<128x1024xf32>
    %7 = tpu.matmul %5, %6, %cst_9 {dimension_numbers = #tpu.dot_dimension_numbers<[1], [0], [0], [1], [0, 0, 1, 1], [], []>} : vector<128x256xbf16>, vector<256x1024xbf16>, vector<128x1024xf32> -> vector<128x1024xf32>
    %8 = arith.addf %3, %7 : vector<128x1024xf32>
    %c0_10 = arith.constant 0 : index
    %c2 = arith.constant 2 : index
    %c0_11 = arith.constant 0 : index
    %c0_12 = arith.constant 0 : index
    %9 = vector.load %arg2[%c0_10, %c2, %c0_11, %c0_12] : memref<1x4x128x256xbf16, #tpu.memory_space<vmem>>, vector<1x1x128x256xbf16>
    %10 = vector.shape_cast %9 : vector<1x1x128x256xbf16> to vector<128x256xbf16>
    %c512 = arith.constant 512 : index
    %c0_13 = arith.constant 0 : index
    %11 = vector.load %arg3[%c512, %c0_13] : memref<1024x1024xbf16, #tpu.memory_space<vmem>>, vector<256x1024xbf16>
    %cst_14 = arith.constant dense<0.000000e+00> : vector<128x1024xf32>
    %12 = tpu.matmul %10, %11, %cst_14 {dimension_numbers = #tpu.dot_dimension_numbers<[1], [0], [0], [1], [0, 0, 1, 1], [], []>} : vector<128x256xbf16>, vector<256x1024xbf16>, vector<128x1024xf32> -> vector<128x1024xf32>
    %13 = arith.addf %8, %12 : vector<128x1024xf32>
    %c0_15 = arith.constant 0 : index
    %c3 = arith.constant 3 : index
    %c0_16 = arith.constant 0 : index
    %c0_17 = arith.constant 0 : index
    %14 = vector.load %arg2[%c0_15, %c3, %c0_16, %c0_17] : memref<1x4x128x256xbf16, #tpu.memory_space<vmem>>, vector<1x1x128x256xbf16>
    %15 = vector.shape_cast %14 : vector<1x1x128x256xbf16> to vector<128x256xbf16>
    %c768 = arith.constant 768 : index
    %c0_18 = arith.constant 0 : index
    %16 = vector.load %arg3[%c768, %c0_18] : memref<1024x1024xbf16, #tpu.memory_space<vmem>>, vector<256x1024xbf16>
    %cst_19 = arith.constant dense<0.000000e+00> : vector<128x1024xf32>
    %17 = tpu.matmul %15, %16, %cst_19 {dimension_numbers = #tpu.dot_dimension_numbers<[1], [0], [0], [1], [0, 0, 1, 1], [], []>} : vector<128x256xbf16>, vector<256x1024xbf16>, vector<128x1024xf32> -> vector<128x1024xf32>
    %18 = arith.addf %13, %17 : vector<128x1024xf32>
    %19 = vector.extract_strided_slice %18 {offsets = [0, 0], sizes = [128, 512], strides = [1, 1]} : vector<128x1024xf32> to vector<128x512xf32>
    %20 = vector.extract_strided_slice %18 {offsets = [0, 512], sizes = [128, 512], strides = [1, 1]} : vector<128x1024xf32> to vector<128x512xf32>
    %21 = arith.mulf %19, %19 : vector<128x512xf32>
    %22 = arith.mulf %20, %20 : vector<128x512xf32>
    %23 = arith.addf %21, %22 : vector<128x512xf32>
    %24 = math.sqrt %23 : vector<128x512xf32>
    %25 = arith.truncf %24 : vector<128x512xf32> to vector<128x512xbf16>
    %c0_20 = arith.constant 0 : index
    %c0_21 = arith.constant 0 : index
    %26 = vector.load %arg4[%c0_20, %c0_21] : memref<512x128xbf16, #tpu.memory_space<vmem>>, vector<512x128xbf16>
    %cst_22 = arith.constant dense<0.000000e+00> : vector<128x128xf32>
    %27 = tpu.matmul %25, %26, %cst_22 {dimension_numbers = #tpu.dot_dimension_numbers<[1], [0], [0], [1], [0, 0, 1, 1], [], []>} : vector<128x512xbf16>, vector<512x128xbf16>, vector<128x128xf32> -> vector<128x128xf32>
    %cst_23 = arith.constant 1.000000e-07 : f32
    %28 = vector.broadcast %cst_23 : f32 to vector<128x128xf32>
    %29 = arith.maximumf %27, %28 : vector<128x128xf32>
    %30 = math.log %29 : vector<128x128xf32>
    %31 = tpu.transpose %30, [1, 0] : vector<128x128xf32> -> vector<128x128xf32>
    %32 = vector.extract_strided_slice %31 {offsets = [0, 0], sizes = [100, 128], strides = [1, 1]} : vector<128x128xf32> to vector<100x128xf32>
    %c0_24 = arith.constant 0 : index
    %c0_25 = arith.constant 0 : index
    %c0_26 = arith.constant 0 : index
    %33 = vector.load %arg5[%c0_24, %c0_25, %c0_26] : memref<1x100x128xf32, #tpu.memory_space<vmem>>, vector<1x100x128xf32>
    %34 = vector.shape_cast %33 : vector<1x100x128xf32> to vector<100x128xf32>
    %35 = vector.shape_cast %32 : vector<100x128xf32> to vector<1x100x128xf32>
    tpu.vector_store %arg5[%c0_24, %c0_25, %c0_26], %35 {strides = array<i32>} : memref<1x100x128xf32, #tpu.memory_space<vmem>>, vector<1x100x128xf32>,
    return
  }
  func.func @transform_0(%arg0: i32, %arg1: i32) -> (i32, i32, i32, i32) {
    %c1_i32 = arith.constant 1 : i32
    %0 = arith.muli %arg0, %c1_i32 : i32
    %1 = arith.addi %0, %arg1 : i32
    %c0_i32 = arith.constant 0 : i32
    %c0_i32_0 = arith.constant 0 : i32
    %c0_i32_1 = arith.constant 0 : i32
    %c0_i32_2 = arith.constant 0 : i32
    return %1, %c0_i32, %c0_i32_0, %c0_i32_1 : i32, i32, i32, i32
  }
  func.func @transform_1(%arg0: i32, %arg1: i32) -> (i32, i32) {
    %c0_i32 = arith.constant 0 : i32
    %c0_i32_0 = arith.constant 0 : i32
    %c0_i32_1 = arith.constant 0 : i32
    return %c0_i32, %c0_i32_0 : i32, i32
  }
  func.func @transform_2(%arg0: i32, %arg1: i32) -> (i32, i32) {
    %c0_i32 = arith.constant 0 : i32
    %c0_i32_0 = arith.constant 0 : i32
    %c0_i32_1 = arith.constant 0 : i32
    return %c0_i32, %c0_i32_0 : i32, i32
  }
  func.func @transform_3(%arg0: i32, %arg1: i32) -> (i32, i32, i32) {
    %c0_i32 = arith.constant 0 : i32
    %c0_i32_0 = arith.constant 0 : i32
    return %arg0, %c0_i32, %arg1 : i32, i32, i32
  }
}

</mosaic_0001>

<bundles_post_ra>
// kernel: mel_spectrogram_features.1
= control target key start
LH: loop header
LB: loop body
LE: loop exit
PB: predicated region body
PF: predicated region fallthrough
CT: control target
= control target key end

     0   :  { %s11991_s12 = smov 0   ;;  %s11993_s13 = smov 0   ;;  %s18475_s0 = inlined_call_operand.vmem [shape: bf16[2,4,128,256], index: 0, kind: input, shape index: {}]   ;;  %s18476_s1 = inlined_call_operand.vmem [shape: bf16[1024,1024], index: 1, kind: input, shape index: {}]   ;;  %s18477_s2 = inlined_call_operand.vmem [shape: bf16[512,128], index: 2, kind: input, shape index: {}]   ;;  %s18478_s3 = inlined_call_operand.vmem [shape: f32[2,100,128], index: 3, kind: output, shape index: {}]  }
   0x1   :  { %s11995_s14 = smov 0  }
   0x2 LB: > { %s25_s15 = sadd.s32 1, %s11965_s13  ;;  %p8667_p0 = scmp.ge.s32.totalorder %s11969_s14, 1  ;;  %s11969_s14 = sphi %s11995_s14, %s13_s14   ;;  %s11965_s13 = sphi %s11993_s13, %s19186_s13   ;;  %s11961_s12 = sphi %s11991_s12, %s19185_s12  }
   0x3   : > { %p27_p1 = scmp.ge.s32.totalorder %s25_s15, 2  ;;  %p155_p2 = scmp.lt.s32.totalorder %s11969_s14, 3 }
   0x5   : > { %s19188_s15 = smov (%p27_p1, %s25_s15), 0  ;;  %p156_p3 = pnand %p8667_p0, %p155_p2 }
   0x7   : > { %159 = sbr.rel (%p156_p3) target bundleno = 2564 (0xa04), region = 32 }
   0xc   : > { %v8977_v0 = vld [vmem:[%s18476_s1 + $0x5c0] sm:$0xf]  ;;  %v11370_v5 = vld [vmem:[%s18476_s1 + $0x5c4] sm:$0xf]  ;;  %p184_p4 = scmp.lt.s32.totalorder %s11961_s12, 1 }
   0xd   : > { %v11374_v1 = vld [vmem:[%s18476_s1 + $0x5dc] sm:$0xf0]  ;;  %v8979_v6 = vld [vmem:[%s18476_s1 + $0x5e0] sm:$0xf0] }
   0xe   : > { %v9233_v2 = vld [vmem:[%s18476_s1 + $0x7c0] sm:$0xf]  ;;  %v8978_v3 = vor.u32 %v11374_v1, %v8977_v0  ;;  %v8982_v8 = vor.u32 %v11370_v5, %v8979_v6  ;;  %v11434_v9 = vld [vmem:[%s18476_s1 + $0x7c4] sm:$0xf]  ;;  %s19190_s12 = smov (!%p184_p4, %s11961_s12), 1 }
   0xf   : > { %v11438_v4 = vld [vmem:[%s18476_s1 + $0x7dc] sm:$0xf0]  ;;  %v9235_v10 = vld [vmem:[%s18476_s1 + $0x7e0] sm:$0xf0]  ;;  %s11153_s29 = sshll.u32 %s19190_s12, 9  ;;  %s11762_s22 = smul.u32 104, %s19190_s12 }
  0x10   : > { %v9234_v7 = vor.u32 %v11438_v4, %v9233_v2  ;;  %v8945_v11 = vld [vmem:[%s18476_s1 + $0x580] sm:$0xf]  ;;  %1207 = vmatpush.bf16.msra.mxu0 %v8978_v3  ;;  %v9238_v12 = vor.u32 %v11434_v9, %v9235_v10  ;;  %1305 = vmatpush.bf16.msra.mxu2 %v8982_v8  ;;  %v11362_v18 = vld [vmem:[%s18476_s1 + $0x584] sm:$0xf]  ;;  %s12211_s5 = scalar_lea.vmem %s18475_s0, %s11153_s29 }
  0x11   : > { %v11366_v13 = vld [vmem:[%s18476_s1 + $0x59c] sm:$0xf0]  ;;  %v8947_v19 = vld [vmem:[%s18476_s1 + $0x5a0] sm:$0xf0]  ;;  %s197_s25 = scalar_lea.vmem %s18478_s3, %s11762_s22 }
  0x12   : > { %v9201_v14 = vld [vmem:[%s18476_s1 + $0x780] sm:$0xf]  ;;  %1256 = vmatpush.bf16.msra.mxu1 %v9234_v7  ;;  %v8946_v16 = vor.u32 %v11366_v13, %v8945_v11  ;;  %v11426_v20 = vld [vmem:[%s18476_s1 + $0x784] sm:$0xf]  ;;  %1354 = vmatpush.bf16.msra.mxu3 %v9238_v12  ;;  %v8950_v21 = vor.u32 %v11362_v18, %v8947_v19 }
  0x13   : > { %v11430_v15 = vld [vmem:[%s18476_s1 + $0x79c] sm:$0xf0]  ;;  %v9203_v22 = vld [vmem:[%s18476_s1 + $0x7a0] sm:$0xf0] }
  0x14   : > { %v9202_v17 = vor.u32 %v11430_v15, %v9201_v14  ;;  %v8913_v23 = vld [vmem:[%s18476_s1 + $0x540] sm:$0xf]  ;;  %v9206_v25 = vor.u32 %v11426_v20, %v9203_v22  ;;  %v11354_v28 = vld [vmem:[%s18476_s1 + $0x544] sm:$0xf]  ;;  %1208 = vmatpush.bf16.msra.mxu0 %v8946_v16  ;;  %1306 = vmatpush.bf16.msra.mxu2 %v8950_v21 }
  0x15   : > { %v11358_v24 = vld [vmem:[%s18476_s1 + $0x55c] sm:$0xf0]  ;;  %v8915_v30 = vld [vmem:[%s18476_s1 + $0x560] sm:$0xf0] }
  0x16   : > { %v9169_v26 = vld [vmem:[%s18476_s1 + $0x740] sm:$0xf]  ;;  %v8914_v29 = vor.u32 %v11358_v24, %v8913_v23  ;;  %v11418_v31 = vld [vmem:[%s18476_s1 + $0x744] sm:$0xf]  ;;  %1257 = vmatpush.bf16.msra.mxu1 %v9202_v17  ;;  %v8918_v34 = vor.u32 %v11354_v28, %v8915_v30  ;;  %1355 = vmatpush.bf16.msra.mxu3 %v9206_v25  ;;  %v11371_v28 = vld [vmem:[%s18476_s1 + $0x5cc] sm:$0xf] }
  0x17   : > { %v11422_v27 = vld [vmem:[%s18476_s1 + $0x75c] sm:$0xf0]  ;;  %v9171_v32 = vld [vmem:[%s18476_s1 + $0x760] sm:$0xf0]  ;;  %v11435_v30 = vld [vmem:[%s18476_s1 + $0x7cc] sm:$0xf] }
  0x18   : > { %v9170_v33 = vor.u32 %v11422_v27, %v9169_v26  ;;  %v8881_v35 = vld [vmem:[%s18476_s1 + $0x500] sm:$0xf]  ;;  %v9174_v38 = vor.u32 %v11418_v31, %v9171_v32  ;;  %v11346_v40 = vld [vmem:[%s18476_s1 + $0x504] sm:$0xf]  ;;  %1209 = vmatpush.bf16.msra.mxu0 %v8914_v29  ;;  %1307 = vmatpush.bf16.msra.mxu2 %v8918_v34  ;;  %v8987_v29 = vld [vmem:[%s18476_s1 + $0x5e8] sm:$0xf0] }
  0x19   : > { %v11350_v36 = vld [vmem:[%s18476_s1 + $0x51c] sm:$0xf0]  ;;  %v8883_v41 = vld [vmem:[%s18476_s1 + $0x520] sm:$0xf0]  ;;  %v9243_v34 = vld [vmem:[%s18476_s1 + $0x7e8] sm:$0xf0] }
  0x1a   : > { %v9137_v37 = vld [vmem:[%s18476_s1 + $0x700] sm:$0xf]  ;;  %v11410_v42 = vld [vmem:[%s18476_s1 + $0x704] sm:$0xf]  ;;  %v8882_v44 = vor.u32 %v11350_v36, %v8881_v35  ;;  %1258 = vmatpush.bf16.msra.mxu1 %v9170_v33  ;;  %v8886_v46 = vor.u32 %v11346_v40, %v8883_v41  ;;  %1356 = vmatpush.bf16.msra.mxu3 %v9174_v38  ;;  %v11299_v33 = vld [vmem:[%s12211_s5 + $0x84] sm:$0xf0]  ;;  %v8990_v40 = vor.u32 %v11371_v28, %v8987_v29 }
  0x1b   : > { %v11414_v39 = vld [vmem:[%s18476_s1 + $0x71c] sm:$0xf0]  ;;  %v9139_v43 = vld [vmem:[%s18476_s1 + $0x720] sm:$0xf0]  ;;  %v8691_v38 = vld [vmem:[%s12211_s5 + $0x88] sm:$0xf0] }
  0x1c   : > { %v9138_v45 = vor.u32 %v11414_v39, %v9137_v37  ;;  %v8849_v47 = vld [vmem:[%s18476_s1 + $0x4c0] sm:$0xf]  ;;  %v9142_v50 = vor.u32 %v11410_v42, %v9139_v43  ;;  %v11338_v52 = vld [vmem:[%s18476_s1 + $0x4c4] sm:$0xf]  ;;  %1210 = vmatpush.bf16.msra.mxu0 %v8882_v44  ;;  %1308 = vmatpush.bf16.msra.mxu2 %v8886_v46  ;;  %v8985_v41 = vld [vmem:[%s18476_s1 + $0x5c8] sm:$0xf] }
  0x1d   : > { %v11342_v48 = vld [vmem:[%s18476_s1 + $0x4dc] sm:$0xf0]  ;;  %v8851_v53 = vld [vmem:[%s18476_s1 + $0x4e0] sm:$0xf0]  ;;  %v11375_v42 = vld [vmem:[%s18476_s1 + $0x5e4] sm:$0xf0] }
  0x1e   : > { %v9105_v49 = vld [vmem:[%s18476_s1 + $0x6c0] sm:$0xf]  ;;  %v11402_v54 = vld [vmem:[%s18476_s1 + $0x6c4] sm:$0xf]  ;;  %v8850_v56 = vor.u32 %v11342_v48, %v8849_v47  ;;  %1259 = vmatpush.bf16.msra.mxu1 %v9138_v45  ;;  %v8854_v58 = vor.u32 %v11338_v52, %v8851_v53  ;;  %1357 = vmatpush.bf16.msra.mxu3 %v9142_v50  ;;  %v9241_v43 = vld [vmem:[%s18476_s1 + $0x7c8] sm:$0xf]  ;;  %v9246_v45 = vor.u32 %v11435_v30, %v9243_v34 }
  0x1f   : > { %v11406_v51 = vld [vmem:[%s18476_s1 + $0x6dc] sm:$0xf0]  ;;  %v9107_v55 = vld [vmem:[%s18476_s1 + $0x6e0] sm:$0xf0]  ;;  %v11439_v46 = vld [vmem:[%s18476_s1 + $0x7e4] sm:$0xf0]  ;;  %v8986_v52 = vor.u32 %v11375_v42, %v8985_v41 }
  0x20   : > { %v9106_v57 = vor.u32 %v11406_v51, %v9105_v49  ;;  %v8817_v59 = vld [vmem:[%s18476_s1 + $0x480] sm:$0xf]  ;;  %v9110_v62 = vor.u32 %v11402_v54, %v9107_v55  ;;  %v11330_v0 = vld [vmem:[%s18476_s1 + $0x484] sm:$0xf]  ;;  %1211 = vmatpush.bf16.msra.mxu0 %v8850_v56  ;;  %1309 = vmatpush.bf16.msra.mxu2 %v8854_v58  ;;  %v11363_v47 = vld [vmem:[%s18476_s1 + $0x58c] sm:$0xf]  ;;  %v9242_v53 = vor.u32 %v11439_v46, %v9241_v43 }
  0x21   : > { %v11334_v60 = vld [vmem:[%s18476_s1 + $0x49c] sm:$0xf0]  ;;  %v8819_v1 = vld [vmem:[%s18476_s1 + $0x4a0] sm:$0xf0]  ;;  %v8955_v48 = vld [vmem:[%s18476_s1 + $0x5a8] sm:$0xf0] }
  0x22   : > { %v9073_v61 = vld [vmem:[%s18476_s1 + $0x680] sm:$0xf]  ;;  %v11394_v2 = vld [vmem:[%s18476_s1 + $0x684] sm:$0xf]  ;;  %v8818_v4 = vor.u32 %v11334_v60, %v8817_v59  ;;  %1260 = vmatpush.bf16.msra.mxu1 %v9106_v57  ;;  %v8822_v7 = vor.u32 %v11330_v0, %v8819_v1  ;;  %1358 = vmatpush.bf16.msra.mxu3 %v9110_v62  ;;  %v11427_v50 = vld [vmem:[%s18476_s1 + $0x78c] sm:$0xf]  ;;  %v8958_v54 = vor.u32 %v11363_v47, %v8955_v48 }
  0x23   : > { %v11398_v63 = vld [vmem:[%s18476_s1 + $0x69c] sm:$0xf0]  ;;  %v9075_v3 = vld [vmem:[%s18476_s1 + $0x6a0] sm:$0xf0]  ;;  %v9211_v51 = vld [vmem:[%s18476_s1 + $0x7a8] sm:$0xf0] }
  0x24   : > { %v8785_v5 = vld [vmem:[%s18476_s1 + $0x440] sm:$0xf]  ;;  %v9074_v6 = vor.u32 %v11398_v63, %v9073_v61  ;;  %v9078_v11 = vor.u32 %v11394_v2, %v9075_v3  ;;  %v11322_v12 = vld [vmem:[%s18476_s1 + $0x444] sm:$0xf]  ;;  %1212 = vmatpush.bf16.msra.mxu0 %v8818_v4  ;;  %1310 = vmatpush.bf16.msra.mxu2 %v8822_v7  ;;  %v8953_v55 = vld [vmem:[%s18476_s1 + $0x588] sm:$0xf]  ;;  %v9214_v57 = vor.u32 %v11427_v50, %v9211_v51 }
  0x25   : > { %v11326_v8 = vld [vmem:[%s18476_s1 + $0x45c] sm:$0xf0]  ;;  %v8787_v13 = vld [vmem:[%s18476_s1 + $0x460] sm:$0xf0]  ;;  %v11367_v56 = vld [vmem:[%s18476_s1 + $0x5a4] sm:$0xf0] }
  0x26   : > { %v9041_v9 = vld [vmem:[%s18476_s1 + $0x640] sm:$0xf]  ;;  %v11386_v14 = vld [vmem:[%s18476_s1 + $0x644] sm:$0xf]  ;;  %v8786_v17 = vor.u32 %v11326_v8, %v8785_v5  ;;  %1261 = vmatpush.bf16.msra.mxu1 %v9074_v6  ;;  %v8790_v21 = vor.u32 %v11322_v12, %v8787_v13  ;;  %1359 = vmatpush.bf16.msra.mxu3 %v9078_v11  ;;  %v9209_v58 = vld [vmem:[%s18476_s1 + $0x788] sm:$0xf]  ;;  %v8954_v60 = vor.u32 %v11367_v56, %v8953_v55 }
  0x27   : > { %v11390_v10 = vld [vmem:[%s18476_s1 + $0x65c] sm:$0xf0]  ;;  %v9043_v15 = vld [vmem:[%s18476_s1 + $0x660] sm:$0xf0]  ;;  %v11431_v59 = vld [vmem:[%s18476_s1 + $0x7a4] sm:$0xf0] }
  0x28   : > { %v8753_v16 = vld [vmem:[%s18476_s1 + $0x400] sm:$0xf]  ;;  %v9042_v20 = vor.u32 %v11390_v10, %v9041_v9  ;;  %v11314_v23 = vld [vmem:[%s18476_s1 + $0x404] sm:$0xf]  ;;  %v9046_v25 = vor.u32 %v11386_v14, %v9043_v15  ;;  %1213 = vmatpush.bf16.msra.mxu0 %v8786_v17  ;;  %1311 = vmatpush.bf16.msra.mxu2 %v8790_v21  ;;  %v11355_v61 = vld [vmem:[%s18476_s1 + $0x54c] sm:$0xf]  ;;  %v9210_v0 = vor.u32 %v11431_v59, %v9209_v58 }
  0x29   : > { %v11318_v18 = vld [vmem:[%s18476_s1 + $0x41c] sm:$0xf0]  ;;  %v8755_v24 = vld [vmem:[%s18476_s1 + $0x420] sm:$0xf0]  ;;  %v8923_v62 = vld [vmem:[%s18476_s1 + $0x568] sm:$0xf0] }
  0x2a   : > { %v9009_v19 = vld [vmem:[%s18476_s1 + $0x600] sm:$0xf]  ;;  %v11378_v26 = vld [vmem:[%s18476_s1 + $0x604] sm:$0xf]  ;;  %v8754_v31 = vor.u32 %v11318_v18, %v8753_v16  ;;  %1262 = vmatpush.bf16.msra.mxu1 %v9042_v20  ;;  %v8758_v36 = vor.u32 %v11314_v23, %v8755_v24  ;;  %1360 = vmatpush.bf16.msra.mxu3 %v9046_v25  ;;  %v11419_v63 = vld [vmem:[%s18476_s1 + $0x74c] sm:$0xf]  ;;  %v8926_v1 = vor.u32 %v11355_v61, %v8923_v62 }
  0x2b   : > { %v11382_v22 = vld [vmem:[%s18476_s1 + $0x61c] sm:$0xf0]  ;;  %v9011_v27 = vld [vmem:[%s18476_s1 + $0x620] sm:$0xf0]  ;;  %v9179_v2 = vld [vmem:[%s18476_s1 + $0x768] sm:$0xf0] }
  0x2c   : > { %v8689_v32 = vld [vmem:[%s12211_s5 + $0x80] sm:$0xf]  ;;  %v9010_v35 = vor.u32 %v11382_v22, %v9009_v19  ;;  %v11298_v37 = vld [vmem:[%s12211_s5 + $0x84] sm:$0xf]  ;;  %v9014_v39 = vor.u32 %v11378_v26, %v9011_v27  ;;  %1214 = vmatpush.bf16.msra.mxu0 %v8754_v31  ;;  %1312 = vmatpush.bf16.msra.mxu2 %v8758_v36  ;;  %v8921_v3 = vld [vmem:[%s18476_s1 + $0x548] sm:$0xf]  ;;  %v9182_v5 = vor.u32 %v11419_v63, %v9179_v2 }
  0x2d   : > { %v12238_v44 = vor.u32 %v11299_v33, %v8689_v32  ;;  %v12249_v49 = vor.u32 %v11298_v37, %v8691_v38  ;;  %v11359_v4 = vld [vmem:[%s18476_s1 + $0x564] sm:$0xf0]  ;;  %v8697_v10 = vld [vmem:[%s12211_s5 + $0x90] sm:$0xf]  ;;  %v11301_v11 = vld [vmem:[%s12211_s5 + $0x94] sm:$0xf0] }
  0x2e   : > { %1263 = vmatpush.bf16.msra.mxu1 %v9010_v35  ;;  %1361 = vmatpush.bf16.msra.mxu3 %v9014_v39  ;;  %v9177_v6 = vld [vmem:[%s18476_s1 + $0x748] sm:$0xf]  ;;  %v8922_v8 = vor.u32 %v11359_v4, %v8921_v3  ;;  %v11300_v12 = vld [vmem:[%s12211_s5 + $0x94] sm:$0xf]  ;;  %v8699_v13 = vld [vmem:[%s12211_s5 + $0x98] sm:$0xf0]  ;;  %v12301_v14 = vor.u32 %v11301_v11, %v8697_v10 }
  0x2f   : > { %1215 = vmatmul.bf16.vlgmr.msra.gmra.mxu0 %v12238_v44  ;;  %1313 = vmatmul.bf16.vlgmr.msra.gmra.mxu2 %v12238_v44  ;;  %v11423_v7 = vld [vmem:[%s18476_s1 + $0x764] sm:$0xf0]  ;;  %v12303_v15 = vor.u32 %v11300_v12, %v8699_v13  ;;  %v11347_v16 = vld [vmem:[%s18476_s1 + $0x50c] sm:$0xf]  ;;  %v8705_v28 = vld [vmem:[%s12211_s5 + $0xa0] sm:$0xf] }
  0x30   : > { %1501 = vmatpush.bf16.msrb.mxu2 %v8990_v40  ;;  %1403 = vmatpush.bf16.msrb.mxu0 %v8986_v52  ;;  %v9178_v9 = vor.u32 %v11423_v7, %v9177_v6  ;;  %v8891_v17 = vld [vmem:[%s18476_s1 + $0x528] sm:$0xf0]  ;;  %v8889_v21 = vld [vmem:[%s18476_s1 + $0x508] sm:$0xf]  ;;  %v11302_v30 = vld [vmem:[%s12211_s5 + $0xa4] sm:$0xf] }
  0x31   : > { %1264 = vmatmul.bf16.vlgmr.msra.gmra.mxu1 %v12249_v49  ;;  %1362 = vmatmul.bf16.vlgmr.msra.gmra.mxu3 %v12249_v49  ;;  %v11411_v18 = vld [vmem:[%s18476_s1 + $0x70c] sm:$0xf]  ;;  %v8894_v19 = vor.u32 %v11347_v16, %v8891_v17  ;;  %v11351_v22 = vld [vmem:[%s18476_s1 + $0x524] sm:$0xf0]  ;;  %v8713_v47 = vld [vmem:[%s12211_s5 + $0xb0] sm:$0xf] }
  0x32   : > { %1550 = vmatpush.bf16.msrb.mxu3 %v9246_v45  ;;  %1452 = vmatpush.bf16.msrb.mxu1 %v9242_v53  ;;  %v9147_v20 = vld [vmem:[%s18476_s1 + $0x728] sm:$0xf0]  ;;  %v8890_v24 = vor.u32 %v11351_v22, %v8889_v21  ;;  %v9145_v25 = vld [vmem:[%s18476_s1 + $0x708] sm:$0xf]  ;;  %v11305_v48 = vld [vmem:[%s12211_s5 + $0xb4] sm:$0xf0] }
  0x33   : > { %v9150_v23 = vor.u32 %v11411_v18, %v9147_v20  ;;  %v11415_v26 = vld [vmem:[%s18476_s1 + $0x724] sm:$0xf0]  ;;  %v8707_v31 = vld [vmem:[%s12211_s5 + $0xa8] sm:$0xf0]  ;;  %v11304_v50 = vld [vmem:[%s12211_s5 + $0xb4] sm:$0xf]  ;;  %v12373_v52 = vor.u32 %v11305_v48, %v8713_v47 }
  0x34   : > { %1502 = vmatpush.bf16.msrb.mxu2 %v8958_v54  ;;  %1404 = vmatpush.bf16.msrb.mxu0 %v8954_v60  ;;  %v9146_v27 = vor.u32 %v11415_v26, %v9145_v25  ;;  %v11303_v29 = vld [vmem:[%s12211_s5 + $0xa4] sm:$0xf0]  ;;  %v12339_v33 = vor.u32 %v11302_v30, %v8707_v31  ;;  %v11339_v34 = vld [vmem:[%s18476_s1 + $0x4cc] sm:$0xf]  ;;  %v8715_v51 = vld [vmem:[%s12211_s5 + $0xb8] sm:$0xf0] }
  0x35   : > { %v12337_v32 = vor.u32 %v11303_v29, %v8705_v28  ;;  %v8859_v35 = vld [vmem:[%s18476_s1 + $0x4e8] sm:$0xf0]  ;;  %v8857_v39 = vld [vmem:[%s18476_s1 + $0x4c8] sm:$0xf]  ;;  %v12375_v53 = vor.u32 %v11304_v50, %v8715_v51  ;;  %v8721_v2 = vld [vmem:[%s12211_s5 + $0xc0] sm:$0xf] }
  0x36   : > { %1551 = vmatpush.bf16.msrb.mxu3 %v9214_v57  ;;  %1453 = vmatpush.bf16.msrb.mxu1 %v9210_v0  ;;  %v11403_v36 = vld [vmem:[%s18476_s1 + $0x6cc] sm:$0xf]  ;;  %v8862_v37 = vor.u32 %v11339_v34, %v8859_v35  ;;  %v11343_v40 = vld [vmem:[%s18476_s1 + $0x4e4] sm:$0xf0]  ;;  %v11306_v4 = vld [vmem:[%s12211_s5 + $0xc4] sm:$0xf] }
  0x37   : > { %v9115_v38 = vld [vmem:[%s18476_s1 + $0x6e8] sm:$0xf0]  ;;  %v8858_v42 = vor.u32 %v11343_v40, %v8857_v39  ;;  %v9113_v43 = vld [vmem:[%s18476_s1 + $0x6c8] sm:$0xf]  ;;  %v8729_v22 = vld [vmem:[%s12211_s5 + $0xd0] sm:$0xf] }
  0x38   : > { %1503 = vmatpush.bf16.msrb.mxu2 %v8926_v1  ;;  %1405 = vmatpush.bf16.msrb.mxu0 %v8922_v8  ;;  %v9118_v41 = vor.u32 %v11403_v36, %v9115_v38  ;;  %v11407_v45 = vld [vmem:[%s18476_s1 + $0x6e4] sm:$0xf0]  ;;  %v11331_v54 = vld [vmem:[%s18476_s1 + $0x48c] sm:$0xf]  ;;  %v8731_v25 = vld [vmem:[%s12211_s5 + $0xd8] sm:$0xf0] }
  0x39   : > { %v9114_v46 = vor.u32 %v11407_v45, %v9113_v43  ;;  %v8827_v55 = vld [vmem:[%s18476_s1 + $0x4a8] sm:$0xf0]  ;;  %v8825_v59 = vld [vmem:[%s18476_s1 + $0x488] sm:$0xf]  ;;  %v11310_v45 = vld [vmem:[%s12211_s5 + $0xe4] sm:$0xf] }
  0x3a   : > { %1552 = vmatpush.bf16.msrb.mxu3 %v9182_v5  ;;  %1454 = vmatpush.bf16.msrb.mxu1 %v9178_v9  ;;  %v11395_v56 = vld [vmem:[%s18476_s1 + $0x68c] sm:$0xf]  ;;  %v8830_v57 = vor.u32 %v11331_v54, %v8827_v55  ;;  %v11335_v60 = vld [vmem:[%s18476_s1 + $0x4a4] sm:$0xf0]  ;;  %v11372_v50 = vld [vmem:[%s18476_s1 + $0x5d4] sm:$0xf] }
  0x3b   : > { %v9083_v58 = vld [vmem:[%s18476_s1 + $0x6a8] sm:$0xf0]  ;;  %v8826_v62 = vor.u32 %v11335_v60, %v8825_v59  ;;  %v9081_v63 = vld [vmem:[%s18476_s1 + $0x688] sm:$0xf]  ;;  %v8995_v51 = vld [vmem:[%s18476_s1 + $0x5f0] sm:$0xf0] }
  0x3c   : > { %1504 = vmatpush.bf16.msrb.mxu2 %v8894_v19  ;;  %1406 = vmatpush.bf16.msrb.mxu0 %v8890_v24  ;;  %v9086_v61 = vor.u32 %v11395_v56, %v9083_v58  ;;  %v11399_v0 = vld [vmem:[%s18476_s1 + $0x6a4] sm:$0xf0]  ;;  %v8723_v5 = vld [vmem:[%s12211_s5 + $0xc8] sm:$0xf0]  ;;  %v11308_v24 = vld [vmem:[%s12211_s5 + $0xd4] sm:$0xf]  ;;  %v8998_v55 = vor.u32 %v11372_v50, %v8995_v51 }
  0x3d   : > { %v9082_v1 = vor.u32 %v11399_v0, %v9081_v63  ;;  %v11307_v3 = vld [vmem:[%s12211_s5 + $0xc4] sm:$0xf0]  ;;  %v12411_v7 = vor.u32 %v11306_v4, %v8723_v5  ;;  %v11323_v8 = vld [vmem:[%s18476_s1 + $0x44c] sm:$0xf]  ;;  %v11436_v54 = vld [vmem:[%s18476_s1 + $0x7d4] sm:$0xf] }
  0x3e   : > { %1553 = vmatpush.bf16.msrb.mxu3 %v9150_v23  ;;  %1455 = vmatpush.bf16.msrb.mxu1 %v9146_v27  ;;  %v12409_v6 = vor.u32 %v11307_v3, %v8721_v2  ;;  %v8795_v9 = vld [vmem:[%s18476_s1 + $0x468] sm:$0xf0]  ;;  %v8793_v13 = vld [vmem:[%s18476_s1 + $0x448] sm:$0xf]  ;;  %v11309_v23 = vld [vmem:[%s12211_s5 + $0xd4] sm:$0xf0]  ;;  %v12447_v27 = vor.u32 %v11308_v24, %v8731_v25 }
  0x3f   : > { %1220 = vmatmul.bf16.gmra.mxu0 %v12301_v14  ;;  %1318 = vmatmul.bf16.gmra.mxu2 %v12301_v14  ;;  %v11387_v10 = vld [vmem:[%s18476_s1 + $0x64c] sm:$0xf]  ;;  %v8798_v11 = vor.u32 %v11323_v8, %v8795_v9  ;;  %v11327_v16 = vld [vmem:[%s18476_s1 + $0x464] sm:$0xf0]  ;;  %v12445_v26 = vor.u32 %v11309_v23, %v8729_v22  ;;  %v9251_v56 = vld [vmem:[%s18476_s1 + $0x7f0] sm:$0xf0] }
  0x40   : > { %1505 = vmatpush.bf16.msrb.mxu2 %v8862_v37  ;;  %1407 = vmatpush.bf16.msrb.mxu0 %v8858_v42  ;;  %v9051_v12 = vld [vmem:[%s18476_s1 + $0x668] sm:$0xf0]  ;;  %v8794_v18 = vor.u32 %v11327_v16, %v8793_v13  ;;  %v9049_v19 = vld [vmem:[%s18476_s1 + $0x648] sm:$0xf]  ;;  %v8737_v42 = vld [vmem:[%s12211_s5 + $0xe0] sm:$0xf] }
  0x41   : > { %1269 = vmatmul.bf16.gmra.mxu1 %v12303_v15  ;;  %1367 = vmatmul.bf16.gmra.mxu3 %v12303_v15  ;;  %v9054_v17 = vor.u32 %v11387_v10, %v9051_v12  ;;  %v11391_v20 = vld [vmem:[%s18476_s1 + $0x664] sm:$0xf0]  ;;  %v11315_v28 = vld [vmem:[%s18476_s1 + $0x40c] sm:$0xf]  ;;  %v8993_v58 = vld [vmem:[%s18476_s1 + $0x5d0] sm:$0xf] }
  0x42   : > { %1554 = vmatpush.bf16.msrb.mxu3 %v9118_v41  ;;  %1456 = vmatpush.bf16.msrb.mxu1 %v9114_v46  ;;  %v9050_v21 = vor.u32 %v11391_v20, %v9049_v19  ;;  %v8763_v29 = vld [vmem:[%s18476_s1 + $0x428] sm:$0xf0]  ;;  %v8761_v35 = vld [vmem:[%s18476_s1 + $0x408] sm:$0xf]  ;;  %v11376_v59 = vld [vmem:[%s18476_s1 + $0x5ec] sm:$0xf0] }
  0x43   : > { %v11379_v30 = vld [vmem:[%s18476_s1 + $0x60c] sm:$0xf]  ;;  %v8766_v31 = vor.u32 %v11315_v28, %v8763_v29  ;;  %v11319_v36 = vld [vmem:[%s18476_s1 + $0x424] sm:$0xf0]  ;;  %v9249_v60 = vld [vmem:[%s18476_s1 + $0x7d0] sm:$0xf] }
  0x44   : > { %1506 = vmatpush.bf16.msrb.mxu2 %v8830_v57  ;;  %1408 = vmatpush.bf16.msrb.mxu0 %v8826_v62  ;;  %v9019_v34 = vld [vmem:[%s18476_s1 + $0x628] sm:$0xf0]  ;;  %v8762_v38 = vor.u32 %v11319_v36, %v8761_v35  ;;  %v9017_v39 = vld [vmem:[%s18476_s1 + $0x608] sm:$0xf]  ;;  %v9254_v57 = vor.u32 %v11436_v54, %v9251_v56  ;;  %v11440_v62 = vld [vmem:[%s18476_s1 + $0x7ec] sm:$0xf0] }
  0x45   : > { %v9022_v37 = vor.u32 %v11379_v30, %v9019_v34  ;;  %v11383_v40 = vld [vmem:[%s18476_s1 + $0x624] sm:$0xf0]  ;;  %v8739_v46 = vld [vmem:[%s12211_s5 + $0xe8] sm:$0xf0]  ;;  %v9250_v63 = vor.u32 %v11440_v62, %v9249_v60  ;;  %v8745_v0 = vld [vmem:[%s12211_s5 + $0xf0] sm:$0xf] }
  0x46   : > { %1555 = vmatpush.bf16.msrb.mxu3 %v9086_v61  ;;  %1457 = vmatpush.bf16.msrb.mxu1 %v9082_v1  ;;  %v9018_v41 = vor.u32 %v11383_v40, %v9017_v39  ;;  %v11311_v43 = vld [vmem:[%s12211_s5 + $0xe4] sm:$0xf0]  ;;  %v12483_v48 = vor.u32 %v11310_v45, %v8739_v46  ;;  %v8994_v61 = vor.u32 %v11376_v59, %v8993_v58  ;;  %v11313_v1 = vld [vmem:[%s12211_s5 + $0xf4] sm:$0xf0]  ;;  %v11312_v2 = vld [vmem:[%s12211_s5 + $0xf4] sm:$0xf] }
  0x47   : > { %v12481_v47 = vor.u32 %v11311_v43, %v8737_v42  ;;  %v8747_v3 = vld [vmem:[%s12211_s5 + $0xf8] sm:$0xf0]  ;;  %v12517_v4 = vor.u32 %v11313_v1, %v8745_v0  ;;  %v11364_v8 = vld [vmem:[%s18476_s1 + $0x594] sm:$0xf]  ;;  %v8961_v16 = vld [vmem:[%s18476_s1 + $0x590] sm:$0xf] }
  0x48   : > { %1507 = vmatpush.bf16.msrb.mxu2 %v8798_v11  ;;  %1409 = vmatpush.bf16.msrb.mxu0 %v8794_v18  ;;  %v12519_v5 = vor.u32 %v11312_v2, %v8747_v3  ;;  %v8963_v9 = vld [vmem:[%s18476_s1 + $0x5b0] sm:$0xf0]  ;;  %v9217_v18 = vld [vmem:[%s18476_s1 + $0x790] sm:$0xf] }
  0x49   : > { %v11428_v10 = vld [vmem:[%s18476_s1 + $0x794] sm:$0xf]  ;;  %v8966_v11 = vor.u32 %v11364_v8, %v8963_v9  ;;  %v11432_v20 = vld [vmem:[%s18476_s1 + $0x7ac] sm:$0xf0] }
  0x4a   : > { %1556 = vmatpush.bf16.msrb.mxu3 %v9054_v17  ;;  %1458 = vmatpush.bf16.msrb.mxu1 %v9050_v21  ;;  %v9219_v12 = vld [vmem:[%s18476_s1 + $0x7b0] sm:$0xf0]  ;;  %v11368_v17 = vld [vmem:[%s18476_s1 + $0x5ac] sm:$0xf0]  ;;  %v9218_v21 = vor.u32 %v11432_v20, %v9217_v18 }
  0x4b   : > { %v9222_v13 = vor.u32 %v11428_v10, %v9219_v12  ;;  %v8962_v19 = vor.u32 %v11368_v17, %v8961_v16  ;;  %v11356_v25 = vld [vmem:[%s18476_s1 + $0x554] sm:$0xf]  ;;  %v8929_v40 = vld [vmem:[%s18476_s1 + $0x550] sm:$0xf] }
  0x4c   : > { %1508 = vmatpush.bf16.msrb.mxu2 %v8766_v31  ;;  %1410 = vmatpush.bf16.msrb.mxu0 %v8762_v38  ;;  %v8931_v28 = vld [vmem:[%s18476_s1 + $0x570] sm:$0xf0]  ;;  %v9185_v42 = vld [vmem:[%s18476_s1 + $0x750] sm:$0xf] }
  0x4d   : > { %v11420_v29 = vld [vmem:[%s18476_s1 + $0x754] sm:$0xf]  ;;  %v8934_v30 = vor.u32 %v11356_v25, %v8931_v28  ;;  %v11424_v46 = vld [vmem:[%s18476_s1 + $0x76c] sm:$0xf0] }
  0x4e   : > { %1557 = vmatpush.bf16.msrb.mxu3 %v9022_v37  ;;  %1459 = vmatpush.bf16.msrb.mxu1 %v9018_v41  ;;  %v9187_v31 = vld [vmem:[%s18476_s1 + $0x770] sm:$0xf0]  ;;  %v11360_v41 = vld [vmem:[%s18476_s1 + $0x56c] sm:$0xf0]  ;;  %v9186_v50 = vor.u32 %v11424_v46, %v9185_v42 }
  0x4f   : > { %1225 = vmatmul.bf16.gmra.mxu0 %v12337_v32  ;;  %1323 = vmatmul.bf16.gmra.mxu2 %v12337_v32  ;;  %v9190_v35 = vor.u32 %v11420_v29, %v9187_v31  ;;  %v8930_v45 = vor.u32 %v11360_v41, %v8929_v40  ;;  %v11348_v59 = vld [vmem:[%s18476_s1 + $0x514] sm:$0xf]  ;;  %v8897_v10 = vld [vmem:[%s18476_s1 + $0x510] sm:$0xf] }
  0x50   : > { %1697 = vmatpush.bf16.msra.mxu2 %v8998_v55  ;;  %1599 = vmatpush.bf16.msra.mxu0 %v8994_v61  ;;  %v8899_v60 = vld [vmem:[%s18476_s1 + $0x530] sm:$0xf0]  ;;  %v9153_v12 = vld [vmem:[%s18476_s1 + $0x710] sm:$0xf] }
  0x51   : > { %1274 = vmatmul.bf16.gmra.mxu1 %v12339_v33  ;;  %1372 = vmatmul.bf16.gmra.mxu3 %v12339_v33  ;;  %v11412_v61 = vld [vmem:[%s18476_s1 + $0x714] sm:$0xf]  ;;  %v8902_v62 = vor.u32 %v11348_v59, %v8899_v60  ;;  %v11416_v17 = vld [vmem:[%s18476_s1 + $0x72c] sm:$0xf0] }
  0x52   : > { %1746 = vmatpush.bf16.msra.mxu3 %v9254_v57  ;;  %1648 = vmatpush.bf16.msra.mxu1 %v9250_v63  ;;  %v9155_v63 = vld [vmem:[%s18476_s1 + $0x730] sm:$0xf0]  ;;  %v9154_v18 = vor.u32 %v11416_v17, %v9153_v12  ;;  %v8865_v42 = vld [vmem:[%s18476_s1 + $0x4d0] sm:$0xf] }
  0x53   : > { %v9158_v1 = vor.u32 %v11412_v61, %v9155_v63  ;;  %v11340_v28 = vld [vmem:[%s18476_s1 + $0x4d4] sm:$0xf]  ;;  %v9121_v46 = vld [vmem:[%s18476_s1 + $0x6d0] sm:$0xf] }
  0x54   : > { %1698 = vmatpush.bf16.msra.mxu2 %v8966_v11  ;;  %1600 = vmatpush.bf16.msra.mxu0 %v8962_v19  ;;  %v11352_v11 = vld [vmem:[%s18476_s1 + $0x52c] sm:$0xf0]  ;;  %v8867_v29 = vld [vmem:[%s18476_s1 + $0x4f0] sm:$0xf0] }
  0x55   : > { %v8898_v16 = vor.u32 %v11352_v11, %v8897_v10  ;;  %v8870_v31 = vor.u32 %v11340_v28, %v8867_v29  ;;  %v11400_v29 = vld [vmem:[%s18476_s1 + $0x6ac] sm:$0xf0] }
  0x56   : > { %1747 = vmatpush.bf16.msra.mxu3 %v9222_v13  ;;  %1649 = vmatpush.bf16.msra.mxu1 %v9218_v21 }
  0x58   : > { %1699 = vmatpush.bf16.msra.mxu2 %v8934_v30  ;;  %1601 = vmatpush.bf16.msra.mxu0 %v8930_v45  ;;  %v11404_v30 = vld [vmem:[%s18476_s1 + $0x6d4] sm:$0xf]  ;;  %v11344_v45 = vld [vmem:[%s18476_s1 + $0x4ec] sm:$0xf0] }
  0x5a   : > { %1748 = vmatpush.bf16.msra.mxu3 %v9190_v35  ;;  %1650 = vmatpush.bf16.msra.mxu1 %v9186_v50 }
  0x5c   : > { %1700 = vmatpush.bf16.msra.mxu2 %v8902_v62  ;;  %1602 = vmatpush.bf16.msra.mxu0 %v8898_v16 }
  0x5e   : > { %1749 = vmatpush.bf16.msra.mxu3 %v9158_v1  ;;  %1651 = vmatpush.bf16.msra.mxu1 %v9154_v18  ;;  %v8835_v1 = vld [vmem:[%s18476_s1 + $0x4b0] sm:$0xf0] }
  0x5f   : > { %1230 = vmatmul.bf16.gmra.mxu0 %v12373_v52  ;;  %1328 = vmatmul.bf16.gmra.mxu2 %v12373_v52 }
  0x60   : > { %1701 = vmatpush.bf16.msra.mxu2 %v8870_v31 }
  0x61   : > { %1279 = vmatmul.bf16.gmra.mxu1 %v12375_v53  ;;  %1377 = vmatmul.bf16.gmra.mxu3 %v12375_v53 }
  0x6f   : > { %1235 = vmatmul.bf16.gmra.mxu0 %v12409_v6  ;;  %1333 = vmatmul.bf16.gmra.mxu2 %v12409_v6 }
  0x71   : > { %1284 = vmatmul.bf16.gmra.mxu1 %v12411_v7  ;;  %1382 = vmatmul.bf16.gmra.mxu3 %v12411_v7 }
  0x7f   : > { %1240 = vmatmul.bf16.gmra.mxu0 %v12445_v26  ;;  %1338 = vmatmul.bf16.gmra.mxu2 %v12445_v26 }
  0x81   : > { %1289 = vmatmul.bf16.gmra.mxu1 %v12447_v27  ;;  %1387 = vmatmul.bf16.gmra.mxu3 %v12447_v27 }
  0x8f   : > { %1245 = vmatmul.bf16.gmra.mxu0 %v12481_v47  ;;  %1343 = vmatmul.bf16.gmra.mxu2 %v12481_v47 }
  0x91   : > { %1294 = vmatmul.bf16.gmra.mxu1 %v12483_v48  ;;  %1392 = vmatmul.bf16.gmra.mxu3 %v12483_v48 }
  0x9f   : > { %1250 = vmatmul.bf16.gmra.mxu0 %v12517_v4  ;;  %1348 = vmatmul.bf16.gmra.mxu2 %v12517_v4 }
  0xa1   : > { %1299 = vmatmul.bf16.gmra.mxu1 %v12519_v5  ;;  %1397 = vmatmul.bf16.gmra.mxu3 %v12519_v5 }
  0xac   : > { %v1216_v22 = vpop.f32.mrf.mxu0 }
  0xae   : > { %v1265_v23 = vpop.f32.mrf.mxu1 }
  0xaf   : > { %v12549_v24 = vadd.f32 %v1265_v23, %v1216_v22  ;;  %1411 = vmatmul.bf16.vlgmr.msrb.gmra.mxu0 %v12238_v44  ;;  %1509 = vmatmul.bf16.vlgmr.msrb.gmra.mxu2 %v12238_v44 }
  0xb1   : > { %1460 = vmatmul.bf16.vlgmr.msrb.gmra.mxu1 %v12249_v49  ;;  %1558 = vmatmul.bf16.vlgmr.msrb.gmra.mxu3 %v12249_v49 }
  0xb2   : > { %v1314_v34 = vpop.f32.mrf.mxu2 }
  0xb4   : > { %v1363_v36 = vpop.f32.mrf.mxu3  ;;  %v1218_v37 = vpop.f32.mrf.mxu0 }
  0xb5   : > { %v12567_v38 = vadd.f32 %v1363_v36, %v1314_v34  ;;  %v9123_v34 = vld [vmem:[%s18476_s1 + $0x6f0] sm:$0xf0] }
  0xb6   : > { %v1267_v39 = vpop.f32.mrf.mxu1  ;;  %v9126_v36 = vor.u32 %v11404_v30, %v9123_v34 }
  0xb7   : > { %v12578_v43 = vadd.f32 %v1267_v39, %v1218_v37 }
  0xb8   : > { %1750 = vmatpush.bf16.msra.mxu3 %v9126_v36 }
  0xba   : > { %v1316_v51 = vpop.f32.mrf.mxu2 }
  0xbc   : > { %v1365_v54 = vpop.f32.mrf.mxu3  ;;  %v1221_v55 = vpop.f32.mrf.mxu0 }
  0xbd   : > { %v12583_v56 = vadd.f32 %v1365_v54, %v1316_v51  ;;  %v8866_v51 = vor.u32 %v11344_v45, %v8865_v42  ;;  %v11408_v54 = vld [vmem:[%s18476_s1 + $0x6ec] sm:$0xf0]  ;;  %v8803_v42 = vld [vmem:[%s18476_s1 + $0x470] sm:$0xf0] }
  0xbe   : > { %v1270_v57 = vpop.f32.mrf.mxu1  ;;  %v11388_v45 = vld [vmem:[%s18476_s1 + $0x654] sm:$0xf] }
  0xbf   : > { %v12585_v58 = vadd.f32 %v1270_v57, %v1221_v55  ;;  %1416 = vmatmul.bf16.gmra.mxu0 %v12301_v14  ;;  %1514 = vmatmul.bf16.gmra.mxu2 %v12301_v14  ;;  %v9122_v55 = vor.u32 %v11408_v54, %v9121_v46 }
  0xc0   : > { %1603 = vmatpush.bf16.msra.mxu0 %v8866_v51  ;;  %v9059_v51 = vld [vmem:[%s18476_s1 + $0x670] sm:$0xf0] }
  0xc1   : > { %1465 = vmatmul.bf16.gmra.mxu1 %v12303_v15  ;;  %1563 = vmatmul.bf16.gmra.mxu3 %v12303_v15 }
  0xc2   : > { %v1319_v0 = vpop.f32.mrf.mxu2  ;;  %1652 = vmatpush.bf16.msra.mxu1 %v9122_v55  ;;  %v9062_v55 = vor.u32 %v11388_v45, %v9059_v51  ;;  %v8769_v51 = vld [vmem:[%s18476_s1 + $0x410] sm:$0xf] }
  0xc4   : > { %v1368_v2 = vpop.f32.mrf.mxu3  ;;  %v1223_v3 = vpop.f32.mrf.mxu0 }
  0xc5   : > { %v12603_v8 = vadd.f32 %v1368_v2, %v1319_v0  ;;  %v11332_v0 = vld [vmem:[%s18476_s1 + $0x494] sm:$0xf] }
  0xc6   : > { %v1272_v9 = vpop.f32.mrf.mxu1  ;;  %v11396_v2 = vld [vmem:[%s18476_s1 + $0x694] sm:$0xf] }
  0xc7   : > { %v12614_v13 = vadd.f32 %v1272_v9, %v1223_v3  ;;  %v8838_v3 = vor.u32 %v11332_v0, %v8835_v1  ;;  %v9091_v9 = vld [vmem:[%s18476_s1 + $0x6b0] sm:$0xf0]  ;;  %v8801_v0 = vld [vmem:[%s18476_s1 + $0x450] sm:$0xf] }
  0xc8   : > { %v9094_v11 = vor.u32 %v11396_v2, %v9091_v9  ;;  %v11328_v1 = vld [vmem:[%s18476_s1 + $0x46c] sm:$0xf0] }
  0xc9   : > { %1702 = vmatpush.bf16.msra.mxu2 %v8838_v3  ;;  %v9057_v2 = vld [vmem:[%s18476_s1 + $0x650] sm:$0xf]  ;;  %v8802_v9 = vor.u32 %v11328_v1, %v8801_v0 }
  0xca   : > { %v1321_v19 = vpop.f32.mrf.mxu2  ;;  %1751 = vmatpush.bf16.msra.mxu3 %v9094_v11 }
  0xcc   : > { %v1370_v20 = vpop.f32.mrf.mxu3  ;;  %v1226_v21 = vpop.f32.mrf.mxu0 }
  0xcd   : > { %v12619_v22 = vadd.f32 %v1370_v20, %v1321_v19  ;;  %v8833_v19 = vld [vmem:[%s18476_s1 + $0x490] sm:$0xf] }
  0xce   : > { %v1275_v23 = vpop.f32.mrf.mxu1  ;;  %v11336_v20 = vld [vmem:[%s18476_s1 + $0x4ac] sm:$0xf0]  ;;  %1752 = vmatpush.bf16.msra.mxu3 %v9062_v55 }
  0xcf   : > { %v12621_v25 = vadd.f32 %v1275_v23, %v1226_v21  ;;  %1421 = vmatmul.bf16.gmra.mxu0 %v12337_v32  ;;  %1519 = vmatmul.bf16.gmra.mxu2 %v12337_v32  ;;  %v9089_v21 = vld [vmem:[%s18476_s1 + $0x690] sm:$0xf]  ;;  %v8834_v28 = vor.u32 %v11336_v20, %v8833_v19 }
  0xd0   : > { %v9090_v30 = vor.u32 %v11400_v29, %v9089_v21  ;;  %v8771_v29 = vld [vmem:[%s18476_s1 + $0x430] sm:$0xf0]  ;;  %v9025_v55 = vld [vmem:[%s18476_s1 + $0x610] sm:$0xf] }
  0xd1   : > { %1470 = vmatmul.bf16.gmra.mxu1 %v12339_v33  ;;  %1568 = vmatmul.bf16.gmra.mxu3 %v12339_v33 }
  0xd2   : > { %v1324_v35 = vpop.f32.mrf.mxu2  ;;  %1604 = vmatpush.bf16.msra.mxu0 %v8834_v28  ;;  %1653 = vmatpush.bf16.msra.mxu1 %v9090_v30  ;;  %v11316_v28 = vld [vmem:[%s18476_s1 + $0x414] sm:$0xf] }
  0xd3   : > { %v11380_v30 = vld [vmem:[%s18476_s1 + $0x614] sm:$0xf] }
  0xd4   : > { %v1373_v37 = vpop.f32.mrf.mxu3  ;;  %v1228_v39 = vpop.f32.mrf.mxu0 }
  0xd5   : > { %v12639_v40 = vadd.f32 %v1373_v37, %v1324_v35 }
  0xd6   : > { %v1277_v41 = vpop.f32.mrf.mxu1  ;;  %1605 = vmatpush.bf16.msra.mxu0 %v8802_v9 }
  0xd7   : > { %v12650_v50 = vadd.f32 %v1277_v41, %v1228_v39  ;;  %v11324_v41 = vld [vmem:[%s18476_s1 + $0x454] sm:$0xf] }
  0xd8   : > { %v8806_v46 = vor.u32 %v11324_v41, %v8803_v42 }
  0xda   : > { %v1326_v57 = vpop.f32.mrf.mxu2  ;;  %1703 = vmatpush.bf16.msra.mxu2 %v8806_v46 }
  0xdc   : > { %v1375_v59 = vpop.f32.mrf.mxu3  ;;  %v1231_v60 = vpop.f32.mrf.mxu0 }
  0xdd   : > { %v12655_v61 = vadd.f32 %v1375_v59, %v1326_v57 }
  0xde   : > { %v1280_v62 = vpop.f32.mrf.mxu1 }
  0xdf   : > { %v12657_v63 = vadd.f32 %v1280_v62, %v1231_v60  ;;  %1426 = vmatmul.bf16.gmra.mxu0 %v12373_v52  ;;  %1524 = vmatmul.bf16.gmra.mxu2 %v12373_v52 }
  0xe1   : > { %1475 = vmatmul.bf16.gmra.mxu1 %v12375_v53  ;;  %1573 = vmatmul.bf16.gmra.mxu3 %v12375_v53 }
  0xe2   : > { %v1329_v10 = vpop.f32.mrf.mxu2 }
  0xe4   : > { %v1378_v12 = vpop.f32.mrf.mxu3  ;;  %v1233_v16 = vpop.f32.mrf.mxu0 }
  0xe5   : > { %v12675_v17 = vadd.f32 %v1378_v12, %v1329_v10  ;;  %v11392_v10 = vld [vmem:[%s18476_s1 + $0x66c] sm:$0xf0] }
  0xe6   : > { %v1282_v18 = vpop.f32.mrf.mxu1  ;;  %v9058_v11 = vor.u32 %v11392_v10, %v9057_v2 }
  0xe7   : > { %v12686_v23 = vadd.f32 %v1282_v18, %v1233_v16 }
  0xe8   : > { %1654 = vmatpush.bf16.msra.mxu1 %v9058_v11 }
  0xea   : > { %v1331_v31 = vpop.f32.mrf.mxu2 }
  0xec   : > { %v1380_v34 = vpop.f32.mrf.mxu3  ;;  %v1236_v35 = vpop.f32.mrf.mxu0 }
  0xed   : > { %v12691_v36 = vadd.f32 %v1380_v34, %v1331_v31  ;;  %v8774_v31 = vor.u32 %v11316_v28, %v8771_v29  ;;  %v9027_v34 = vld [vmem:[%s18476_s1 + $0x630] sm:$0xf0]  ;;  %v9259_v29 = vld [vmem:[%s18476_s1 + $0x7f8] sm:$0xf0] }
  0xee   : > { %v1285_v37 = vpop.f32.mrf.mxu1 }
  0xef   : > { %v12693_v39 = vadd.f32 %v1285_v37, %v1236_v35  ;;  %1431 = vmatmul.bf16.gmra.mxu0 %v12409_v6  ;;  %1529 = vmatmul.bf16.gmra.mxu2 %v12409_v6  ;;  %v9030_v37 = vor.u32 %v11380_v30, %v9027_v34 }
  0xf0   : > { %1704 = vmatpush.bf16.msra.mxu2 %v8774_v31 }
  0xf1   : > { %1480 = vmatmul.bf16.gmra.mxu1 %v12411_v7  ;;  %1578 = vmatmul.bf16.gmra.mxu3 %v12411_v7 }
  0xf2   : > { %v1334_v54 = vpop.f32.mrf.mxu2  ;;  %1753 = vmatpush.bf16.msra.mxu3 %v9030_v37 }
  0xf4   : > { %v1383_v57 = vpop.f32.mrf.mxu3  ;;  %v1238_v59 = vpop.f32.mrf.mxu0 }
  0xf5   : > { %v12711_v60 = vadd.f32 %v1383_v57, %v1334_v54  ;;  %v11320_v54 = vld [vmem:[%s18476_s1 + $0x42c] sm:$0xf0] }
  0xf6   : > { %v1287_v62 = vpop.f32.mrf.mxu1 }
  0xf7   : > { %v12722_v3 = vadd.f32 %v1287_v62, %v1238_v59  ;;  %v8770_v59 = vor.u32 %v11320_v54, %v8769_v51  ;;  %v11384_v62 = vld [vmem:[%s18476_s1 + $0x62c] sm:$0xf0]  ;;  %v9257_v51 = vld [vmem:[%s18476_s1 + $0x7d8] sm:$0xf] }
  0xf8   : > { %v9026_v0 = vor.u32 %v11384_v62, %v9025_v55 }
  0xf9   : > { %1606 = vmatpush.bf16.msra.mxu0 %v8770_v59  ;;  %v11441_v59 = vld [vmem:[%s18476_s1 + $0x7f4] sm:$0xf0] }
  0xfa   : > { %v1336_v12 = vpop.f32.mrf.mxu2  ;;  %1655 = vmatpush.bf16.msra.mxu1 %v9026_v0  ;;  %v9258_v62 = vor.u32 %v11441_v59, %v9257_v51  ;;  %v8969_v51 = vld [vmem:[%s18476_s1 + $0x598] sm:$0xf] }
  0xfb   : > { %v9225_v59 = vld [vmem:[%s18476_s1 + $0x798] sm:$0xf] }
  0xfc   : > { %v1385_v16 = vpop.f32.mrf.mxu3  ;;  %v1241_v18 = vpop.f32.mrf.mxu0 }
  0xfd   : > { %v12727_v19 = vadd.f32 %v1385_v16, %v1336_v12  ;;  %v11373_v16 = vld [vmem:[%s18476_s1 + $0x5dc] sm:$0xf] }
  0xfe   : > { %v1290_v20 = vpop.f32.mrf.mxu1  ;;  %1844 = vmatpush.bf16.msrb.mxu1 %v9258_v62 }
  0xff   : > { %v12729_v21 = vadd.f32 %v1290_v20, %v1241_v18  ;;  %1436 = vmatmul.bf16.gmra.mxu0 %v12445_v26  ;;  %1534 = vmatmul.bf16.gmra.mxu2 %v12445_v26  ;;  %v9003_v18 = vld [vmem:[%s18476_s1 + $0x5f8] sm:$0xf0] }
 0x100   : > { %v11437_v20 = vld [vmem:[%s18476_s1 + $0x7dc] sm:$0xf]  ;;  %v9006_v28 = vor.u32 %v11373_v16, %v9003_v18 }
 0x101   : > { %1485 = vmatmul.bf16.gmra.mxu1 %v12447_v27  ;;  %1583 = vmatmul.bf16.gmra.mxu3 %v12447_v27  ;;  %v9262_v31 = vor.u32 %v11437_v20, %v9259_v29  ;;  %v11365_v18 = vld [vmem:[%s18476_s1 + $0x59c] sm:$0xf] }
 0x102   : > { %v1339_v35 = vpop.f32.mrf.mxu2  ;;  %1893 = vmatpush.bf16.msrb.mxu2 %v9006_v28  ;;  %v8971_v20 = vld [vmem:[%s18476_s1 + $0x5b8] sm:$0xf0] }
 0x103   : > { %1942 = vmatpush.bf16.msrb.mxu3 %v9262_v31  ;;  %v11429_v28 = vld [vmem:[%s18476_s1 + $0x79c] sm:$0xf]  ;;  %v8974_v29 = vor.u32 %v11365_v18, %v8971_v20 }
 0x104   : > { %v1388_v41 = vpop.f32.mrf.mxu3  ;;  %v1243_v42 = vpop.f32.mrf.mxu0 }
 0x105   : > { %v12747_v45 = vadd.f32 %v1388_v41, %v1339_v35 }
 0x106   : > { %v1292_v46 = vpop.f32.mrf.mxu1  ;;  %1894 = vmatpush.bf16.msrb.mxu2 %v8974_v29 }
 0x107   : > { %v12758_v57 = vadd.f32 %v1292_v46, %v1243_v42  ;;  %v9001_v42 = vld [vmem:[%s18476_s1 + $0x5d8] sm:$0xf] }
 0x108   : > { %v11377_v46 = vld [vmem:[%s18476_s1 + $0x5f4] sm:$0xf0] }
 0x109   : > { %v9002_v55 = vor.u32 %v11377_v46, %v9001_v42 }
 0x10a   : > { %v1341_v1 = vpop.f32.mrf.mxu2 }
 0x10b   : > { %1795 = vmatpush.bf16.msrb.mxu0 %v9002_v55  ;;  %v11369_v55 = vld [vmem:[%s18476_s1 + $0x5b4] sm:$0xf0] }
 0x10c   : > { %v1390_v2 = vpop.f32.mrf.mxu3  ;;  %v1246_v9 = vpop.f32.mrf.mxu0 }
 0x10d   : > { %v12763_v10 = vadd.f32 %v1390_v2, %v1341_v1 }
 0x10e   : > { %v1295_v11 = vpop.f32.mrf.mxu1 }
 0x10f   : > { %v12765_v12 = vadd.f32 %v1295_v11, %v1246_v9  ;;  %1441 = vmatmul.bf16.gmra.mxu0 %v12481_v47  ;;  %1539 = vmatmul.bf16.gmra.mxu2 %v12481_v47 }
 0x111   : > { %1490 = vmatmul.bf16.gmra.mxu1 %v12483_v48  ;;  %1588 = vmatmul.bf16.gmra.mxu3 %v12483_v48 }
 0x112   : > { %v1344_v30 = vpop.f32.mrf.mxu2 }
 0x114   : > { %v1393_v34 = vpop.f32.mrf.mxu3  ;;  %v1248_v35 = vpop.f32.mrf.mxu0 }
 0x115   : > { %v12783_v37 = vadd.f32 %v1393_v34, %v1344_v30  ;;  %v9227_v30 = vld [vmem:[%s18476_s1 + $0x7b8] sm:$0xf0] }
 0x116   : > { %v1297_v41 = vpop.f32.mrf.mxu1  ;;  %v9230_v34 = vor.u32 %v11429_v28, %v9227_v30 }
 0x117   : > { %v12794_v54 = vadd.f32 %v1297_v41, %v1248_v35 }
 0x118   : > { %1943 = vmatpush.bf16.msrb.mxu3 %v9230_v34  ;;  %v8939_v34 = vld [vmem:[%s18476_s1 + $0x578] sm:$0xf0] }
 0x11a   : > { %v1346_v0 = vpop.f32.mrf.mxu2 }
 0x11c   : > { %v1395_v1 = vpop.f32.mrf.mxu3  ;;  %v1251_v2 = vpop.f32.mrf.mxu0 }
 0x11d   : > { %v12799_v9 = vadd.f32 %v1395_v1, %v1346_v0  ;;  %v8970_v0 = vor.u32 %v11369_v55, %v8969_v51  ;;  %v11433_v1 = vld [vmem:[%s18476_s1 + $0x7b4] sm:$0xf0] }
 0x11e   : > { %v1300_v11 = vpop.f32.mrf.mxu1 }
 0x11f   : > { %v12801_v16 = vadd.f32 %v1300_v11, %v1251_v2  ;;  %1446 = vmatmul.bf16.gmra.mxu0 %v12517_v4  ;;  %1544 = vmatmul.bf16.gmra.mxu2 %v12517_v4  ;;  %v9226_v2 = vor.u32 %v11433_v1, %v9225_v59 }
 0x120   : > { %1796 = vmatpush.bf16.msrb.mxu0 %v8970_v0 }
 0x121   : > { %1495 = vmatmul.bf16.gmra.mxu1 %v12519_v5  ;;  %1593 = vmatmul.bf16.gmra.mxu3 %v12519_v5 }
 0x122   : > { %v1349_v31 = vpop.f32.mrf.mxu2  ;;  %1845 = vmatpush.bf16.msrb.mxu1 %v9226_v2 }
 0x124   : > { %v1398_v35 = vpop.f32.mrf.mxu3  ;;  %v1253_v41 = vpop.f32.mrf.mxu0 }
 0x125   : > { %v12819_v42 = vadd.f32 %v1398_v35, %v1349_v31  ;;  %v11357_v31 = vld [vmem:[%s18476_s1 + $0x55c] sm:$0xf] }
 0x126   : > { %v1302_v46 = vpop.f32.mrf.mxu1  ;;  %v11421_v35 = vld [vmem:[%s18476_s1 + $0x75c] sm:$0xf] }
 0x127   : > { %v12830_v62 = vadd.f32 %v1302_v46, %v1253_v41  ;;  %v8942_v41 = vor.u32 %v11357_v31, %v8939_v34  ;;  %v9195_v46 = vld [vmem:[%s18476_s1 + $0x778] sm:$0xf0]  ;;  %v11425_v34 = vld [vmem:[%s18476_s1 + $0x774] sm:$0xf0] }
 0x128   : > { %v9198_v55 = vor.u32 %v11421_v35, %v9195_v46 }
 0x129   : > { %1895 = vmatpush.bf16.msrb.mxu2 %v8942_v41 }
 0x12a   : > { %v1351_v11 = vpop.f32.mrf.mxu2  ;;  %1944 = vmatpush.bf16.msrb.mxu3 %v9198_v55 }
 0x12c   : > { %v1400_v18 = vpop.f32.mrf.mxu3  ;;  %v1412_v20 = vpop.f32.mrf.mxu0 }
 0x12d   : > { %v12835_v28 = vadd.f32 %v1400_v18, %v1351_v11  ;;  %v8937_v11 = vld [vmem:[%s18476_s1 + $0x558] sm:$0xf] }
 0x12e   : > { %v1461_v29 = vpop.f32.mrf.mxu1  ;;  %v11361_v18 = vld [vmem:[%s18476_s1 + $0x574] sm:$0xf0] }
 0x12f   : > { %v12837_v30 = vadd.f32 %v1461_v29, %v1412_v20  ;;  %1607 = vmatmul.bf16.vlgmr.msra.gmra.mxu0 %v12238_v44  ;;  %1705 = vmatmul.bf16.vlgmr.msra.gmra.mxu2 %v12238_v44  ;;  %v9193_v20 = vld [vmem:[%s18476_s1 + $0x758] sm:$0xf]  ;;  %v8938_v31 = vor.u32 %v11361_v18, %v8937_v11  ;;  %v11413_v11 = vld [vmem:[%s18476_s1 + $0x71c] sm:$0xf] }
 0x130   : > { %v9194_v35 = vor.u32 %v11425_v34, %v9193_v20  ;;  %v9163_v20 = vld [vmem:[%s18476_s1 + $0x738] sm:$0xf0] }
 0x131   : > { %1656 = vmatmul.bf16.vlgmr.msra.gmra.mxu1 %v12249_v49  ;;  %1754 = vmatmul.bf16.vlgmr.msra.gmra.mxu3 %v12249_v49  ;;  %v9166_v34 = vor.u32 %v11413_v11, %v9163_v20 }
 0x132   : > { %v1510_v51 = vpop.f32.mrf.mxu2  ;;  %1797 = vmatpush.bf16.msrb.mxu0 %v8938_v31  ;;  %1846 = vmatpush.bf16.msrb.mxu1 %v9194_v35 }
 0x133   : > { %1945 = vmatpush.bf16.msrb.mxu3 %v9166_v34 }
 0x134   : > { %v1559_v59 = vpop.f32.mrf.mxu3  ;;  %v1414_v0 = vpop.f32.mrf.mxu0 }
 0x135   : > { %v12855_v1 = vadd.f32 %v1559_v59, %v1510_v51 }
 0x136   : > { %v1463_v2 = vpop.f32.mrf.mxu1 }
 0x137   : > { %18485 = vst [vmem:[#allocation2_spill] sm:$0xff] %v12855_v1  ;;  %v12866_v29 = vadd.f32 %v1463_v2, %v1414_v0  ;;  %v11349_v0 = vld [vmem:[%s18476_s1 + $0x51c] sm:$0xf] }
 0x138   : > { %v8907_v2 = vld [vmem:[%s18476_s1 + $0x538] sm:$0xf0] }
 0x139   : > { %18486 = vst [vmem:[#allocation3_spill] sm:$0xff] %v12866_v29  ;;  %v8910_v18 = vor.u32 %v11349_v0, %v8907_v2  ;;  %v11353_v0 = vld [vmem:[%s18476_s1 + $0x534] sm:$0xf0] }
 0x13a   : > { %v1512_v41 = vpop.f32.mrf.mxu2  ;;  %v9161_v2 = vld [vmem:[%s18476_s1 + $0x718] sm:$0xf] }
 0x13b   : > { %1896 = vmatpush.bf16.msrb.mxu2 %v8910_v18  ;;  %v11417_v18 = vld [vmem:[%s18476_s1 + $0x734] sm:$0xf0] }
 0x13c   : > { %v1561_v46 = vpop.f32.mrf.mxu3  ;;  %v1417_v51 = vpop.f32.mrf.mxu0 }
 0x13d   : > { %v12871_v55 = vadd.f32 %v1561_v46, %v1512_v41 }
 0x13e   : > { %v1466_v59 = vpop.f32.mrf.mxu1 }
 0x13f   : > { %18487 = vst [vmem:[#allocation4_spill] sm:$0xff] %v12871_v55  ;;  %v12873_v1 = vadd.f32 %v1466_v59, %v1417_v51  ;;  %1612 = vmatmul.bf16.gmra.mxu0 %v12301_v14  ;;  %1710 = vmatmul.bf16.gmra.mxu2 %v12301_v14  ;;  %v8905_v59 = vld [vmem:[%s18476_s1 + $0x518] sm:$0xf] }
 0x140   : > { %v8906_v20 = vor.u32 %v11353_v0, %v8905_v59  ;;  %v9131_v59 = vld [vmem:[%s18476_s1 + $0x6f8] sm:$0xf0] }
 0x141   : > { %18488 = vst [vmem:[#allocation5_spill] sm:$0xff] %v12873_v1  ;;  %1661 = vmatmul.bf16.gmra.mxu1 %v12303_v15  ;;  %1759 = vmatmul.bf16.gmra.mxu3 %v12303_v15 }
 0x142   : > { %v1515_v31 = vpop.f32.mrf.mxu2  ;;  %1798 = vmatpush.bf16.msrb.mxu0 %v8906_v20 }
 0x144   : > { %v1564_v35 = vpop.f32.mrf.mxu3  ;;  %v1419_v41 = vpop.f32.mrf.mxu0 }
 0x145   : > { %v12891_v46 = vadd.f32 %v1564_v35, %v1515_v31  ;;  %v9162_v31 = vor.u32 %v11417_v18, %v9161_v2 }
 0x146   : > { %v1468_v51 = vpop.f32.mrf.mxu1 }
 0x147   : > { %18489 = vst [vmem:[#allocation6_spill] sm:$0xff] %v12891_v46  ;;  %v12902_v11 = vadd.f32 %v1468_v51, %v1419_v41  ;;  %1847 = vmatpush.bf16.msrb.mxu1 %v9162_v31  ;;  %v11341_v41 = vld [vmem:[%s18476_s1 + $0x4dc] sm:$0xf] }
 0x148   : > { %v8875_v51 = vld [vmem:[%s18476_s1 + $0x4f8] sm:$0xf0] }
 0x149   : > { %18490 = vst [vmem:[#allocation7_spill] sm:$0xff] %v12902_v11 }
 0x14a   : > { %v1517_v34 = vpop.f32.mrf.mxu2 }
 0x14c   : > { %v1566_v35 = vpop.f32.mrf.mxu3  ;;  %v1422_v46 = vpop.f32.mrf.mxu0 }
 0x14d   : > { %v12907_v1 = vadd.f32 %v1566_v35, %v1517_v34  ;;  %v8873_v35 = vld [vmem:[%s18476_s1 + $0x4d8] sm:$0xf] }
 0x14e   : > { %v1471_v55 = vpop.f32.mrf.mxu1 }
 0x14f   : > { %18491 = vst [vmem:[#allocation8_spill] sm:$0xff] %v12907_v1  ;;  %v12909_v29 = vadd.f32 %v1471_v55, %v1422_v46  ;;  %1617 = vmatmul.bf16.gmra.mxu0 %v12337_v32  ;;  %1715 = vmatmul.bf16.gmra.mxu2 %v12337_v32  ;;  %v11405_v55 = vld [vmem:[%s18476_s1 + $0x6dc] sm:$0xf]  ;;  %v8878_v46 = vor.u32 %v11341_v41, %v8875_v51  ;;  %v11345_v41 = vld [vmem:[%s18476_s1 + $0x4f4] sm:$0xf0] }
 0x150   : > { %v9134_v2 = vor.u32 %v11405_v55, %v9131_v59  ;;  %v9129_v51 = vld [vmem:[%s18476_s1 + $0x6d8] sm:$0xf]  ;;  %v8874_v59 = vor.u32 %v11345_v41, %v8873_v35  ;;  %v9099_v35 = vld [vmem:[%s18476_s1 + $0x6b8] sm:$0xf0] }
 0x151   : > { %18492 = vst [vmem:[#allocation9_spill] sm:$0xff] %v12909_v29  ;;  %1666 = vmatmul.bf16.gmra.mxu1 %v12339_v33  ;;  %1764 = vmatmul.bf16.gmra.mxu3 %v12339_v33 }
 0x152   : > { %v1520_v0 = vpop.f32.mrf.mxu2  ;;  %1897 = vmatpush.bf16.msrb.mxu2 %v8878_v46  ;;  %1946 = vmatpush.bf16.msrb.mxu3 %v9134_v2  ;;  %v11409_v46 = vld [vmem:[%s18476_s1 + $0x6f4] sm:$0xf0] }
 0x153   : > { %1799 = vmatpush.bf16.msrb.mxu0 %v8874_v59 }
 0x154   : > { %v1569_v20 = vpop.f32.mrf.mxu3  ;;  %v1424_v18 = vpop.f32.mrf.mxu0 }
 0x155   : > { %v12927_v31 = vadd.f32 %v1569_v20, %v1520_v0  ;;  %v9130_v0 = vor.u32 %v11409_v46, %v9129_v51 }
 0x156   : > { %v1473_v34 = vpop.f32.mrf.mxu1 }
 0x157   : > { %18493 = vst [vmem:[#allocation10_spill] sm:$0xff] %v12927_v31  ;;  %v12938_v55 = vadd.f32 %v1473_v34, %v1424_v18  ;;  %1848 = vmatpush.bf16.msrb.mxu1 %v9130_v0  ;;  %v11333_v18 = vld [vmem:[%s18476_s1 + $0x49c] sm:$0xf] }
 0x158   : > { %v8843_v34 = vld [vmem:[%s18476_s1 + $0x4b8] sm:$0xf0] }
 0x159   : > { %18494 = vst [vmem:[#allocation11_spill] sm:$0xff] %v12938_v55 }
 0x15a   : > { %v1522_v2 = vpop.f32.mrf.mxu2 }
 0x15c   : > { %v1571_v20 = vpop.f32.mrf.mxu3  ;;  %v1427_v31 = vpop.f32.mrf.mxu0 }
 0x15d   : > { %v12943_v29 = vadd.f32 %v1571_v20, %v1522_v2  ;;  %v8841_v20 = vld [vmem:[%s18476_s1 + $0x498] sm:$0xf] }
 0x15e   : > { %v1476_v1 = vpop.f32.mrf.mxu1 }
 0x15f   : > { %18495 = vst [vmem:[#allocation12_spill] sm:$0xff] %v12943_v29  ;;  %v12945_v11 = vadd.f32 %v1476_v1, %v1427_v31  ;;  %1622 = vmatmul.bf16.gmra.mxu0 %v12373_v52  ;;  %1720 = vmatmul.bf16.gmra.mxu2 %v12373_v52  ;;  %v11397_v1 = vld [vmem:[%s18476_s1 + $0x69c] sm:$0xf]  ;;  %v8846_v31 = vor.u32 %v11333_v18, %v8843_v34  ;;  %v11337_v18 = vld [vmem:[%s18476_s1 + $0x4b4] sm:$0xf0] }
 0x160   : > { %v9102_v51 = vor.u32 %v11397_v1, %v9099_v35  ;;  %v9097_v34 = vld [vmem:[%s18476_s1 + $0x698] sm:$0xf]  ;;  %v8842_v35 = vor.u32 %v11337_v18, %v8841_v20  ;;  %v9067_v20 = vld [vmem:[%s18476_s1 + $0x678] sm:$0xf0] }
 0x161   : > { %18496 = vst [vmem:[#allocation13_spill] sm:$0xff] %v12945_v11  ;;  %1671 = vmatmul.bf16.gmra.mxu1 %v12375_v53  ;;  %1769 = vmatmul.bf16.gmra.mxu3 %v12375_v53 }
 0x162   : > { %v1525_v41 = vpop.f32.mrf.mxu2  ;;  %1898 = vmatpush.bf16.msrb.mxu2 %v8846_v31  ;;  %1947 = vmatpush.bf16.msrb.mxu3 %v9102_v51  ;;  %v11401_v31 = vld [vmem:[%s18476_s1 + $0x6b4] sm:$0xf0] }
 0x163   : > { %1800 = vmatpush.bf16.msrb.mxu0 %v8842_v35 }
 0x164   : > { %v1574_v59 = vpop.f32.mrf.mxu3  ;;  %v1429_v46 = vpop.f32.mrf.mxu0 }
 0x165   : > { %v12963_v0 = vadd.f32 %v1574_v59, %v1525_v41  ;;  %v9098_v41 = vor.u32 %v11401_v31, %v9097_v34 }
 0x166   : > { %v1478_v2 = vpop.f32.mrf.mxu1 }
 0x167   : > { %18497 = vst [vmem:[#allocation14_spill] sm:$0xff] %v12963_v0  ;;  %v12974_v1 = vadd.f32 %v1478_v2, %v1429_v46  ;;  %1849 = vmatpush.bf16.msrb.mxu1 %v9098_v41  ;;  %v11325_v46 = vld [vmem:[%s18476_s1 + $0x45c] sm:$0xf] }
 0x168   : > { %v8811_v2 = vld [vmem:[%s18476_s1 + $0x478] sm:$0xf0] }
 0x169   : > { %18498 = vst [vmem:[#allocation15_spill] sm:$0xff] %v12974_v1 }
 0x16a   : > { %v1527_v51 = vpop.f32.mrf.mxu2 }
 0x16c   : > { %v1576_v59 = vpop.f32.mrf.mxu3  ;;  %v1432_v0 = vpop.f32.mrf.mxu0 }
 0x16d   : > { %v12979_v11 = vadd.f32 %v1576_v59, %v1527_v51  ;;  %v8809_v59 = vld [vmem:[%s18476_s1 + $0x458] sm:$0xf] }
 0x16e   : > { %v1481_v29 = vpop.f32.mrf.mxu1 }
 0x16f   : > { %18499 = vst [vmem:[#allocation16_spill] sm:$0xff] %v12979_v11  ;;  %v12981_v55 = vadd.f32 %v1481_v29, %v1432_v0  ;;  %1627 = vmatmul.bf16.gmra.mxu0 %v12409_v6  ;;  %1725 = vmatmul.bf16.gmra.mxu2 %v12409_v6  ;;  %v11389_v29 = vld [vmem:[%s18476_s1 + $0x65c] sm:$0xf]  ;;  %v8814_v0 = vor.u32 %v11325_v46, %v8811_v2  ;;  %v11329_v46 = vld [vmem:[%s18476_s1 + $0x474] sm:$0xf0] }
 0x170   : > { %v9070_v34 = vor.u32 %v11389_v29, %v9067_v20  ;;  %v9065_v2 = vld [vmem:[%s18476_s1 + $0x658] sm:$0xf]  ;;  %v8810_v20 = vor.u32 %v11329_v46, %v8809_v59  ;;  %v9035_v59 = vld [vmem:[%s18476_s1 + $0x638] sm:$0xf0] }
 0x171   : > { %18500 = vst [vmem:[#allocation17_spill] sm:$0xff] %v12981_v55  ;;  %1676 = vmatmul.bf16.gmra.mxu1 %v12411_v7  ;;  %1774 = vmatmul.bf16.gmra.mxu3 %v12411_v7 }
 0x172   : > { %v1530_v18 = vpop.f32.mrf.mxu2  ;;  %1899 = vmatpush.bf16.msrb.mxu2 %v8814_v0  ;;  %1948 = vmatpush.bf16.msrb.mxu3 %v9070_v34  ;;  %v11393_v0 = vld [vmem:[%s18476_s1 + $0x674] sm:$0xf0] }
 0x173   : > { %1801 = vmatpush.bf16.msrb.mxu0 %v8810_v20 }
 0x174   : > { %v1579_v35 = vpop.f32.mrf.mxu3  ;;  %v1434_v31 = vpop.f32.mrf.mxu0 }
 0x175   : > { %v12999_v41 = vadd.f32 %v1579_v35, %v1530_v18  ;;  %v9066_v18 = vor.u32 %v11393_v0, %v9065_v2 }
 0x176   : > { %v1483_v51 = vpop.f32.mrf.mxu1 }
 0x177   : > { %18501 = vst [vmem:[#allocation18_spill] sm:$0xff] %v12999_v41  ;;  %v13010_v29 = vadd.f32 %v1483_v51, %v1434_v31  ;;  %1850 = vmatpush.bf16.msrb.mxu1 %v9066_v18  ;;  %v11317_v31 = vld [vmem:[%s18476_s1 + $0x41c] sm:$0xf] }
 0x178   : > { %v8779_v51 = vld [vmem:[%s18476_s1 + $0x438] sm:$0xf0] }
 0x179   : > { %18502 = vst [vmem:[#allocation19_spill] sm:$0xff] %v13010_v29 }
 0x17a   : > { %v1532_v34 = vpop.f32.mrf.mxu2 }
 0x17c   : > { %v1581_v35 = vpop.f32.mrf.mxu3  ;;  %v1437_v41 = vpop.f32.mrf.mxu0 }
 0x17d   : > { %v13015_v55 = vadd.f32 %v1581_v35, %v1532_v34  ;;  %v8777_v35 = vld [vmem:[%s18476_s1 + $0x418] sm:$0xf] }
 0x17e   : > { %v1486_v11 = vpop.f32.mrf.mxu1 }
 0x17f   : > { %18503 = vst [vmem:[#allocation20_spill] sm:$0xff] %v13015_v55  ;;  %v13017_v1 = vadd.f32 %v1486_v11, %v1437_v41  ;;  %1632 = vmatmul.bf16.gmra.mxu0 %v12445_v26  ;;  %1730 = vmatmul.bf16.gmra.mxu2 %v12445_v26  ;;  %v11381_v11 = vld [vmem:[%s18476_s1 + $0x61c] sm:$0xf]  ;;  %v8782_v41 = vor.u32 %v11317_v31, %v8779_v51  ;;  %v11321_v31 = vld [vmem:[%s18476_s1 + $0x434] sm:$0xf0] }
 0x180   : > { %v9038_v2 = vor.u32 %v11381_v11, %v9035_v59  ;;  %v9033_v51 = vld [vmem:[%s18476_s1 + $0x618] sm:$0xf]  ;;  %v8778_v59 = vor.u32 %v11321_v31, %v8777_v35  ;;  %v9811_v35 = vld [vmem:[%s18476_s1 + $0x3e0] sm:$0xf0] }
 0x181   : > { %18504 = vst [vmem:[#allocation21_spill] sm:$0xff] %v13017_v1  ;;  %1681 = vmatmul.bf16.gmra.mxu1 %v12447_v27  ;;  %1779 = vmatmul.bf16.gmra.mxu3 %v12447_v27 }
 0x182   : > { %v1535_v46 = vpop.f32.mrf.mxu2  ;;  %1900 = vmatpush.bf16.msrb.mxu2 %v8782_v41  ;;  %1949 = vmatpush.bf16.msrb.mxu3 %v9038_v2  ;;  %v11385_v41 = vld [vmem:[%s18476_s1 + $0x634] sm:$0xf0] }
 0x183   : > { %1802 = vmatpush.bf16.msrb.mxu0 %v8778_v59 }
 0x184   : > { %v1584_v20 = vpop.f32.mrf.mxu3  ;;  %v1439_v0 = vpop.f32.mrf.mxu0 }
 0x185   : > { %v13035_v18 = vadd.f32 %v1584_v20, %v1535_v46  ;;  %v9034_v46 = vor.u32 %v11385_v41, %v9033_v51 }
 0x186   : > { %v1488_v34 = vpop.f32.mrf.mxu1 }
 0x187   : > { %18505 = vst [vmem:[#allocation22_spill] sm:$0xff] %v13035_v18  ;;  %v13046_v11 = vadd.f32 %v1488_v34, %v1439_v0  ;;  %1851 = vmatpush.bf16.msrb.mxu1 %v9034_v46  ;;  %v11226_v0 = vld [vmem:[%s18476_s1 + $0x1c4] sm:$0xf] }
 0x188   : > { %v9555_v34 = vld [vmem:[%s18476_s1 + $0x1e0] sm:$0xf0] }
 0x189   : > { %18506 = vst [vmem:[#allocation23_spill] sm:$0xff] %v13046_v11 }
 0x18a   : > { %v1537_v2 = vpop.f32.mrf.mxu2 }
 0x18c   : > { %v1586_v20 = vpop.f32.mrf.mxu3  ;;  %v1442_v18 = vpop.f32.mrf.mxu0 }
 0x18d   : > { %v13051_v1 = vadd.f32 %v1586_v20, %v1537_v2  ;;  %v9553_v20 = vld [vmem:[%s18476_s1 + $0x1c0] sm:$0xf] }
 0x18e   : > { %v1491_v55 = vpop.f32.mrf.mxu1 }
 0x18f   : > { %18507 = vst [vmem:[#allocation24_spill] sm:$0xff] %v13051_v1  ;;  %v13053_v29 = vadd.f32 %v1491_v55, %v1442_v18  ;;  %1637 = vmatmul.bf16.gmra.mxu0 %v12481_v47  ;;  %1735 = vmatmul.bf16.gmra.mxu2 %v12481_v47  ;;  %v11290_v55 = vld [vmem:[%s18476_s1 + $0x3c4] sm:$0xf]  ;;  %v9558_v18 = vor.u32 %v11226_v0, %v9555_v34  ;;  %v11230_v0 = vld [vmem:[%s18476_s1 + $0x1dc] sm:$0xf0] }
 0x190   : > { %v9814_v51 = vor.u32 %v11290_v55, %v9811_v35  ;;  %v9809_v34 = vld [vmem:[%s18476_s1 + $0x3c0] sm:$0xf]  ;;  %v9554_v35 = vor.u32 %v11230_v0, %v9553_v20  ;;  %v9779_v20 = vld [vmem:[%s18476_s1 + $0x3a0] sm:$0xf0] }
 0x191   : > { %18508 = vst [vmem:[#allocation25_spill] sm:$0xff] %v13053_v29  ;;  %1686 = vmatmul.bf16.gmra.mxu1 %v12483_v48  ;;  %1784 = vmatmul.bf16.gmra.mxu3 %v12483_v48 }
 0x192   : > { %v1540_v31 = vpop.f32.mrf.mxu2  ;;  %2809 = vmatpush.bf16.msra.mxu2 %v9558_v18  ;;  %2858 = vmatpush.bf16.msra.mxu3 %v9814_v51  ;;  %v11294_v18 = vld [vmem:[%s18476_s1 + $0x3dc] sm:$0xf0] }
 0x193   : > { %2711 = vmatpush.bf16.msra.mxu0 %v9554_v35 }
 0x194   : > { %v1589_v59 = vpop.f32.mrf.mxu3  ;;  %v1444_v41 = vpop.f32.mrf.mxu0 }
 0x195   : > { %v13071_v46 = vadd.f32 %v1589_v59, %v1540_v31  ;;  %v9810_v31 = vor.u32 %v11294_v18, %v9809_v34 }
 0x196   : > { %v1493_v2 = vpop.f32.mrf.mxu1 }
 0x197   : > { %18509 = vst [vmem:[#allocation26_spill] sm:$0xff] %v13071_v46  ;;  %v13082_v55 = vadd.f32 %v1493_v2, %v1444_v41  ;;  %2760 = vmatpush.bf16.msra.mxu1 %v9810_v31  ;;  %v11218_v41 = vld [vmem:[%s18476_s1 + $0x184] sm:$0xf] }
 0x198   : > { %v9523_v2 = vld [vmem:[%s18476_s1 + $0x1a0] sm:$0xf0] }
 0x199   : > { %18510 = vst [vmem:[#allocation27_spill] sm:$0xff] %v13082_v55 }
 0x19a   : > { %v1542_v51 = vpop.f32.mrf.mxu2 }
 0x19c   : > { %v1591_v59 = vpop.f32.mrf.mxu3  ;;  %v1447_v46 = vpop.f32.mrf.mxu0 }
 0x19d   : > { %v13087_v29 = vadd.f32 %v1591_v59, %v1542_v51  ;;  %v9521_v59 = vld [vmem:[%s18476_s1 + $0x180] sm:$0xf] }
 0x19e   : > { %v1496_v1 = vpop.f32.mrf.mxu1 }
 0x19f   : > { %18511 = vst [vmem:[#allocation28_spill] sm:$0xff] %v13087_v29  ;;  %v13089_v11 = vadd.f32 %v1496_v1, %v1447_v46  ;;  %1642 = vmatmul.bf16.gmra.mxu0 %v12517_v4  ;;  %1740 = vmatmul.bf16.gmra.mxu2 %v12517_v4  ;;  %v11282_v1 = vld [vmem:[%s18476_s1 + $0x384] sm:$0xf]  ;;  %v9526_v46 = vor.u32 %v11218_v41, %v9523_v2  ;;  %v11222_v41 = vld [vmem:[%s18476_s1 + $0x19c] sm:$0xf0] }
 0x1a0   : > { %v9782_v34 = vor.u32 %v11282_v1, %v9779_v20  ;;  %v9777_v2 = vld [vmem:[%s18476_s1 + $0x380] sm:$0xf]  ;;  %v9522_v20 = vor.u32 %v11222_v41, %v9521_v59  ;;  %v9747_v59 = vld [vmem:[%s18476_s1 + $0x360] sm:$0xf0] }
 0x1a1   : > { %18512 = vst [vmem:[#allocation29_spill] sm:$0xff] %v13089_v11  ;;  %1691 = vmatmul.bf16.gmra.mxu1 %v12519_v5  ;;  %1789 = vmatmul.bf16.gmra.mxu3 %v12519_v5 }
 0x1a2   : > { %v1545_v0 = vpop.f32.mrf.mxu2  ;;  %2810 = vmatpush.bf16.msra.mxu2 %v9526_v46  ;;  %2859 = vmatpush.bf16.msra.mxu3 %v9782_v34  ;;  %v11286_v46 = vld [vmem:[%s18476_s1 + $0x39c] sm:$0xf0] }
 0x1a3   : > { %2712 = vmatpush.bf16.msra.mxu0 %v9522_v20 }
 0x1a4   : > { %v1594_v35 = vpop.f32.mrf.mxu3  ;;  %v1449_v18 = vpop.f32.mrf.mxu0 }
 0x1a5   : > { %v13107_v31 = vadd.f32 %v1594_v35, %v1545_v0  ;;  %v9778_v0 = vor.u32 %v11286_v46, %v9777_v2 }
 0x1a6   : > { %v1498_v51 = vpop.f32.mrf.mxu1 }
 0x1a7   : > { %18513 = vst [vmem:[#allocation30_spill] sm:$0xff] %v13107_v31  ;;  %v13118_v1 = vadd.f32 %v1498_v51, %v1449_v18  ;;  %2761 = vmatpush.bf16.msra.mxu1 %v9778_v0  ;;  %v11210_v18 = vld [vmem:[%s18476_s1 + $0x144] sm:$0xf]  ;;  %v9489_v0 = vld [vmem:[%s18476_s1 + $0x140] sm:$0xf] }
 0x1a8   : > { %v9491_v51 = vld [vmem:[%s18476_s1 + $0x160] sm:$0xf0] }
 0x1aa   : > { %v1547_v34 = vpop.f32.mrf.mxu2 }
 0x1ac   : > { %v1596_v35 = vpop.f32.mrf.mxu3  ;;  %v1608_v31 = vpop.f32.mrf.mxu0 }
 0x1ad   : > { %v13123_v11 = vadd.f32 %v1596_v35, %v1547_v34  ;;  %v11214_v34 = vld [vmem:[%s18476_s1 + $0x15c] sm:$0xf0] }
 0x1ae   : > { %v1657_v29 = vpop.f32.mrf.mxu1  ;;  %v9745_v35 = vld [vmem:[%s18476_s1 + $0x340] sm:$0xf] }
 0x1af   : > { %18514 = vst [vmem:[#allocation31_spill] sm:$0xff] %v13123_v11  ;;  %v13125_v55 = vadd.f32 %v1657_v29, %v1608_v31  ;;  %1803 = vmatmul.bf16.vlgmr.msrb.gmra.mxu0 %v12238_v44  ;;  %1901 = vmatmul.bf16.vlgmr.msrb.gmra.mxu2 %v12238_v44  ;;  %v11274_v29 = vld [vmem:[%s18476_s1 + $0x344] sm:$0xf]  ;;  %v9494_v31 = vor.u32 %v11210_v18, %v9491_v51 }
 0x1b0   : > { %v9750_v41 = vor.u32 %v11274_v29, %v9747_v59  ;;  %v9490_v51 = vor.u32 %v11214_v34, %v9489_v0  ;;  %v11278_v29 = vld [vmem:[%s18476_s1 + $0x35c] sm:$0xf0]  ;;  %v9715_v34 = vld [vmem:[%s18476_s1 + $0x320] sm:$0xf0] }
 0x1b1   : > { %18515 = vst [vmem:[#allocation32_spill] sm:$0xff] %v13125_v55  ;;  %1852 = vmatmul.bf16.vlgmr.msrb.gmra.mxu1 %v12249_v49  ;;  %1950 = vmatmul.bf16.vlgmr.msrb.gmra.mxu3 %v12249_v49 }
 0x1b2   : > { %v1706_v44 = vpop.f32.mrf.mxu2  ;;  %2811 = vmatpush.bf16.msra.mxu2 %v9494_v31  ;;  %2860 = vmatpush.bf16.msra.mxu3 %v9750_v41  ;;  %v9746_v31 = vor.u32 %v11278_v29, %v9745_v35 }
 0x1b3   : > { %2713 = vmatpush.bf16.msra.mxu0 %v9490_v51 }
 0x1b4   : > { %v1755_v49 = vpop.f32.mrf.mxu3  ;;  %v1610_v2 = vpop.f32.mrf.mxu0  ;;  %2762 = vmatpush.bf16.msra.mxu1 %v9746_v31 }
 0x1b5   : > { %v13143_v20 = vadd.f32 %v1755_v49, %v1706_v44 }
 0x1b6   : > { %v1659_v46 = vpop.f32.mrf.mxu1 }
 0x1b7   : > { %18516 = vst [vmem:[#allocation33_spill] sm:$0xff] %v13143_v20  ;;  %v13154_v18 = vadd.f32 %v1659_v46, %v1610_v2  ;;  %v11202_v2 = vld [vmem:[%s18476_s1 + $0x104] sm:$0xf] }
 0x1b8   : > { %v9459_v46 = vld [vmem:[%s18476_s1 + $0x120] sm:$0xf0] }
 0x1b9   : > { %18517 = vst [vmem:[#allocation34_spill] sm:$0xff] %v13154_v18  ;;  %v9462_v0 = vor.u32 %v11202_v2, %v9459_v46 }
 0x1ba   : > { %v1708_v59 = vpop.f32.mrf.mxu2 }
 0x1bb   : > { %2812 = vmatpush.bf16.msra.mxu2 %v9462_v0 }
 0x1bc   : > { %v1757_v44 = vpop.f32.mrf.mxu3  ;;  %v1613_v41 = vpop.f32.mrf.mxu0 }
 0x1bd   : > { %v13159_v49 = vadd.f32 %v1757_v44, %v1708_v59  ;;  %v9457_v59 = vld [vmem:[%s18476_s1 + $0x100] sm:$0xf] }
 0x1be   : > { %v1662_v20 = vpop.f32.mrf.mxu1  ;;  %v11206_v44 = vld [vmem:[%s18476_s1 + $0x11c] sm:$0xf0] }
 0x1bf   : > { %18518 = vst [vmem:[#allocation35_spill] sm:$0xff] %v13159_v49  ;;  %v13161_v55 = vadd.f32 %v1662_v20, %v1613_v41  ;;  %1808 = vmatmul.bf16.gmra.mxu0 %v12301_v14  ;;  %1906 = vmatmul.bf16.gmra.mxu2 %v12301_v14  ;;  %v11266_v20 = vld [vmem:[%s18476_s1 + $0x304] sm:$0xf]  ;;  %v9713_v41 = vld [vmem:[%s18476_s1 + $0x300] sm:$0xf]  ;;  %v9458_v46 = vor.u32 %v11206_v44, %v9457_v59 }
 0x1c0   : > { %v9718_v35 = vor.u32 %v11266_v20, %v9715_v34  ;;  %v11270_v20 = vld [vmem:[%s18476_s1 + $0x31c] sm:$0xf0]  ;;  %v9683_v44 = vld [vmem:[%s18476_s1 + $0x2e0] sm:$0xf0] }
 0x1c1   : > { %18519 = vst [vmem:[#allocation36_spill] sm:$0xff] %v13161_v55  ;;  %1857 = vmatmul.bf16.gmra.mxu1 %v12303_v15  ;;  %1955 = vmatmul.bf16.gmra.mxu3 %v12303_v15  ;;  %v9714_v0 = vor.u32 %v11270_v20, %v9713_v41 }
 0x1c2   : > { %v1711_v14 = vpop.f32.mrf.mxu2  ;;  %2861 = vmatpush.bf16.msra.mxu3 %v9718_v35  ;;  %2714 = vmatpush.bf16.msra.mxu0 %v9458_v46 }
 0x1c3   : > { %2763 = vmatpush.bf16.msra.mxu1 %v9714_v0 }
 0x1c4   : > { %v1760_v15 = vpop.f32.mrf.mxu3  ;;  %v1615_v51 = vpop.f32.mrf.mxu0 }
 0x1c5   : > { %v13179_v29 = vadd.f32 %v1760_v15, %v1711_v14 }
 0x1c6   : > { %v1664_v31 = vpop.f32.mrf.mxu1 }
 0x1c7   : > { %18520 = vst [vmem:[#allocation37_spill] sm:$0xff] %v13179_v29  ;;  %v13190_v2 = vadd.f32 %v1664_v31, %v1615_v51  ;;  %v11194_v51 = vld [vmem:[%s18476_s1 + $0xc4] sm:$0xf] }
 0x1c8   : > { %v9427_v31 = vld [vmem:[%s18476_s1 + $0xe0] sm:$0xf0] }
 0x1c9   : > { %18521 = vst [vmem:[#allocation38_spill] sm:$0xff] %v13190_v2  ;;  %v9430_v59 = vor.u32 %v11194_v51, %v9427_v31 }
 0x1ca   : > { %v1713_v34 = vpop.f32.mrf.mxu2 }
 0x1cb   : > { %2813 = vmatpush.bf16.msra.mxu2 %v9430_v59 }
 0x1cc   : > { %v1762_v14 = vpop.f32.mrf.mxu3  ;;  %v1618_v35 = vpop.f32.mrf.mxu0 }
 0x1cd   : > { %v13195_v15 = vadd.f32 %v1762_v14, %v1713_v34  ;;  %v9425_v34 = vld [vmem:[%s18476_s1 + $0xc0] sm:$0xf] }
 0x1ce   : > { %v1667_v29 = vpop.f32.mrf.mxu1  ;;  %v11198_v14 = vld [vmem:[%s18476_s1 + $0xdc] sm:$0xf0] }
 0x1cf   : > { %18522 = vst [vmem:[#allocation39_spill] sm:$0xff] %v13195_v15  ;;  %v13197_v55 = vadd.f32 %v1667_v29, %v1618_v35  ;;  %1813 = vmatmul.bf16.gmra.mxu0 %v12337_v32  ;;  %1911 = vmatmul.bf16.gmra.mxu2 %v12337_v32  ;;  %v11258_v29 = vld [vmem:[%s18476_s1 + $0x2c4] sm:$0xf]  ;;  %v9681_v35 = vld [vmem:[%s18476_s1 + $0x2c0] sm:$0xf]  ;;  %v9426_v31 = vor.u32 %v11198_v14, %v9425_v34 }
 0x1d0   : > { %v9686_v41 = vor.u32 %v11258_v29, %v9683_v44  ;;  %v11262_v29 = vld [vmem:[%s18476_s1 + $0x2dc] sm:$0xf0]  ;;  %v9651_v14 = vld [vmem:[%s18476_s1 + $0x2a0] sm:$0xf0] }
 0x1d1   : > { %18523 = vst [vmem:[#allocation40_spill] sm:$0xff] %v13197_v55  ;;  %1862 = vmatmul.bf16.gmra.mxu1 %v12339_v33  ;;  %1960 = vmatmul.bf16.gmra.mxu3 %v12339_v33  ;;  %v9682_v59 = vor.u32 %v11262_v29, %v9681_v35 }
 0x1d2   : > { %v1716_v32 = vpop.f32.mrf.mxu2  ;;  %2862 = vmatpush.bf16.msra.mxu3 %v9686_v41  ;;  %2715 = vmatpush.bf16.msra.mxu0 %v9426_v31 }
 0x1d3   : > { %2764 = vmatpush.bf16.msra.mxu1 %v9682_v59 }
 0x1d4   : > { %v1765_v33 = vpop.f32.mrf.mxu3  ;;  %v1620_v46 = vpop.f32.mrf.mxu0 }
 0x1d5   : > { %v13215_v20 = vadd.f32 %v1765_v33, %v1716_v32 }
 0x1d6   : > { %v1669_v0 = vpop.f32.mrf.mxu1 }
 0x1d7   : > { %18524 = vst [vmem:[#allocation41_spill] sm:$0xff] %v13215_v20  ;;  %v13226_v51 = vadd.f32 %v1669_v0, %v1620_v46  ;;  %v11186_v46 = vld [vmem:[%s18476_s1 + $0x84] sm:$0xf] }
 0x1d8   : > { %v9395_v0 = vld [vmem:[%s18476_s1 + $0xa0] sm:$0xf0] }
 0x1d9   : > { %18525 = vst [vmem:[#allocation42_spill] sm:$0xff] %v13226_v51  ;;  %v9398_v34 = vor.u32 %v11186_v46, %v9395_v0 }
 0x1da   : > { %v1718_v44 = vpop.f32.mrf.mxu2 }
 0x1db   : > { %2814 = vmatpush.bf16.msra.mxu2 %v9398_v34 }
 0x1dc   : > { %v1767_v32 = vpop.f32.mrf.mxu3  ;;  %v1623_v41 = vpop.f32.mrf.mxu0 }
 0x1dd   : > { %v13231_v33 = vadd.f32 %v1767_v32, %v1718_v44  ;;  %v9393_v44 = vld [vmem:[%s18476_s1 + $0x80] sm:$0xf] }
 0x1de   : > { %v1672_v20 = vpop.f32.mrf.mxu1  ;;  %v11190_v32 = vld [vmem:[%s18476_s1 + $0x9c] sm:$0xf0] }
 0x1df   : > { %18526 = vst [vmem:[#allocation43_spill] sm:$0xff] %v13231_v33  ;;  %v13233_v55 = vadd.f32 %v1672_v20, %v1623_v41  ;;  %1818 = vmatmul.bf16.gmra.mxu0 %v12373_v52  ;;  %1916 = vmatmul.bf16.gmra.mxu2 %v12373_v52  ;;  %v11250_v20 = vld [vmem:[%s18476_s1 + $0x284] sm:$0xf]  ;;  %v9649_v41 = vld [vmem:[%s18476_s1 + $0x280] sm:$0xf]  ;;  %v9394_v0 = vor.u32 %v11190_v32, %v9393_v44 }
 0x1e0   : > { %v9654_v35 = vor.u32 %v11250_v20, %v9651_v14  ;;  %v11254_v20 = vld [vmem:[%s18476_s1 + $0x29c] sm:$0xf0]  ;;  %v9619_v32 = vld [vmem:[%s18476_s1 + $0x260] sm:$0xf0] }
 0x1e1   : > { %18527 = vst [vmem:[#allocation44_spill] sm:$0xff] %v13233_v55  ;;  %1867 = vmatmul.bf16.gmra.mxu1 %v12375_v53  ;;  %1965 = vmatmul.bf16.gmra.mxu3 %v12375_v53  ;;  %v9650_v34 = vor.u32 %v11254_v20, %v9649_v41 }
 0x1e2   : > { %v1721_v52 = vpop.f32.mrf.mxu2  ;;  %2863 = vmatpush.bf16.msra.mxu3 %v9654_v35  ;;  %2716 = vmatpush.bf16.msra.mxu0 %v9394_v0 }
 0x1e3   : > { %2765 = vmatpush.bf16.msra.mxu1 %v9650_v34 }
 0x1e4   : > { %v1770_v53 = vpop.f32.mrf.mxu3  ;;  %v1625_v31 = vpop.f32.mrf.mxu0 }
 0x1e5   : > { %v13251_v29 = vadd.f32 %v1770_v53, %v1721_v52 }
 0x1e6   : > { %v1674_v59 = vpop.f32.mrf.mxu1 }
 0x1e7   : > { %18528 = vst [vmem:[#allocation45_spill] sm:$0xff] %v13251_v29  ;;  %v13262_v46 = vadd.f32 %v1674_v59, %v1625_v31  ;;  %v11178_v31 = vld [vmem:[%s18476_s1 + $0x44] sm:$0xf] }
 0x1e8   : > { %v9363_v59 = vld [vmem:[%s18476_s1 + $0x60] sm:$0xf0] }
 0x1e9   : > { %18529 = vst [vmem:[#allocation46_spill] sm:$0xff] %v13262_v46  ;;  %v9366_v44 = vor.u32 %v11178_v31, %v9363_v59 }
 0x1ea   : > { %v1723_v14 = vpop.f32.mrf.mxu2 }
 0x1eb   : > { %2815 = vmatpush.bf16.msra.mxu2 %v9366_v44 }
 0x1ec   : > { %v1772_v52 = vpop.f32.mrf.mxu3  ;;  %v1628_v35 = vpop.f32.mrf.mxu0 }
 0x1ed   : > { %v13267_v53 = vadd.f32 %v1772_v52, %v1723_v14  ;;  %v9361_v14 = vld [vmem:[%s18476_s1 + $0x40] sm:$0xf] }
 0x1ee   : > { %v1677_v29 = vpop.f32.mrf.mxu1  ;;  %v11182_v52 = vld [vmem:[%s18476_s1 + $0x5c] sm:$0xf0] }
 0x1ef   : > { %18530 = vst [vmem:[#allocation47_spill] sm:$0xff] %v13267_v53  ;;  %v13269_v55 = vadd.f32 %v1677_v29, %v1628_v35  ;;  %1823 = vmatmul.bf16.gmra.mxu0 %v12409_v6  ;;  %1921 = vmatmul.bf16.gmra.mxu2 %v12409_v6  ;;  %v11242_v29 = vld [vmem:[%s18476_s1 + $0x244] sm:$0xf]  ;;  %v9617_v35 = vld [vmem:[%s18476_s1 + $0x240] sm:$0xf]  ;;  %v9362_v59 = vor.u32 %v11182_v52, %v9361_v14 }
 0x1f0   : > { %v9622_v41 = vor.u32 %v11242_v29, %v9619_v32  ;;  %v11246_v29 = vld [vmem:[%s18476_s1 + $0x25c] sm:$0xf0]  ;;  %v9587_v52 = vld [vmem:[%s18476_s1 + $0x220] sm:$0xf0] }
 0x1f1   : > { %18531 = vst [vmem:[#allocation48_spill] sm:$0xff] %v13269_v55  ;;  %1872 = vmatmul.bf16.gmra.mxu1 %v12411_v7  ;;  %1970 = vmatmul.bf16.gmra.mxu3 %v12411_v7  ;;  %v9618_v44 = vor.u32 %v11246_v29, %v9617_v35 }
 0x1f2   : > { %v1726_v6 = vpop.f32.mrf.mxu2  ;;  %2864 = vmatpush.bf16.msra.mxu3 %v9622_v41  ;;  %2717 = vmatpush.bf16.msra.mxu0 %v9362_v59 }
 0x1f3   : > { %2766 = vmatpush.bf16.msra.mxu1 %v9618_v44 }
 0x1f4   : > { %v1775_v7 = vpop.f32.mrf.mxu3  ;;  %v1630_v0 = vpop.f32.mrf.mxu0 }
 0x1f5   : > { %v13287_v20 = vadd.f32 %v1775_v7, %v1726_v6 }
 0x1f6   : > { %v1679_v34 = vpop.f32.mrf.mxu1 }
 0x1f7   : > { %18532 = vst [vmem:[#allocation49_spill] sm:$0xff] %v13287_v20  ;;  %v13298_v31 = vadd.f32 %v1679_v34, %v1630_v0  ;;  %v11170_v0 = vld [vmem:[%s18476_s1 + $0x4] sm:$0xf] }
 0x1f8   : > { %v9331_v34 = vld [vmem:[%s18476_s1 + $0x20] sm:$0xf0] }
 0x1f9   : > { %18533 = vst [vmem:[#allocation50_spill] sm:$0xff] %v13298_v31  ;;  %v9334_v14 = vor.u32 %v11170_v0, %v9331_v34 }
 0x1fa   : > { %v1728_v32 = vpop.f32.mrf.mxu2 }
 0x1fb   : > { %2816 = vmatpush.bf16.msra.mxu2 %v9334_v14 }
 0x1fc   : > { %v1777_v6 = vpop.f32.mrf.mxu3  ;;  %v1633_v41 = vpop.f32.mrf.mxu0 }
 0x1fd   : > { %v13303_v7 = vadd.f32 %v1777_v6, %v1728_v32  ;;  %v9329_v32 = vld [vmem:[%s18476_s1] sm:$0xf] }
 0x1fe   : > { %v1682_v20 = vpop.f32.mrf.mxu1  ;;  %v11174_v6 = vld [vmem:[%s18476_s1 + $0x1c] sm:$0xf0] }
 0x1ff   : > { %18534 = vst [vmem:[#allocation51_spill] sm:$0xff] %v13303_v7  ;;  %v13305_v55 = vadd.f32 %v1682_v20, %v1633_v41  ;;  %1828 = vmatmul.bf16.gmra.mxu0 %v12445_v26  ;;  %1926 = vmatmul.bf16.gmra.mxu2 %v12445_v26  ;;  %v11234_v20 = vld [vmem:[%s18476_s1 + $0x204] sm:$0xf]  ;;  %v9585_v41 = vld [vmem:[%s18476_s1 + $0x200] sm:$0xf]  ;;  %v9330_v34 = vor.u32 %v11174_v6, %v9329_v32 }
 0x200   : > { %v9590_v35 = vor.u32 %v11234_v20, %v9587_v52  ;;  %v11238_v20 = vld [vmem:[%s18476_s1 + $0x21c] sm:$0xf0]  ;;  %v9819_v6 = vld [vmem:[%s18476_s1 + $0x3e8] sm:$0xf0] }
 0x201   : > { %18535 = vst [vmem:[#allocation52_spill] sm:$0xff] %v13305_v55  ;;  %1877 = vmatmul.bf16.gmra.mxu1 %v12447_v27  ;;  %1975 = vmatmul.bf16.gmra.mxu3 %v12447_v27  ;;  %v9586_v14 = vor.u32 %v11238_v20, %v9585_v41 }
 0x202   : > { %v1731_v26 = vpop.f32.mrf.mxu2  ;;  %2865 = vmatpush.bf16.msra.mxu3 %v9590_v35  ;;  %2718 = vmatpush.bf16.msra.mxu0 %v9330_v34 }
 0x203   : > { %2767 = vmatpush.bf16.msra.mxu1 %v9586_v14 }
 0x204   : > { %v1780_v27 = vpop.f32.mrf.mxu3  ;;  %v1635_v59 = vpop.f32.mrf.mxu0 }
 0x205   : > { %v13323_v29 = vadd.f32 %v1780_v27, %v1731_v26 }
 0x206   : > { %v1684_v44 = vpop.f32.mrf.mxu1 }
 0x207   : > { %18536 = vst [vmem:[#allocation53_spill] sm:$0xff] %v13323_v29  ;;  %v13334_v0 = vadd.f32 %v1684_v44, %v1635_v59  ;;  %v11227_v59 = vld [vmem:[%s18476_s1 + $0x1cc] sm:$0xf] }
 0x208   : > { %v9563_v44 = vld [vmem:[%s18476_s1 + $0x1e8] sm:$0xf0] }
 0x209   : > { %18537 = vst [vmem:[#allocation54_spill] sm:$0xff] %v13334_v0  ;;  %v9566_v32 = vor.u32 %v11227_v59, %v9563_v44 }
 0x20a   : > { %v1733_v52 = vpop.f32.mrf.mxu2 }
 0x20b   : > { %3005 = vmatpush.bf16.msrb.mxu2 %v9566_v32 }
 0x20c   : > { %v1782_v26 = vpop.f32.mrf.mxu3  ;;  %v1638_v35 = vpop.f32.mrf.mxu0 }
 0x20d   : > { %v13339_v27 = vadd.f32 %v1782_v26, %v1733_v52  ;;  %v9561_v52 = vld [vmem:[%s18476_s1 + $0x1c8] sm:$0xf] }
 0x20e   : > { %v1687_v29 = vpop.f32.mrf.mxu1  ;;  %v11231_v26 = vld [vmem:[%s18476_s1 + $0x1e4] sm:$0xf0] }
 0x20f   : > { %18538 = vst [vmem:[#allocation55_spill] sm:$0xff] %v13339_v27  ;;  %v13341_v55 = vadd.f32 %v1687_v29, %v1638_v35  ;;  %1833 = vmatmul.bf16.gmra.mxu0 %v12481_v47  ;;  %1931 = vmatmul.bf16.gmra.mxu2 %v12481_v47  ;;  %v11291_v29 = vld [vmem:[%s18476_s1 + $0x3cc] sm:$0xf]  ;;  %v9817_v35 = vld [vmem:[%s18476_s1 + $0x3c8] sm:$0xf]  ;;  %v9562_v44 = vor.u32 %v11231_v26, %v9561_v52 }
 0x210   : > { %v9822_v41 = vor.u32 %v11291_v29, %v9819_v6  ;;  %v11295_v29 = vld [vmem:[%s18476_s1 + $0x3e4] sm:$0xf0]  ;;  %v9787_v26 = vld [vmem:[%s18476_s1 + $0x3a8] sm:$0xf0] }
 0x211   : > { %18539 = vst [vmem:[#allocation56_spill] sm:$0xff] %v13341_v55  ;;  %1882 = vmatmul.bf16.gmra.mxu1 %v12483_v48  ;;  %1980 = vmatmul.bf16.gmra.mxu3 %v12483_v48  ;;  %v9818_v32 = vor.u32 %v11295_v29, %v9817_v35 }
 0x212   : > { %v1736_v47 = vpop.f32.mrf.mxu2  ;;  %3054 = vmatpush.bf16.msrb.mxu3 %v9822_v41  ;;  %2907 = vmatpush.bf16.msrb.mxu0 %v9562_v44 }
 0x213   : > { %2956 = vmatpush.bf16.msrb.mxu1 %v9818_v32 }
 0x214   : > { %v1785_v48 = vpop.f32.mrf.mxu3  ;;  %v1640_v34 = vpop.f32.mrf.mxu0 }
 0x215   : > { %v13359_v20 = vadd.f32 %v1785_v48, %v1736_v47 }
 0x216   : > { %v1689_v14 = vpop.f32.mrf.mxu1 }
 0x217   : > { %18540 = vst [vmem:[#allocation57_spill] sm:$0xff] %v13359_v20  ;;  %v13370_v59 = vadd.f32 %v1689_v14, %v1640_v34  ;;  %v11219_v34 = vld [vmem:[%s18476_s1 + $0x18c] sm:$0xf] }
 0x218   : > { %v9531_v14 = vld [vmem:[%s18476_s1 + $0x1a8] sm:$0xf0] }
 0x219   : > { %18541 = vst [vmem:[#allocation58_spill] sm:$0xff] %v13370_v59  ;;  %v9534_v52 = vor.u32 %v11219_v34, %v9531_v14 }
 0x21a   : > { %v1738_v6 = vpop.f32.mrf.mxu2 }
 0x21b   : > { %3006 = vmatpush.bf16.msrb.mxu2 %v9534_v52 }
 0x21c   : > { %v1787_v47 = vpop.f32.mrf.mxu3  ;;  %v1643_v41 = vpop.f32.mrf.mxu0 }
 0x21d   : > { %v13375_v48 = vadd.f32 %v1787_v47, %v1738_v6  ;;  %v9529_v6 = vld [vmem:[%s18476_s1 + $0x188] sm:$0xf] }
 0x21e   : > { %v1692_v20 = vpop.f32.mrf.mxu1  ;;  %v11223_v47 = vld [vmem:[%s18476_s1 + $0x1a4] sm:$0xf0] }
 0x21f   : > { %18542 = vst [vmem:[#allocation59_spill] sm:$0xff] %v13375_v48  ;;  %v13377_v55 = vadd.f32 %v1692_v20, %v1643_v41  ;;  %1838 = vmatmul.bf16.gmra.mxu0 %v12517_v4  ;;  %1936 = vmatmul.bf16.gmra.mxu2 %v12517_v4  ;;  %v11283_v20 = vld [vmem:[%s18476_s1 + $0x38c] sm:$0xf]  ;;  %v9785_v41 = vld [vmem:[%s18476_s1 + $0x388] sm:$0xf]  ;;  %v9530_v14 = vor.u32 %v11223_v47, %v9529_v6 }
 0x220   : > { %v11211_v47 = vld [vmem:[%s18476_s1 + $0x14c] sm:$0xf] }
 0x221   : > { %18543 = vst [vmem:[#allocation60_spill] sm:$0xff] %v13377_v55  ;;  %1887 = vmatmul.bf16.gmra.mxu1 %v12519_v5  ;;  %1985 = vmatmul.bf16.gmra.mxu3 %v12519_v5  ;;  %v9790_v5 = vor.u32 %v11283_v20, %v9787_v26  ;;  %v11287_v20 = vld [vmem:[%s18476_s1 + $0x3a4] sm:$0xf0]  ;;  %v9265_v26 = vld [vmem:[%s12211_s5] sm:$0xf] }
 0x222   : > { %v1741_v4 = vpop.f32.mrf.mxu2  ;;  %v9786_v52 = vor.u32 %v11287_v20, %v9785_v41  ;;  %2908 = vmatpush.bf16.msrb.mxu0 %v9530_v14  ;;  %v9755_v41 = vld [vmem:[%s18476_s1 + $0x368] sm:$0xf0] }
 0x223   : > { %3055 = vmatpush.bf16.msrb.mxu3 %v9790_v5  ;;  %v11154_v5 = vld [vmem:[%s12211_s5 + $0x4] sm:$0xf] }
 0x224   : > { %v1790_v35 = vpop.f32.mrf.mxu3  ;;  %v1645_v44 = vpop.f32.mrf.mxu0  ;;  %2957 = vmatpush.bf16.msrb.mxu1 %v9786_v52 }
 0x225   : > { %v13395_v29 = vadd.f32 %v1790_v35, %v1741_v4  ;;  %v11155_v4 = vld [vmem:[%s12211_s5 + $0x4] sm:$0xf0]  ;;  %v9267_v35 = vld [vmem:[%s12211_s5 + $0x8] sm:$0xf0] }
 0x226   : > { %v1694_v32 = vpop.f32.mrf.mxu1  ;;  %v13415_v55 = vor.u32 %v11155_v4, %v9265_v26  ;;  %v13417_v27 = vor.u32 %v11154_v5, %v9267_v35  ;;  %v9497_v35 = vld [vmem:[%s18476_s1 + $0x148] sm:$0xf] }
 0x227   : > { %18544 = vst [vmem:[#allocation61_spill] sm:$0xff] %v13395_v29  ;;  %v13406_v34 = vadd.f32 %v1694_v32, %v1645_v44 }
 0x229   : > { %18545 = vst [vmem:[#allocation62_spill] sm:$0xff] %v13406_v34 }
 0x22a   : > { %v1743_v29 = vpop.f32.mrf.mxu2 }
 0x22c   : > { %v1792_v48 = vpop.f32.mrf.mxu3  ;;  %v1804_v59 = vpop.f32.mrf.mxu0 }
 0x22d   : > { %v13419_v44 = vadd.f32 %v1792_v48, %v1743_v29  ;;  %v9499_v48 = vld [vmem:[%s18476_s1 + $0x168] sm:$0xf0] }
 0x22e   : > { %v1853_v32 = vpop.f32.mrf.mxu1  ;;  %v9502_v29 = vor.u32 %v11211_v47, %v9499_v48  ;;  %v9753_v47 = vld [vmem:[%s18476_s1 + $0x348] sm:$0xf] }
 0x22f   : > { %18546 = vst [vmem:[#allocation63_spill] sm:$0xff] %v13419_v44  ;;  %v13421_v6 = vadd.f32 %v1853_v32, %v1804_v59  ;;  %2719 = vmatmul.bf16.vlgmr.msra.gmra.mxu0 %v13415_v55  ;;  %2817 = vmatmul.bf16.vlgmr.msra.gmra.mxu2 %v13415_v55  ;;  %v11275_v59 = vld [vmem:[%s18476_s1 + $0x34c] sm:$0xf]  ;;  %v11215_v32 = vld [vmem:[%s18476_s1 + $0x164] sm:$0xf0] }
 0x230   : > { %v9758_v20 = vor.u32 %v11275_v59, %v9755_v41  ;;  %3007 = vmatpush.bf16.msrb.mxu2 %v9502_v29  ;;  %v9498_v59 = vor.u32 %v11215_v32, %v9497_v35  ;;  %v11279_v29 = vld [vmem:[%s18476_s1 + $0x364] sm:$0xf0]  ;;  %v11203_v32 = vld [vmem:[%s18476_s1 + $0x10c] sm:$0xf] }
 0x231   : > { %18547 = vst [vmem:[#allocation64_spill] sm:$0xff] %v13421_v6  ;;  %2768 = vmatmul.bf16.vlgmr.msra.gmra.mxu1 %v13417_v27  ;;  %2866 = vmatmul.bf16.vlgmr.msra.gmra.mxu3 %v13417_v27  ;;  %v9754_v41 = vor.u32 %v11279_v29, %v9753_v47 }
 0x232   : > { %v1902_v14 = vpop.f32.mrf.mxu2  ;;  %3056 = vmatpush.bf16.msrb.mxu3 %v9758_v20  ;;  %v11157_v20 = vld [vmem:[%s12211_s5 + $0x14] sm:$0xf0]  ;;  %2909 = vmatpush.bf16.msrb.mxu0 %v9498_v59 }
 0x233   : > { %2958 = vmatpush.bf16.msrb.mxu1 %v9754_v41 }
 0x234   : > { %v1951_v52 = vpop.f32.mrf.mxu3  ;;  %v1806_v26 = vpop.f32.mrf.mxu0 }
 0x235   : > { %v13439_v4 = vadd.f32 %v1951_v52, %v1902_v14  ;;  %v9273_v14 = vld [vmem:[%s12211_s5 + $0x10] sm:$0xf]  ;;  %v11156_v52 = vld [vmem:[%s12211_s5 + $0x14] sm:$0xf] }
 0x236   : > { %v1855_v5 = vpop.f32.mrf.mxu1  ;;  %v13459_v44 = vor.u32 %v11157_v20, %v9273_v14 }
 0x237   : > { %18548 = vst [vmem:[#allocation65_spill] sm:$0xff] %v13439_v4  ;;  %v13450_v48 = vadd.f32 %v1855_v5, %v1806_v26  ;;  %v9275_v4 = vld [vmem:[%s12211_s5 + $0x18] sm:$0xf0] }
 0x238   : > { %v13461_v7 = vor.u32 %v11156_v52, %v9275_v4  ;;  %v9723_v4 = vld [vmem:[%s18476_s1 + $0x328] sm:$0xf0]  ;;  %v9465_v52 = vld [vmem:[%s18476_s1 + $0x108] sm:$0xf] }
 0x239   : > { %18549 = vst [vmem:[#allocation66_spill] sm:$0xff] %v13450_v48 }
 0x23a   : > { %v1904_v6 = vpop.f32.mrf.mxu2 }
 0x23c   : > { %v1953_v34 = vpop.f32.mrf.mxu3  ;;  %v1809_v0 = vpop.f32.mrf.mxu0 }
 0x23d   : > { %v13463_v26 = vadd.f32 %v1953_v34, %v1904_v6  ;;  %v9467_v34 = vld [vmem:[%s18476_s1 + $0x128] sm:$0xf0] }
 0x23e   : > { %v1858_v5 = vpop.f32.mrf.mxu1  ;;  %v9470_v6 = vor.u32 %v11203_v32, %v9467_v34  ;;  %v9721_v32 = vld [vmem:[%s18476_s1 + $0x308] sm:$0xf] }
 0x23f   : > { %18550 = vst [vmem:[#allocation67_spill] sm:$0xff] %v13463_v26  ;;  %v13465_v35 = vadd.f32 %v1858_v5, %v1809_v0  ;;  %2724 = vmatmul.bf16.gmra.mxu0 %v13459_v44  ;;  %2822 = vmatmul.bf16.gmra.mxu2 %v13459_v44  ;;  %v11267_v0 = vld [vmem:[%s18476_s1 + $0x30c] sm:$0xf]  ;;  %v11207_v5 = vld [vmem:[%s18476_s1 + $0x124] sm:$0xf0] }
 0x240   : > { %v9726_v59 = vor.u32 %v11267_v0, %v9723_v4  ;;  %3008 = vmatpush.bf16.msrb.mxu2 %v9470_v6  ;;  %v9466_v0 = vor.u32 %v11207_v5, %v9465_v52  ;;  %v11271_v6 = vld [vmem:[%s18476_s1 + $0x324] sm:$0xf0]  ;;  %v11195_v5 = vld [vmem:[%s18476_s1 + $0xcc] sm:$0xf] }
 0x241   : > { %18551 = vst [vmem:[#allocation68_spill] sm:$0xff] %v13465_v35  ;;  %2773 = vmatmul.bf16.gmra.mxu1 %v13461_v7  ;;  %2871 = vmatmul.bf16.gmra.mxu3 %v13461_v7  ;;  %v9722_v4 = vor.u32 %v11271_v6, %v9721_v32 }
 0x242   : > { %v1907_v47 = vpop.f32.mrf.mxu2  ;;  %3057 = vmatpush.bf16.msrb.mxu3 %v9726_v59  ;;  %v11159_v59 = vld [vmem:[%s12211_s5 + $0x24] sm:$0xf0]  ;;  %2910 = vmatpush.bf16.msrb.mxu0 %v9466_v0 }
 0x243   : > { %2959 = vmatpush.bf16.msrb.mxu1 %v9722_v4 }
 0x244   : > { %v1956_v29 = vpop.f32.mrf.mxu3  ;;  %v1811_v41 = vpop.f32.mrf.mxu0 }
 0x245   : > { %v13483_v14 = vadd.f32 %v1956_v29, %v1907_v47  ;;  %v9281_v47 = vld [vmem:[%s12211_s5 + $0x20] sm:$0xf]  ;;  %v11158_v29 = vld [vmem:[%s12211_s5 + $0x24] sm:$0xf] }
 0x246   : > { %v1860_v20 = vpop.f32.mrf.mxu1  ;;  %v13503_v26 = vor.u32 %v11159_v59, %v9281_v47 }
 0x247   : > { %18552 = vst [vmem:[#allocation69_spill] sm:$0xff] %v13483_v14  ;;  %v13494_v34 = vadd.f32 %v1860_v20, %v1811_v41  ;;  %v9283_v14 = vld [vmem:[%s12211_s5 + $0x28] sm:$0xf0] }
 0x248   : > { %v13505_v53 = vor.u32 %v11158_v29, %v9283_v14  ;;  %v9691_v14 = vld [vmem:[%s18476_s1 + $0x2e8] sm:$0xf0]  ;;  %v9433_v29 = vld [vmem:[%s18476_s1 + $0xc8] sm:$0xf] }
 0x249   : > { %18553 = vst [vmem:[#allocation70_spill] sm:$0xff] %v13494_v34 }
 0x24a   : > { %v1909_v35 = vpop.f32.mrf.mxu2 }
 0x24c   : > { %v1958_v48 = vpop.f32.mrf.mxu3  ;;  %v1814_v31 = vpop.f32.mrf.mxu0 }
 0x24d   : > { %v13507_v41 = vadd.f32 %v1958_v48, %v1909_v35  ;;  %v9435_v48 = vld [vmem:[%s18476_s1 + $0xe8] sm:$0xf0] }
 0x24e   : > { %v1863_v20 = vpop.f32.mrf.mxu1  ;;  %v9438_v35 = vor.u32 %v11195_v5, %v9435_v48  ;;  %v9689_v5 = vld [vmem:[%s18476_s1 + $0x2c8] sm:$0xf] }
 0x24f   : > { %18554 = vst [vmem:[#allocation71_spill] sm:$0xff] %v13507_v41  ;;  %v13509_v52 = vadd.f32 %v1863_v20, %v1814_v31  ;;  %2729 = vmatmul.bf16.gmra.mxu0 %v13503_v26  ;;  %2827 = vmatmul.bf16.gmra.mxu2 %v13503_v26  ;;  %v11259_v31 = vld [vmem:[%s18476_s1 + $0x2cc] sm:$0xf]  ;;  %v11199_v20 = vld [vmem:[%s18476_s1 + $0xe4] sm:$0xf0] }
 0x250   : > { %v9694_v0 = vor.u32 %v11259_v31, %v9691_v14  ;;  %3009 = vmatpush.bf16.msrb.mxu2 %v9438_v35  ;;  %v9434_v31 = vor.u32 %v11199_v20, %v9433_v29  ;;  %v11263_v35 = vld [vmem:[%s18476_s1 + $0x2e4] sm:$0xf0]  ;;  %v11187_v20 = vld [vmem:[%s18476_s1 + $0x8c] sm:$0xf] }
 0x251   : > { %18555 = vst [vmem:[#allocation72_spill] sm:$0xff] %v13509_v52  ;;  %2778 = vmatmul.bf16.gmra.mxu1 %v13505_v53  ;;  %2876 = vmatmul.bf16.gmra.mxu3 %v13505_v53  ;;  %v9690_v14 = vor.u32 %v11263_v35, %v9689_v5 }
 0x252   : > { %v1912_v32 = vpop.f32.mrf.mxu2  ;;  %3058 = vmatpush.bf16.msrb.mxu3 %v9694_v0  ;;  %v11161_v0 = vld [vmem:[%s12211_s5 + $0x34] sm:$0xf0]  ;;  %2911 = vmatpush.bf16.msrb.mxu0 %v9434_v31 }
 0x253   : > { %2960 = vmatpush.bf16.msrb.mxu1 %v9690_v14 }
 0x254   : > { %v1961_v6 = vpop.f32.mrf.mxu3  ;;  %v1816_v4 = vpop.f32.mrf.mxu0 }
 0x255   : > { %v13527_v47 = vadd.f32 %v1961_v6, %v1912_v32  ;;  %v9289_v32 = vld [vmem:[%s12211_s5 + $0x30] sm:$0xf]  ;;  %v11160_v6 = vld [vmem:[%s12211_s5 + $0x34] sm:$0xf] }
 0x256   : > { %v1865_v59 = vpop.f32.mrf.mxu1  ;;  %v13547_v41 = vor.u32 %v11161_v0, %v9289_v32 }
 0x257   : > { %18556 = vst [vmem:[#allocation73_spill] sm:$0xff] %v13527_v47  ;;  %v13538_v48 = vadd.f32 %v1865_v59, %v1816_v4  ;;  %v9291_v47 = vld [vmem:[%s12211_s5 + $0x38] sm:$0xf0] }
 0x258   : > { %v13549_v33 = vor.u32 %v11160_v6, %v9291_v47  ;;  %v9659_v47 = vld [vmem:[%s18476_s1 + $0x2a8] sm:$0xf0]  ;;  %v9401_v6 = vld [vmem:[%s18476_s1 + $0x88] sm:$0xf] }
 0x259   : > { %18557 = vst [vmem:[#allocation74_spill] sm:$0xff] %v13538_v48 }
 0x25a   : > { %v1914_v52 = vpop.f32.mrf.mxu2 }
 0x25c   : > { %v1963_v34 = vpop.f32.mrf.mxu3  ;;  %v1819_v46 = vpop.f32.mrf.mxu0 }
 0x25d   : > { %v13551_v4 = vadd.f32 %v1963_v34, %v1914_v52  ;;  %v9403_v34 = vld [vmem:[%s18476_s1 + $0xa8] sm:$0xf0] }
 0x25e   : > { %v1868_v59 = vpop.f32.mrf.mxu1  ;;  %v9406_v52 = vor.u32 %v11187_v20, %v9403_v34  ;;  %v9657_v20 = vld [vmem:[%s18476_s1 + $0x288] sm:$0xf] }
 0x25f   : > { %18558 = vst [vmem:[#allocation75_spill] sm:$0xff] %v13551_v4  ;;  %v13553_v29 = vadd.f32 %v1868_v59, %v1819_v46  ;;  %2734 = vmatmul.bf16.gmra.mxu0 %v13547_v41  ;;  %2832 = vmatmul.bf16.gmra.mxu2 %v13547_v41  ;;  %v11251_v46 = vld [vmem:[%s18476_s1 + $0x28c] sm:$0xf]  ;;  %v11191_v59 = vld [vmem:[%s18476_s1 + $0xa4] sm:$0xf0] }
 0x260   : > { %v9662_v31 = vor.u32 %v11251_v46, %v9659_v47  ;;  %3010 = vmatpush.bf16.msrb.mxu2 %v9406_v52  ;;  %v9402_v46 = vor.u32 %v11191_v59, %v9401_v6  ;;  %v11255_v52 = vld [vmem:[%s18476_s1 + $0x2a4] sm:$0xf0]  ;;  %v11179_v59 = vld [vmem:[%s18476_s1 + $0x4c] sm:$0xf] }
 0x261   : > { %18559 = vst [vmem:[#allocation76_spill] sm:$0xff] %v13553_v29  ;;  %2783 = vmatmul.bf16.gmra.mxu1 %v13549_v33  ;;  %2881 = vmatmul.bf16.gmra.mxu3 %v13549_v33  ;;  %v9658_v47 = vor.u32 %v11255_v52, %v9657_v20 }
 0x262   : > { %v1917_v5 = vpop.f32.mrf.mxu2  ;;  %3059 = vmatpush.bf16.msrb.mxu3 %v9662_v31  ;;  %v11163_v31 = vld [vmem:[%s12211_s5 + $0x44] sm:$0xf0]  ;;  %2912 = vmatpush.bf16.msrb.mxu0 %v9402_v46 }
 0x263   : > { %2961 = vmatpush.bf16.msrb.mxu1 %v9658_v47 }
 0x264   : > { %v1966_v35 = vpop.f32.mrf.mxu3  ;;  %v1821_v14 = vpop.f32.mrf.mxu0 }
 0x265   : > { %v13571_v32 = vadd.f32 %v1966_v35, %v1917_v5  ;;  %v9297_v5 = vld [vmem:[%s12211_s5 + $0x40] sm:$0xf]  ;;  %v11162_v35 = vld [vmem:[%s12211_s5 + $0x44] sm:$0xf] }
 0x266   : > { %v1870_v0 = vpop.f32.mrf.mxu1  ;;  %v13591_v4 = vor.u32 %v11163_v31, %v9297_v5 }
 0x267   : > { %18560 = vst [vmem:[#allocation77_spill] sm:$0xff] %v13571_v32  ;;  %v13582_v34 = vadd.f32 %v1870_v0, %v1821_v14  ;;  %v9299_v32 = vld [vmem:[%s12211_s5 + $0x48] sm:$0xf0] }
 0x268   : > { %v13593_v15 = vor.u32 %v11162_v35, %v9299_v32  ;;  %v9627_v32 = vld [vmem:[%s18476_s1 + $0x268] sm:$0xf0]  ;;  %v9369_v35 = vld [vmem:[%s18476_s1 + $0x48] sm:$0xf] }
 0x269   : > { %18561 = vst [vmem:[#allocation78_spill] sm:$0xff] %v13582_v34 }
 0x26a   : > { %v1919_v29 = vpop.f32.mrf.mxu2 }
 0x26c   : > { %v1968_v48 = vpop.f32.mrf.mxu3  ;;  %v1824_v51 = vpop.f32.mrf.mxu0 }
 0x26d   : > { %v13595_v14 = vadd.f32 %v1968_v48, %v1919_v29  ;;  %v9371_v48 = vld [vmem:[%s18476_s1 + $0x68] sm:$0xf0] }
 0x26e   : > { %v1873_v0 = vpop.f32.mrf.mxu1  ;;  %v9374_v29 = vor.u32 %v11179_v59, %v9371_v48  ;;  %v9625_v59 = vld [vmem:[%s18476_s1 + $0x248] sm:$0xf] }
 0x26f   : > { %18562 = vst [vmem:[#allocation79_spill] sm:$0xff] %v13595_v14  ;;  %v13597_v6 = vadd.f32 %v1873_v0, %v1824_v51  ;;  %2739 = vmatmul.bf16.gmra.mxu0 %v13591_v4  ;;  %2837 = vmatmul.bf16.gmra.mxu2 %v13591_v4  ;;  %v11243_v51 = vld [vmem:[%s18476_s1 + $0x24c] sm:$0xf]  ;;  %v11183_v0 = vld [vmem:[%s18476_s1 + $0x64] sm:$0xf0] }
 0x270   : > { %v9630_v46 = vor.u32 %v11243_v51, %v9627_v32  ;;  %3011 = vmatpush.bf16.msrb.mxu2 %v9374_v29  ;;  %v9370_v51 = vor.u32 %v11183_v0, %v9369_v35  ;;  %v11247_v29 = vld [vmem:[%s18476_s1 + $0x264] sm:$0xf0]  ;;  %v11171_v0 = vld [vmem:[%s18476_s1 + $0xc] sm:$0xf] }
 0x271   : > { %18563 = vst [vmem:[#allocation80_spill] sm:$0xff] %v13597_v6  ;;  %2788 = vmatmul.bf16.gmra.mxu1 %v13593_v15  ;;  %2886 = vmatmul.bf16.gmra.mxu3 %v13593_v15  ;;  %v9626_v32 = vor.u32 %v11247_v29, %v9625_v59 }
 0x272   : > { %v1922_v20 = vpop.f32.mrf.mxu2  ;;  %3060 = vmatpush.bf16.msrb.mxu3 %v9630_v46  ;;  %v11165_v46 = vld [vmem:[%s12211_s5 + $0x54] sm:$0xf0]  ;;  %2913 = vmatpush.bf16.msrb.mxu0 %v9370_v51 }
 0x273   : > { %2962 = vmatpush.bf16.msrb.mxu1 %v9626_v32 }
 0x274   : > { %v1971_v52 = vpop.f32.mrf.mxu3  ;;  %v1826_v47 = vpop.f32.mrf.mxu0 }
 0x275   : > { %v13615_v5 = vadd.f32 %v1971_v52, %v1922_v20  ;;  %v9305_v20 = vld [vmem:[%s12211_s5 + $0x50] sm:$0xf]  ;;  %v11164_v52 = vld [vmem:[%s12211_s5 + $0x54] sm:$0xf] }
 0x276   : > { %v1875_v31 = vpop.f32.mrf.mxu1  ;;  %v13635_v14 = vor.u32 %v11165_v46, %v9305_v20 }
 0x277   : > { %18564 = vst [vmem:[#allocation81_spill] sm:$0xff] %v13615_v5  ;;  %v13626_v48 = vadd.f32 %v1875_v31, %v1826_v47  ;;  %v9307_v5 = vld [vmem:[%s12211_s5 + $0x58] sm:$0xf0] }
 0x278   : > { %v13637_v49 = vor.u32 %v11164_v52, %v9307_v5  ;;  %v9595_v5 = vld [vmem:[%s18476_s1 + $0x228] sm:$0xf0]  ;;  %v9337_v52 = vld [vmem:[%s18476_s1 + $0x8] sm:$0xf] }
 0x279   : > { %18565 = vst [vmem:[#allocation82_spill] sm:$0xff] %v13626_v48 }
 0x27a   : > { %v1924_v6 = vpop.f32.mrf.mxu2 }
 0x27c   : > { %v1973_v34 = vpop.f32.mrf.mxu3  ;;  %v1829_v2 = vpop.f32.mrf.mxu0 }
 0x27d   : > { %v13639_v47 = vadd.f32 %v1973_v34, %v1924_v6  ;;  %v9339_v34 = vld [vmem:[%s18476_s1 + $0x28] sm:$0xf0] }
 0x27e   : > { %v1878_v31 = vpop.f32.mrf.mxu1  ;;  %v9342_v6 = vor.u32 %v11171_v0, %v9339_v34  ;;  %v9593_v0 = vld [vmem:[%s18476_s1 + $0x208] sm:$0xf] }
 0x27f   : > { %18566 = vst [vmem:[#allocation83_spill] sm:$0xff] %v13639_v47  ;;  %v13641_v35 = vadd.f32 %v1878_v31, %v1829_v2  ;;  %2744 = vmatmul.bf16.gmra.mxu0 %v13635_v14  ;;  %2842 = vmatmul.bf16.gmra.mxu2 %v13635_v14  ;;  %v11235_v2 = vld [vmem:[%s18476_s1 + $0x20c] sm:$0xf]  ;;  %v11175_v31 = vld [vmem:[%s18476_s1 + $0x24] sm:$0xf0] }
 0x280   : > { %v9598_v51 = vor.u32 %v11235_v2, %v9595_v5  ;;  %3012 = vmatpush.bf16.msrb.mxu2 %v9342_v6  ;;  %v9338_v2 = vor.u32 %v11175_v31, %v9337_v52  ;;  %v11239_v6 = vld [vmem:[%s18476_s1 + $0x224] sm:$0xf0]  ;;  %v11228_v31 = vld [vmem:[%s18476_s1 + $0x1d4] sm:$0xf] }
 0x281   : > { %18567 = vst [vmem:[#allocation84_spill] sm:$0xff] %v13641_v35  ;;  %2793 = vmatmul.bf16.gmra.mxu1 %v13637_v49  ;;  %2891 = vmatmul.bf16.gmra.mxu3 %v13637_v49  ;;  %v9594_v5 = vor.u32 %v11239_v6, %v9593_v0 }
 0x282   : > { %v1927_v59 = vpop.f32.mrf.mxu2  ;;  %3061 = vmatpush.bf16.msrb.mxu3 %v9598_v51  ;;  %v11167_v51 = vld [vmem:[%s12211_s5 + $0x64] sm:$0xf0]  ;;  %2914 = vmatpush.bf16.msrb.mxu0 %v9338_v2 }
 0x283   : > { %2963 = vmatpush.bf16.msrb.mxu1 %v9594_v5 }
 0x284   : > { %v1976_v29 = vpop.f32.mrf.mxu3  ;;  %v1831_v32 = vpop.f32.mrf.mxu0 }
 0x285   : > { %v13659_v20 = vadd.f32 %v1976_v29, %v1927_v59  ;;  %v9313_v59 = vld [vmem:[%s12211_s5 + $0x60] sm:$0xf]  ;;  %v11166_v29 = vld [vmem:[%s12211_s5 + $0x64] sm:$0xf] }
 0x286   : > { %v1880_v46 = vpop.f32.mrf.mxu1  ;;  %v13679_v47 = vor.u32 %v11167_v51, %v9313_v59 }
 0x287   : > { %18568 = vst [vmem:[#allocation85_spill] sm:$0xff] %v13659_v20  ;;  %v13670_v34 = vadd.f32 %v1880_v46, %v1831_v32  ;;  %v9315_v20 = vld [vmem:[%s12211_s5 + $0x68] sm:$0xf0] }
 0x288   : > { %v13681_v11 = vor.u32 %v11166_v29, %v9315_v20  ;;  %v9827_v20 = vld [vmem:[%s18476_s1 + $0x3f0] sm:$0xf0] }
 0x289   : > { %18569 = vst [vmem:[#allocation86_spill] sm:$0xff] %v13670_v34 }
 0x28a   : > { %v1929_v35 = vpop.f32.mrf.mxu2 }
 0x28c   : > { %v1978_v48 = vpop.f32.mrf.mxu3  ;;  %v1834_v18 = vpop.f32.mrf.mxu0 }
 0x28d   : > { %v13683_v32 = vadd.f32 %v1978_v48, %v1929_v35  ;;  %v9571_v48 = vld [vmem:[%s18476_s1 + $0x1f0] sm:$0xf0] }
 0x28e   : > { %v1883_v46 = vpop.f32.mrf.mxu1  ;;  %v9574_v35 = vor.u32 %v11228_v31, %v9571_v48  ;;  %v11232_v31 = vld [vmem:[%s18476_s1 + $0x1ec] sm:$0xf0] }
 0x28f   : > { %18570 = vst [vmem:[#allocation87_spill] sm:$0xff] %v13683_v32  ;;  %v13685_v52 = vadd.f32 %v1883_v46, %v1834_v18  ;;  %2749 = vmatmul.bf16.gmra.mxu0 %v13679_v47  ;;  %2847 = vmatmul.bf16.gmra.mxu2 %v13679_v47  ;;  %v11292_v18 = vld [vmem:[%s18476_s1 + $0x3d4] sm:$0xf]  ;;  %v9569_v46 = vld [vmem:[%s18476_s1 + $0x1d0] sm:$0xf] }
 0x290   : > { %v9830_v2 = vor.u32 %v11292_v18, %v9827_v20  ;;  %3201 = vmatpush.bf16.msra.mxu2 %v9574_v35  ;;  %v9825_v48 = vld [vmem:[%s18476_s1 + $0x3d0] sm:$0xf]  ;;  %v9570_v18 = vor.u32 %v11232_v31, %v9569_v46 }
 0x291   : > { %18571 = vst [vmem:[#allocation88_spill] sm:$0xff] %v13685_v52  ;;  %2798 = vmatmul.bf16.gmra.mxu1 %v13681_v11  ;;  %2896 = vmatmul.bf16.gmra.mxu3 %v13681_v11  ;;  %v11296_v35 = vld [vmem:[%s18476_s1 + $0x3ec] sm:$0xf0] }
 0x292   : > { %v1932_v0 = vpop.f32.mrf.mxu2  ;;  %3250 = vmatpush.bf16.msra.mxu3 %v9830_v2  ;;  %v9321_v20 = vld [vmem:[%s12211_s5 + $0x70] sm:$0xf]  ;;  %v9826_v2 = vor.u32 %v11296_v35, %v9825_v48  ;;  %3103 = vmatpush.bf16.msra.mxu0 %v9570_v18  ;;  %v11220_v48 = vld [vmem:[%s18476_s1 + $0x194] sm:$0xf] }
 0x293   : > { %v9795_v35 = vld [vmem:[%s18476_s1 + $0x3b0] sm:$0xf0] }
 0x294   : > { %v1981_v6 = vpop.f32.mrf.mxu3  ;;  %v1836_v5 = vpop.f32.mrf.mxu0  ;;  %3152 = vmatpush.bf16.msra.mxu1 %v9826_v2 }
 0x295   : > { %v13703_v59 = vadd.f32 %v1981_v6, %v1932_v0  ;;  %v11169_v0 = vld [vmem:[%s12211_s5 + $0x74] sm:$0xf0]  ;;  %v11168_v6 = vld [vmem:[%s12211_s5 + $0x74] sm:$0xf] }
 0x296   : > { %v1885_v51 = vpop.f32.mrf.mxu1 }
 0x297   : > { %18572 = vst [vmem:[#allocation89_spill] sm:$0xff] %v13703_v59  ;;  %v13705_v29 = vadd.f32 %v1885_v51, %v1836_v5  ;;  %v9323_v5 = vld [vmem:[%s12211_s5 + $0x78] sm:$0xf0] }
 0x298   : > { %v13725_v32 = vor.u32 %v11168_v6, %v9323_v5 }
 0x299   : > { %18573 = vst [vmem:[#allocation90_spill] sm:$0xff] %v13705_v29  ;;  %v13723_v29 = vor.u32 %v11169_v0, %v9321_v20 }
 0x29a   : > { %v1934_v51 = vpop.f32.mrf.mxu2 }
 0x29c   : > { %v1983_v59 = vpop.f32.mrf.mxu3  ;;  %v1839_v52 = vpop.f32.mrf.mxu0 }
 0x29d   : > { %v13727_v34 = vadd.f32 %v1983_v59, %v1934_v51  ;;  %v9539_v59 = vld [vmem:[%s18476_s1 + $0x1b0] sm:$0xf0] }
 0x29e   : > { %v1888_v46 = vpop.f32.mrf.mxu1  ;;  %v9542_v18 = vor.u32 %v11220_v48, %v9539_v59  ;;  %v11224_v48 = vld [vmem:[%s18476_s1 + $0x1ac] sm:$0xf0] }
 0x29f   : > { %v13729_v31 = vadd.f32 %v1888_v46, %v1839_v52  ;;  %2754 = vmatmul.bf16.gmra.mxu0 %v13723_v29  ;;  %2852 = vmatmul.bf16.gmra.mxu2 %v13723_v29  ;;  %v11284_v52 = vld [vmem:[%s18476_s1 + $0x394] sm:$0xf]  ;;  %v9793_v59 = vld [vmem:[%s18476_s1 + $0x390] sm:$0xf] }
 0x2a0   : > { %v9798_v0 = vor.u32 %v11284_v52, %v9795_v35  ;;  %3202 = vmatpush.bf16.msra.mxu2 %v9542_v18  ;;  %v11288_v18 = vld [vmem:[%s18476_s1 + $0x3ac] sm:$0xf0] }
 0x2a1   : > { %18574 = vst [vmem:[#allocation91_spill] sm:$0xff] %v13729_v31  ;;  %2803 = vmatmul.bf16.gmra.mxu1 %v13725_v32  ;;  %2901 = vmatmul.bf16.gmra.mxu3 %v13725_v32  ;;  %v9537_v31 = vld [vmem:[%s18476_s1 + $0x190] sm:$0xf]  ;;  %v9794_v35 = vor.u32 %v11288_v18, %v9793_v59  ;;  %v9763_v59 = vld [vmem:[%s18476_s1 + $0x370] sm:$0xf0] }
 0x2a2   : > { %v1937_v20 = vpop.f32.mrf.mxu2  ;;  %3251 = vmatpush.bf16.msra.mxu3 %v9798_v0  ;;  %v9538_v52 = vor.u32 %v11224_v48, %v9537_v31  ;;  %v11212_v31 = vld [vmem:[%s18476_s1 + $0x154] sm:$0xf] }
 0x2a3   : > { %3153 = vmatpush.bf16.msra.mxu1 %v9794_v35  ;;  %v9507_v48 = vld [vmem:[%s18476_s1 + $0x170] sm:$0xf0] }
 0x2a4   : > { %v1986_v2 = vpop.f32.mrf.mxu3  ;;  %v1841_v6 = vpop.f32.mrf.mxu0  ;;  %3104 = vmatpush.bf16.msra.mxu0 %v9538_v52 }
 0x2a5   : > { %v13747_v5 = vadd.f32 %v1986_v2, %v1937_v20 }
 0x2a6   : > { %v1890_v51 = vpop.f32.mrf.mxu1 }
 0x2a7   : > { %18575 = vst [vmem:[#allocation92_spill] sm:$0xff] %v13747_v5  ;;  %v13749_v46 = vadd.f32 %v1890_v51, %v1841_v6 }
 0x2a9   : > { %18576 = vst [vmem:[#allocation93_spill] sm:$0xff] %v13749_v46 }
 0x2aa   : > { %v1939_v20 = vpop.f32.mrf.mxu2 }
 0x2ac   : > { %v1988_v0 = vpop.f32.mrf.mxu3  ;;  %v2720_v2 = vpop.f32.mrf.mxu0 }
 0x2ad   : > { %v13763_v6 = vadd.f32 %v1988_v0, %v1939_v20  ;;  %v2721_v51 = vadd.f32 %v2720_v2, %v12549_v24  ;;  %v11276_v24 = vld [vmem:[%s18476_s1 + $0x354] sm:$0xf] }
 0x2ae   : > { %v2769_v46 = vpop.f32.mrf.mxu1  ;;  %v9766_v18 = vor.u32 %v11276_v24, %v9763_v59 }
 0x2af   : > { %18577 = vst [vmem:[#allocation94_spill] sm:$0xff] %v13763_v6  ;;  %v13766_v5 = vadd.f32 %v2769_v46, %v2721_v51  ;;  %2915 = vmatmul.bf16.vlgmr.msrb.gmra.mxu0 %v13415_v55  ;;  %3013 = vmatmul.bf16.vlgmr.msrb.gmra.mxu2 %v13415_v55  ;;  %v9510_v46 = vor.u32 %v11212_v31, %v9507_v48  ;;  %v9505_v31 = vld [vmem:[%s18476_s1 + $0x150] sm:$0xf] }
 0x2b0   : > { %3252 = vmatpush.bf16.msra.mxu3 %v9766_v18  ;;  %v11216_v48 = vld [vmem:[%s18476_s1 + $0x16c] sm:$0xf0] }
 0x2b1   : > { %18578 = vst [vmem:[#allocation95_spill] sm:$0xff] %v13766_v5  ;;  %2964 = vmatmul.bf16.vlgmr.msrb.gmra.mxu1 %v13417_v27  ;;  %3062 = vmatmul.bf16.vlgmr.msrb.gmra.mxu3 %v13417_v27 }
 0x2b2   : > { %v2818_v52 = vpop.f32.mrf.mxu2  ;;  %3203 = vmatpush.bf16.msra.mxu2 %v9510_v46  ;;  %v9506_v46 = vor.u32 %v11216_v48, %v9505_v31  ;;  %v9731_v31 = vld [vmem:[%s18476_s1 + $0x330] sm:$0xf0] }
 0x2b3   : > { %v2819_v35 = vadd.f32 %v2818_v52, %v12567_v38  ;;  %v9761_v38 = vld [vmem:[%s18476_s1 + $0x350] sm:$0xf] }
 0x2b4   : > { %v2867_v20 = vpop.f32.mrf.mxu3  ;;  %v2722_v0 = vpop.f32.mrf.mxu0  ;;  %3105 = vmatpush.bf16.msra.mxu0 %v9506_v46 }
 0x2b5   : > { %v2723_v2 = vadd.f32 %v2722_v0, %v12578_v43  ;;  %v13786_v5 = vadd.f32 %v2867_v20, %v2819_v35  ;;  %v11280_v43 = vld [vmem:[%s18476_s1 + $0x36c] sm:$0xf0] }
 0x2b6   : > { %v2771_v51 = vpop.f32.mrf.mxu1  ;;  %v9762_v59 = vor.u32 %v11280_v43, %v9761_v38 }
 0x2b7   : > { %18579 = vst [vmem:[#allocation96_spill] sm:$0xff] %v13786_v5  ;;  %v13797_v24 = vadd.f32 %v2771_v51, %v2723_v2 }
 0x2b8   : > { %3154 = vmatpush.bf16.msra.mxu1 %v9762_v59 }
 0x2ba   : > { %v2820_v52 = vpop.f32.mrf.mxu2 }
 0x2bb   : > { %v2821_v18 = vadd.f32 %v2820_v52, %v12583_v56  ;;  %v11204_v56 = vld [vmem:[%s18476_s1 + $0x114] sm:$0xf] }
 0x2bc   : > { %v2869_v35 = vpop.f32.mrf.mxu3  ;;  %v2725_v20 = vpop.f32.mrf.mxu0 }
 0x2bd   : > { %v2726_v0 = vadd.f32 %v2725_v20, %v12585_v58  ;;  %v13804_v6 = vadd.f32 %v2869_v35, %v2821_v18  ;;  %v9475_v58 = vld [vmem:[%s18476_s1 + $0x130] sm:$0xf0]  ;;  %v9473_v20 = vld [vmem:[%s18476_s1 + $0x110] sm:$0xf] }
 0x2be   : > { %v2774_v5 = vpop.f32.mrf.mxu1  ;;  %v9478_v51 = vor.u32 %v11204_v56, %v9475_v58 }
 0x2bf   : > { %v13806_v2 = vadd.f32 %v2774_v5, %v2726_v0  ;;  %2920 = vmatmul.bf16.gmra.mxu0 %v13459_v44  ;;  %3018 = vmatmul.bf16.gmra.mxu2 %v13459_v44  ;;  %v11268_v5 = vld [vmem:[%s18476_s1 + $0x314] sm:$0xf]  ;;  %v11208_v0 = vld [vmem:[%s18476_s1 + $0x12c] sm:$0xf0] }
 0x2c0   : > { %v9734_v38 = vor.u32 %v11268_v5, %v9731_v31  ;;  %3204 = vmatpush.bf16.msra.mxu2 %v9478_v51  ;;  %v9474_v58 = vor.u32 %v11208_v0, %v9473_v20  ;;  %v9699_v0 = vld [vmem:[%s18476_s1 + $0x2f0] sm:$0xf0] }
 0x2c1   : > { %2969 = vmatmul.bf16.gmra.mxu1 %v13461_v7  ;;  %3067 = vmatmul.bf16.gmra.mxu3 %v13461_v7 }
 0x2c2   : > { %v2823_v48 = vpop.f32.mrf.mxu2  ;;  %3253 = vmatpush.bf16.msra.mxu3 %v9734_v38  ;;  %3106 = vmatpush.bf16.msra.mxu0 %v9474_v58 }
 0x2c3   : > { %v2824_v46 = vadd.f32 %v2823_v48, %v12603_v8  ;;  %v9729_v8 = vld [vmem:[%s18476_s1 + $0x310] sm:$0xf] }
 0x2c4   : > { %v2872_v43 = vpop.f32.mrf.mxu3  ;;  %v2727_v59 = vpop.f32.mrf.mxu0 }
 0x2c5   : > { %v2728_v52 = vadd.f32 %v2727_v59, %v12614_v13  ;;  %v13826_v35 = vadd.f32 %v2872_v43, %v2824_v46  ;;  %v11272_v13 = vld [vmem:[%s18476_s1 + $0x32c] sm:$0xf0] }
 0x2c6   : > { %v2776_v18 = vpop.f32.mrf.mxu1  ;;  %v9730_v5 = vor.u32 %v11272_v13, %v9729_v8 }
 0x2c7   : > { %v13837_v56 = vadd.f32 %v2776_v18, %v2728_v52  ;;  %v11260_v18 = vld [vmem:[%s18476_s1 + $0x2d4] sm:$0xf] }
 0x2c8   : > { %3155 = vmatpush.bf16.msra.mxu1 %v9730_v5  ;;  %v9702_v58 = vor.u32 %v11260_v18, %v9699_v0 }
 0x2ca   : > { %v2825_v51 = vpop.f32.mrf.mxu2  ;;  %3254 = vmatpush.bf16.msra.mxu3 %v9702_v58 }
 0x2cb   : > { %v2826_v31 = vadd.f32 %v2825_v51, %v12619_v22  ;;  %v11196_v22 = vld [vmem:[%s18476_s1 + $0xd4] sm:$0xf] }
 0x2cc   : > { %v2874_v48 = vpop.f32.mrf.mxu3  ;;  %v2730_v38 = vpop.f32.mrf.mxu0 }
 0x2cd   : > { %v2731_v46 = vadd.f32 %v2730_v38, %v12621_v25  ;;  %v13844_v59 = vadd.f32 %v2874_v48, %v2826_v31  ;;  %v9443_v25 = vld [vmem:[%s18476_s1 + $0xf0] sm:$0xf0] }
 0x2ce   : > { %v2779_v43 = vpop.f32.mrf.mxu1  ;;  %v9446_v20 = vor.u32 %v11196_v22, %v9443_v25 }
 0x2cf   : > { %v13846_v52 = vadd.f32 %v2779_v43, %v2731_v46  ;;  %2925 = vmatmul.bf16.gmra.mxu0 %v13503_v26  ;;  %3023 = vmatmul.bf16.gmra.mxu2 %v13503_v26  ;;  %v9441_v46 = vld [vmem:[%s18476_s1 + $0xd0] sm:$0xf] }
 0x2d0   : > { %3205 = vmatpush.bf16.msra.mxu2 %v9446_v20  ;;  %v11200_v43 = vld [vmem:[%s18476_s1 + $0xec] sm:$0xf0] }
 0x2d1   : > { %2974 = vmatmul.bf16.gmra.mxu1 %v13505_v53  ;;  %3072 = vmatmul.bf16.gmra.mxu3 %v13505_v53  ;;  %v9442_v25 = vor.u32 %v11200_v43, %v9441_v46  ;;  %v9667_v43 = vld [vmem:[%s18476_s1 + $0x2b0] sm:$0xf0] }
 0x2d2   : > { %v2828_v8 = vpop.f32.mrf.mxu2 }
 0x2d3   : > { %v2829_v13 = vadd.f32 %v2828_v8, %v12639_v40  ;;  %v9697_v40 = vld [vmem:[%s18476_s1 + $0x2d0] sm:$0xf]  ;;  %3107 = vmatpush.bf16.msra.mxu0 %v9442_v25 }
 0x2d4   : > { %v2877_v5 = vpop.f32.mrf.mxu3  ;;  %v2732_v51 = vpop.f32.mrf.mxu0 }
 0x2d5   : > { %v2733_v31 = vadd.f32 %v2732_v51, %v12650_v50  ;;  %v13866_v38 = vadd.f32 %v2877_v5, %v2829_v13  ;;  %v11264_v50 = vld [vmem:[%s18476_s1 + $0x2ec] sm:$0xf0] }
 0x2d6   : > { %v2781_v48 = vpop.f32.mrf.mxu1  ;;  %v9698_v18 = vor.u32 %v11264_v50, %v9697_v40 }
 0x2d7   : > { %v13877_v22 = vadd.f32 %v2781_v48, %v2733_v31  ;;  %v11252_v48 = vld [vmem:[%s18476_s1 + $0x294] sm:$0xf] }
 0x2d8   : > { %3156 = vmatpush.bf16.msra.mxu1 %v9698_v18  ;;  %v9670_v25 = vor.u32 %v11252_v48, %v9667_v43 }
 0x2da   : > { %v2830_v20 = vpop.f32.mrf.mxu2  ;;  %3255 = vmatpush.bf16.msra.mxu3 %v9670_v25 }
 0x2db   : > { %v2831_v0 = vadd.f32 %v2830_v20, %v12655_v61  ;;  %v11188_v61 = vld [vmem:[%s18476_s1 + $0x94] sm:$0xf] }
 0x2dc   : > { %v2879_v8 = vpop.f32.mrf.mxu3  ;;  %v2735_v58 = vpop.f32.mrf.mxu0 }
 0x2dd   : > { %v2736_v13 = vadd.f32 %v2735_v58, %v12657_v63  ;;  %v13884_v51 = vadd.f32 %v2879_v8, %v2831_v0  ;;  %v9411_v63 = vld [vmem:[%s18476_s1 + $0xb0] sm:$0xf0] }
 0x2de   : > { %v2784_v5 = vpop.f32.mrf.mxu1  ;;  %v9414_v46 = vor.u32 %v11188_v61, %v9411_v63 }
 0x2df   : > { %v13886_v31 = vadd.f32 %v2784_v5, %v2736_v13  ;;  %2930 = vmatmul.bf16.gmra.mxu0 %v13547_v41  ;;  %3028 = vmatmul.bf16.gmra.mxu2 %v13547_v41  ;;  %v9409_v13 = vld [vmem:[%s18476_s1 + $0x90] sm:$0xf] }
 0x2e0   : > { %3206 = vmatpush.bf16.msra.mxu2 %v9414_v46  ;;  %v11192_v5 = vld [vmem:[%s18476_s1 + $0xac] sm:$0xf0] }
 0x2e1   : > { %2979 = vmatmul.bf16.gmra.mxu1 %v13549_v33  ;;  %3077 = vmatmul.bf16.gmra.mxu3 %v13549_v33  ;;  %v9410_v63 = vor.u32 %v11192_v5, %v9409_v13  ;;  %v9635_v5 = vld [vmem:[%s18476_s1 + $0x270] sm:$0xf0] }
 0x2e2   : > { %v2833_v40 = vpop.f32.mrf.mxu2 }
 0x2e3   : > { %v2834_v50 = vadd.f32 %v2833_v40, %v12675_v17  ;;  %v9665_v17 = vld [vmem:[%s18476_s1 + $0x290] sm:$0xf]  ;;  %3108 = vmatpush.bf16.msra.mxu0 %v9410_v63 }
 0x2e4   : > { %v2882_v18 = vpop.f32.mrf.mxu3  ;;  %v2737_v20 = vpop.f32.mrf.mxu0 }
 0x2e5   : > { %v2738_v0 = vadd.f32 %v2737_v20, %v12686_v23  ;;  %v13906_v58 = vadd.f32 %v2882_v18, %v2834_v50  ;;  %v11256_v23 = vld [vmem:[%s18476_s1 + $0x2ac] sm:$0xf0] }
 0x2e6   : > { %v2786_v8 = vpop.f32.mrf.mxu1  ;;  %v9666_v48 = vor.u32 %v11256_v23, %v9665_v17 }
 0x2e7   : > { %v13917_v61 = vadd.f32 %v2786_v8, %v2738_v0  ;;  %v11244_v8 = vld [vmem:[%s18476_s1 + $0x254] sm:$0xf] }
 0x2e8   : > { %3157 = vmatpush.bf16.msra.mxu1 %v9666_v48  ;;  %v9638_v63 = vor.u32 %v11244_v8, %v9635_v5 }
 0x2ea   : > { %v2835_v46 = vpop.f32.mrf.mxu2  ;;  %3256 = vmatpush.bf16.msra.mxu3 %v9638_v63 }
 0x2eb   : > { %v2836_v43 = vadd.f32 %v2835_v46, %v12691_v36  ;;  %v11180_v36 = vld [vmem:[%s18476_s1 + $0x54] sm:$0xf] }
 0x2ec   : > { %v2884_v40 = vpop.f32.mrf.mxu3  ;;  %v2740_v25 = vpop.f32.mrf.mxu0 }
 0x2ed   : > { %v2741_v50 = vadd.f32 %v2740_v25, %v12693_v39  ;;  %v13924_v20 = vadd.f32 %v2884_v40, %v2836_v43  ;;  %v9379_v39 = vld [vmem:[%s18476_s1 + $0x70] sm:$0xf0] }
 0x2ee   : > { %v2789_v18 = vpop.f32.mrf.mxu1  ;;  %v9382_v13 = vor.u32 %v11180_v36, %v9379_v39 }
 0x2ef   : > { %v13926_v0 = vadd.f32 %v2789_v18, %v2741_v50  ;;  %2935 = vmatmul.bf16.gmra.mxu0 %v13591_v4  ;;  %3033 = vmatmul.bf16.gmra.mxu2 %v13591_v4  ;;  %v9377_v50 = vld [vmem:[%s18476_s1 + $0x50] sm:$0xf] }
 0x2f0   : > { %3207 = vmatpush.bf16.msra.mxu2 %v9382_v13  ;;  %v11184_v18 = vld [vmem:[%s18476_s1 + $0x6c] sm:$0xf0] }
 0x2f1   : > { %2984 = vmatmul.bf16.gmra.mxu1 %v13593_v15  ;;  %3082 = vmatmul.bf16.gmra.mxu3 %v13593_v15  ;;  %v9378_v39 = vor.u32 %v11184_v18, %v9377_v50  ;;  %v9603_v18 = vld [vmem:[%s18476_s1 + $0x230] sm:$0xf0] }
 0x2f2   : > { %v2838_v17 = vpop.f32.mrf.mxu2 }
 0x2f3   : > { %v2839_v23 = vadd.f32 %v2838_v17, %v12711_v60  ;;  %v9633_v60 = vld [vmem:[%s18476_s1 + $0x250] sm:$0xf]  ;;  %3109 = vmatpush.bf16.msra.mxu0 %v9378_v39 }
 0x2f4   : > { %v2887_v48 = vpop.f32.mrf.mxu3  ;;  %v2742_v46 = vpop.f32.mrf.mxu0 }
 0x2f5   : > { %v2743_v43 = vadd.f32 %v2742_v46, %v12722_v3  ;;  %v13946_v25 = vadd.f32 %v2887_v48, %v2839_v23  ;;  %v11248_v3 = vld [vmem:[%s18476_s1 + $0x26c] sm:$0xf0] }
 0x2f6   : > { %v2791_v40 = vpop.f32.mrf.mxu1  ;;  %v9634_v8 = vor.u32 %v11248_v3, %v9633_v60 }
 0x2f7   : > { %v13957_v36 = vadd.f32 %v2791_v40, %v2743_v43  ;;  %v11236_v40 = vld [vmem:[%s18476_s1 + $0x214] sm:$0xf] }
 0x2f8   : > { %3158 = vmatpush.bf16.msra.mxu1 %v9634_v8  ;;  %v9606_v39 = vor.u32 %v11236_v40, %v9603_v18 }
 0x2fa   : > { %v2840_v13 = vpop.f32.mrf.mxu2  ;;  %3257 = vmatpush.bf16.msra.mxu3 %v9606_v39 }
 0x2fb   : > { %v2841_v5 = vadd.f32 %v2840_v13, %v12727_v19  ;;  %v11172_v19 = vld [vmem:[%s18476_s1 + $0x14] sm:$0xf] }
 0x2fc   : > { %v2889_v17 = vpop.f32.mrf.mxu3  ;;  %v2745_v63 = vpop.f32.mrf.mxu0 }
 0x2fd   : > { %v2746_v23 = vadd.f32 %v2745_v63, %v12729_v21  ;;  %v13964_v46 = vadd.f32 %v2889_v17, %v2841_v5  ;;  %v9347_v21 = vld [vmem:[%s18476_s1 + $0x30] sm:$0xf0] }
 0x2fe   : > { %v2794_v48 = vpop.f32.mrf.mxu1  ;;  %v9350_v50 = vor.u32 %v11172_v19, %v9347_v21 }
 0x2ff   : > { %v13966_v43 = vadd.f32 %v2794_v48, %v2746_v23  ;;  %2940 = vmatmul.bf16.gmra.mxu0 %v13635_v14  ;;  %3038 = vmatmul.bf16.gmra.mxu2 %v13635_v14  ;;  %v9345_v23 = vld [vmem:[%s18476_s1 + $0x10] sm:$0xf] }
 0x300   : > { %3208 = vmatpush.bf16.msra.mxu2 %v9350_v50  ;;  %v11176_v48 = vld [vmem:[%s18476_s1 + $0x2c] sm:$0xf0] }
 0x301   : > { %2989 = vmatmul.bf16.gmra.mxu1 %v13637_v49  ;;  %3087 = vmatmul.bf16.gmra.mxu3 %v13637_v49  ;;  %v9346_v21 = vor.u32 %v11176_v48, %v9345_v23  ;;  %v9835_v48 = vld [vmem:[%s18476_s1 + $0x3f8] sm:$0xf0] }
 0x302   : > { %v2843_v60 = vpop.f32.mrf.mxu2 }
 0x303   : > { %v2844_v3 = vadd.f32 %v2843_v60, %v12747_v45  ;;  %v9601_v45 = vld [vmem:[%s18476_s1 + $0x210] sm:$0xf]  ;;  %3110 = vmatpush.bf16.msra.mxu0 %v9346_v21 }
 0x304   : > { %v2892_v8 = vpop.f32.mrf.mxu3  ;;  %v2747_v13 = vpop.f32.mrf.mxu0 }
 0x305   : > { %v2748_v5 = vadd.f32 %v2747_v13, %v12758_v57  ;;  %v13986_v63 = vadd.f32 %v2892_v8, %v2844_v3  ;;  %v11240_v57 = vld [vmem:[%s18476_s1 + $0x22c] sm:$0xf0] }
 0x306   : > { %v2796_v17 = vpop.f32.mrf.mxu1  ;;  %v9602_v40 = vor.u32 %v11240_v57, %v9601_v45 }
 0x307   : > { %v13997_v19 = vadd.f32 %v2796_v17, %v2748_v5  ;;  %v11293_v17 = vld [vmem:[%s18476_s1 + $0x3dc] sm:$0xf] }
 0x308   : > { %3159 = vmatpush.bf16.msra.mxu1 %v9602_v40  ;;  %v9838_v21 = vor.u32 %v11293_v17, %v9835_v48 }
 0x30a   : > { %v2845_v50 = vpop.f32.mrf.mxu2  ;;  %3446 = vmatpush.bf16.msrb.mxu3 %v9838_v21 }
 0x30b   : > { %v2846_v18 = vadd.f32 %v2845_v50, %v12763_v10  ;;  %v11229_v10 = vld [vmem:[%s18476_s1 + $0x1dc] sm:$0xf] }
 0x30c   : > { %v2894_v60 = vpop.f32.mrf.mxu3  ;;  %v2750_v39 = vpop.f32.mrf.mxu0 }
 0x30d   : > { %v2751_v3 = vadd.f32 %v2750_v39, %v12765_v12  ;;  %v14004_v13 = vadd.f32 %v2894_v60, %v2846_v18  ;;  %v9579_v12 = vld [vmem:[%s18476_s1 + $0x1f8] sm:$0xf0] }
 0x30e   : > { %v2799_v8 = vpop.f32.mrf.mxu1  ;;  %v9582_v23 = vor.u32 %v11229_v10, %v9579_v12 }
 0x30f   : > { %v14006_v5 = vadd.f32 %v2799_v8, %v2751_v3  ;;  %2945 = vmatmul.bf16.gmra.mxu0 %v13679_v47  ;;  %3043 = vmatmul.bf16.gmra.mxu2 %v13679_v47  ;;  %v9577_v3 = vld [vmem:[%s18476_s1 + $0x1d8] sm:$0xf] }
 0x310   : > { %3397 = vmatpush.bf16.msrb.mxu2 %v9582_v23  ;;  %v11233_v8 = vld [vmem:[%s18476_s1 + $0x1f4] sm:$0xf0] }
 0x311   : > { %2994 = vmatmul.bf16.gmra.mxu1 %v13681_v11  ;;  %3092 = vmatmul.bf16.gmra.mxu3 %v13681_v11  ;;  %v9578_v12 = vor.u32 %v11233_v8, %v9577_v3  ;;  %v9803_v8 = vld [vmem:[%s18476_s1 + $0x3b8] sm:$0xf0] }
 0x312   : > { %v2848_v45 = vpop.f32.mrf.mxu2 }
 0x313   : > { %v2849_v57 = vadd.f32 %v2848_v45, %v12783_v37  ;;  %v9833_v37 = vld [vmem:[%s18476_s1 + $0x3d8] sm:$0xf]  ;;  %3299 = vmatpush.bf16.msrb.mxu0 %v9578_v12 }
 0x314   : > { %v2897_v40 = vpop.f32.mrf.mxu3  ;;  %v2752_v50 = vpop.f32.mrf.mxu0 }
 0x315   : > { %v2753_v18 = vadd.f32 %v2752_v50, %v12794_v54  ;;  %v14026_v39 = vadd.f32 %v2897_v40, %v2849_v57  ;;  %v11297_v54 = vld [vmem:[%s18476_s1 + $0x3f4] sm:$0xf0] }
 0x316   : > { %v2801_v60 = vpop.f32.mrf.mxu1  ;;  %v9834_v17 = vor.u32 %v11297_v54, %v9833_v37 }
 0x317   : > { %v14037_v10 = vadd.f32 %v2801_v60, %v2753_v18  ;;  %v11285_v60 = vld [vmem:[%s18476_s1 + $0x39c] sm:$0xf] }
 0x318   : > { %3348 = vmatpush.bf16.msrb.mxu1 %v9834_v17  ;;  %v9806_v12 = vor.u32 %v11285_v60, %v9803_v8 }
 0x31a   : > { %v2850_v23 = vpop.f32.mrf.mxu2  ;;  %3447 = vmatpush.bf16.msrb.mxu3 %v9806_v12 }
 0x31b   : > { %v2851_v48 = vadd.f32 %v2850_v23, %v12799_v9  ;;  %v11221_v9 = vld [vmem:[%s18476_s1 + $0x19c] sm:$0xf] }
 0x31c   : > { %v2899_v45 = vpop.f32.mrf.mxu3  ;;  %v2755_v21 = vpop.f32.mrf.mxu0 }
 0x31d   : > { %v2756_v57 = vadd.f32 %v2755_v21, %v12801_v16  ;;  %v14044_v50 = vadd.f32 %v2899_v45, %v2851_v48  ;;  %v9547_v16 = vld [vmem:[%s18476_s1 + $0x1b8] sm:$0xf0] }
 0x31e   : > { %v2804_v40 = vpop.f32.mrf.mxu1  ;;  %v9550_v3 = vor.u32 %v11221_v9, %v9547_v16 }
 0x31f   : > { %v14046_v18 = vadd.f32 %v2804_v40, %v2756_v57  ;;  %2950 = vmatmul.bf16.gmra.mxu0 %v13723_v29  ;;  %3048 = vmatmul.bf16.gmra.mxu2 %v13723_v29  ;;  %v9545_v57 = vld [vmem:[%s18476_s1 + $0x198] sm:$0xf] }
 0x320   : > { %3398 = vmatpush.bf16.msrb.mxu2 %v9550_v3  ;;  %v11225_v40 = vld [vmem:[%s18476_s1 + $0x1b4] sm:$0xf0] }
 0x321   : > { %2999 = vmatmul.bf16.gmra.mxu1 %v13725_v32  ;;  %3097 = vmatmul.bf16.gmra.mxu3 %v13725_v32  ;;  %v9546_v16 = vor.u32 %v11225_v40, %v9545_v57  ;;  %v9771_v40 = vld [vmem:[%s18476_s1 + $0x378] sm:$0xf0] }
 0x322   : > { %v2853_v37 = vpop.f32.mrf.mxu2 }
 0x323   : > { %v2854_v54 = vadd.f32 %v2853_v37, %v12819_v42  ;;  %v9801_v42 = vld [vmem:[%s18476_s1 + $0x398] sm:$0xf]  ;;  %3300 = vmatpush.bf16.msrb.mxu0 %v9546_v16 }
 0x324   : > { %v2902_v17 = vpop.f32.mrf.mxu3  ;;  %v2757_v23 = vpop.f32.mrf.mxu0 }
 0x325   : > { %v2758_v48 = vadd.f32 %v2757_v23, %v12830_v62  ;;  %v14066_v21 = vadd.f32 %v2902_v17, %v2854_v54  ;;  %v11289_v62 = vld [vmem:[%s18476_s1 + $0x3b4] sm:$0xf0] }
 0x326   : > { %v2806_v45 = vpop.f32.mrf.mxu1  ;;  %v9802_v60 = vor.u32 %v11289_v62, %v9801_v42  ;;  %v18583_v62 = vld [vmem:[#allocation2_spill] sm:$0xff] }
 0x327   : > { %v14077_v9 = vadd.f32 %v2806_v45, %v2758_v48  ;;  %v11277_v45 = vld [vmem:[%s18476_s1 + $0x35c] sm:$0xf] }
 0x328   : > { %3349 = vmatpush.bf16.msrb.mxu1 %v9802_v60  ;;  %v9774_v16 = vor.u32 %v11277_v45, %v9771_v40  ;;  %v9769_v45 = vld [vmem:[%s18476_s1 + $0x358] sm:$0xf] }
 0x329   : > { %18580 = vst [vmem:[#allocation97_spill] sm:$0xff] %v14077_v9 }
 0x32a   : > { %v2855_v3 = vpop.f32.mrf.mxu2  ;;  %3448 = vmatpush.bf16.msrb.mxu3 %v9774_v16 }
 0x32b   : > { %v2856_v8 = vadd.f32 %v2855_v3, %v12835_v28  ;;  %v11213_v28 = vld [vmem:[%s18476_s1 + $0x15c] sm:$0xf] }
 0x32c   : > { %v2904_v37 = vpop.f32.mrf.mxu3  ;;  %v2916_v12 = vpop.f32.mrf.mxu0 }
 0x32d   : > { %v2917_v54 = vadd.f32 %v2916_v12, %v12837_v30  ;;  %v14084_v23 = vadd.f32 %v2904_v37, %v2856_v8  ;;  %v9515_v30 = vld [vmem:[%s18476_s1 + $0x178] sm:$0xf0]  ;;  %v18584_v37 = vld [vmem:[#allocation3_spill] sm:$0xff] }
 0x32e   : > { %v2965_v17 = vpop.f32.mrf.mxu1  ;;  %v9518_v57 = vor.u32 %v11213_v28, %v9515_v30  ;;  %v9513_v28 = vld [vmem:[%s18476_s1 + $0x158] sm:$0xf] }
 0x32f   : > { %18581 = vst [vmem:[#allocation98_spill] sm:$0xff] %v14084_v23  ;;  %v14086_v48 = vadd.f32 %v2965_v17, %v2917_v54  ;;  %3111 = vmatmul.bf16.vlgmr.msra.gmra.mxu0 %v13415_v55  ;;  %3209 = vmatmul.bf16.vlgmr.msra.gmra.mxu2 %v13415_v55  ;;  %v11217_v30 = vld [vmem:[%s18476_s1 + $0x174] sm:$0xf0] }
 0x330   : > { %3399 = vmatpush.bf16.msrb.mxu2 %v9518_v57  ;;  %v9514_v57 = vor.u32 %v11217_v30, %v9513_v28  ;;  %v9739_v28 = vld [vmem:[%s18476_s1 + $0x338] sm:$0xf0] }
 0x331   : > { %18582 = vst [vmem:[#allocation99_spill] sm:$0xff] %v14086_v48  ;;  %3160 = vmatmul.bf16.vlgmr.msra.gmra.mxu1 %v13417_v27  ;;  %3258 = vmatmul.bf16.vlgmr.msra.gmra.mxu3 %v13417_v27 }
 0x332   : > { %v3014_v42 = vpop.f32.mrf.mxu2  ;;  %3301 = vmatpush.bf16.msrb.mxu0 %v9514_v57  ;;  %v18591_v57 = vld [vmem:[#allocation6_spill] sm:$0xff] }
 0x333   : > { %v3015_v60 = vadd.f32 %v3014_v42, %v18583_v62  ;;  %v11281_v42 = vld [vmem:[%s18476_s1 + $0x374] sm:$0xf0] }
 0x334   : > { %v3063_v3 = vpop.f32.mrf.mxu3  ;;  %v2918_v8 = vpop.f32.mrf.mxu0  ;;  %v9770_v16 = vor.u32 %v11281_v42, %v9769_v45 }
 0x335   : > { %v2919_v12 = vadd.f32 %v2918_v8, %v18584_v37  ;;  %v14106_v17 = vadd.f32 %v3063_v3, %v3015_v60  ;;  %v18587_v60 = vld [vmem:[#allocation4_spill] sm:$0xff] }
 0x336   : > { %v2967_v54 = vpop.f32.mrf.mxu1  ;;  %3350 = vmatpush.bf16.msrb.mxu1 %v9770_v16 }
 0x337   : > { %18585 = vst [vmem:[#allocation2_spill] sm:$0xff] %v14106_v17  ;;  %v14117_v40 = vadd.f32 %v2967_v54, %v2919_v12  ;;  %v18588_v17 = vld [vmem:[#allocation5_spill] sm:$0xff] }
 0x338   : > { %v11205_v54 = vld [vmem:[%s18476_s1 + $0x11c] sm:$0xf] }
 0x339   : > { %18586 = vst [vmem:[#allocation3_spill] sm:$0xff] %v14117_v40 }
 0x33a   : > { %v3016_v62 = vpop.f32.mrf.mxu2 }
 0x33b   : > { %v3017_v3 = vadd.f32 %v3016_v62, %v18587_v60  ;;  %v18592_v60 = vld [vmem:[#allocation7_spill] sm:$0xff] }
 0x33c   : > { %v3065_v8 = vpop.f32.mrf.mxu3  ;;  %v2921_v37 = vpop.f32.mrf.mxu0 }
 0x33d   : > { %v2922_v48 = vadd.f32 %v2921_v37, %v18588_v17  ;;  %v14124_v9 = vadd.f32 %v3065_v8, %v3017_v3  ;;  %v9483_v17 = vld [vmem:[%s18476_s1 + $0x138] sm:$0xf0] }
 0x33e   : > { %v2970_v23 = vpop.f32.mrf.mxu1 }
 0x33f   : > { %18589 = vst [vmem:[#allocation4_spill] sm:$0xff] %v14124_v9  ;;  %v14126_v12 = vadd.f32 %v2970_v23, %v2922_v48  ;;  %3116 = vmatmul.bf16.gmra.mxu0 %v13459_v44  ;;  %3214 = vmatmul.bf16.gmra.mxu2 %v13459_v44  ;;  %v11269_v23 = vld [vmem:[%s18476_s1 + $0x31c] sm:$0xf]  ;;  %v9486_v48 = vor.u32 %v11205_v54, %v9483_v17  ;;  %v9481_v54 = vld [vmem:[%s18476_s1 + $0x118] sm:$0xf] }
 0x340   : > { %v9742_v45 = vor.u32 %v11269_v23, %v9739_v28  ;;  %v11209_v17 = vld [vmem:[%s18476_s1 + $0x134] sm:$0xf0] }
 0x341   : > { %18590 = vst [vmem:[#allocation5_spill] sm:$0xff] %v14126_v12  ;;  %3165 = vmatmul.bf16.gmra.mxu1 %v13461_v7  ;;  %3263 = vmatmul.bf16.gmra.mxu3 %v13461_v7  ;;  %v9737_v23 = vld [vmem:[%s18476_s1 + $0x318] sm:$0xf] }
 0x342   : > { %v3019_v30 = vpop.f32.mrf.mxu2  ;;  %3400 = vmatpush.bf16.msrb.mxu2 %v9486_v48  ;;  %3449 = vmatpush.bf16.msrb.mxu3 %v9742_v45  ;;  %v9482_v48 = vor.u32 %v11209_v17, %v9481_v54  ;;  %v9707_v54 = vld [vmem:[%s18476_s1 + $0x2f8] sm:$0xf0] }
 0x343   : > { %v3020_v42 = vadd.f32 %v3019_v30, %v18591_v57  ;;  %v11273_v30 = vld [vmem:[%s18476_s1 + $0x334] sm:$0xf0] }
 0x344   : > { %v3068_v16 = vpop.f32.mrf.mxu3  ;;  %v2923_v62 = vpop.f32.mrf.mxu0  ;;  %v9738_v45 = vor.u32 %v11273_v30, %v9737_v23  ;;  %3302 = vmatpush.bf16.msrb.mxu0 %v9482_v48  ;;  %v18599_v48 = vld [vmem:[#allocation10_spill] sm:$0xff] }
 0x345   : > { %v2924_v3 = vadd.f32 %v2923_v62, %v18592_v60  ;;  %v14146_v37 = vadd.f32 %v3068_v16, %v3020_v42  ;;  %v18595_v42 = vld [vmem:[#allocation8_spill] sm:$0xff] }
 0x346   : > { %v2972_v8 = vpop.f32.mrf.mxu1  ;;  %3351 = vmatpush.bf16.msrb.mxu1 %v9738_v45 }
 0x347   : > { %18593 = vst [vmem:[#allocation6_spill] sm:$0xff] %v14146_v37  ;;  %v14157_v28 = vadd.f32 %v2972_v8, %v2924_v3  ;;  %v18596_v37 = vld [vmem:[#allocation9_spill] sm:$0xff] }
 0x348   : > { %v11197_v8 = vld [vmem:[%s18476_s1 + $0xdc] sm:$0xf] }
 0x349   : > { %18594 = vst [vmem:[#allocation7_spill] sm:$0xff] %v14157_v28 }
 0x34a   : > { %v3021_v57 = vpop.f32.mrf.mxu2 }
 0x34b   : > { %v3022_v16 = vadd.f32 %v3021_v57, %v18595_v42  ;;  %v18600_v42 = vld [vmem:[#allocation11_spill] sm:$0xff] }
 0x34c   : > { %v3070_v62 = vpop.f32.mrf.mxu3  ;;  %v2926_v60 = vpop.f32.mrf.mxu0 }
 0x34d   : > { %v2927_v12 = vadd.f32 %v2926_v60, %v18596_v37  ;;  %v14164_v40 = vadd.f32 %v3070_v62, %v3022_v16  ;;  %v9451_v37 = vld [vmem:[%s18476_s1 + $0xf8] sm:$0xf0] }
 0x34e   : > { %v2975_v9 = vpop.f32.mrf.mxu1 }
 0x34f   : > { %18597 = vst [vmem:[#allocation8_spill] sm:$0xff] %v14164_v40  ;;  %v14166_v3 = vadd.f32 %v2975_v9, %v2927_v12  ;;  %3121 = vmatmul.bf16.gmra.mxu0 %v13503_v26  ;;  %3219 = vmatmul.bf16.gmra.mxu2 %v13503_v26  ;;  %v11261_v9 = vld [vmem:[%s18476_s1 + $0x2dc] sm:$0xf]  ;;  %v9454_v12 = vor.u32 %v11197_v8, %v9451_v37  ;;  %v9449_v8 = vld [vmem:[%s18476_s1 + $0xd8] sm:$0xf] }
 0x350   : > { %v9710_v23 = vor.u32 %v11261_v9, %v9707_v54  ;;  %v11201_v37 = vld [vmem:[%s18476_s1 + $0xf4] sm:$0xf0] }
 0x351   : > { %18598 = vst [vmem:[#allocation9_spill] sm:$0xff] %v14166_v3  ;;  %3170 = vmatmul.bf16.gmra.mxu1 %v13505_v53  ;;  %3268 = vmatmul.bf16.gmra.mxu3 %v13505_v53  ;;  %v9705_v9 = vld [vmem:[%s18476_s1 + $0x2d8] sm:$0xf] }
 0x352   : > { %v3024_v17 = vpop.f32.mrf.mxu2  ;;  %3401 = vmatpush.bf16.msrb.mxu2 %v9454_v12  ;;  %3450 = vmatpush.bf16.msrb.mxu3 %v9710_v23  ;;  %v9450_v12 = vor.u32 %v11201_v37, %v9449_v8  ;;  %v9675_v8 = vld [vmem:[%s18476_s1 + $0x2b8] sm:$0xf0] }
 0x353   : > { %v3025_v30 = vadd.f32 %v3024_v17, %v18599_v48  ;;  %v11265_v17 = vld [vmem:[%s18476_s1 + $0x2f4] sm:$0xf0] }
 0x354   : > { %v3073_v45 = vpop.f32.mrf.mxu3  ;;  %v2928_v57 = vpop.f32.mrf.mxu0  ;;  %v9706_v23 = vor.u32 %v11265_v17, %v9705_v9  ;;  %3303 = vmatpush.bf16.msrb.mxu0 %v9450_v12  ;;  %v18607_v12 = vld [vmem:[#allocation14_spill] sm:$0xff] }
 0x355   : > { %v2929_v16 = vadd.f32 %v2928_v57, %v18600_v42  ;;  %v14186_v60 = vadd.f32 %v3073_v45, %v3025_v30  ;;  %v18603_v30 = vld [vmem:[#allocation12_spill] sm:$0xff] }
 0x356   : > { %v2977_v62 = vpop.f32.mrf.mxu1  ;;  %3352 = vmatpush.bf16.msrb.mxu1 %v9706_v23 }
 0x357   : > { %18601 = vst [vmem:[#allocation10_spill] sm:$0xff] %v14186_v60  ;;  %v14197_v54 = vadd.f32 %v2977_v62, %v2929_v16  ;;  %v18604_v60 = vld [vmem:[#allocation13_spill] sm:$0xff] }
 0x358   : > { %v11189_v62 = vld [vmem:[%s18476_s1 + $0x9c] sm:$0xf] }
 0x359   : > { %18602 = vst [vmem:[#allocation11_spill] sm:$0xff] %v14197_v54 }
 0x35a   : > { %v3026_v48 = vpop.f32.mrf.mxu2 }
 0x35b   : > { %v3027_v45 = vadd.f32 %v3026_v48, %v18603_v30  ;;  %v18608_v30 = vld [vmem:[#allocation15_spill] sm:$0xff] }
 0x35c   : > { %v3075_v57 = vpop.f32.mrf.mxu3  ;;  %v2931_v42 = vpop.f32.mrf.mxu0 }
 0x35d   : > { %v2932_v3 = vadd.f32 %v2931_v42, %v18604_v60  ;;  %v14204_v28 = vadd.f32 %v3075_v57, %v3027_v45  ;;  %v9419_v60 = vld [vmem:[%s18476_s1 + $0xb8] sm:$0xf0] }
 0x35e   : > { %v2980_v40 = vpop.f32.mrf.mxu1 }
 0x35f   : > { %18605 = vst [vmem:[#allocation12_spill] sm:$0xff] %v14204_v28  ;;  %v14206_v16 = vadd.f32 %v2980_v40, %v2932_v3  ;;  %3126 = vmatmul.bf16.gmra.mxu0 %v13547_v41  ;;  %3224 = vmatmul.bf16.gmra.mxu2 %v13547_v41  ;;  %v11253_v40 = vld [vmem:[%s18476_s1 + $0x29c] sm:$0xf]  ;;  %v9422_v3 = vor.u32 %v11189_v62, %v9419_v60  ;;  %v9417_v62 = vld [vmem:[%s18476_s1 + $0x98] sm:$0xf] }
 0x360   : > { %v9678_v9 = vor.u32 %v11253_v40, %v9675_v8  ;;  %v11193_v60 = vld [vmem:[%s18476_s1 + $0xb4] sm:$0xf0] }
 0x361   : > { %18606 = vst [vmem:[#allocation13_spill] sm:$0xff] %v14206_v16  ;;  %3175 = vmatmul.bf16.gmra.mxu1 %v13549_v33  ;;  %3273 = vmatmul.bf16.gmra.mxu3 %v13549_v33  ;;  %v9673_v40 = vld [vmem:[%s18476_s1 + $0x298] sm:$0xf] }
 0x362   : > { %v3029_v37 = vpop.f32.mrf.mxu2  ;;  %3402 = vmatpush.bf16.msrb.mxu2 %v9422_v3  ;;  %3451 = vmatpush.bf16.msrb.mxu3 %v9678_v9  ;;  %v9418_v3 = vor.u32 %v11193_v60, %v9417_v62  ;;  %v9643_v62 = vld [vmem:[%s18476_s1 + $0x278] sm:$0xf0] }
 0x363   : > { %v3030_v17 = vadd.f32 %v3029_v37, %v18607_v12  ;;  %v11257_v37 = vld [vmem:[%s18476_s1 + $0x2b4] sm:$0xf0] }
 0x364   : > { %v3078_v23 = vpop.f32.mrf.mxu3  ;;  %v2933_v48 = vpop.f32.mrf.mxu0  ;;  %v9674_v9 = vor.u32 %v11257_v37, %v9673_v40  ;;  %3304 = vmatpush.bf16.msrb.mxu0 %v9418_v3  ;;  %v18615_v3 = vld [vmem:[#allocation18_spill] sm:$0xff] }
 0x365   : > { %v2934_v45 = vadd.f32 %v2933_v48, %v18608_v30  ;;  %v14226_v42 = vadd.f32 %v3078_v23, %v3030_v17  ;;  %v18611_v17 = vld [vmem:[#allocation16_spill] sm:$0xff] }
 0x366   : > { %v2982_v57 = vpop.f32.mrf.mxu1  ;;  %3353 = vmatpush.bf16.msrb.mxu1 %v9674_v9 }
 0x367   : > { %18609 = vst [vmem:[#allocation14_spill] sm:$0xff] %v14226_v42  ;;  %v14237_v8 = vadd.f32 %v2982_v57, %v2934_v45  ;;  %v18612_v42 = vld [vmem:[#allocation17_spill] sm:$0xff] }
 0x368   : > { %v11181_v57 = vld [vmem:[%s18476_s1 + $0x5c] sm:$0xf] }
 0x369   : > { %18610 = vst [vmem:[#allocation15_spill] sm:$0xff] %v14237_v8 }
 0x36a   : > { %v3031_v12 = vpop.f32.mrf.mxu2 }
 0x36b   : > { %v3032_v23 = vadd.f32 %v3031_v12, %v18611_v17  ;;  %v18616_v17 = vld [vmem:[#allocation19_spill] sm:$0xff] }
 0x36c   : > { %v3080_v48 = vpop.f32.mrf.mxu3  ;;  %v2936_v30 = vpop.f32.mrf.mxu0 }
 0x36d   : > { %v2937_v16 = vadd.f32 %v2936_v30, %v18612_v42  ;;  %v14244_v54 = vadd.f32 %v3080_v48, %v3032_v23  ;;  %v9387_v42 = vld [vmem:[%s18476_s1 + $0x78] sm:$0xf0] }
 0x36e   : > { %v2985_v28 = vpop.f32.mrf.mxu1 }
 0x36f   : > { %18613 = vst [vmem:[#allocation16_spill] sm:$0xff] %v14244_v54  ;;  %v14246_v45 = vadd.f32 %v2985_v28, %v2937_v16  ;;  %3131 = vmatmul.bf16.gmra.mxu0 %v13591_v4  ;;  %3229 = vmatmul.bf16.gmra.mxu2 %v13591_v4  ;;  %v11245_v28 = vld [vmem:[%s18476_s1 + $0x25c] sm:$0xf]  ;;  %v9390_v16 = vor.u32 %v11181_v57, %v9387_v42  ;;  %v9385_v57 = vld [vmem:[%s18476_s1 + $0x58] sm:$0xf] }
 0x370   : > { %v9646_v40 = vor.u32 %v11245_v28, %v9643_v62  ;;  %v11185_v42 = vld [vmem:[%s18476_s1 + $0x74] sm:$0xf0] }
 0x371   : > { %18614 = vst [vmem:[#allocation17_spill] sm:$0xff] %v14246_v45  ;;  %3180 = vmatmul.bf16.gmra.mxu1 %v13593_v15  ;;  %3278 = vmatmul.bf16.gmra.mxu3 %v13593_v15  ;;  %v9641_v28 = vld [vmem:[%s18476_s1 + $0x258] sm:$0xf] }
 0x372   : > { %v3034_v60 = vpop.f32.mrf.mxu2  ;;  %3403 = vmatpush.bf16.msrb.mxu2 %v9390_v16  ;;  %3452 = vmatpush.bf16.msrb.mxu3 %v9646_v40  ;;  %v9386_v16 = vor.u32 %v11185_v42, %v9385_v57  ;;  %v9611_v57 = vld [vmem:[%s18476_s1 + $0x238] sm:$0xf0] }
 0x373   : > { %v3035_v37 = vadd.f32 %v3034_v60, %v18615_v3  ;;  %v11249_v60 = vld [vmem:[%s18476_s1 + $0x274] sm:$0xf0] }
 0x374   : > { %v3083_v9 = vpop.f32.mrf.mxu3  ;;  %v2938_v12 = vpop.f32.mrf.mxu0  ;;  %v9642_v40 = vor.u32 %v11249_v60, %v9641_v28  ;;  %3305 = vmatpush.bf16.msrb.mxu0 %v9386_v16  ;;  %v18623_v16 = vld [vmem:[#allocation22_spill] sm:$0xff] }
 0x375   : > { %v2939_v23 = vadd.f32 %v2938_v12, %v18616_v17  ;;  %v14266_v30 = vadd.f32 %v3083_v9, %v3035_v37  ;;  %v18619_v37 = vld [vmem:[#allocation20_spill] sm:$0xff] }
 0x376   : > { %v2987_v48 = vpop.f32.mrf.mxu1  ;;  %3354 = vmatpush.bf16.msrb.mxu1 %v9642_v40 }
 0x377   : > { %18617 = vst [vmem:[#allocation18_spill] sm:$0xff] %v14266_v30  ;;  %v14277_v62 = vadd.f32 %v2987_v48, %v2939_v23  ;;  %v18620_v30 = vld [vmem:[#allocation21_spill] sm:$0xff] }
 0x378   : > { %v11173_v48 = vld [vmem:[%s18476_s1 + $0x1c] sm:$0xf] }
 0x379   : > { %18618 = vst [vmem:[#allocation19_spill] sm:$0xff] %v14277_v62 }
 0x37a   : > { %v3036_v3 = vpop.f32.mrf.mxu2 }
 0x37b   : > { %v3037_v9 = vadd.f32 %v3036_v3, %v18619_v37  ;;  %v18624_v37 = vld [vmem:[#allocation23_spill] sm:$0xff] }
 0x37c   : > { %v3085_v12 = vpop.f32.mrf.mxu3  ;;  %v2941_v17 = vpop.f32.mrf.mxu0 }
 0x37d   : > { %v2942_v45 = vadd.f32 %v2941_v17, %v18620_v30  ;;  %v14284_v8 = vadd.f32 %v3085_v12, %v3037_v9  ;;  %v9355_v30 = vld [vmem:[%s18476_s1 + $0x38] sm:$0xf0] }
 0x37e   : > { %v2990_v54 = vpop.f32.mrf.mxu1 }
 0x37f   : > { %18621 = vst [vmem:[#allocation20_spill] sm:$0xff] %v14284_v8  ;;  %v14286_v23 = vadd.f32 %v2990_v54, %v2942_v45  ;;  %3136 = vmatmul.bf16.gmra.mxu0 %v13635_v14  ;;  %3234 = vmatmul.bf16.gmra.mxu2 %v13635_v14  ;;  %v11237_v54 = vld [vmem:[%s18476_s1 + $0x21c] sm:$0xf]  ;;  %v9358_v45 = vor.u32 %v11173_v48, %v9355_v30  ;;  %v9353_v48 = vld [vmem:[%s18476_s1 + $0x18] sm:$0xf] }
 0x380   : > { %v9614_v28 = vor.u32 %v11237_v54, %v9611_v57  ;;  %v11177_v30 = vld [vmem:[%s18476_s1 + $0x34] sm:$0xf0] }
 0x381   : > { %18622 = vst [vmem:[#allocation21_spill] sm:$0xff] %v14286_v23  ;;  %3185 = vmatmul.bf16.gmra.mxu1 %v13637_v49  ;;  %3283 = vmatmul.bf16.gmra.mxu3 %v13637_v49  ;;  %v9609_v54 = vld [vmem:[%s18476_s1 + $0x218] sm:$0xf] }
 0x382   : > { %v3039_v42 = vpop.f32.mrf.mxu2  ;;  %3404 = vmatpush.bf16.msrb.mxu2 %v9358_v45  ;;  %3453 = vmatpush.bf16.msrb.mxu3 %v9614_v28  ;;  %v9354_v45 = vor.u32 %v11177_v30, %v9353_v48  ;;  %v10403_v48 = vld [vmem:[%s18476_s1 + $0xbe0] sm:$0xf0] }
 0x383   : > { %v3040_v60 = vadd.f32 %v3039_v42, %v18623_v16  ;;  %v11241_v42 = vld [vmem:[%s18476_s1 + $0x234] sm:$0xf0] }
 0x384   : > { %v3088_v40 = vpop.f32.mrf.mxu3  ;;  %v2943_v3 = vpop.f32.mrf.mxu0  ;;  %v9610_v28 = vor.u32 %v11241_v42, %v9609_v54  ;;  %3306 = vmatpush.bf16.msrb.mxu0 %v9354_v45  ;;  %v18631_v45 = vld [vmem:[#allocation26_spill] sm:$0xff] }
 0x385   : > { %v2944_v9 = vadd.f32 %v2943_v3, %v18624_v37  ;;  %v14306_v17 = vadd.f32 %v3088_v40, %v3040_v60  ;;  %v18627_v60 = vld [vmem:[#allocation24_spill] sm:$0xff] }
 0x386   : > { %v2992_v12 = vpop.f32.mrf.mxu1  ;;  %3355 = vmatpush.bf16.msrb.mxu1 %v9610_v28 }
 0x387   : > { %18625 = vst [vmem:[#allocation22_spill] sm:$0xff] %v14306_v17  ;;  %v14317_v57 = vadd.f32 %v2992_v12, %v2944_v9  ;;  %v18628_v17 = vld [vmem:[#allocation25_spill] sm:$0xff]  ;;  %v11514_v12 = vld [vmem:[%s18476_s1 + $0x9c4] sm:$0xf] }
 0x389   : > { %18626 = vst [vmem:[#allocation23_spill] sm:$0xff] %v14317_v57 }
 0x38a   : > { %v3041_v16 = vpop.f32.mrf.mxu2 }
 0x38b   : > { %v3042_v40 = vadd.f32 %v3041_v16, %v18627_v60  ;;  %v18632_v60 = vld [vmem:[#allocation27_spill] sm:$0xff] }
 0x38c   : > { %v3090_v3 = vpop.f32.mrf.mxu3  ;;  %v2946_v37 = vpop.f32.mrf.mxu0 }
 0x38d   : > { %v2947_v23 = vadd.f32 %v2946_v37, %v18628_v17  ;;  %v14324_v62 = vadd.f32 %v3090_v3, %v3042_v40  ;;  %v10147_v17 = vld [vmem:[%s18476_s1 + $0x9e0] sm:$0xf0] }
 0x38e   : > { %v2995_v8 = vpop.f32.mrf.mxu1 }
 0x38f   : > { %18629 = vst [vmem:[#allocation24_spill] sm:$0xff] %v14324_v62  ;;  %v14326_v9 = vadd.f32 %v2995_v8, %v2947_v23  ;;  %3141 = vmatmul.bf16.gmra.mxu0 %v13679_v47  ;;  %3239 = vmatmul.bf16.gmra.mxu2 %v13679_v47  ;;  %v11578_v8 = vld [vmem:[%s18476_s1 + $0xbc4] sm:$0xf]  ;;  %v10150_v23 = vor.u32 %v11514_v12, %v10147_v17  ;;  %v10145_v12 = vld [vmem:[%s18476_s1 + $0x9c0] sm:$0xf] }
 0x390   : > { %v10406_v54 = vor.u32 %v11578_v8, %v10403_v48  ;;  %v11518_v17 = vld [vmem:[%s18476_s1 + $0x9dc] sm:$0xf0] }
 0x391   : > { %18630 = vst [vmem:[#allocation25_spill] sm:$0xff] %v14326_v9  ;;  %3190 = vmatmul.bf16.gmra.mxu1 %v13681_v11  ;;  %3288 = vmatmul.bf16.gmra.mxu3 %v13681_v11  ;;  %v10401_v8 = vld [vmem:[%s18476_s1 + $0xbc0] sm:$0xf] }
 0x392   : > { %v3044_v30 = vpop.f32.mrf.mxu2  ;;  %4458 = vmatpush.bf16.msra.mxu2 %v10150_v23  ;;  %4507 = vmatpush.bf16.msra.mxu3 %v10406_v54  ;;  %v10146_v23 = vor.u32 %v11518_v17, %v10145_v12  ;;  %v10371_v12 = vld [vmem:[%s18476_s1 + $0xba0] sm:$0xf0] }
 0x393   : > { %v3045_v42 = vadd.f32 %v3044_v30, %v18631_v45  ;;  %v11582_v30 = vld [vmem:[%s18476_s1 + $0xbdc] sm:$0xf0] }
 0x394   : > { %v3093_v28 = vpop.f32.mrf.mxu3  ;;  %v2948_v16 = vpop.f32.mrf.mxu0  ;;  %v10402_v54 = vor.u32 %v11582_v30, %v10401_v8  ;;  %4360 = vmatpush.bf16.msra.mxu0 %v10146_v23  ;;  %v18638_v23 = vld [vmem:[#allocation30_spill] sm:$0xff] }
 0x395   : > { %v2949_v40 = vadd.f32 %v2948_v16, %v18632_v60  ;;  %v14346_v37 = vadd.f32 %v3093_v28, %v3045_v42  ;;  %v18634_v42 = vld [vmem:[#allocation28_spill] sm:$0xff] }
 0x396   : > { %v2997_v3 = vpop.f32.mrf.mxu1  ;;  %4409 = vmatpush.bf16.msra.mxu1 %v10402_v54 }
 0x397   : > { %18633 = vst [vmem:[#allocation26_spill] sm:$0xff] %v14346_v37  ;;  %v14357_v48 = vadd.f32 %v2997_v3, %v2949_v40  ;;  %v18635_v37 = vld [vmem:[#allocation29_spill] sm:$0xff]  ;;  %v11506_v3 = vld [vmem:[%s18476_s1 + $0x984] sm:$0xf] }
 0x39a   : > { %v3046_v45 = vpop.f32.mrf.mxu2 }
 0x39b   : > { %v3047_v28 = vadd.f32 %v3046_v45, %v18634_v42 }
 0x39c   : > { %v3095_v16 = vpop.f32.mrf.mxu3  ;;  %v2951_v60 = vpop.f32.mrf.mxu0 }
 0x39d   : > { %v2952_v9 = vadd.f32 %v2951_v60, %v18635_v37  ;;  %v14364_v57 = vadd.f32 %v3095_v16, %v3047_v28  ;;  %v10115_v37 = vld [vmem:[%s18476_s1 + $0x9a0] sm:$0xf0]  ;;  %v10113_v60 = vld [vmem:[%s18476_s1 + $0x980] sm:$0xf] }
 0x39e   : > { %v3000_v62 = vpop.f32.mrf.mxu1 }
 0x39f   : > { %18636 = vst [vmem:[#allocation27_spill] sm:$0xff] %v14364_v57  ;;  %v14366_v40 = vadd.f32 %v3000_v62, %v2952_v9  ;;  %3146 = vmatmul.bf16.gmra.mxu0 %v13723_v29  ;;  %3244 = vmatmul.bf16.gmra.mxu2 %v13723_v29  ;;  %v11570_v62 = vld [vmem:[%s18476_s1 + $0xb84] sm:$0xf]  ;;  %v10118_v9 = vor.u32 %v11506_v3, %v10115_v37  ;;  %v11510_v3 = vld [vmem:[%s18476_s1 + $0x99c] sm:$0xf0] }
 0x3a0   : > { %v10374_v8 = vor.u32 %v11570_v62, %v10371_v12  ;;  %v10369_v37 = vld [vmem:[%s18476_s1 + $0xb80] sm:$0xf] }
 0x3a1   : > { %18637 = vst [vmem:[#allocation28_spill] sm:$0xff] %v14366_v40  ;;  %3195 = vmatmul.bf16.gmra.mxu1 %v13725_v32  ;;  %3293 = vmatmul.bf16.gmra.mxu3 %v13725_v32 }
 0x3a2   : > { %v3049_v17 = vpop.f32.mrf.mxu2  ;;  %4459 = vmatpush.bf16.msra.mxu2 %v10118_v9  ;;  %4508 = vmatpush.bf16.msra.mxu3 %v10374_v8  ;;  %v10114_v9 = vor.u32 %v11510_v3, %v10113_v60  ;;  %v18640_v8 = vld [vmem:[#allocation31_spill] sm:$0xff]  ;;  %v10083_v60 = vld [vmem:[%s18476_s1 + $0x960] sm:$0xf0] }
 0x3a3   : > { %v3050_v30 = vadd.f32 %v3049_v17, %v18638_v23  ;;  %v10339_v3 = vld [vmem:[%s18476_s1 + $0xb60] sm:$0xf0] }
 0x3a4   : > { %v3098_v54 = vpop.f32.mrf.mxu3  ;;  %v2953_v45 = vpop.f32.mrf.mxu0  ;;  %4361 = vmatpush.bf16.msra.mxu0 %v10114_v9 }
 0x3a5   : > { %v2954_v42 = vadd.f32 %v2953_v45, %v13118_v1  ;;  %v14386_v16 = vadd.f32 %v3098_v54, %v3050_v30  ;;  %v11574_v1 = vld [vmem:[%s18476_s1 + $0xb9c] sm:$0xf0]  ;;  %v18641_v45 = vld [vmem:[#allocation32_spill] sm:$0xff] }
 0x3a6   : > { %v3002_v28 = vpop.f32.mrf.mxu1  ;;  %v10370_v12 = vor.u32 %v11574_v1, %v10369_v37 }
 0x3a7   : > { %18639 = vst [vmem:[#allocation29_spill] sm:$0xff] %v14386_v16  ;;  %v14397_v62 = vadd.f32 %v3002_v28, %v2954_v42  ;;  %v11498_v28 = vld [vmem:[%s18476_s1 + $0x944] sm:$0xf] }
 0x3a8   : > { %4410 = vmatpush.bf16.msra.mxu1 %v10370_v12 }
 0x3aa   : > { %v3051_v17 = vpop.f32.mrf.mxu2 }
 0x3ab   : > { %v3052_v23 = vadd.f32 %v3051_v17, %v18640_v8  ;;  %v18645_v17 = vld [vmem:[#allocation34_spill] sm:$0xff] }
 0x3ac   : > { %v3100_v30 = vpop.f32.mrf.mxu3  ;;  %v3112_v54 = vpop.f32.mrf.mxu0 }
 0x3ad   : > { %v3113_v16 = vadd.f32 %v3112_v54, %v18641_v45  ;;  %v14404_v57 = vadd.f32 %v3100_v30, %v3052_v23  ;;  %v10081_v54 = vld [vmem:[%s18476_s1 + $0x940] sm:$0xf] }
 0x3ae   : > { %v3161_v40 = vpop.f32.mrf.mxu1  ;;  %v11502_v45 = vld [vmem:[%s18476_s1 + $0x95c] sm:$0xf0] }
 0x3af   : > { %18642 = vst [vmem:[#allocation30_spill] sm:$0xff] %v14404_v57  ;;  %v14406_v42 = vadd.f32 %v3161_v40, %v3113_v16  ;;  %3307 = vmatmul.bf16.vlgmr.msrb.gmra.mxu0 %v13415_v55  ;;  %3405 = vmatmul.bf16.vlgmr.msrb.gmra.mxu2 %v13415_v55  ;;  %v11562_v40 = vld [vmem:[%s18476_s1 + $0xb44] sm:$0xf]  ;;  %v10086_v16 = vor.u32 %v11498_v28, %v10083_v60  ;;  %v10337_v28 = vld [vmem:[%s18476_s1 + $0xb40] sm:$0xf] }
 0x3b0   : > { %v10342_v37 = vor.u32 %v11562_v40, %v10339_v3  ;;  %v10082_v40 = vor.u32 %v11502_v45, %v10081_v54  ;;  %v10051_v54 = vld [vmem:[%s18476_s1 + $0x920] sm:$0xf0] }
 0x3b1   : > { %18643 = vst [vmem:[#allocation31_spill] sm:$0xff] %v14406_v42  ;;  %3356 = vmatmul.bf16.vlgmr.msrb.gmra.mxu1 %v13417_v27  ;;  %3454 = vmatmul.bf16.vlgmr.msrb.gmra.mxu3 %v13417_v27  ;;  %v18644_v27 = vld [vmem:[#allocation33_spill] sm:$0xff] }
 0x3b2   : > { %v3210_v55 = vpop.f32.mrf.mxu2  ;;  %4460 = vmatpush.bf16.msra.mxu2 %v10086_v16  ;;  %4509 = vmatpush.bf16.msra.mxu3 %v10342_v37  ;;  %v11566_v16 = vld [vmem:[%s18476_s1 + $0xb5c] sm:$0xf0]  ;;  %v18648_v37 = vld [vmem:[#allocation35_spill] sm:$0xff] }
 0x3b3   : > { %v3211_v9 = vadd.f32 %v3210_v55, %v18644_v27  ;;  %v10338_v3 = vor.u32 %v11566_v16, %v10337_v28  ;;  %4362 = vmatpush.bf16.msra.mxu0 %v10082_v40  ;;  %v10307_v28 = vld [vmem:[%s18476_s1 + $0xb20] sm:$0xf0] }
 0x3b4   : > { %v3259_v1 = vpop.f32.mrf.mxu3  ;;  %v3114_v12 = vpop.f32.mrf.mxu0 }
 0x3b5   : > { %v3115_v8 = vadd.f32 %v3114_v12, %v18645_v17  ;;  %v14426_v30 = vadd.f32 %v3259_v1, %v3211_v9  ;;  %4411 = vmatpush.bf16.msra.mxu1 %v10338_v3  ;;  %v18649_v12 = vld [vmem:[#allocation36_spill] sm:$0xff] }
 0x3b6   : > { %v3163_v23 = vpop.f32.mrf.mxu1 }
 0x3b7   : > { %18646 = vst [vmem:[#allocation32_spill] sm:$0xff] %v14426_v30  ;;  %v14437_v60 = vadd.f32 %v3163_v23, %v3115_v8  ;;  %v11490_v23 = vld [vmem:[%s18476_s1 + $0x904] sm:$0xf] }
 0x3b8   : > { %v10054_v45 = vor.u32 %v11490_v23, %v10051_v54  ;;  %v10305_v23 = vld [vmem:[%s18476_s1 + $0xb00] sm:$0xf] }
 0x3b9   : > { %18647 = vst [vmem:[#allocation33_spill] sm:$0xff] %v14437_v60 }
 0x3ba   : > { %v3212_v55 = vpop.f32.mrf.mxu2  ;;  %4461 = vmatpush.bf16.msra.mxu2 %v10054_v45  ;;  %v11558_v45 = vld [vmem:[%s18476_s1 + $0xb1c] sm:$0xf0] }
 0x3bb   : > { %v3213_v27 = vadd.f32 %v3212_v55, %v18648_v37  ;;  %v18653_v37 = vld [vmem:[#allocation38_spill] sm:$0xff] }
 0x3bc   : > { %v3261_v9 = vpop.f32.mrf.mxu3  ;;  %v3117_v1 = vpop.f32.mrf.mxu0 }
 0x3bd   : > { %v3118_v17 = vadd.f32 %v3117_v1, %v18649_v12  ;;  %v14444_v42 = vadd.f32 %v3261_v9, %v3213_v27  ;;  %v10049_v12 = vld [vmem:[%s18476_s1 + $0x900] sm:$0xf] }
 0x3be   : > { %v3166_v30 = vpop.f32.mrf.mxu1 }
 0x3bf   : > { %18650 = vst [vmem:[#allocation34_spill] sm:$0xff] %v14444_v42  ;;  %v14446_v8 = vadd.f32 %v3166_v30, %v3118_v17  ;;  %3312 = vmatmul.bf16.gmra.mxu0 %v13459_v44  ;;  %3410 = vmatmul.bf16.gmra.mxu2 %v13459_v44  ;;  %v11554_v30 = vld [vmem:[%s18476_s1 + $0xb04] sm:$0xf]  ;;  %v11494_v17 = vld [vmem:[%s18476_s1 + $0x91c] sm:$0xf0] }
 0x3c0   : > { %v10310_v40 = vor.u32 %v11554_v30, %v10307_v28  ;;  %v10050_v30 = vor.u32 %v11494_v17, %v10049_v12  ;;  %v10306_v28 = vor.u32 %v11558_v45, %v10305_v23  ;;  %v10019_v12 = vld [vmem:[%s18476_s1 + $0x8e0] sm:$0xf0] }
 0x3c1   : > { %18651 = vst [vmem:[#allocation35_spill] sm:$0xff] %v14446_v8  ;;  %3361 = vmatmul.bf16.gmra.mxu1 %v13461_v7  ;;  %3459 = vmatmul.bf16.gmra.mxu3 %v13461_v7  ;;  %v18652_v7 = vld [vmem:[#allocation37_spill] sm:$0xff]  ;;  %v10275_v23 = vld [vmem:[%s18476_s1 + $0xae0] sm:$0xf0] }
 0x3c2   : > { %v3215_v44 = vpop.f32.mrf.mxu2  ;;  %4510 = vmatpush.bf16.msra.mxu3 %v10310_v40  ;;  %4363 = vmatpush.bf16.msra.mxu0 %v10050_v30  ;;  %v18656_v40 = vld [vmem:[#allocation39_spill] sm:$0xff] }
 0x3c3   : > { %v3216_v16 = vadd.f32 %v3215_v44, %v18652_v7  ;;  %4412 = vmatpush.bf16.msra.mxu1 %v10306_v28 }
 0x3c4   : > { %v3264_v3 = vpop.f32.mrf.mxu3  ;;  %v3119_v55 = vpop.f32.mrf.mxu0 }
 0x3c5   : > { %v3120_v27 = vadd.f32 %v3119_v55, %v18653_v37  ;;  %v14466_v1 = vadd.f32 %v3264_v3, %v3216_v16  ;;  %v18657_v55 = vld [vmem:[#allocation40_spill] sm:$0xff] }
 0x3c6   : > { %v3168_v9 = vpop.f32.mrf.mxu1 }
 0x3c7   : > { %18654 = vst [vmem:[#allocation36_spill] sm:$0xff] %v14466_v1  ;;  %v14477_v54 = vadd.f32 %v3168_v9, %v3120_v27  ;;  %v11482_v9 = vld [vmem:[%s18476_s1 + $0x8c4] sm:$0xf] }
 0x3c8   : > { %v10022_v17 = vor.u32 %v11482_v9, %v10019_v12  ;;  %v10273_v9 = vld [vmem:[%s18476_s1 + $0xac0] sm:$0xf] }
 0x3c9   : > { %18655 = vst [vmem:[#allocation37_spill] sm:$0xff] %v14477_v54 }
 0x3ca   : > { %v3217_v44 = vpop.f32.mrf.mxu2  ;;  %4462 = vmatpush.bf16.msra.mxu2 %v10022_v17  ;;  %v11550_v17 = vld [vmem:[%s18476_s1 + $0xadc] sm:$0xf0] }
 0x3cb   : > { %v3218_v7 = vadd.f32 %v3217_v44, %v18656_v40  ;;  %v18661_v40 = vld [vmem:[#allocation42_spill] sm:$0xff] }
 0x3cc   : > { %v3266_v16 = vpop.f32.mrf.mxu3  ;;  %v3122_v3 = vpop.f32.mrf.mxu0 }
 0x3cd   : > { %v3123_v37 = vadd.f32 %v3122_v3, %v18657_v55  ;;  %v14484_v8 = vadd.f32 %v3266_v16, %v3218_v7  ;;  %v10017_v55 = vld [vmem:[%s18476_s1 + $0x8c0] sm:$0xf] }
 0x3ce   : > { %v3171_v1 = vpop.f32.mrf.mxu1 }
 0x3cf   : > { %18658 = vst [vmem:[#allocation38_spill] sm:$0xff] %v14484_v8  ;;  %v14486_v27 = vadd.f32 %v3171_v1, %v3123_v37  ;;  %3317 = vmatmul.bf16.gmra.mxu0 %v13503_v26  ;;  %3415 = vmatmul.bf16.gmra.mxu2 %v13503_v26  ;;  %v11546_v1 = vld [vmem:[%s18476_s1 + $0xac4] sm:$0xf]  ;;  %v11486_v37 = vld [vmem:[%s18476_s1 + $0x8dc] sm:$0xf0] }
 0x3d0   : > { %v10278_v30 = vor.u32 %v11546_v1, %v10275_v23  ;;  %v10018_v1 = vor.u32 %v11486_v37, %v10017_v55  ;;  %v10274_v23 = vor.u32 %v11550_v17, %v10273_v9  ;;  %v9987_v55 = vld [vmem:[%s18476_s1 + $0x8a0] sm:$0xf0] }
 0x3d1   : > { %18659 = vst [vmem:[#allocation39_spill] sm:$0xff] %v14486_v27  ;;  %3366 = vmatmul.bf16.gmra.mxu1 %v13505_v53  ;;  %3464 = vmatmul.bf16.gmra.mxu3 %v13505_v53  ;;  %v18660_v53 = vld [vmem:[#allocation41_spill] sm:$0xff]  ;;  %v10243_v9 = vld [vmem:[%s18476_s1 + $0xaa0] sm:$0xf0] }
 0x3d2   : > { %v3220_v26 = vpop.f32.mrf.mxu2  ;;  %4511 = vmatpush.bf16.msra.mxu3 %v10278_v30  ;;  %4364 = vmatpush.bf16.msra.mxu0 %v10018_v1  ;;  %v18664_v30 = vld [vmem:[#allocation43_spill] sm:$0xff] }
 0x3d3   : > { %v3221_v45 = vadd.f32 %v3220_v26, %v18660_v53  ;;  %4413 = vmatpush.bf16.msra.mxu1 %v10274_v23 }
 0x3d4   : > { %v3269_v28 = vpop.f32.mrf.mxu3  ;;  %v3124_v44 = vpop.f32.mrf.mxu0 }
 0x3d5   : > { %v3125_v7 = vadd.f32 %v3124_v44, %v18661_v40  ;;  %v14506_v3 = vadd.f32 %v3269_v28, %v3221_v45  ;;  %v18665_v44 = vld [vmem:[#allocation44_spill] sm:$0xff] }
 0x3d6   : > { %v3173_v16 = vpop.f32.mrf.mxu1 }
 0x3d7   : > { %18662 = vst [vmem:[#allocation40_spill] sm:$0xff] %v14506_v3  ;;  %v14517_v12 = vadd.f32 %v3173_v16, %v3125_v7  ;;  %v11474_v16 = vld [vmem:[%s18476_s1 + $0x884] sm:$0xf] }
 0x3d8   : > { %v9990_v37 = vor.u32 %v11474_v16, %v9987_v55  ;;  %v10241_v16 = vld [vmem:[%s18476_s1 + $0xa80] sm:$0xf] }
 0x3d9   : > { %18663 = vst [vmem:[#allocation41_spill] sm:$0xff] %v14517_v12 }
 0x3da   : > { %v3222_v26 = vpop.f32.mrf.mxu2  ;;  %4463 = vmatpush.bf16.msra.mxu2 %v9990_v37  ;;  %v11542_v37 = vld [vmem:[%s18476_s1 + $0xa9c] sm:$0xf0] }
 0x3db   : > { %v3223_v53 = vadd.f32 %v3222_v26, %v18664_v30  ;;  %v18669_v30 = vld [vmem:[#allocation46_spill] sm:$0xff] }
 0x3dc   : > { %v3271_v45 = vpop.f32.mrf.mxu3  ;;  %v3127_v28 = vpop.f32.mrf.mxu0 }
 0x3dd   : > { %v3128_v40 = vadd.f32 %v3127_v28, %v18665_v44  ;;  %v14524_v27 = vadd.f32 %v3271_v45, %v3223_v53  ;;  %v9985_v44 = vld [vmem:[%s18476_s1 + $0x880] sm:$0xf] }
 0x3de   : > { %v3176_v3 = vpop.f32.mrf.mxu1 }
 0x3df   : > { %18666 = vst [vmem:[#allocation42_spill] sm:$0xff] %v14524_v27  ;;  %v14526_v7 = vadd.f32 %v3176_v3, %v3128_v40  ;;  %3322 = vmatmul.bf16.gmra.mxu0 %v13547_v41  ;;  %3420 = vmatmul.bf16.gmra.mxu2 %v13547_v41  ;;  %v11538_v3 = vld [vmem:[%s18476_s1 + $0xa84] sm:$0xf]  ;;  %v11478_v40 = vld [vmem:[%s18476_s1 + $0x89c] sm:$0xf0] }
 0x3e0   : > { %v10246_v1 = vor.u32 %v11538_v3, %v10243_v9  ;;  %v9986_v3 = vor.u32 %v11478_v40, %v9985_v44  ;;  %v10242_v9 = vor.u32 %v11542_v37, %v10241_v16  ;;  %v9955_v44 = vld [vmem:[%s18476_s1 + $0x860] sm:$0xf0] }
 0x3e1   : > { %18667 = vst [vmem:[#allocation43_spill] sm:$0xff] %v14526_v7  ;;  %3371 = vmatmul.bf16.gmra.mxu1 %v13549_v33  ;;  %3469 = vmatmul.bf16.gmra.mxu3 %v13549_v33  ;;  %v18668_v33 = vld [vmem:[#allocation45_spill] sm:$0xff]  ;;  %v10211_v16 = vld [vmem:[%s18476_s1 + $0xa60] sm:$0xf0] }
 0x3e2   : > { %v3225_v41 = vpop.f32.mrf.mxu2  ;;  %4512 = vmatpush.bf16.msra.mxu3 %v10246_v1  ;;  %4365 = vmatpush.bf16.msra.mxu0 %v9986_v3  ;;  %v18672_v1 = vld [vmem:[#allocation47_spill] sm:$0xff] }
 0x3e3   : > { %v3226_v17 = vadd.f32 %v3225_v41, %v18668_v33  ;;  %4414 = vmatpush.bf16.msra.mxu1 %v10242_v9 }
 0x3e4   : > { %v3274_v23 = vpop.f32.mrf.mxu3  ;;  %v3129_v26 = vpop.f32.mrf.mxu0 }
 0x3e5   : > { %v3130_v53 = vadd.f32 %v3129_v26, %v18669_v30  ;;  %v14546_v28 = vadd.f32 %v3274_v23, %v3226_v17  ;;  %v18673_v26 = vld [vmem:[#allocation48_spill] sm:$0xff] }
 0x3e6   : > { %v3178_v45 = vpop.f32.mrf.mxu1 }
 0x3e7   : > { %18670 = vst [vmem:[#allocation44_spill] sm:$0xff] %v14546_v28  ;;  %v14557_v55 = vadd.f32 %v3178_v45, %v3130_v53  ;;  %v11466_v45 = vld [vmem:[%s18476_s1 + $0x844] sm:$0xf] }
 0x3e8   : > { %v9958_v40 = vor.u32 %v11466_v45, %v9955_v44  ;;  %v10209_v45 = vld [vmem:[%s18476_s1 + $0xa40] sm:$0xf] }
 0x3e9   : > { %18671 = vst [vmem:[#allocation45_spill] sm:$0xff] %v14557_v55 }
 0x3ea   : > { %v3227_v41 = vpop.f32.mrf.mxu2  ;;  %4464 = vmatpush.bf16.msra.mxu2 %v9958_v40  ;;  %v11534_v40 = vld [vmem:[%s18476_s1 + $0xa5c] sm:$0xf0] }
 0x3eb   : > { %v3228_v33 = vadd.f32 %v3227_v41, %v18672_v1  ;;  %v18677_v1 = vld [vmem:[#allocation50_spill] sm:$0xff] }
 0x3ec   : > { %v3276_v17 = vpop.f32.mrf.mxu3  ;;  %v3132_v23 = vpop.f32.mrf.mxu0 }
 0x3ed   : > { %v3133_v30 = vadd.f32 %v3132_v23, %v18673_v26  ;;  %v14564_v7 = vadd.f32 %v3276_v17, %v3228_v33  ;;  %v9953_v26 = vld [vmem:[%s18476_s1 + $0x840] sm:$0xf] }
 0x3ee   : > { %v3181_v28 = vpop.f32.mrf.mxu1 }
 0x3ef   : > { %18674 = vst [vmem:[#allocation46_spill] sm:$0xff] %v14564_v7  ;;  %v14566_v53 = vadd.f32 %v3181_v28, %v3133_v30  ;;  %3327 = vmatmul.bf16.gmra.mxu0 %v13591_v4  ;;  %3425 = vmatmul.bf16.gmra.mxu2 %v13591_v4  ;;  %v11530_v28 = vld [vmem:[%s18476_s1 + $0xa44] sm:$0xf]  ;;  %v11470_v30 = vld [vmem:[%s18476_s1 + $0x85c] sm:$0xf0] }
 0x3f0   : > { %v10214_v3 = vor.u32 %v11530_v28, %v10211_v16  ;;  %v9954_v28 = vor.u32 %v11470_v30, %v9953_v26  ;;  %v10210_v16 = vor.u32 %v11534_v40, %v10209_v45  ;;  %v9923_v26 = vld [vmem:[%s18476_s1 + $0x820] sm:$0xf0] }
 0x3f1   : > { %18675 = vst [vmem:[#allocation47_spill] sm:$0xff] %v14566_v53  ;;  %3376 = vmatmul.bf16.gmra.mxu1 %v13593_v15  ;;  %3474 = vmatmul.bf16.gmra.mxu3 %v13593_v15  ;;  %v18676_v15 = vld [vmem:[#allocation49_spill] sm:$0xff]  ;;  %v10179_v45 = vld [vmem:[%s18476_s1 + $0xa20] sm:$0xf0] }
 0x3f2   : > { %v3230_v4 = vpop.f32.mrf.mxu2  ;;  %4513 = vmatpush.bf16.msra.mxu3 %v10214_v3  ;;  %4366 = vmatpush.bf16.msra.mxu0 %v9954_v28  ;;  %v18680_v3 = vld [vmem:[#allocation51_spill] sm:$0xff] }
 0x3f3   : > { %v3231_v37 = vadd.f32 %v3230_v4, %v18676_v15  ;;  %4415 = vmatpush.bf16.msra.mxu1 %v10210_v16 }
 0x3f4   : > { %v3279_v9 = vpop.f32.mrf.mxu3  ;;  %v3134_v41 = vpop.f32.mrf.mxu0 }
 0x3f5   : > { %v3135_v33 = vadd.f32 %v3134_v41, %v18677_v1  ;;  %v14586_v23 = vadd.f32 %v3279_v9, %v3231_v37  ;;  %v18681_v41 = vld [vmem:[#allocation52_spill] sm:$0xff] }
 0x3f6   : > { %v3183_v17 = vpop.f32.mrf.mxu1 }
 0x3f7   : > { %18678 = vst [vmem:[#allocation48_spill] sm:$0xff] %v14586_v23  ;;  %v14597_v44 = vadd.f32 %v3183_v17, %v3135_v33  ;;  %v11458_v17 = vld [vmem:[%s18476_s1 + $0x804] sm:$0xf] }
 0x3f8   : > { %v9926_v30 = vor.u32 %v11458_v17, %v9923_v26  ;;  %v10177_v17 = vld [vmem:[%s18476_s1 + $0xa00] sm:$0xf] }
 0x3f9   : > { %18679 = vst [vmem:[#allocation49_spill] sm:$0xff] %v14597_v44 }
 0x3fa   : > { %v3232_v4 = vpop.f32.mrf.mxu2  ;;  %4465 = vmatpush.bf16.msra.mxu2 %v9926_v30  ;;  %v11526_v30 = vld [vmem:[%s18476_s1 + $0xa1c] sm:$0xf0] }
 0x3fb   : > { %v3233_v15 = vadd.f32 %v3232_v4, %v18680_v3  ;;  %v18685_v3 = vld [vmem:[#allocation54_spill] sm:$0xff] }
 0x3fc   : > { %v3281_v37 = vpop.f32.mrf.mxu3  ;;  %v3137_v9 = vpop.f32.mrf.mxu0 }
 0x3fd   : > { %v3138_v1 = vadd.f32 %v3137_v9, %v18681_v41  ;;  %v14604_v53 = vadd.f32 %v3281_v37, %v3233_v15  ;;  %v9921_v41 = vld [vmem:[%s18476_s1 + $0x800] sm:$0xf] }
 0x3fe   : > { %v3186_v23 = vpop.f32.mrf.mxu1 }
 0x3ff   : > { %18682 = vst [vmem:[#allocation50_spill] sm:$0xff] %v14604_v53  ;;  %v14606_v33 = vadd.f32 %v3186_v23, %v3138_v1  ;;  %3332 = vmatmul.bf16.gmra.mxu0 %v13635_v14  ;;  %3430 = vmatmul.bf16.gmra.mxu2 %v13635_v14  ;;  %v11522_v23 = vld [vmem:[%s18476_s1 + $0xa04] sm:$0xf]  ;;  %v11462_v1 = vld [vmem:[%s18476_s1 + $0x81c] sm:$0xf0] }
 0x400   : > { %v10182_v28 = vor.u32 %v11522_v23, %v10179_v45  ;;  %v9922_v23 = vor.u32 %v11462_v1, %v9921_v41  ;;  %v10178_v45 = vor.u32 %v11526_v30, %v10177_v17  ;;  %v10155_v41 = vld [vmem:[%s18476_s1 + $0x9e8] sm:$0xf0] }
 0x401   : > { %18683 = vst [vmem:[#allocation51_spill] sm:$0xff] %v14606_v33  ;;  %3381 = vmatmul.bf16.gmra.mxu1 %v13637_v49  ;;  %3479 = vmatmul.bf16.gmra.mxu3 %v13637_v49  ;;  %v18684_v49 = vld [vmem:[#allocation53_spill] sm:$0xff]  ;;  %v10411_v17 = vld [vmem:[%s18476_s1 + $0xbe8] sm:$0xf0] }
 0x402   : > { %v3235_v14 = vpop.f32.mrf.mxu2  ;;  %4514 = vmatpush.bf16.msra.mxu3 %v10182_v28  ;;  %4367 = vmatpush.bf16.msra.mxu0 %v9922_v23  ;;  %v18688_v28 = vld [vmem:[#allocation55_spill] sm:$0xff] }
 0x403   : > { %v3236_v40 = vadd.f32 %v3235_v14, %v18684_v49  ;;  %4416 = vmatpush.bf16.msra.mxu1 %v10178_v45 }
 0x404   : > { %v3284_v16 = vpop.f32.mrf.mxu3  ;;  %v3139_v4 = vpop.f32.mrf.mxu0 }
 0x405   : > { %v3140_v15 = vadd.f32 %v3139_v4, %v18685_v3  ;;  %v14626_v9 = vadd.f32 %v3284_v16, %v3236_v40  ;;  %v18689_v4 = vld [vmem:[#allocation56_spill] sm:$0xff] }
 0x406   : > { %v3188_v37 = vpop.f32.mrf.mxu1 }
 0x407   : > { %18686 = vst [vmem:[#allocation52_spill] sm:$0xff] %v14626_v9  ;;  %v14637_v26 = vadd.f32 %v3188_v37, %v3140_v15  ;;  %v11515_v37 = vld [vmem:[%s18476_s1 + $0x9cc] sm:$0xf] }
 0x408   : > { %v10158_v1 = vor.u32 %v11515_v37, %v10155_v41  ;;  %v10409_v37 = vld [vmem:[%s18476_s1 + $0xbc8] sm:$0xf] }
 0x409   : > { %18687 = vst [vmem:[#allocation53_spill] sm:$0xff] %v14637_v26 }
 0x40a   : > { %v3237_v14 = vpop.f32.mrf.mxu2  ;;  %4654 = vmatpush.bf16.msrb.mxu2 %v10158_v1  ;;  %v11583_v1 = vld [vmem:[%s18476_s1 + $0xbe4] sm:$0xf0] }
 0x40b   : > { %v3238_v49 = vadd.f32 %v3237_v14, %v18688_v28  ;;  %v18693_v28 = vld [vmem:[#allocation58_spill] sm:$0xff] }
 0x40c   : > { %v3286_v40 = vpop.f32.mrf.mxu3  ;;  %v3142_v16 = vpop.f32.mrf.mxu0 }
 0x40d   : > { %v3143_v3 = vadd.f32 %v3142_v16, %v18689_v4  ;;  %v14644_v33 = vadd.f32 %v3286_v40, %v3238_v49  ;;  %v10153_v4 = vld [vmem:[%s18476_s1 + $0x9c8] sm:$0xf] }
 0x40e   : > { %v3191_v9 = vpop.f32.mrf.mxu1 }
 0x40f   : > { %18690 = vst [vmem:[#allocation54_spill] sm:$0xff] %v14644_v33  ;;  %v14646_v15 = vadd.f32 %v3191_v9, %v3143_v3  ;;  %3337 = vmatmul.bf16.gmra.mxu0 %v13679_v47  ;;  %3435 = vmatmul.bf16.gmra.mxu2 %v13679_v47  ;;  %v11579_v9 = vld [vmem:[%s18476_s1 + $0xbcc] sm:$0xf]  ;;  %v11519_v3 = vld [vmem:[%s18476_s1 + $0x9e4] sm:$0xf0] }
 0x410   : > { %v10414_v23 = vor.u32 %v11579_v9, %v10411_v17  ;;  %v10154_v9 = vor.u32 %v11519_v3, %v10153_v4  ;;  %v10410_v17 = vor.u32 %v11583_v1, %v10409_v37  ;;  %v10123_v4 = vld [vmem:[%s18476_s1 + $0x9a8] sm:$0xf0] }
 0x411   : > { %18691 = vst [vmem:[#allocation55_spill] sm:$0xff] %v14646_v15  ;;  %3386 = vmatmul.bf16.gmra.mxu1 %v13681_v11  ;;  %3484 = vmatmul.bf16.gmra.mxu3 %v13681_v11  ;;  %v18692_v11 = vld [vmem:[#allocation57_spill] sm:$0xff]  ;;  %v10379_v37 = vld [vmem:[%s18476_s1 + $0xba8] sm:$0xf0] }
 0x412   : > { %v3240_v47 = vpop.f32.mrf.mxu2  ;;  %4703 = vmatpush.bf16.msrb.mxu3 %v10414_v23  ;;  %4556 = vmatpush.bf16.msrb.mxu0 %v10154_v9  ;;  %v18696_v23 = vld [vmem:[#allocation59_spill] sm:$0xff]  ;;  %v18700_v9 = vld [vmem:[#allocation61_spill] sm:$0xff] }
 0x413   : > { %v3241_v30 = vadd.f32 %v3240_v47, %v18692_v11  ;;  %4605 = vmatpush.bf16.msrb.mxu1 %v10410_v17 }
 0x414   : > { %v3289_v45 = vpop.f32.mrf.mxu3  ;;  %v3144_v14 = vpop.f32.mrf.mxu0 }
 0x415   : > { %v3145_v49 = vadd.f32 %v3144_v14, %v18693_v28  ;;  %v14666_v16 = vadd.f32 %v3289_v45, %v3241_v30  ;;  %v18697_v14 = vld [vmem:[#allocation60_spill] sm:$0xff] }
 0x416   : > { %v3193_v40 = vpop.f32.mrf.mxu1 }
 0x417   : > { %18694 = vst [vmem:[#allocation56_spill] sm:$0xff] %v14666_v16  ;;  %v14677_v41 = vadd.f32 %v3193_v40, %v3145_v49  ;;  %v11507_v40 = vld [vmem:[%s18476_s1 + $0x98c] sm:$0xf] }
 0x418   : > { %v10126_v3 = vor.u32 %v11507_v40, %v10123_v4  ;;  %v10377_v40 = vld [vmem:[%s18476_s1 + $0xb88] sm:$0xf] }
 0x419   : > { %18695 = vst [vmem:[#allocation57_spill] sm:$0xff] %v14677_v41 }
 0x41a   : > { %v3242_v47 = vpop.f32.mrf.mxu2  ;;  %4655 = vmatpush.bf16.msrb.mxu2 %v10126_v3  ;;  %v11575_v3 = vld [vmem:[%s18476_s1 + $0xba4] sm:$0xf0] }
 0x41b   : > { %v3243_v11 = vadd.f32 %v3242_v47, %v18696_v23  ;;  %v18701_v23 = vld [vmem:[#allocation62_spill] sm:$0xff] }
 0x41c   : > { %v3291_v30 = vpop.f32.mrf.mxu3  ;;  %v3147_v45 = vpop.f32.mrf.mxu0 }
 0x41d   : > { %v3148_v28 = vadd.f32 %v3147_v45, %v18697_v14  ;;  %v14684_v15 = vadd.f32 %v3291_v30, %v3243_v11  ;;  %v10121_v14 = vld [vmem:[%s18476_s1 + $0x988] sm:$0xf] }
 0x41e   : > { %v3196_v16 = vpop.f32.mrf.mxu1 }
 0x41f   : > { %18698 = vst [vmem:[#allocation58_spill] sm:$0xff] %v14684_v15  ;;  %v14686_v49 = vadd.f32 %v3196_v16, %v3148_v28  ;;  %3342 = vmatmul.bf16.gmra.mxu0 %v13723_v29  ;;  %3440 = vmatmul.bf16.gmra.mxu2 %v13723_v29  ;;  %v11571_v16 = vld [vmem:[%s18476_s1 + $0xb8c] sm:$0xf]  ;;  %v11511_v28 = vld [vmem:[%s18476_s1 + $0x9a4] sm:$0xf0] }
 0x421   : > { %18699 = vst [vmem:[#allocation59_spill] sm:$0xff] %v14686_v49  ;;  %3391 = vmatmul.bf16.gmra.mxu1 %v13725_v32  ;;  %3489 = vmatmul.bf16.gmra.mxu3 %v13725_v32  ;;  %v10382_v32 = vor.u32 %v11571_v16, %v10379_v37  ;;  %v10122_v16 = vor.u32 %v11511_v28, %v10121_v14  ;;  %v9857_v37 = vld [vmem:[%s12211_s5 + $0x100] sm:$0xf]  ;;  %v18705_v14 = vld [vmem:[#allocation64_spill] sm:$0xff] }
 0x422   : > { %v3245_v29 = vpop.f32.mrf.mxu2 }
 0x423   : > { %v3246_v1 = vadd.f32 %v3245_v29, %v18700_v9  ;;  %4704 = vmatpush.bf16.msrb.mxu3 %v10382_v32  ;;  %v11443_v29 = vld [vmem:[%s12211_s5 + $0x104] sm:$0xf0]  ;;  %v10378_v32 = vor.u32 %v11575_v3, %v10377_v40  ;;  %v11442_v9 = vld [vmem:[%s12211_s5 + $0x104] sm:$0xf]  ;;  %4557 = vmatpush.bf16.msrb.mxu0 %v10122_v16  ;;  %v11499_v40 = vld [vmem:[%s18476_s1 + $0x94c] sm:$0xf] }
 0x424   : > { %v3294_v17 = vpop.f32.mrf.mxu3  ;;  %v3149_v47 = vpop.f32.mrf.mxu0  ;;  %v10091_v16 = vld [vmem:[%s18476_s1 + $0x968] sm:$0xf0] }
 0x425   : > { %v3150_v11 = vadd.f32 %v3149_v47, %v18701_v23  ;;  %v14706_v45 = vadd.f32 %v3294_v17, %v3246_v1  ;;  %v9859_v1 = vld [vmem:[%s12211_s5 + $0x108] sm:$0xf0]  ;;  %4606 = vmatpush.bf16.msrb.mxu1 %v10378_v32  ;;  %v14726_v47 = vor.u32 %v11443_v29, %v9857_v37  ;;  %v18708_v29 = vld [vmem:[#allocation65_spill] sm:$0xff] }
 0x426   : > { %v3198_v30 = vpop.f32.mrf.mxu1  ;;  %v18704_v23 = vld [vmem:[#allocation63_spill] sm:$0xff] }
 0x427   : > { %18702 = vst [vmem:[#allocation60_spill] sm:$0xff] %v14706_v45  ;;  %v14717_v4 = vadd.f32 %v3198_v30, %v3150_v11  ;;  %v14729_v30 = vor.u32 %v11442_v9, %v9859_v1 }
 0x429   : > { %18703 = vst [vmem:[#allocation61_spill] sm:$0xff] %v14717_v4 }
 0x42a   : > { %v3247_v17 = vpop.f32.mrf.mxu2 }
 0x42b   : > { %v3248_v45 = vadd.f32 %v3247_v17, %v18704_v23  ;;  %v18709_v17 = vld [vmem:[#allocation66_spill] sm:$0xff] }
 0x42c   : > { %v3296_v49 = vpop.f32.mrf.mxu3  ;;  %v3308_v11 = vpop.f32.mrf.mxu0 }
 0x42d   : > { %v3309_v28 = vadd.f32 %v3308_v11, %v18705_v14  ;;  %v14732_v15 = vadd.f32 %v3296_v49, %v3248_v45  ;;  %v11563_v49 = vld [vmem:[%s18476_s1 + $0xb4c] sm:$0xf]  ;;  %v10094_v45 = vor.u32 %v11499_v40, %v10091_v16  ;;  %v11503_v40 = vld [vmem:[%s18476_s1 + $0x964] sm:$0xf0] }
 0x42e   : > { %v3357_v4 = vpop.f32.mrf.mxu1  ;;  %v10345_v16 = vld [vmem:[%s18476_s1 + $0xb48] sm:$0xf] }
 0x42f   : > { %18706 = vst [vmem:[#allocation62_spill] sm:$0xff] %v14732_v15  ;;  %v14734_v41 = vadd.f32 %v3357_v4, %v3309_v28  ;;  %4368 = vmatmul.bf16.vlgmr.msra.gmra.mxu0 %v14726_v47  ;;  %4466 = vmatmul.bf16.vlgmr.msra.gmra.mxu2 %v14726_v47  ;;  %v10347_v4 = vld [vmem:[%s18476_s1 + $0xb68] sm:$0xf0]  ;;  %v10089_v28 = vld [vmem:[%s18476_s1 + $0x948] sm:$0xf] }
 0x430   : > { %v10350_v37 = vor.u32 %v11563_v49, %v10347_v4  ;;  %4656 = vmatpush.bf16.msrb.mxu2 %v10094_v45  ;;  %v10090_v45 = vor.u32 %v11503_v40, %v10089_v28  ;;  %v11567_v4 = vld [vmem:[%s18476_s1 + $0xb64] sm:$0xf0]  ;;  %v18713_v28 = vld [vmem:[#allocation68_spill] sm:$0xff] }
 0x431   : > { %18707 = vst [vmem:[#allocation63_spill] sm:$0xff] %v14734_v41  ;;  %4417 = vmatmul.bf16.vlgmr.msra.gmra.mxu1 %v14729_v30  ;;  %4515 = vmatmul.bf16.vlgmr.msra.gmra.mxu3 %v14729_v30 }
 0x432   : > { %v3406_v3 = vpop.f32.mrf.mxu2  ;;  %4705 = vmatpush.bf16.msrb.mxu3 %v10350_v37  ;;  %v11445_v37 = vld [vmem:[%s12211_s5 + $0x114] sm:$0xf0]  ;;  %4558 = vmatpush.bf16.msrb.mxu0 %v10090_v45 }
 0x433   : > { %v3407_v32 = vadd.f32 %v3406_v3, %v18708_v29  ;;  %v9865_v3 = vld [vmem:[%s12211_s5 + $0x110] sm:$0xf]  ;;  %v10346_v29 = vor.u32 %v11567_v4, %v10345_v16  ;;  %v10059_v16 = vld [vmem:[%s18476_s1 + $0x928] sm:$0xf0] }
 0x434   : > { %v3455_v9 = vpop.f32.mrf.mxu3  ;;  %v3310_v1 = vpop.f32.mrf.mxu0 }
 0x435   : > { %v3311_v23 = vadd.f32 %v3310_v1, %v18709_v17  ;;  %v14754_v14 = vadd.f32 %v3455_v9, %v3407_v32  ;;  %v11444_v32 = vld [vmem:[%s12211_s5 + $0x114] sm:$0xf]  ;;  %v9867_v9 = vld [vmem:[%s12211_s5 + $0x118] sm:$0xf0]  ;;  %4607 = vmatpush.bf16.msrb.mxu1 %v10346_v29  ;;  %v14774_v17 = vor.u32 %v11445_v37, %v9865_v3 }
 0x436   : > { %v3359_v11 = vpop.f32.mrf.mxu1  ;;  %v18716_v3 = vld [vmem:[#allocation69_spill] sm:$0xff] }
 0x437   : > { %18710 = vst [vmem:[#allocation64_spill] sm:$0xff] %v14754_v14  ;;  %v14765_v49 = vadd.f32 %v3359_v11, %v3311_v23  ;;  %v18712_v14 = vld [vmem:[#allocation67_spill] sm:$0xff]  ;;  %v14777_v11 = vor.u32 %v11444_v32, %v9867_v9  ;;  %v18717_v9 = vld [vmem:[#allocation70_spill] sm:$0xff] }
 0x439   : > { %18711 = vst [vmem:[#allocation65_spill] sm:$0xff] %v14765_v49 }
 0x43a   : > { %v3408_v1 = vpop.f32.mrf.mxu2 }
 0x43b   : > { %v3409_v41 = vadd.f32 %v3408_v1, %v18712_v14  ;;  %v11491_v14 = vld [vmem:[%s18476_s1 + $0x90c] sm:$0xf] }
 0x43c   : > { %v3457_v15 = vpop.f32.mrf.mxu3  ;;  %v3313_v23 = vpop.f32.mrf.mxu0 }
 0x43d   : > { %v3314_v40 = vadd.f32 %v3313_v23, %v18713_v28  ;;  %v14780_v33 = vadd.f32 %v3457_v15, %v3409_v41  ;;  %v11555_v15 = vld [vmem:[%s18476_s1 + $0xb0c] sm:$0xf]  ;;  %v10062_v41 = vor.u32 %v11491_v14, %v10059_v16  ;;  %v11495_v14 = vld [vmem:[%s18476_s1 + $0x924] sm:$0xf0] }
 0x43e   : > { %v3362_v49 = vpop.f32.mrf.mxu1  ;;  %v10313_v16 = vld [vmem:[%s18476_s1 + $0xb08] sm:$0xf] }
 0x43f   : > { %18714 = vst [vmem:[#allocation66_spill] sm:$0xff] %v14780_v33  ;;  %v14782_v26 = vadd.f32 %v3362_v49, %v3314_v40  ;;  %4373 = vmatmul.bf16.gmra.mxu0 %v14774_v17  ;;  %4471 = vmatmul.bf16.gmra.mxu2 %v14774_v17  ;;  %v10315_v49 = vld [vmem:[%s18476_s1 + $0xb28] sm:$0xf0]  ;;  %v10057_v40 = vld [vmem:[%s18476_s1 + $0x908] sm:$0xf] }
 0x440   : > { %v10318_v4 = vor.u32 %v11555_v15, %v10315_v49  ;;  %4657 = vmatpush.bf16.msrb.mxu2 %v10062_v41  ;;  %v10058_v41 = vor.u32 %v11495_v14, %v10057_v40  ;;  %v11559_v49 = vld [vmem:[%s18476_s1 + $0xb24] sm:$0xf0]  ;;  %v18721_v40 = vld [vmem:[#allocation72_spill] sm:$0xff] }
 0x441   : > { %18715 = vst [vmem:[#allocation67_spill] sm:$0xff] %v14782_v26  ;;  %4422 = vmatmul.bf16.gmra.mxu1 %v14777_v11  ;;  %4520 = vmatmul.bf16.gmra.mxu3 %v14777_v11 }
 0x442   : > { %v3411_v45 = vpop.f32.mrf.mxu2  ;;  %4706 = vmatpush.bf16.msrb.mxu3 %v10318_v4  ;;  %v11447_v4 = vld [vmem:[%s12211_s5 + $0x124] sm:$0xf0]  ;;  %4559 = vmatpush.bf16.msrb.mxu0 %v10058_v41 }
 0x443   : > { %v3412_v37 = vadd.f32 %v3411_v45, %v18716_v3  ;;  %v9873_v45 = vld [vmem:[%s12211_s5 + $0x120] sm:$0xf]  ;;  %v10314_v3 = vor.u32 %v11559_v49, %v10313_v16  ;;  %v10027_v16 = vld [vmem:[%s18476_s1 + $0x8e8] sm:$0xf0] }
 0x444   : > { %v3460_v29 = vpop.f32.mrf.mxu3  ;;  %v3315_v32 = vpop.f32.mrf.mxu0 }
 0x445   : > { %v3316_v1 = vadd.f32 %v3315_v32, %v18717_v9  ;;  %v14802_v28 = vadd.f32 %v3460_v29, %v3412_v37  ;;  %v11446_v37 = vld [vmem:[%s12211_s5 + $0x124] sm:$0xf]  ;;  %v9875_v29 = vld [vmem:[%s12211_s5 + $0x128] sm:$0xf0]  ;;  %4608 = vmatpush.bf16.msrb.mxu1 %v10314_v3  ;;  %v14822_v9 = vor.u32 %v11447_v4, %v9873_v45  ;;  %v18724_v45 = vld [vmem:[#allocation73_spill] sm:$0xff] }
 0x446   : > { %v3364_v23 = vpop.f32.mrf.mxu1 }
 0x447   : > { %18718 = vst [vmem:[#allocation68_spill] sm:$0xff] %v14802_v28  ;;  %v14813_v15 = vadd.f32 %v3364_v23, %v3316_v1  ;;  %v18720_v28 = vld [vmem:[#allocation71_spill] sm:$0xff]  ;;  %v14825_v23 = vor.u32 %v11446_v37, %v9875_v29  ;;  %v18725_v29 = vld [vmem:[#allocation74_spill] sm:$0xff] }
 0x449   : > { %18719 = vst [vmem:[#allocation69_spill] sm:$0xff] %v14813_v15 }
 0x44a   : > { %v3413_v32 = vpop.f32.mrf.mxu2 }
 0x44b   : > { %v3414_v26 = vadd.f32 %v3413_v32, %v18720_v28  ;;  %v11483_v28 = vld [vmem:[%s18476_s1 + $0x8cc] sm:$0xf] }
 0x44c   : > { %v3462_v33 = vpop.f32.mrf.mxu3  ;;  %v3318_v1 = vpop.f32.mrf.mxu0 }
 0x44d   : > { %v3319_v14 = vadd.f32 %v3318_v1, %v18721_v40  ;;  %v14828_v53 = vadd.f32 %v3462_v33, %v3414_v26  ;;  %v11547_v33 = vld [vmem:[%s18476_s1 + $0xacc] sm:$0xf]  ;;  %v10030_v26 = vor.u32 %v11483_v28, %v10027_v16  ;;  %v11487_v28 = vld [vmem:[%s18476_s1 + $0x8e4] sm:$0xf0] }
 0x44e   : > { %v3367_v15 = vpop.f32.mrf.mxu1  ;;  %v10281_v16 = vld [vmem:[%s18476_s1 + $0xac8] sm:$0xf] }
 0x44f   : > { %18722 = vst [vmem:[#allocation70_spill] sm:$0xff] %v14828_v53  ;;  %v14830_v44 = vadd.f32 %v3367_v15, %v3319_v14  ;;  %4378 = vmatmul.bf16.gmra.mxu0 %v14822_v9  ;;  %4476 = vmatmul.bf16.gmra.mxu2 %v14822_v9  ;;  %v10283_v15 = vld [vmem:[%s18476_s1 + $0xae8] sm:$0xf0]  ;;  %v10025_v14 = vld [vmem:[%s18476_s1 + $0x8c8] sm:$0xf] }
 0x450   : > { %v10286_v49 = vor.u32 %v11547_v33, %v10283_v15  ;;  %4658 = vmatpush.bf16.msrb.mxu2 %v10030_v26  ;;  %v10026_v26 = vor.u32 %v11487_v28, %v10025_v14  ;;  %v11551_v15 = vld [vmem:[%s18476_s1 + $0xae4] sm:$0xf0]  ;;  %v18729_v14 = vld [vmem:[#allocation76_spill] sm:$0xff] }
 0x451   : > { %18723 = vst [vmem:[#allocation71_spill] sm:$0xff] %v14830_v44  ;;  %4427 = vmatmul.bf16.gmra.mxu1 %v14825_v23  ;;  %4525 = vmatmul.bf16.gmra.mxu3 %v14825_v23 }
 0x452   : > { %v3416_v41 = vpop.f32.mrf.mxu2  ;;  %4707 = vmatpush.bf16.msrb.mxu3 %v10286_v49  ;;  %v11449_v49 = vld [vmem:[%s12211_s5 + $0x134] sm:$0xf0]  ;;  %4560 = vmatpush.bf16.msrb.mxu0 %v10026_v26 }
 0x453   : > { %v3417_v4 = vadd.f32 %v3416_v41, %v18724_v45  ;;  %v9881_v41 = vld [vmem:[%s12211_s5 + $0x130] sm:$0xf]  ;;  %v10282_v45 = vor.u32 %v11551_v15, %v10281_v16  ;;  %v9995_v16 = vld [vmem:[%s18476_s1 + $0x8a8] sm:$0xf0] }
 0x454   : > { %v3465_v3 = vpop.f32.mrf.mxu3  ;;  %v3320_v37 = vpop.f32.mrf.mxu0 }
 0x455   : > { %v3321_v32 = vadd.f32 %v3320_v37, %v18725_v29  ;;  %v14850_v40 = vadd.f32 %v3465_v3, %v3417_v4  ;;  %v11448_v4 = vld [vmem:[%s12211_s5 + $0x134] sm:$0xf]  ;;  %v9883_v3 = vld [vmem:[%s12211_s5 + $0x138] sm:$0xf0]  ;;  %4609 = vmatpush.bf16.msrb.mxu1 %v10282_v45  ;;  %v14870_v29 = vor.u32 %v11449_v49, %v9881_v41 }
 0x456   : > { %v3369_v1 = vpop.f32.mrf.mxu1  ;;  %v18732_v41 = vld [vmem:[#allocation77_spill] sm:$0xff] }
 0x457   : > { %18726 = vst [vmem:[#allocation72_spill] sm:$0xff] %v14850_v40  ;;  %v14861_v33 = vadd.f32 %v3369_v1, %v3321_v32  ;;  %v18728_v40 = vld [vmem:[#allocation75_spill] sm:$0xff]  ;;  %v14873_v1 = vor.u32 %v11448_v4, %v9883_v3  ;;  %v18733_v3 = vld [vmem:[#allocation78_spill] sm:$0xff] }
 0x459   : > { %18727 = vst [vmem:[#allocation73_spill] sm:$0xff] %v14861_v33 }
 0x45a   : > { %v3418_v37 = vpop.f32.mrf.mxu2 }
 0x45b   : > { %v3419_v44 = vadd.f32 %v3418_v37, %v18728_v40  ;;  %v11475_v40 = vld [vmem:[%s18476_s1 + $0x88c] sm:$0xf] }
 0x45c   : > { %v3467_v53 = vpop.f32.mrf.mxu3  ;;  %v3323_v32 = vpop.f32.mrf.mxu0 }
 0x45d   : > { %v3324_v28 = vadd.f32 %v3323_v32, %v18729_v14  ;;  %v14876_v7 = vadd.f32 %v3467_v53, %v3419_v44  ;;  %v11539_v53 = vld [vmem:[%s18476_s1 + $0xa8c] sm:$0xf]  ;;  %v9998_v44 = vor.u32 %v11475_v40, %v9995_v16  ;;  %v11479_v40 = vld [vmem:[%s18476_s1 + $0x8a4] sm:$0xf0] }
 0x45e   : > { %v3372_v33 = vpop.f32.mrf.mxu1  ;;  %v10249_v16 = vld [vmem:[%s18476_s1 + $0xa88] sm:$0xf] }
 0x45f   : > { %18730 = vst [vmem:[#allocation74_spill] sm:$0xff] %v14876_v7  ;;  %v14878_v55 = vadd.f32 %v3372_v33, %v3324_v28  ;;  %4383 = vmatmul.bf16.gmra.mxu0 %v14870_v29  ;;  %4481 = vmatmul.bf16.gmra.mxu2 %v14870_v29  ;;  %v10251_v33 = vld [vmem:[%s18476_s1 + $0xaa8] sm:$0xf0]  ;;  %v9993_v28 = vld [vmem:[%s18476_s1 + $0x888] sm:$0xf] }
 0x460   : > { %v10254_v15 = vor.u32 %v11539_v53, %v10251_v33  ;;  %4659 = vmatpush.bf16.msrb.mxu2 %v9998_v44  ;;  %v9994_v44 = vor.u32 %v11479_v40, %v9993_v28  ;;  %v11543_v33 = vld [vmem:[%s18476_s1 + $0xaa4] sm:$0xf0]  ;;  %v18737_v28 = vld [vmem:[#allocation80_spill] sm:$0xff] }
 0x461   : > { %18731 = vst [vmem:[#allocation75_spill] sm:$0xff] %v14878_v55  ;;  %4432 = vmatmul.bf16.gmra.mxu1 %v14873_v1  ;;  %4530 = vmatmul.bf16.gmra.mxu3 %v14873_v1 }
 0x462   : > { %v3421_v26 = vpop.f32.mrf.mxu2  ;;  %4708 = vmatpush.bf16.msrb.mxu3 %v10254_v15  ;;  %v11451_v15 = vld [vmem:[%s12211_s5 + $0x144] sm:$0xf0]  ;;  %4561 = vmatpush.bf16.msrb.mxu0 %v9994_v44 }
 0x463   : > { %v3422_v49 = vadd.f32 %v3421_v26, %v18732_v41  ;;  %v9889_v26 = vld [vmem:[%s12211_s5 + $0x140] sm:$0xf]  ;;  %v10250_v41 = vor.u32 %v11543_v33, %v10249_v16  ;;  %v9963_v16 = vld [vmem:[%s18476_s1 + $0x868] sm:$0xf0] }
 0x464   : > { %v3470_v45 = vpop.f32.mrf.mxu3  ;;  %v3325_v4 = vpop.f32.mrf.mxu0 }
 0x465   : > { %v3326_v37 = vadd.f32 %v3325_v4, %v18733_v3  ;;  %v14898_v14 = vadd.f32 %v3470_v45, %v3422_v49  ;;  %v11450_v49 = vld [vmem:[%s12211_s5 + $0x144] sm:$0xf]  ;;  %v9891_v45 = vld [vmem:[%s12211_s5 + $0x148] sm:$0xf0]  ;;  %4610 = vmatpush.bf16.msrb.mxu1 %v10250_v41  ;;  %v14918_v3 = vor.u32 %v11451_v15, %v9889_v26  ;;  %v18740_v26 = vld [vmem:[#allocation81_spill] sm:$0xff] }
 0x466   : > { %v3374_v32 = vpop.f32.mrf.mxu1 }
 0x467   : > { %18734 = vst [vmem:[#allocation76_spill] sm:$0xff] %v14898_v14  ;;  %v14909_v53 = vadd.f32 %v3374_v32, %v3326_v37  ;;  %v18736_v14 = vld [vmem:[#allocation79_spill] sm:$0xff]  ;;  %v14921_v32 = vor.u32 %v11450_v49, %v9891_v45  ;;  %v18741_v45 = vld [vmem:[#allocation82_spill] sm:$0xff] }
 0x469   : > { %18735 = vst [vmem:[#allocation77_spill] sm:$0xff] %v14909_v53 }
 0x46a   : > { %v3423_v4 = vpop.f32.mrf.mxu2 }
 0x46b   : > { %v3424_v55 = vadd.f32 %v3423_v4, %v18736_v14  ;;  %v11467_v14 = vld [vmem:[%s18476_s1 + $0x84c] sm:$0xf] }
 0x46c   : > { %v3472_v7 = vpop.f32.mrf.mxu3  ;;  %v3328_v37 = vpop.f32.mrf.mxu0 }
 0x46d   : > { %v3329_v40 = vadd.f32 %v3328_v37, %v18737_v28  ;;  %v14924_v27 = vadd.f32 %v3472_v7, %v3424_v55  ;;  %v11531_v7 = vld [vmem:[%s18476_s1 + $0xa4c] sm:$0xf]  ;;  %v9966_v55 = vor.u32 %v11467_v14, %v9963_v16  ;;  %v11471_v14 = vld [vmem:[%s18476_s1 + $0x864] sm:$0xf0] }
 0x46e   : > { %v3377_v53 = vpop.f32.mrf.mxu1  ;;  %v10217_v16 = vld [vmem:[%s18476_s1 + $0xa48] sm:$0xf] }
 0x46f   : > { %18738 = vst [vmem:[#allocation78_spill] sm:$0xff] %v14924_v27  ;;  %v14926_v12 = vadd.f32 %v3377_v53, %v3329_v40  ;;  %4388 = vmatmul.bf16.gmra.mxu0 %v14918_v3  ;;  %4486 = vmatmul.bf16.gmra.mxu2 %v14918_v3  ;;  %v10219_v53 = vld [vmem:[%s18476_s1 + $0xa68] sm:$0xf0]  ;;  %v9961_v40 = vld [vmem:[%s18476_s1 + $0x848] sm:$0xf] }
 0x470   : > { %v10222_v33 = vor.u32 %v11531_v7, %v10219_v53  ;;  %4660 = vmatpush.bf16.msrb.mxu2 %v9966_v55  ;;  %v9962_v55 = vor.u32 %v11471_v14, %v9961_v40  ;;  %v11535_v53 = vld [vmem:[%s18476_s1 + $0xa64] sm:$0xf0]  ;;  %v18745_v40 = vld [vmem:[#allocation84_spill] sm:$0xff] }
 0x471   : > { %18739 = vst [vmem:[#allocation79_spill] sm:$0xff] %v14926_v12  ;;  %4437 = vmatmul.bf16.gmra.mxu1 %v14921_v32  ;;  %4535 = vmatmul.bf16.gmra.mxu3 %v14921_v32 }
 0x472   : > { %v3426_v44 = vpop.f32.mrf.mxu2  ;;  %4709 = vmatpush.bf16.msrb.mxu3 %v10222_v33  ;;  %v11453_v33 = vld [vmem:[%s12211_s5 + $0x154] sm:$0xf0]  ;;  %4562 = vmatpush.bf16.msrb.mxu0 %v9962_v55 }
 0x473   : > { %v3427_v15 = vadd.f32 %v3426_v44, %v18740_v26  ;;  %v9897_v44 = vld [vmem:[%s12211_s5 + $0x150] sm:$0xf]  ;;  %v10218_v26 = vor.u32 %v11535_v53, %v10217_v16  ;;  %v9931_v16 = vld [vmem:[%s18476_s1 + $0x828] sm:$0xf0] }
 0x474   : > { %v3475_v41 = vpop.f32.mrf.mxu3  ;;  %v3330_v49 = vpop.f32.mrf.mxu0 }
 0x475   : > { %v3331_v4 = vadd.f32 %v3330_v49, %v18741_v45  ;;  %v14946_v28 = vadd.f32 %v3475_v41, %v3427_v15  ;;  %v11452_v15 = vld [vmem:[%s12211_s5 + $0x154] sm:$0xf]  ;;  %v9899_v41 = vld [vmem:[%s12211_s5 + $0x158] sm:$0xf0]  ;;  %4611 = vmatpush.bf16.msrb.mxu1 %v10218_v26  ;;  %v14966_v45 = vor.u32 %v11453_v33, %v9897_v44 }
 0x476   : > { %v3379_v37 = vpop.f32.mrf.mxu1  ;;  %v18748_v44 = vld [vmem:[#allocation85_spill] sm:$0xff] }
 0x477   : > { %18742 = vst [vmem:[#allocation80_spill] sm:$0xff] %v14946_v28  ;;  %v14957_v7 = vadd.f32 %v3379_v37, %v3331_v4  ;;  %v18744_v28 = vld [vmem:[#allocation83_spill] sm:$0xff]  ;;  %v14969_v37 = vor.u32 %v11452_v15, %v9899_v41  ;;  %v18749_v41 = vld [vmem:[#allocation86_spill] sm:$0xff] }
 0x479   : > { %18743 = vst [vmem:[#allocation81_spill] sm:$0xff] %v14957_v7 }
 0x47a   : > { %v3428_v49 = vpop.f32.mrf.mxu2 }
 0x47b   : > { %v3429_v12 = vadd.f32 %v3428_v49, %v18744_v28  ;;  %v11459_v28 = vld [vmem:[%s18476_s1 + $0x80c] sm:$0xf] }
 0x47c   : > { %v3477_v27 = vpop.f32.mrf.mxu3  ;;  %v3333_v4 = vpop.f32.mrf.mxu0 }
 0x47d   : > { %v3334_v14 = vadd.f32 %v3333_v4, %v18745_v40  ;;  %v14972_v8 = vadd.f32 %v3477_v27, %v3429_v12  ;;  %v11523_v27 = vld [vmem:[%s18476_s1 + $0xa0c] sm:$0xf]  ;;  %v9934_v12 = vor.u32 %v11459_v28, %v9931_v16  ;;  %v11463_v28 = vld [vmem:[%s18476_s1 + $0x824] sm:$0xf0] }
 0x47e   : > { %v3382_v7 = vpop.f32.mrf.mxu1  ;;  %v10185_v16 = vld [vmem:[%s18476_s1 + $0xa08] sm:$0xf] }
 0x47f   : > { %18746 = vst [vmem:[#allocation82_spill] sm:$0xff] %v14972_v8  ;;  %v14974_v54 = vadd.f32 %v3382_v7, %v3334_v14  ;;  %4393 = vmatmul.bf16.gmra.mxu0 %v14966_v45  ;;  %4491 = vmatmul.bf16.gmra.mxu2 %v14966_v45  ;;  %v10187_v7 = vld [vmem:[%s18476_s1 + $0xa28] sm:$0xf0]  ;;  %v9929_v14 = vld [vmem:[%s18476_s1 + $0x808] sm:$0xf] }
 0x480   : > { %v10190_v53 = vor.u32 %v11523_v27, %v10187_v7  ;;  %4661 = vmatpush.bf16.msrb.mxu2 %v9934_v12  ;;  %v9930_v12 = vor.u32 %v11463_v28, %v9929_v14  ;;  %v11527_v7 = vld [vmem:[%s18476_s1 + $0xa24] sm:$0xf0]  ;;  %v18753_v14 = vld [vmem:[#allocation88_spill] sm:$0xff] }
 0x481   : > { %18747 = vst [vmem:[#allocation83_spill] sm:$0xff] %v14974_v54  ;;  %4442 = vmatmul.bf16.gmra.mxu1 %v14969_v37  ;;  %4540 = vmatmul.bf16.gmra.mxu3 %v14969_v37 }
 0x482   : > { %v3431_v55 = vpop.f32.mrf.mxu2  ;;  %4710 = vmatpush.bf16.msrb.mxu3 %v10190_v53  ;;  %v11455_v53 = vld [vmem:[%s12211_s5 + $0x164] sm:$0xf0]  ;;  %4563 = vmatpush.bf16.msrb.mxu0 %v9930_v12 }
 0x483   : > { %v3432_v33 = vadd.f32 %v3431_v55, %v18748_v44  ;;  %v9905_v55 = vld [vmem:[%s12211_s5 + $0x160] sm:$0xf]  ;;  %v10186_v44 = vor.u32 %v11527_v7, %v10185_v16  ;;  %v10163_v16 = vld [vmem:[%s18476_s1 + $0x9f0] sm:$0xf0] }
 0x484   : > { %v3480_v26 = vpop.f32.mrf.mxu3  ;;  %v3335_v15 = vpop.f32.mrf.mxu0 }
 0x485   : > { %v3336_v49 = vadd.f32 %v3335_v15, %v18749_v41  ;;  %v14994_v40 = vadd.f32 %v3480_v26, %v3432_v33  ;;  %v11454_v33 = vld [vmem:[%s12211_s5 + $0x164] sm:$0xf]  ;;  %v9907_v26 = vld [vmem:[%s12211_s5 + $0x168] sm:$0xf0]  ;;  %4612 = vmatpush.bf16.msrb.mxu1 %v10186_v44  ;;  %v15014_v41 = vor.u32 %v11455_v53, %v9905_v55  ;;  %v18756_v55 = vld [vmem:[#allocation89_spill] sm:$0xff] }
 0x486   : > { %v3384_v4 = vpop.f32.mrf.mxu1 }
 0x487   : > { %18750 = vst [vmem:[#allocation84_spill] sm:$0xff] %v14994_v40  ;;  %v15005_v27 = vadd.f32 %v3384_v4, %v3336_v49  ;;  %v18752_v40 = vld [vmem:[#allocation87_spill] sm:$0xff]  ;;  %v15017_v4 = vor.u32 %v11454_v33, %v9907_v26  ;;  %v18757_v26 = vld [vmem:[#allocation90_spill] sm:$0xff] }
 0x489   : > { %18751 = vst [vmem:[#allocation85_spill] sm:$0xff] %v15005_v27 }
 0x48a   : > { %v3433_v15 = vpop.f32.mrf.mxu2 }
 0x48b   : > { %v3434_v54 = vadd.f32 %v3433_v15, %v18752_v40  ;;  %v11516_v40 = vld [vmem:[%s18476_s1 + $0x9d4] sm:$0xf] }
 0x48c   : > { %v3482_v8 = vpop.f32.mrf.mxu3  ;;  %v3338_v49 = vpop.f32.mrf.mxu0 }
 0x48d   : > { %v3339_v28 = vadd.f32 %v3338_v49, %v18753_v14  ;;  %v15020_v42 = vadd.f32 %v3482_v8, %v3434_v54  ;;  %v11580_v8 = vld [vmem:[%s18476_s1 + $0xbd4] sm:$0xf]  ;;  %v10166_v54 = vor.u32 %v11516_v40, %v10163_v16  ;;  %v10161_v40 = vld [vmem:[%s18476_s1 + $0x9d0] sm:$0xf] }
 0x48e   : > { %v3387_v27 = vpop.f32.mrf.mxu1  ;;  %v11520_v16 = vld [vmem:[%s18476_s1 + $0x9ec] sm:$0xf0] }
 0x48f   : > { %18754 = vst [vmem:[#allocation86_spill] sm:$0xff] %v15020_v42  ;;  %v15022_v60 = vadd.f32 %v3387_v27, %v3339_v28  ;;  %4398 = vmatmul.bf16.gmra.mxu0 %v15014_v41  ;;  %4496 = vmatmul.bf16.gmra.mxu2 %v15014_v41  ;;  %v10419_v27 = vld [vmem:[%s18476_s1 + $0xbf0] sm:$0xf0] }
 0x490   : > { %v10422_v7 = vor.u32 %v11580_v8, %v10419_v27  ;;  %4850 = vmatpush.bf16.msra.mxu2 %v10166_v54  ;;  %v10417_v8 = vld [vmem:[%s18476_s1 + $0xbd0] sm:$0xf]  ;;  %v11457_v27 = vld [vmem:[%s12211_s5 + $0x174] sm:$0xf0] }
 0x491   : > { %18755 = vst [vmem:[#allocation87_spill] sm:$0xff] %v15022_v60  ;;  %4447 = vmatmul.bf16.gmra.mxu1 %v15017_v4  ;;  %4545 = vmatmul.bf16.gmra.mxu3 %v15017_v4  ;;  %v9913_v54 = vld [vmem:[%s12211_s5 + $0x170] sm:$0xf]  ;;  %v18760_v60 = vld [vmem:[#allocation91_spill] sm:$0xff] }
 0x492   : > { %v3436_v12 = vpop.f32.mrf.mxu2  ;;  %4899 = vmatpush.bf16.msra.mxu3 %v10422_v7  ;;  %v11584_v7 = vld [vmem:[%s18476_s1 + $0xbec] sm:$0xf0] }
 0x493   : > { %v3437_v53 = vadd.f32 %v3436_v12, %v18756_v55  ;;  %v10162_v12 = vor.u32 %v11520_v16, %v10161_v40  ;;  %v11456_v55 = vld [vmem:[%s12211_s5 + $0x174] sm:$0xf] }
 0x494   : > { %v3485_v44 = vpop.f32.mrf.mxu3  ;;  %v3340_v33 = vpop.f32.mrf.mxu0 }
 0x495   : > { %v3341_v15 = vadd.f32 %v3340_v33, %v18757_v26  ;;  %v15042_v14 = vadd.f32 %v3485_v44, %v3437_v53  ;;  %v9915_v53 = vld [vmem:[%s12211_s5 + $0x178] sm:$0xf0]  ;;  %v10418_v44 = vor.u32 %v11584_v7, %v10417_v8  ;;  %4752 = vmatpush.bf16.msra.mxu0 %v10162_v12  ;;  %v15062_v26 = vor.u32 %v11457_v27, %v9913_v54  ;;  %v10387_v54 = vld [vmem:[%s18476_s1 + $0xbb0] sm:$0xf0] }
 0x496   : > { %v3389_v49 = vpop.f32.mrf.mxu1  ;;  %v18761_v7 = vld [vmem:[#allocation92_spill] sm:$0xff] }
 0x497   : > { %18758 = vst [vmem:[#allocation88_spill] sm:$0xff] %v15042_v14  ;;  %v15044_v28 = vadd.f32 %v3389_v49, %v3341_v15  ;;  %4801 = vmatpush.bf16.msra.mxu1 %v10418_v44  ;;  %v15065_v14 = vor.u32 %v11456_v55, %v9915_v53 }
 0x499   : > { %18759 = vst [vmem:[#allocation89_spill] sm:$0xff] %v15044_v28 }
 0x49a   : > { %v3438_v33 = vpop.f32.mrf.mxu2 }
 0x49b   : > { %v3439_v15 = vadd.f32 %v3438_v33, %v13727_v34  ;;  %v11508_v34 = vld [vmem:[%s18476_s1 + $0x994] sm:$0xf]  ;;  %v18762_v33 = vld [vmem:[#allocation93_spill] sm:$0xff] }
 0x49c   : > { %v3487_v49 = vpop.f32.mrf.mxu3  ;;  %v3343_v28 = vpop.f32.mrf.mxu0 }
 0x49d   : > { %v3344_v40 = vadd.f32 %v3343_v28, %v18760_v60  ;;  %v15068_v42 = vadd.f32 %v3487_v49, %v3439_v15  ;;  %v10131_v60 = vld [vmem:[%s18476_s1 + $0x9b0] sm:$0xf0] }
 0x49e   : > { %v3392_v16 = vpop.f32.mrf.mxu1  ;;  %v11572_v28 = vld [vmem:[%s18476_s1 + $0xb94] sm:$0xf]  ;;  %v10134_v8 = vor.u32 %v11508_v34, %v10131_v60  ;;  %v10129_v34 = vld [vmem:[%s18476_s1 + $0x990] sm:$0xf] }
 0x49f   : > { %v15070_v57 = vadd.f32 %v3392_v16, %v3344_v40  ;;  %4403 = vmatmul.bf16.gmra.mxu0 %v15062_v26  ;;  %4501 = vmatmul.bf16.gmra.mxu2 %v15062_v26  ;;  %v10390_v12 = vor.u32 %v11572_v28, %v10387_v54  ;;  %v11512_v60 = vld [vmem:[%s18476_s1 + $0x9ac] sm:$0xf0] }
 0x4a0   : > { %4851 = vmatpush.bf16.msra.mxu2 %v10134_v8  ;;  %v10385_v28 = vld [vmem:[%s18476_s1 + $0xb90] sm:$0xf]  ;;  %v10130_v8 = vor.u32 %v11512_v60, %v10129_v34  ;;  %v11500_v60 = vld [vmem:[%s18476_s1 + $0x954] sm:$0xf] }
 0x4a1   : > { %4452 = vmatmul.bf16.gmra.mxu1 %v15065_v14  ;;  %4550 = vmatmul.bf16.gmra.mxu3 %v15065_v14  ;;  %v11576_v54 = vld [vmem:[%s18476_s1 + $0xbac] sm:$0xf0] }
 0x4a2   : > { %v3441_v27 = vpop.f32.mrf.mxu2  ;;  %4900 = vmatpush.bf16.msra.mxu3 %v10390_v12  ;;  %4753 = vmatpush.bf16.msra.mxu0 %v10130_v8  ;;  %v11564_v8 = vld [vmem:[%s18476_s1 + $0xb54] sm:$0xf] }
 0x4a3   : > { %v3442_v55 = vadd.f32 %v3441_v27, %v18761_v7  ;;  %v10386_v27 = vor.u32 %v11576_v54, %v10385_v28  ;;  %v18764_v7 = vld [vmem:[#allocation94_spill] sm:$0xff]  ;;  %v10099_v28 = vld [vmem:[%s18476_s1 + $0x970] sm:$0xf0] }
 0x4a4   : > { %v3490_v53 = vpop.f32.mrf.mxu3  ;;  %v3345_v44 = vpop.f32.mrf.mxu0  ;;  %v10355_v54 = vld [vmem:[%s18476_s1 + $0xb70] sm:$0xf0] }
 0x4a5   : > { %v3346_v15 = vadd.f32 %v3345_v44, %v18762_v33  ;;  %v15090_v40 = vadd.f32 %v3490_v53, %v3442_v55  ;;  %4802 = vmatpush.bf16.msra.mxu1 %v10386_v27 }
 0x4a6   : > { %v3394_v49 = vpop.f32.mrf.mxu1 }
 0x4a7   : > { %v15092_v16 = vadd.f32 %v3394_v49, %v3346_v15 }
 0x4a9   : > { %18763 = vst [vmem:[#allocation90_spill] sm:$0xff] %v15092_v16  ;;  %v18766_v16 = vld [vmem:[#allocation95_spill] sm:$0xff] }
 0x4aa   : > { %v3443_v12 = vpop.f32.mrf.mxu2 }
 0x4ab   : > { %v3444_v55 = vadd.f32 %v3443_v12, %v18764_v7  ;;  %v10358_v12 = vor.u32 %v11564_v8, %v10355_v54  ;;  %v10353_v8 = vld [vmem:[%s18476_s1 + $0xb50] sm:$0xf] }
 0x4ac   : > { %v3492_v53 = vpop.f32.mrf.mxu3  ;;  %v4369_v44 = vpop.f32.mrf.mxu0 }
 0x4ad   : > { %v15107_v15 = vadd.f32 %v3492_v53, %v3444_v55  ;;  %4901 = vmatpush.bf16.msra.mxu3 %v10358_v12 }
 0x4ae   : > { %v4418_v33 = vpop.f32.mrf.mxu1 }
 0x4af   : > { %18765 = vst [vmem:[#allocation91_spill] sm:$0xff] %v15107_v15  ;;  %v4419_v49 = vadd.f32 %v4418_v33, %v4369_v44  ;;  %4564 = vmatmul.bf16.vlgmr.msrb.gmra.mxu0 %v14726_v47  ;;  %4662 = vmatmul.bf16.vlgmr.msrb.gmra.mxu2 %v14726_v47 }
 0x4b1   : > { %v15111_v34 = vadd.f32 %v4419_v49, %v18766_v16  ;;  %4613 = vmatmul.bf16.vlgmr.msrb.gmra.mxu1 %v14729_v30  ;;  %4711 = vmatmul.bf16.vlgmr.msrb.gmra.mxu3 %v14729_v30  ;;  %v10102_v16 = vor.u32 %v11500_v60, %v10099_v28  ;;  %v18768_v49 = vld [vmem:[#allocation96_spill] sm:$0xff] }
 0x4b2   : > { %v4467_v27 = vpop.f32.mrf.mxu2  ;;  %v10097_v60 = vld [vmem:[%s18476_s1 + $0x950] sm:$0xf] }
 0x4b3   : > { %18767 = vst [vmem:[#allocation92_spill] sm:$0xff] %v15111_v34  ;;  %4852 = vmatpush.bf16.msra.mxu2 %v10102_v16  ;;  %v11504_v28 = vld [vmem:[%s18476_s1 + $0x96c] sm:$0xf0] }
 0x4b4   : > { %v4516_v7 = vpop.f32.mrf.mxu3  ;;  %v4371_v55 = vpop.f32.mrf.mxu0  ;;  %v10098_v54 = vor.u32 %v11504_v28, %v10097_v60  ;;  %v11556_v60 = vld [vmem:[%s18476_s1 + $0xb14] sm:$0xf] }
 0x4b5   : > { %v4517_v53 = vadd.f32 %v4516_v7, %v4467_v27  ;;  %v11568_v27 = vld [vmem:[%s18476_s1 + $0xb6c] sm:$0xf0] }
 0x4b6   : > { %v4420_v44 = vpop.f32.mrf.mxu1  ;;  %v10354_v12 = vor.u32 %v11568_v27, %v10353_v8  ;;  %4754 = vmatpush.bf16.msra.mxu0 %v10098_v54 }
 0x4b7   : > { %v4421_v33 = vadd.f32 %v4420_v44, %v4371_v55  ;;  %v15129_v34 = vadd.f32 %v4517_v53, %v18768_v49 }
 0x4b8   : > { %4803 = vmatpush.bf16.msra.mxu1 %v10354_v12 }
 0x4b9   : > { %18769 = vst [vmem:[#allocation93_spill] sm:$0xff] %v15129_v34  ;;  %v15141_v16 = vadd.f32 %v4421_v33, %v13797_v24  ;;  %v11492_v33 = vld [vmem:[%s18476_s1 + $0x914] sm:$0xf] }
 0x4ba   : > { %v4469_v7 = vpop.f32.mrf.mxu2 }
 0x4bc   : > { %v4518_v55 = vpop.f32.mrf.mxu3  ;;  %v4374_v53 = vpop.f32.mrf.mxu0 }
 0x4bd   : > { %v4519_v44 = vadd.f32 %v4518_v55, %v4469_v7 }
 0x4be   : > { %v4423_v49 = vpop.f32.mrf.mxu1 }
 0x4bf   : > { %v4424_v34 = vadd.f32 %v4423_v49, %v4374_v53  ;;  %v15147_v15 = vadd.f32 %v4519_v44, %v13804_v6  ;;  %4569 = vmatmul.bf16.gmra.mxu0 %v14774_v17  ;;  %4667 = vmatmul.bf16.gmra.mxu2 %v14774_v17  ;;  %v10067_v6 = vld [vmem:[%s18476_s1 + $0x930] sm:$0xf0]  ;;  %v10065_v44 = vld [vmem:[%s18476_s1 + $0x910] sm:$0xf] }
 0x4c0   : > { %v11496_v49 = vld [vmem:[%s18476_s1 + $0x92c] sm:$0xf0] }
 0x4c1   : > { %v15151_v24 = vadd.f32 %v4424_v34, %v13806_v2  ;;  %4618 = vmatmul.bf16.gmra.mxu1 %v14777_v11  ;;  %4716 = vmatmul.bf16.gmra.mxu3 %v14777_v11  ;;  %v10070_v2 = vor.u32 %v11492_v33, %v10067_v6  ;;  %v10323_v34 = vld [vmem:[%s18476_s1 + $0xb30] sm:$0xf0]  ;;  %v10321_v33 = vld [vmem:[%s18476_s1 + $0xb10] sm:$0xf] }
 0x4c2   : > { %v4472_v28 = vpop.f32.mrf.mxu2  ;;  %v10326_v8 = vor.u32 %v11556_v60, %v10323_v34  ;;  %v10066_v60 = vor.u32 %v11496_v49, %v10065_v44  ;;  %v11548_v44 = vld [vmem:[%s18476_s1 + $0xad4] sm:$0xf] }
 0x4c3   : > { %4853 = vmatpush.bf16.msra.mxu2 %v10070_v2  ;;  %v10291_v49 = vld [vmem:[%s18476_s1 + $0xaf0] sm:$0xf0] }
 0x4c4   : > { %v4521_v54 = vpop.f32.mrf.mxu3  ;;  %v4376_v27 = vpop.f32.mrf.mxu0  ;;  %4902 = vmatpush.bf16.msra.mxu3 %v10326_v8  ;;  %4755 = vmatpush.bf16.msra.mxu0 %v10066_v60  ;;  %v10294_v60 = vor.u32 %v11548_v44, %v10291_v49 }
 0x4c5   : > { %v4522_v12 = vadd.f32 %v4521_v54, %v4472_v28 }
 0x4c6   : > { %v4425_v7 = vpop.f32.mrf.mxu1 }
 0x4c7   : > { %v4426_v55 = vadd.f32 %v4425_v7, %v4376_v27  ;;  %v15169_v53 = vadd.f32 %v4522_v12, %v13826_v35  ;;  %v11560_v35 = vld [vmem:[%s18476_s1 + $0xb2c] sm:$0xf0] }
 0x4c8   : > { %v10322_v2 = vor.u32 %v11560_v35, %v10321_v33  ;;  %4903 = vmatpush.bf16.msra.mxu3 %v10294_v60 }
 0x4c9   : > { %v15181_v6 = vadd.f32 %v4426_v55, %v13837_v56  ;;  %v11484_v55 = vld [vmem:[%s18476_s1 + $0x8d4] sm:$0xf] }
 0x4ca   : > { %v4474_v34 = vpop.f32.mrf.mxu2  ;;  %4804 = vmatpush.bf16.msra.mxu1 %v10322_v2 }
 0x4cc   : > { %v4523_v28 = vpop.f32.mrf.mxu3  ;;  %v4379_v8 = vpop.f32.mrf.mxu0 }
 0x4cd   : > { %v4524_v54 = vadd.f32 %v4523_v28, %v4474_v34 }
 0x4ce   : > { %v4428_v27 = vpop.f32.mrf.mxu1 }
 0x4cf   : > { %v4429_v12 = vadd.f32 %v4428_v27, %v4379_v8  ;;  %v15187_v7 = vadd.f32 %v4524_v54, %v13844_v59  ;;  %4574 = vmatmul.bf16.gmra.mxu0 %v14822_v9  ;;  %4672 = vmatmul.bf16.gmra.mxu2 %v14822_v9  ;;  %v10035_v59 = vld [vmem:[%s18476_s1 + $0x8f0] sm:$0xf0]  ;;  %v10033_v27 = vld [vmem:[%s18476_s1 + $0x8d0] sm:$0xf] }
 0x4d1   : > { %v15191_v56 = vadd.f32 %v4429_v12, %v13846_v52  ;;  %4623 = vmatmul.bf16.gmra.mxu1 %v14825_v23  ;;  %4721 = vmatmul.bf16.gmra.mxu3 %v14825_v23  ;;  %v10038_v52 = vor.u32 %v11484_v55, %v10035_v59  ;;  %v11488_v12 = vld [vmem:[%s18476_s1 + $0x8ec] sm:$0xf0] }
 0x4d2   : > { %v4477_v33 = vpop.f32.mrf.mxu2  ;;  %v10289_v55 = vld [vmem:[%s18476_s1 + $0xad0] sm:$0xf]  ;;  %v10034_v44 = vor.u32 %v11488_v12, %v10033_v27  ;;  %v11540_v27 = vld [vmem:[%s18476_s1 + $0xa94] sm:$0xf] }
 0x4d3   : > { %4854 = vmatpush.bf16.msra.mxu2 %v10038_v52  ;;  %v10259_v12 = vld [vmem:[%s18476_s1 + $0xab0] sm:$0xf0] }
 0x4d4   : > { %v4526_v35 = vpop.f32.mrf.mxu3  ;;  %v4381_v2 = vpop.f32.mrf.mxu0  ;;  %4756 = vmatpush.bf16.msra.mxu0 %v10034_v44  ;;  %v10262_v44 = vor.u32 %v11540_v27, %v10259_v12 }
 0x4d5   : > { %v4527_v34 = vadd.f32 %v4526_v35, %v4477_v33 }
 0x4d6   : > { %v4430_v28 = vpop.f32.mrf.mxu1  ;;  %4904 = vmatpush.bf16.msra.mxu3 %v10262_v44 }
 0x4d7   : > { %v4431_v8 = vadd.f32 %v4430_v28, %v4381_v2  ;;  %v15209_v54 = vadd.f32 %v4527_v34, %v13866_v38  ;;  %v11552_v38 = vld [vmem:[%s18476_s1 + $0xaec] sm:$0xf0] }
 0x4d8   : > { %v10290_v52 = vor.u32 %v11552_v38, %v10289_v55 }
 0x4d9   : > { %v15221_v59 = vadd.f32 %v4431_v8, %v13877_v22  ;;  %v11476_v8 = vld [vmem:[%s18476_s1 + $0x894] sm:$0xf] }
 0x4da   : > { %v4479_v49 = vpop.f32.mrf.mxu2  ;;  %4805 = vmatpush.bf16.msra.mxu1 %v10290_v52 }
 0x4dc   : > { %v4528_v33 = vpop.f32.mrf.mxu3  ;;  %v4384_v60 = vpop.f32.mrf.mxu0 }
 0x4dd   : > { %v4529_v35 = vadd.f32 %v4528_v33, %v4479_v49 }
 0x4de   : > { %v4433_v2 = vpop.f32.mrf.mxu1 }
 0x4df   : > { %v4434_v34 = vadd.f32 %v4433_v2, %v4384_v60  ;;  %v15227_v28 = vadd.f32 %v4529_v35, %v13884_v51  ;;  %4579 = vmatmul.bf16.gmra.mxu0 %v14870_v29  ;;  %4677 = vmatmul.bf16.gmra.mxu2 %v14870_v29  ;;  %v10003_v51 = vld [vmem:[%s18476_s1 + $0x8b0] sm:$0xf0]  ;;  %v10001_v2 = vld [vmem:[%s18476_s1 + $0x890] sm:$0xf] }
 0x4e1   : > { %v15231_v22 = vadd.f32 %v4434_v34, %v13886_v31  ;;  %4628 = vmatmul.bf16.gmra.mxu1 %v14873_v1  ;;  %4726 = vmatmul.bf16.gmra.mxu3 %v14873_v1  ;;  %v10006_v31 = vor.u32 %v11476_v8, %v10003_v51  ;;  %v11480_v34 = vld [vmem:[%s18476_s1 + $0x8ac] sm:$0xf0] }
 0x4e2   : > { %v4482_v55 = vpop.f32.mrf.mxu2  ;;  %v10257_v8 = vld [vmem:[%s18476_s1 + $0xa90] sm:$0xf]  ;;  %v10002_v27 = vor.u32 %v11480_v34, %v10001_v2  ;;  %v11532_v2 = vld [vmem:[%s18476_s1 + $0xa54] sm:$0xf] }
 0x4e3   : > { %4855 = vmatpush.bf16.msra.mxu2 %v10006_v31  ;;  %v10227_v34 = vld [vmem:[%s18476_s1 + $0xa70] sm:$0xf0] }
 0x4e4   : > { %v4531_v38 = vpop.f32.mrf.mxu3  ;;  %v4386_v52 = vpop.f32.mrf.mxu0  ;;  %4757 = vmatpush.bf16.msra.mxu0 %v10002_v27  ;;  %v10230_v27 = vor.u32 %v11532_v2, %v10227_v34 }
 0x4e5   : > { %v4532_v49 = vadd.f32 %v4531_v38, %v4482_v55 }
 0x4e6   : > { %v4435_v33 = vpop.f32.mrf.mxu1  ;;  %4905 = vmatpush.bf16.msra.mxu3 %v10230_v27 }
 0x4e7   : > { %v4436_v60 = vadd.f32 %v4435_v33, %v4386_v52  ;;  %v15249_v35 = vadd.f32 %v4532_v49, %v13906_v58  ;;  %v11544_v58 = vld [vmem:[%s18476_s1 + $0xaac] sm:$0xf0] }
 0x4e8   : > { %v10258_v31 = vor.u32 %v11544_v58, %v10257_v8 }
 0x4e9   : > { %v15261_v51 = vadd.f32 %v4436_v60, %v13917_v61  ;;  %v11468_v60 = vld [vmem:[%s18476_s1 + $0x854] sm:$0xf] }
 0x4ea   : > { %v4484_v12 = vpop.f32.mrf.mxu2  ;;  %4806 = vmatpush.bf16.msra.mxu1 %v10258_v31 }
 0x4ec   : > { %v4533_v55 = vpop.f32.mrf.mxu3  ;;  %v4389_v44 = vpop.f32.mrf.mxu0 }
 0x4ed   : > { %v4534_v38 = vadd.f32 %v4533_v55, %v4484_v12 }
 0x4ee   : > { %v4438_v52 = vpop.f32.mrf.mxu1 }
 0x4ef   : > { %v4439_v49 = vadd.f32 %v4438_v52, %v4389_v44  ;;  %v15267_v33 = vadd.f32 %v4534_v38, %v13924_v20  ;;  %4584 = vmatmul.bf16.gmra.mxu0 %v14918_v3  ;;  %4682 = vmatmul.bf16.gmra.mxu2 %v14918_v3  ;;  %v9971_v20 = vld [vmem:[%s18476_s1 + $0x870] sm:$0xf0]  ;;  %v9969_v52 = vld [vmem:[%s18476_s1 + $0x850] sm:$0xf] }
 0x4f1   : > { %v15271_v61 = vadd.f32 %v4439_v49, %v13926_v0  ;;  %4633 = vmatmul.bf16.gmra.mxu1 %v14921_v32  ;;  %4731 = vmatmul.bf16.gmra.mxu3 %v14921_v32  ;;  %v9974_v0 = vor.u32 %v11468_v60, %v9971_v20  ;;  %v11472_v49 = vld [vmem:[%s18476_s1 + $0x86c] sm:$0xf0] }
 0x4f2   : > { %v4487_v8 = vpop.f32.mrf.mxu2  ;;  %v10225_v60 = vld [vmem:[%s18476_s1 + $0xa50] sm:$0xf]  ;;  %v9970_v2 = vor.u32 %v11472_v49, %v9969_v52  ;;  %v11524_v52 = vld [vmem:[%s18476_s1 + $0xa14] sm:$0xf] }
 0x4f3   : > { %4856 = vmatpush.bf16.msra.mxu2 %v9974_v0  ;;  %v10195_v49 = vld [vmem:[%s18476_s1 + $0xa30] sm:$0xf0] }
 0x4f4   : > { %v4536_v58 = vpop.f32.mrf.mxu3  ;;  %v4391_v31 = vpop.f32.mrf.mxu0  ;;  %4758 = vmatpush.bf16.msra.mxu0 %v9970_v2  ;;  %v10198_v2 = vor.u32 %v11524_v52, %v10195_v49 }
 0x4f5   : > { %v4537_v12 = vadd.f32 %v4536_v58, %v4487_v8 }
 0x4f6   : > { %v4440_v55 = vpop.f32.mrf.mxu1  ;;  %4906 = vmatpush.bf16.msra.mxu3 %v10198_v2 }
 0x4f7   : > { %v4441_v44 = vadd.f32 %v4440_v55, %v4391_v31  ;;  %v15289_v38 = vadd.f32 %v4537_v12, %v13946_v25  ;;  %v11536_v25 = vld [vmem:[%s18476_s1 + $0xa6c] sm:$0xf0] }
 0x4f8   : > { %v10226_v0 = vor.u32 %v11536_v25, %v10225_v60 }
 0x4f9   : > { %v15301_v20 = vadd.f32 %v4441_v44, %v13957_v36  ;;  %v11460_v44 = vld [vmem:[%s18476_s1 + $0x814] sm:$0xf] }
 0x4fa   : > { %v4489_v34 = vpop.f32.mrf.mxu2  ;;  %4807 = vmatpush.bf16.msra.mxu1 %v10226_v0 }
 0x4fc   : > { %v4538_v8 = vpop.f32.mrf.mxu3  ;;  %v4394_v27 = vpop.f32.mrf.mxu0 }
 0x4fd   : > { %v4539_v58 = vadd.f32 %v4538_v8, %v4489_v34 }
 0x4fe   : > { %v4443_v31 = vpop.f32.mrf.mxu1 }
 0x4ff   : > { %v4444_v12 = vadd.f32 %v4443_v31, %v4394_v27  ;;  %v15307_v55 = vadd.f32 %v4539_v58, %v13964_v46  ;;  %4589 = vmatmul.bf16.gmra.mxu0 %v14966_v45  ;;  %4687 = vmatmul.bf16.gmra.mxu2 %v14966_v45  ;;  %v9939_v46 = vld [vmem:[%s18476_s1 + $0x830] sm:$0xf0]  ;;  %v9937_v31 = vld [vmem:[%s18476_s1 + $0x810] sm:$0xf] }
 0x501   : > { %v15311_v36 = vadd.f32 %v4444_v12, %v13966_v43  ;;  %4638 = vmatmul.bf16.gmra.mxu1 %v14969_v37  ;;  %4736 = vmatmul.bf16.gmra.mxu3 %v14969_v37  ;;  %v9942_v43 = vor.u32 %v11460_v44, %v9939_v46  ;;  %v11464_v12 = vld [vmem:[%s18476_s1 + $0x82c] sm:$0xf0] }
 0x502   : > { %v4492_v60 = vpop.f32.mrf.mxu2  ;;  %v10193_v44 = vld [vmem:[%s18476_s1 + $0xa10] sm:$0xf]  ;;  %v9938_v52 = vor.u32 %v11464_v12, %v9937_v31  ;;  %v11581_v31 = vld [vmem:[%s18476_s1 + $0xbdc] sm:$0xf] }
 0x503   : > { %4857 = vmatpush.bf16.msra.mxu2 %v9942_v43  ;;  %v10427_v12 = vld [vmem:[%s18476_s1 + $0xbf8] sm:$0xf0] }
 0x504   : > { %v4541_v25 = vpop.f32.mrf.mxu3  ;;  %v4396_v0 = vpop.f32.mrf.mxu0  ;;  %4759 = vmatpush.bf16.msra.mxu0 %v9938_v52  ;;  %v10430_v52 = vor.u32 %v11581_v31, %v10427_v12 }
 0x505   : > { %v4542_v34 = vadd.f32 %v4541_v25, %v4492_v60 }
 0x506   : > { %v4445_v8 = vpop.f32.mrf.mxu1  ;;  %5095 = vmatpush.bf16.msrb.mxu3 %v10430_v52 }
 0x507   : > { %v4446_v27 = vadd.f32 %v4445_v8, %v4396_v0  ;;  %v15329_v58 = vadd.f32 %v4542_v34, %v13986_v63  ;;  %v11528_v63 = vld [vmem:[%s18476_s1 + $0xa2c] sm:$0xf0] }
 0x508   : > { %v10194_v43 = vor.u32 %v11528_v63, %v10193_v44 }
 0x509   : > { %v15341_v46 = vadd.f32 %v4446_v27, %v13997_v19  ;;  %v11517_v27 = vld [vmem:[%s18476_s1 + $0x9dc] sm:$0xf] }
 0x50a   : > { %v4494_v49 = vpop.f32.mrf.mxu2  ;;  %4808 = vmatpush.bf16.msra.mxu1 %v10194_v43 }
 0x50c   : > { %v4543_v60 = vpop.f32.mrf.mxu3  ;;  %v4399_v2 = vpop.f32.mrf.mxu0 }
 0x50d   : > { %v4544_v25 = vadd.f32 %v4543_v60, %v4494_v49 }
 0x50e   : > { %v4448_v0 = vpop.f32.mrf.mxu1 }
 0x50f   : > { %v4449_v34 = vadd.f32 %v4448_v0, %v4399_v2  ;;  %v15347_v8 = vadd.f32 %v4544_v25, %v14004_v13  ;;  %4594 = vmatmul.bf16.gmra.mxu0 %v15014_v41  ;;  %4692 = vmatmul.bf16.gmra.mxu2 %v15014_v41  ;;  %v10171_v13 = vld [vmem:[%s18476_s1 + $0x9f8] sm:$0xf0]  ;;  %v10169_v0 = vld [vmem:[%s18476_s1 + $0x9d8] sm:$0xf] }
 0x511   : > { %v15351_v19 = vadd.f32 %v4449_v34, %v14006_v5  ;;  %4643 = vmatmul.bf16.gmra.mxu1 %v15017_v4  ;;  %4741 = vmatmul.bf16.gmra.mxu3 %v15017_v4  ;;  %v10174_v5 = vor.u32 %v11517_v27, %v10171_v13  ;;  %v11521_v34 = vld [vmem:[%s18476_s1 + $0x9f4] sm:$0xf0] }
 0x512   : > { %v4497_v44 = vpop.f32.mrf.mxu2  ;;  %v10425_v27 = vld [vmem:[%s18476_s1 + $0xbd8] sm:$0xf]  ;;  %v10170_v31 = vor.u32 %v11521_v34, %v10169_v0  ;;  %v11573_v0 = vld [vmem:[%s18476_s1 + $0xb9c] sm:$0xf] }
 0x513   : > { %5046 = vmatpush.bf16.msrb.mxu2 %v10174_v5  ;;  %v10395_v34 = vld [vmem:[%s18476_s1 + $0xbb8] sm:$0xf0] }
 0x514   : > { %v4546_v63 = vpop.f32.mrf.mxu3  ;;  %v4401_v43 = vpop.f32.mrf.mxu0  ;;  %4948 = vmatpush.bf16.msrb.mxu0 %v10170_v31  ;;  %v10398_v31 = vor.u32 %v11573_v0, %v10395_v34 }
 0x515   : > { %v4547_v49 = vadd.f32 %v4546_v63, %v4497_v44 }
 0x516   : > { %v4450_v60 = vpop.f32.mrf.mxu1  ;;  %5096 = vmatpush.bf16.msrb.mxu3 %v10398_v31 }
 0x517   : > { %v4451_v2 = vadd.f32 %v4450_v60, %v4401_v43  ;;  %v15369_v25 = vadd.f32 %v4547_v49, %v14026_v39  ;;  %v11585_v39 = vld [vmem:[%s18476_s1 + $0xbf4] sm:$0xf0] }
 0x518   : > { %v10426_v5 = vor.u32 %v11585_v39, %v10425_v27 }
 0x519   : > { %v15381_v13 = vadd.f32 %v4451_v2, %v14037_v10  ;;  %v11509_v2 = vld [vmem:[%s18476_s1 + $0x99c] sm:$0xf] }
 0x51a   : > { %v4499_v12 = vpop.f32.mrf.mxu2  ;;  %4997 = vmatpush.bf16.msrb.mxu1 %v10426_v5 }
 0x51c   : > { %v4548_v44 = vpop.f32.mrf.mxu3  ;;  %v4404_v52 = vpop.f32.mrf.mxu0 }
 0x51d   : > { %v4549_v63 = vadd.f32 %v4548_v44, %v4499_v12 }
 0x51e   : > { %v4453_v43 = vpop.f32.mrf.mxu1 }
 0x51f   : > { %v4454_v49 = vadd.f32 %v4453_v43, %v4404_v52  ;;  %v15387_v60 = vadd.f32 %v4549_v63, %v14044_v50  ;;  %4599 = vmatmul.bf16.gmra.mxu0 %v15062_v26  ;;  %4697 = vmatmul.bf16.gmra.mxu2 %v15062_v26  ;;  %v10139_v50 = vld [vmem:[%s18476_s1 + $0x9b8] sm:$0xf0]  ;;  %v10137_v43 = vld [vmem:[%s18476_s1 + $0x998] sm:$0xf] }
 0x521   : > { %v15391_v10 = vadd.f32 %v4454_v49, %v14046_v18  ;;  %4648 = vmatmul.bf16.gmra.mxu1 %v15065_v14  ;;  %4746 = vmatmul.bf16.gmra.mxu3 %v15065_v14  ;;  %v10142_v18 = vor.u32 %v11509_v2, %v10139_v50  ;;  %v11513_v49 = vld [vmem:[%s18476_s1 + $0x9b4] sm:$0xf0] }
 0x522   : > { %v4502_v27 = vpop.f32.mrf.mxu2  ;;  %v10393_v2 = vld [vmem:[%s18476_s1 + $0xb98] sm:$0xf] }
 0x523   : > { %18770 = vst [vmem:[#allocation94_spill] sm:$0xff] %v15391_v10  ;;  %5047 = vmatpush.bf16.msrb.mxu2 %v10142_v18  ;;  %v18772_v50 = vld [vmem:[#allocation97_spill] sm:$0xff]  ;;  %v10138_v18 = vor.u32 %v11513_v49, %v10137_v43 }
 0x524   : > { %v4551_v39 = vpop.f32.mrf.mxu3  ;;  %v4406_v5 = vpop.f32.mrf.mxu0  ;;  %v11501_v49 = vld [vmem:[%s18476_s1 + $0x95c] sm:$0xf] }
 0x525   : > { %v4552_v12 = vadd.f32 %v4551_v39, %v4502_v27  ;;  %4949 = vmatpush.bf16.msrb.mxu0 %v10138_v18  ;;  %v10363_v18 = vld [vmem:[%s18476_s1 + $0xb78] sm:$0xf0] }
 0x526   : > { %v4455_v44 = vpop.f32.mrf.mxu1 }
 0x527   : > { %v4456_v52 = vadd.f32 %v4455_v44, %v4406_v5  ;;  %v15409_v63 = vadd.f32 %v4552_v12, %v14066_v21  ;;  %v11577_v21 = vld [vmem:[%s18476_s1 + $0xbb4] sm:$0xf0] }
 0x528   : > { %v10394_v34 = vor.u32 %v11577_v21, %v10393_v2  ;;  %v11565_v2 = vld [vmem:[%s18476_s1 + $0xb5c] sm:$0xf] }
 0x529   : > { %18771 = vst [vmem:[#allocation95_spill] sm:$0xff] %v15409_v63  ;;  %v15421_v0 = vadd.f32 %v4456_v52, %v18772_v50  ;;  %v18774_v63 = vld [vmem:[#allocation98_spill] sm:$0xff]  ;;  %v18776_v52 = vld [vmem:[#allocation99_spill] sm:$0xff] }
 0x52a   : > { %v4504_v27 = vpop.f32.mrf.mxu2  ;;  %4998 = vmatpush.bf16.msrb.mxu1 %v10394_v34  ;;  %v10366_v34 = vor.u32 %v11565_v2, %v10363_v18  ;;  %v10361_v2 = vld [vmem:[%s18476_s1 + $0xb58] sm:$0xf] }
 0x52b   : > { %18773 = vst [vmem:[#allocation96_spill] sm:$0xff] %v15421_v0 }
 0x52c   : > { %v4553_v31 = vpop.f32.mrf.mxu3  ;;  %v4565_v39 = vpop.f32.mrf.mxu0  ;;  %5097 = vmatpush.bf16.msrb.mxu3 %v10366_v34  ;;  %v11569_v34 = vld [vmem:[%s18476_s1 + $0xb74] sm:$0xf0] }
 0x52d   : > { %v4554_v5 = vadd.f32 %v4553_v31, %v4504_v27 }
 0x52e   : > { %v4614_v12 = vpop.f32.mrf.mxu1 }
 0x52f   : > { %v4615_v44 = vadd.f32 %v4614_v12, %v4565_v39  ;;  %v15427_v10 = vadd.f32 %v4554_v5, %v18774_v63  ;;  %4760 = vmatmul.bf16.vlgmr.msra.gmra.mxu0 %v14726_v47  ;;  %4858 = vmatmul.bf16.vlgmr.msra.gmra.mxu2 %v14726_v47  ;;  %v10107_v63 = vld [vmem:[%s18476_s1 + $0x978] sm:$0xf0] }
 0x530   : > { %v10110_v50 = vor.u32 %v11501_v49, %v10107_v63  ;;  %v10105_v49 = vld [vmem:[%s18476_s1 + $0x958] sm:$0xf] }
 0x531   : > { %18775 = vst [vmem:[#allocation97_spill] sm:$0xff] %v15427_v10  ;;  %v15431_v43 = vadd.f32 %v4615_v44, %v18776_v52  ;;  %4809 = vmatmul.bf16.vlgmr.msra.gmra.mxu1 %v14729_v30  ;;  %4907 = vmatmul.bf16.vlgmr.msra.gmra.mxu3 %v14729_v30  ;;  %v18778_v44 = vld [vmem:[#allocation2_spill] sm:$0xff]  ;;  %v11505_v63 = vld [vmem:[%s18476_s1 + $0x974] sm:$0xf0]  ;;  %v18782_v10 = vld [vmem:[#allocation4_spill] sm:$0xff] }
 0x532   : > { %v4663_v21 = vpop.f32.mrf.mxu2  ;;  %5048 = vmatpush.bf16.msrb.mxu2 %v10110_v50  ;;  %v18780_v50 = vld [vmem:[#allocation3_spill] sm:$0xff] }
 0x533   : > { %18777 = vst [vmem:[#allocation98_spill] sm:$0xff] %v15431_v43 }
 0x534   : > { %v4712_v27 = vpop.f32.mrf.mxu3  ;;  %v4567_v31 = vpop.f32.mrf.mxu0 }
 0x535   : > { %v4713_v39 = vadd.f32 %v4712_v27, %v4663_v21  ;;  %v10106_v21 = vor.u32 %v11505_v63, %v10105_v49  ;;  %v10362_v27 = vor.u32 %v11569_v34, %v10361_v2  ;;  %v11493_v63 = vld [vmem:[%s18476_s1 + $0x91c] sm:$0xf] }
 0x536   : > { %v4616_v5 = vpop.f32.mrf.mxu1  ;;  %v10331_v2 = vld [vmem:[%s18476_s1 + $0xb38] sm:$0xf0] }
 0x537   : > { %v4617_v12 = vadd.f32 %v4616_v5, %v4567_v31  ;;  %v15449_v52 = vadd.f32 %v4713_v39, %v18778_v44  ;;  %4950 = vmatpush.bf16.msrb.mxu0 %v10106_v21  ;;  %4999 = vmatpush.bf16.msrb.mxu1 %v10362_v27 }
 0x539   : > { %18779 = vst [vmem:[#allocation99_spill] sm:$0xff] %v15449_v52  ;;  %v15461_v18 = vadd.f32 %v4617_v12, %v18780_v50  ;;  %v18784_v12 = vld [vmem:[#allocation5_spill] sm:$0xff] }
 0x53a   : > { %v4665_v31 = vpop.f32.mrf.mxu2 }
 0x53b   : > { %18781 = vst [vmem:[#allocation2_spill] sm:$0xff] %v15461_v18 }
 0x53c   : > { %v4714_v39 = vpop.f32.mrf.mxu3  ;;  %v4570_v5 = vpop.f32.mrf.mxu0 }
 0x53d   : > { %v4715_v44 = vadd.f32 %v4714_v39, %v4665_v31 }
 0x53e   : > { %v4619_v52 = vpop.f32.mrf.mxu1 }
 0x53f   : > { %v4620_v43 = vadd.f32 %v4619_v52, %v4570_v5  ;;  %v15467_v0 = vadd.f32 %v4715_v44, %v18782_v10  ;;  %4765 = vmatmul.bf16.gmra.mxu0 %v14774_v17  ;;  %4863 = vmatmul.bf16.gmra.mxu2 %v14774_v17  ;;  %v10075_v10 = vld [vmem:[%s18476_s1 + $0x938] sm:$0xf0]  ;;  %v18786_v44 = vld [vmem:[#allocation6_spill] sm:$0xff] }
 0x540   : > { %v11557_v52 = vld [vmem:[%s18476_s1 + $0xb1c] sm:$0xf] }
 0x541   : > { %18783 = vst [vmem:[#allocation3_spill] sm:$0xff] %v15467_v0  ;;  %v15471_v49 = vadd.f32 %v4620_v43, %v18784_v12  ;;  %4814 = vmatmul.bf16.gmra.mxu1 %v14777_v11  ;;  %4912 = vmatmul.bf16.gmra.mxu3 %v14777_v11  ;;  %v10078_v43 = vor.u32 %v11493_v63, %v10075_v10  ;;  %v10073_v63 = vld [vmem:[%s18476_s1 + $0x918] sm:$0xf]  ;;  %v18790_v0 = vld [vmem:[#allocation8_spill] sm:$0xff] }
 0x542   : > { %v4668_v50 = vpop.f32.mrf.mxu2  ;;  %v10334_v21 = vor.u32 %v11557_v52, %v10331_v2  ;;  %v11497_v10 = vld [vmem:[%s18476_s1 + $0x934] sm:$0xf0] }
 0x543   : > { %18785 = vst [vmem:[#allocation4_spill] sm:$0xff] %v15471_v49  ;;  %5049 = vmatpush.bf16.msrb.mxu2 %v10078_v43  ;;  %v10329_v52 = vld [vmem:[%s18476_s1 + $0xb18] sm:$0xf]  ;;  %v18788_v43 = vld [vmem:[#allocation7_spill] sm:$0xff] }
 0x544   : > { %v4717_v34 = vpop.f32.mrf.mxu3  ;;  %v4572_v27 = vpop.f32.mrf.mxu0  ;;  %5098 = vmatpush.bf16.msrb.mxu3 %v10334_v21  ;;  %v11561_v21 = vld [vmem:[%s18476_s1 + $0xb34] sm:$0xf0] }
 0x545   : > { %v4718_v31 = vadd.f32 %v4717_v34, %v4668_v50  ;;  %v10074_v50 = vor.u32 %v11497_v10, %v10073_v63  ;;  %v10330_v34 = vor.u32 %v11561_v21, %v10329_v52  ;;  %v11485_v10 = vld [vmem:[%s18476_s1 + $0x8dc] sm:$0xf] }
 0x546   : > { %v4621_v39 = vpop.f32.mrf.mxu1  ;;  %v10299_v52 = vld [vmem:[%s18476_s1 + $0xaf8] sm:$0xf0] }
 0x547   : > { %v4622_v5 = vadd.f32 %v4621_v39, %v4572_v27  ;;  %v15489_v12 = vadd.f32 %v4718_v31, %v18786_v44  ;;  %4951 = vmatpush.bf16.msrb.mxu0 %v10074_v50  ;;  %5000 = vmatpush.bf16.msrb.mxu1 %v10330_v34 }
 0x549   : > { %18787 = vst [vmem:[#allocation5_spill] sm:$0xff] %v15489_v12  ;;  %v15501_v2 = vadd.f32 %v4622_v5, %v18788_v43  ;;  %v18792_v5 = vld [vmem:[#allocation9_spill] sm:$0xff] }
 0x54a   : > { %v4670_v27 = vpop.f32.mrf.mxu2 }
 0x54b   : > { %18789 = vst [vmem:[#allocation6_spill] sm:$0xff] %v15501_v2 }
 0x54c   : > { %v4719_v31 = vpop.f32.mrf.mxu3  ;;  %v4575_v39 = vpop.f32.mrf.mxu0 }
 0x54d   : > { %v4720_v44 = vadd.f32 %v4719_v31, %v4670_v27 }
 0x54e   : > { %v4624_v12 = vpop.f32.mrf.mxu1 }
 0x54f   : > { %v4625_v49 = vadd.f32 %v4624_v12, %v4575_v39  ;;  %v15507_v18 = vadd.f32 %v4720_v44, %v18790_v0  ;;  %4770 = vmatmul.bf16.gmra.mxu0 %v14822_v9  ;;  %4868 = vmatmul.bf16.gmra.mxu2 %v14822_v9  ;;  %v10043_v0 = vld [vmem:[%s18476_s1 + $0x8f8] sm:$0xf0]  ;;  %v18794_v44 = vld [vmem:[#allocation10_spill] sm:$0xff] }
 0x550   : > { %v11549_v12 = vld [vmem:[%s18476_s1 + $0xadc] sm:$0xf] }
 0x551   : > { %18791 = vst [vmem:[#allocation7_spill] sm:$0xff] %v15507_v18  ;;  %v15511_v63 = vadd.f32 %v4625_v49, %v18792_v5  ;;  %4819 = vmatmul.bf16.gmra.mxu1 %v14825_v23  ;;  %4917 = vmatmul.bf16.gmra.mxu3 %v14825_v23  ;;  %v10046_v49 = vor.u32 %v11485_v10, %v10043_v0  ;;  %v10041_v10 = vld [vmem:[%s18476_s1 + $0x8d8] sm:$0xf]  ;;  %v18798_v18 = vld [vmem:[#allocation12_spill] sm:$0xff] }
 0x552   : > { %v4673_v43 = vpop.f32.mrf.mxu2  ;;  %v10302_v50 = vor.u32 %v11549_v12, %v10299_v52  ;;  %v11489_v0 = vld [vmem:[%s18476_s1 + $0x8f4] sm:$0xf0] }
 0x553   : > { %18793 = vst [vmem:[#allocation8_spill] sm:$0xff] %v15511_v63  ;;  %5050 = vmatpush.bf16.msrb.mxu2 %v10046_v49  ;;  %v10297_v12 = vld [vmem:[%s18476_s1 + $0xad8] sm:$0xf]  ;;  %v18796_v49 = vld [vmem:[#allocation11_spill] sm:$0xff] }
 0x554   : > { %v4722_v21 = vpop.f32.mrf.mxu3  ;;  %v4577_v34 = vpop.f32.mrf.mxu0  ;;  %5099 = vmatpush.bf16.msrb.mxu3 %v10302_v50  ;;  %v11553_v50 = vld [vmem:[%s18476_s1 + $0xaf4] sm:$0xf0] }
 0x555   : > { %v4723_v27 = vadd.f32 %v4722_v21, %v4673_v43  ;;  %v10042_v43 = vor.u32 %v11489_v0, %v10041_v10  ;;  %v10298_v21 = vor.u32 %v11553_v50, %v10297_v12  ;;  %v11477_v0 = vld [vmem:[%s18476_s1 + $0x89c] sm:$0xf] }
 0x556   : > { %v4626_v31 = vpop.f32.mrf.mxu1  ;;  %v10267_v12 = vld [vmem:[%s18476_s1 + $0xab8] sm:$0xf0] }
 0x557   : > { %v4627_v39 = vadd.f32 %v4626_v31, %v4577_v34  ;;  %v15529_v5 = vadd.f32 %v4723_v27, %v18794_v44  ;;  %4952 = vmatpush.bf16.msrb.mxu0 %v10042_v43  ;;  %5001 = vmatpush.bf16.msrb.mxu1 %v10298_v21 }
 0x559   : > { %18795 = vst [vmem:[#allocation9_spill] sm:$0xff] %v15529_v5  ;;  %v15541_v52 = vadd.f32 %v4627_v39, %v18796_v49  ;;  %v18800_v39 = vld [vmem:[#allocation13_spill] sm:$0xff] }
 0x55a   : > { %v4675_v34 = vpop.f32.mrf.mxu2 }
 0x55b   : > { %18797 = vst [vmem:[#allocation10_spill] sm:$0xff] %v15541_v52 }
 0x55c   : > { %v4724_v27 = vpop.f32.mrf.mxu3  ;;  %v4580_v31 = vpop.f32.mrf.mxu0 }
 0x55d   : > { %v4725_v44 = vadd.f32 %v4724_v27, %v4675_v34 }
 0x55e   : > { %v4629_v5 = vpop.f32.mrf.mxu1 }
 0x55f   : > { %v4630_v63 = vadd.f32 %v4629_v5, %v4580_v31  ;;  %v15547_v2 = vadd.f32 %v4725_v44, %v18798_v18  ;;  %4775 = vmatmul.bf16.gmra.mxu0 %v14870_v29  ;;  %4873 = vmatmul.bf16.gmra.mxu2 %v14870_v29  ;;  %v10011_v18 = vld [vmem:[%s18476_s1 + $0x8b8] sm:$0xf0]  ;;  %v18802_v44 = vld [vmem:[#allocation14_spill] sm:$0xff] }
 0x560   : > { %v11541_v5 = vld [vmem:[%s18476_s1 + $0xa9c] sm:$0xf] }
 0x561   : > { %18799 = vst [vmem:[#allocation11_spill] sm:$0xff] %v15547_v2  ;;  %v15551_v10 = vadd.f32 %v4630_v63, %v18800_v39  ;;  %4824 = vmatmul.bf16.gmra.mxu1 %v14873_v1  ;;  %4922 = vmatmul.bf16.gmra.mxu3 %v14873_v1  ;;  %v10014_v63 = vor.u32 %v11477_v0, %v10011_v18  ;;  %v10009_v0 = vld [vmem:[%s18476_s1 + $0x898] sm:$0xf]  ;;  %v18806_v2 = vld [vmem:[#allocation16_spill] sm:$0xff] }
 0x562   : > { %v4678_v49 = vpop.f32.mrf.mxu2  ;;  %v10270_v43 = vor.u32 %v11541_v5, %v10267_v12  ;;  %v11481_v18 = vld [vmem:[%s18476_s1 + $0x8b4] sm:$0xf0] }
 0x563   : > { %18801 = vst [vmem:[#allocation12_spill] sm:$0xff] %v15551_v10  ;;  %5051 = vmatpush.bf16.msrb.mxu2 %v10014_v63  ;;  %v10265_v5 = vld [vmem:[%s18476_s1 + $0xa98] sm:$0xf]  ;;  %v18804_v63 = vld [vmem:[#allocation15_spill] sm:$0xff] }
 0x564   : > { %v4727_v50 = vpop.f32.mrf.mxu3  ;;  %v4582_v21 = vpop.f32.mrf.mxu0  ;;  %5100 = vmatpush.bf16.msrb.mxu3 %v10270_v43  ;;  %v11545_v43 = vld [vmem:[%s18476_s1 + $0xab4] sm:$0xf0] }
 0x565   : > { %v4728_v34 = vadd.f32 %v4727_v50, %v4678_v49  ;;  %v10010_v49 = vor.u32 %v11481_v18, %v10009_v0  ;;  %v10266_v50 = vor.u32 %v11545_v43, %v10265_v5  ;;  %v11469_v18 = vld [vmem:[%s18476_s1 + $0x85c] sm:$0xf] }
 0x566   : > { %v4631_v27 = vpop.f32.mrf.mxu1  ;;  %v10235_v5 = vld [vmem:[%s18476_s1 + $0xa78] sm:$0xf0] }
 0x567   : > { %v4632_v31 = vadd.f32 %v4631_v27, %v4582_v21  ;;  %v15569_v39 = vadd.f32 %v4728_v34, %v18802_v44  ;;  %4953 = vmatpush.bf16.msrb.mxu0 %v10010_v49  ;;  %5002 = vmatpush.bf16.msrb.mxu1 %v10266_v50 }
 0x569   : > { %18803 = vst [vmem:[#allocation13_spill] sm:$0xff] %v15569_v39  ;;  %v15581_v12 = vadd.f32 %v4632_v31, %v18804_v63  ;;  %v18808_v31 = vld [vmem:[#allocation17_spill] sm:$0xff] }
 0x56a   : > { %v4680_v21 = vpop.f32.mrf.mxu2 }
 0x56b   : > { %18805 = vst [vmem:[#allocation14_spill] sm:$0xff] %v15581_v12 }
 0x56c   : > { %v4729_v34 = vpop.f32.mrf.mxu3  ;;  %v4585_v27 = vpop.f32.mrf.mxu0 }
 0x56d   : > { %v4730_v44 = vadd.f32 %v4729_v34, %v4680_v21 }
 0x56e   : > { %v4634_v39 = vpop.f32.mrf.mxu1 }
 0x56f   : > { %v4635_v10 = vadd.f32 %v4634_v39, %v4585_v27  ;;  %v15587_v52 = vadd.f32 %v4730_v44, %v18806_v2  ;;  %4780 = vmatmul.bf16.gmra.mxu0 %v14918_v3  ;;  %4878 = vmatmul.bf16.gmra.mxu2 %v14918_v3  ;;  %v9979_v2 = vld [vmem:[%s18476_s1 + $0x878] sm:$0xf0]  ;;  %v18810_v44 = vld [vmem:[#allocation18_spill] sm:$0xff] }
 0x570   : > { %v11533_v39 = vld [vmem:[%s18476_s1 + $0xa5c] sm:$0xf] }
 0x571   : > { %18807 = vst [vmem:[#allocation15_spill] sm:$0xff] %v15587_v52  ;;  %v15591_v0 = vadd.f32 %v4635_v10, %v18808_v31  ;;  %4829 = vmatmul.bf16.gmra.mxu1 %v14921_v32  ;;  %4927 = vmatmul.bf16.gmra.mxu3 %v14921_v32  ;;  %v9982_v10 = vor.u32 %v11469_v18, %v9979_v2  ;;  %v9977_v18 = vld [vmem:[%s18476_s1 + $0x858] sm:$0xf]  ;;  %v18814_v52 = vld [vmem:[#allocation20_spill] sm:$0xff] }
 0x572   : > { %v4683_v63 = vpop.f32.mrf.mxu2  ;;  %v10238_v49 = vor.u32 %v11533_v39, %v10235_v5  ;;  %v11473_v2 = vld [vmem:[%s18476_s1 + $0x874] sm:$0xf0] }
 0x573   : > { %18809 = vst [vmem:[#allocation16_spill] sm:$0xff] %v15591_v0  ;;  %5052 = vmatpush.bf16.msrb.mxu2 %v9982_v10  ;;  %v10233_v39 = vld [vmem:[%s18476_s1 + $0xa58] sm:$0xf]  ;;  %v18812_v10 = vld [vmem:[#allocation19_spill] sm:$0xff] }
 0x574   : > { %v4732_v43 = vpop.f32.mrf.mxu3  ;;  %v4587_v50 = vpop.f32.mrf.mxu0  ;;  %5101 = vmatpush.bf16.msrb.mxu3 %v10238_v49  ;;  %v11537_v49 = vld [vmem:[%s18476_s1 + $0xa74] sm:$0xf0] }
 0x575   : > { %v4733_v21 = vadd.f32 %v4732_v43, %v4683_v63  ;;  %v9978_v63 = vor.u32 %v11473_v2, %v9977_v18  ;;  %v10234_v43 = vor.u32 %v11537_v49, %v10233_v39  ;;  %v11461_v2 = vld [vmem:[%s18476_s1 + $0x81c] sm:$0xf] }
 0x576   : > { %v4636_v34 = vpop.f32.mrf.mxu1  ;;  %v10203_v39 = vld [vmem:[%s18476_s1 + $0xa38] sm:$0xf0] }
 0x577   : > { %v4637_v27 = vadd.f32 %v4636_v34, %v4587_v50  ;;  %v15609_v31 = vadd.f32 %v4733_v21, %v18810_v44  ;;  %4954 = vmatpush.bf16.msrb.mxu0 %v9978_v63  ;;  %5003 = vmatpush.bf16.msrb.mxu1 %v10234_v43 }
 0x579   : > { %18811 = vst [vmem:[#allocation17_spill] sm:$0xff] %v15609_v31  ;;  %v15621_v5 = vadd.f32 %v4637_v27, %v18812_v10  ;;  %v18816_v27 = vld [vmem:[#allocation21_spill] sm:$0xff] }
 0x57a   : > { %v4685_v50 = vpop.f32.mrf.mxu2 }
 0x57b   : > { %18813 = vst [vmem:[#allocation18_spill] sm:$0xff] %v15621_v5 }
 0x57c   : > { %v4734_v21 = vpop.f32.mrf.mxu3  ;;  %v4590_v34 = vpop.f32.mrf.mxu0 }
 0x57d   : > { %v4735_v44 = vadd.f32 %v4734_v21, %v4685_v50 }
 0x57e   : > { %v4639_v31 = vpop.f32.mrf.mxu1 }
 0x57f   : > { %v4640_v0 = vadd.f32 %v4639_v31, %v4590_v34  ;;  %v15627_v12 = vadd.f32 %v4735_v44, %v18814_v52  ;;  %4785 = vmatmul.bf16.gmra.mxu0 %v14966_v45  ;;  %4883 = vmatmul.bf16.gmra.mxu2 %v14966_v45  ;;  %v9947_v52 = vld [vmem:[%s18476_s1 + $0x838] sm:$0xf0]  ;;  %v18818_v44 = vld [vmem:[#allocation22_spill] sm:$0xff] }
 0x580   : > { %v11525_v31 = vld [vmem:[%s18476_s1 + $0xa1c] sm:$0xf] }
 0x581   : > { %18815 = vst [vmem:[#allocation19_spill] sm:$0xff] %v15627_v12  ;;  %v15631_v18 = vadd.f32 %v4640_v0, %v18816_v27  ;;  %4834 = vmatmul.bf16.gmra.mxu1 %v14969_v37  ;;  %4932 = vmatmul.bf16.gmra.mxu3 %v14969_v37  ;;  %v9950_v0 = vor.u32 %v11461_v2, %v9947_v52  ;;  %v9945_v2 = vld [vmem:[%s18476_s1 + $0x818] sm:$0xf]  ;;  %v18821_v12 = vld [vmem:[#allocation24_spill] sm:$0xff] }
 0x582   : > { %v4688_v10 = vpop.f32.mrf.mxu2  ;;  %v10206_v63 = vor.u32 %v11525_v31, %v10203_v39  ;;  %v11465_v52 = vld [vmem:[%s18476_s1 + $0x834] sm:$0xf0] }
 0x583   : > { %18817 = vst [vmem:[#allocation20_spill] sm:$0xff] %v15631_v18  ;;  %5053 = vmatpush.bf16.msrb.mxu2 %v9950_v0  ;;  %v10201_v31 = vld [vmem:[%s18476_s1 + $0xa18] sm:$0xf]  ;;  %v18820_v0 = vld [vmem:[#allocation23_spill] sm:$0xff] }
 0x584   : > { %v4737_v49 = vpop.f32.mrf.mxu3  ;;  %v4592_v43 = vpop.f32.mrf.mxu0  ;;  %5102 = vmatpush.bf16.msrb.mxu3 %v10206_v63  ;;  %v11529_v63 = vld [vmem:[%s18476_s1 + $0xa34] sm:$0xf0] }
 0x585   : > { %v4738_v50 = vadd.f32 %v4737_v49, %v4688_v10  ;;  %v9946_v10 = vor.u32 %v11465_v52, %v9945_v2  ;;  %v10202_v49 = vor.u32 %v11529_v63, %v10201_v31  ;;  %v11658_v52 = vld [vmem:[%s18476_s1 + $0xdc4] sm:$0xf] }
 0x586   : > { %v4641_v21 = vpop.f32.mrf.mxu1  ;;  %v10995_v31 = vld [vmem:[%s18476_s1 + $0xfe0] sm:$0xf0] }
 0x587   : > { %v4642_v34 = vadd.f32 %v4641_v21, %v4592_v43  ;;  %v15649_v27 = vadd.f32 %v4738_v50, %v18818_v44  ;;  %4955 = vmatpush.bf16.msrb.mxu0 %v9946_v10  ;;  %5004 = vmatpush.bf16.msrb.mxu1 %v10202_v49 }
 0x589   : > { %18819 = vst [vmem:[#allocation21_spill] sm:$0xff] %v15649_v27  ;;  %v15661_v39 = vadd.f32 %v4642_v34, %v18820_v0  ;;  %v18823_v34 = vld [vmem:[#allocation25_spill] sm:$0xff] }
 0x58a   : > { %v4690_v43 = vpop.f32.mrf.mxu2 }
 0x58c   : > { %v4739_v50 = vpop.f32.mrf.mxu3  ;;  %v4595_v21 = vpop.f32.mrf.mxu0 }
 0x58d   : > { %v4740_v44 = vadd.f32 %v4739_v50, %v4690_v43 }
 0x58e   : > { %v4644_v27 = vpop.f32.mrf.mxu1 }
 0x58f   : > { %v4645_v18 = vadd.f32 %v4644_v27, %v4595_v21  ;;  %v15667_v5 = vadd.f32 %v4740_v44, %v18821_v12  ;;  %4790 = vmatmul.bf16.gmra.mxu0 %v15014_v41  ;;  %4888 = vmatmul.bf16.gmra.mxu2 %v15014_v41  ;;  %v10739_v12 = vld [vmem:[%s18476_s1 + $0xde0] sm:$0xf0] }
 0x590   : > { %v11722_v27 = vld [vmem:[%s18476_s1 + $0xfc4] sm:$0xf] }
 0x591   : > { %18822 = vst [vmem:[#allocation22_spill] sm:$0xff] %v15667_v5  ;;  %v15671_v2 = vadd.f32 %v4645_v18, %v18823_v34  ;;  %4839 = vmatmul.bf16.gmra.mxu1 %v15017_v4  ;;  %4937 = vmatmul.bf16.gmra.mxu3 %v15017_v4  ;;  %v10742_v18 = vor.u32 %v11658_v52, %v10739_v12  ;;  %v18825_v44 = vld [vmem:[#allocation26_spill] sm:$0xff] }
 0x592   : > { %v4693_v0 = vpop.f32.mrf.mxu2  ;;  %v10998_v10 = vor.u32 %v11722_v27, %v10995_v31  ;;  %v10737_v52 = vld [vmem:[%s18476_s1 + $0xdc0] sm:$0xf] }
 0x593   : > { %18824 = vst [vmem:[#allocation23_spill] sm:$0xff] %v15671_v2  ;;  %6235 = vmatpush.bf16.msra.mxu2 %v10742_v18  ;;  %v11662_v12 = vld [vmem:[%s18476_s1 + $0xddc] sm:$0xf0]  ;;  %v18827_v2 = vld [vmem:[#allocation27_spill] sm:$0xff] }
 0x594   : > { %v4742_v63 = vpop.f32.mrf.mxu3  ;;  %v4597_v49 = vpop.f32.mrf.mxu0  ;;  %6284 = vmatpush.bf16.msra.mxu3 %v10998_v10  ;;  %v10993_v27 = vld [vmem:[%s18476_s1 + $0xfc0] sm:$0xf]  ;;  %v10738_v31 = vor.u32 %v11662_v12, %v10737_v52  ;;  %v11650_v52 = vld [vmem:[%s18476_s1 + $0xd84] sm:$0xf] }
 0x595   : > { %v4743_v43 = vadd.f32 %v4742_v63, %v4693_v0  ;;  %v11726_v0 = vld [vmem:[%s18476_s1 + $0xfdc] sm:$0xf0]  ;;  %v11714_v12 = vld [vmem:[%s18476_s1 + $0xf84] sm:$0xf] }
 0x596   : > { %v4646_v50 = vpop.f32.mrf.mxu1  ;;  %v10994_v10 = vor.u32 %v11726_v0, %v10993_v27  ;;  %6137 = vmatpush.bf16.msra.mxu0 %v10738_v31  ;;  %v10963_v27 = vld [vmem:[%s18476_s1 + $0xfa0] sm:$0xf0] }
 0x597   : > { %v4647_v21 = vadd.f32 %v4646_v50, %v4597_v49  ;;  %v15689_v34 = vadd.f32 %v4743_v43, %v18825_v44  ;;  %v10966_v0 = vor.u32 %v11714_v12, %v10963_v27  ;;  %v10961_v12 = vld [vmem:[%s18476_s1 + $0xf80] sm:$0xf] }
 0x598   : > { %6186 = vmatpush.bf16.msra.mxu1 %v10994_v10 }
 0x599   : > { %18826 = vst [vmem:[#allocation24_spill] sm:$0xff] %v15689_v34  ;;  %v15701_v18 = vadd.f32 %v4647_v21, %v14357_v48  ;;  %v18829_v48 = vld [vmem:[#allocation28_spill] sm:$0xff]  ;;  %6285 = vmatpush.bf16.msra.mxu3 %v10966_v0 }
 0x59a   : > { %v4695_v63 = vpop.f32.mrf.mxu2 }
 0x59c   : > { %v4744_v49 = vpop.f32.mrf.mxu3  ;;  %v4600_v43 = vpop.f32.mrf.mxu0 }
 0x59d   : > { %v4745_v50 = vadd.f32 %v4744_v49, %v4695_v63 }
 0x59e   : > { %v4649_v44 = vpop.f32.mrf.mxu1 }
 0x59f   : > { %v4650_v34 = vadd.f32 %v4649_v44, %v4600_v43  ;;  %v15707_v5 = vadd.f32 %v4745_v50, %v18827_v2  ;;  %4795 = vmatmul.bf16.gmra.mxu0 %v15062_v26  ;;  %4893 = vmatmul.bf16.gmra.mxu2 %v15062_v26  ;;  %v10707_v2 = vld [vmem:[%s18476_s1 + $0xda0] sm:$0xf0]  ;;  %v18831_v44 = vld [vmem:[#allocation29_spill] sm:$0xff] }
 0x5a1   : > { %18828 = vst [vmem:[#allocation25_spill] sm:$0xff] %v15707_v5  ;;  %v15711_v21 = vadd.f32 %v4650_v34, %v18829_v48  ;;  %4844 = vmatmul.bf16.gmra.mxu1 %v15065_v14  ;;  %4942 = vmatmul.bf16.gmra.mxu3 %v15065_v14  ;;  %v10710_v34 = vor.u32 %v11650_v52, %v10707_v2  ;;  %v10705_v52 = vld [vmem:[%s18476_s1 + $0xd80] sm:$0xf] }
 0x5a2   : > { %v4698_v31 = vpop.f32.mrf.mxu2  ;;  %v11654_v2 = vld [vmem:[%s18476_s1 + $0xd9c] sm:$0xf0] }
 0x5a3   : > { %18830 = vst [vmem:[#allocation26_spill] sm:$0xff] %v15711_v21  ;;  %6236 = vmatpush.bf16.msra.mxu2 %v10710_v34  ;;  %v10706_v27 = vor.u32 %v11654_v2, %v10705_v52  ;;  %v18834_v21 = vld [vmem:[#allocation30_spill] sm:$0xff] }
 0x5a4   : > { %v4747_v10 = vpop.f32.mrf.mxu3  ;;  %v4602_v63 = vpop.f32.mrf.mxu0  ;;  %v11642_v52 = vld [vmem:[%s18476_s1 + $0xd44] sm:$0xf] }
 0x5a5   : > { %v4748_v49 = vadd.f32 %v4747_v10, %v4698_v31  ;;  %v11718_v31 = vld [vmem:[%s18476_s1 + $0xf9c] sm:$0xf0]  ;;  %6138 = vmatpush.bf16.msra.mxu0 %v10706_v27  ;;  %v11706_v2 = vld [vmem:[%s18476_s1 + $0xf44] sm:$0xf] }
 0x5a6   : > { %v4651_v43 = vpop.f32.mrf.mxu1  ;;  %v10962_v0 = vor.u32 %v11718_v31, %v10961_v12  ;;  %v10931_v12 = vld [vmem:[%s18476_s1 + $0xf60] sm:$0xf0] }
 0x5a7   : > { %v4652_v50 = vadd.f32 %v4651_v43, %v4602_v63  ;;  %v15729_v48 = vadd.f32 %v4748_v49, %v18831_v44  ;;  %v10934_v27 = vor.u32 %v11706_v2, %v10931_v12  ;;  %v11710_v12 = vld [vmem:[%s18476_s1 + $0xf5c] sm:$0xf0] }
 0x5a8   : > { %6187 = vmatpush.bf16.msra.mxu1 %v10962_v0 }
 0x5a9   : > { %18832 = vst [vmem:[#allocation27_spill] sm:$0xff] %v15729_v48  ;;  %v15741_v34 = vadd.f32 %v4652_v50, %v14397_v62  ;;  %v18836_v62 = vld [vmem:[#allocation31_spill] sm:$0xff]  ;;  %6286 = vmatpush.bf16.msra.mxu3 %v10934_v27 }
 0x5aa   : > { %v4700_v10 = vpop.f32.mrf.mxu2 }
 0x5ab   : > { %18833 = vst [vmem:[#allocation28_spill] sm:$0xff] %v15741_v34  ;;  %v10753_v34 = vld [vmem:[%s18476_s1 + $0xdd0] sm:$0xf] }
 0x5ac   : > { %v4749_v63 = vpop.f32.mrf.mxu3  ;;  %v4761_v49 = vpop.f32.mrf.mxu0 }
 0x5ad   : > { %v4750_v43 = vadd.f32 %v4749_v63, %v4700_v10 }
 0x5ae   : > { %v4810_v44 = vpop.f32.mrf.mxu1 }
 0x5af   : > { %v4811_v48 = vadd.f32 %v4810_v44, %v4761_v49  ;;  %v15747_v5 = vadd.f32 %v4750_v43, %v18834_v21  ;;  %4956 = vmatmul.bf16.vlgmr.msrb.gmra.mxu0 %v14726_v47  ;;  %5054 = vmatmul.bf16.vlgmr.msrb.gmra.mxu2 %v14726_v47  ;;  %v10675_v21 = vld [vmem:[%s18476_s1 + $0xd60] sm:$0xf0]  ;;  %v18838_v49 = vld [vmem:[#allocation32_spill] sm:$0xff]  ;;  %v10673_v44 = vld [vmem:[%s18476_s1 + $0xd40] sm:$0xf] }
 0x5b1   : > { %18835 = vst [vmem:[#allocation29_spill] sm:$0xff] %v15747_v5  ;;  %v15751_v50 = vadd.f32 %v4811_v48, %v18836_v62  ;;  %5005 = vmatmul.bf16.vlgmr.msrb.gmra.mxu1 %v14729_v30  ;;  %5103 = vmatmul.bf16.vlgmr.msrb.gmra.mxu3 %v14729_v30  ;;  %v10678_v48 = vor.u32 %v11642_v52, %v10675_v21  ;;  %v11646_v62 = vld [vmem:[%s18476_s1 + $0xd5c] sm:$0xf0]  ;;  %v18840_v21 = vld [vmem:[#allocation33_spill] sm:$0xff] }
 0x5b2   : > { %v4859_v47 = vpop.f32.mrf.mxu2  ;;  %v10929_v52 = vld [vmem:[%s18476_s1 + $0xf40] sm:$0xf] }
 0x5b3   : > { %18837 = vst [vmem:[#allocation30_spill] sm:$0xff] %v15751_v50  ;;  %6237 = vmatpush.bf16.msra.mxu2 %v10678_v48  ;;  %v10674_v48 = vor.u32 %v11646_v62, %v10673_v44  ;;  %v11634_v62 = vld [vmem:[%s18476_s1 + $0xd04] sm:$0xf] }
 0x5b4   : > { %v4908_v30 = vpop.f32.mrf.mxu3  ;;  %v4763_v31 = vpop.f32.mrf.mxu0 }
 0x5b5   : > { %v4909_v0 = vadd.f32 %v4908_v30, %v4859_v47  ;;  %v10930_v47 = vor.u32 %v11710_v12, %v10929_v52  ;;  %6139 = vmatpush.bf16.msra.mxu0 %v10674_v48  ;;  %v11698_v52 = vld [vmem:[%s18476_s1 + $0xf04] sm:$0xf] }
 0x5b6   : > { %v4812_v10 = vpop.f32.mrf.mxu1  ;;  %v10899_v48 = vld [vmem:[%s18476_s1 + $0xf20] sm:$0xf0] }
 0x5b7   : > { %v4813_v63 = vadd.f32 %v4812_v10, %v4763_v31  ;;  %v15769_v43 = vadd.f32 %v4909_v0, %v18838_v49  ;;  %6188 = vmatpush.bf16.msra.mxu1 %v10930_v47  ;;  %v10902_v12 = vor.u32 %v11698_v52, %v10899_v48  ;;  %v11702_v48 = vld [vmem:[%s18476_s1 + $0xf1c] sm:$0xf0] }
 0x5b9   : > { %18839 = vst [vmem:[#allocation31_spill] sm:$0xff] %v15769_v43  ;;  %v15781_v2 = vadd.f32 %v4813_v63, %v18840_v21  ;;  %v18842_v43 = vld [vmem:[#allocation34_spill] sm:$0xff]  ;;  %v18844_v63 = vld [vmem:[#allocation35_spill] sm:$0xff]  ;;  %6287 = vmatpush.bf16.msra.mxu3 %v10902_v12 }
 0x5ba   : > { %v4861_v27 = vpop.f32.mrf.mxu2 }
 0x5bb   : > { %18841 = vst [vmem:[#allocation32_spill] sm:$0xff] %v15781_v2  ;;  %v18948_v2 = vld [vmem:[#allocation87_spill] sm:$0xff] }
 0x5bc   : > { %v4910_v30 = vpop.f32.mrf.mxu3  ;;  %v4766_v31 = vpop.f32.mrf.mxu0 }
 0x5bd   : > { %v4911_v0 = vadd.f32 %v4910_v30, %v4861_v27 }
 0x5be   : > { %v4815_v10 = vpop.f32.mrf.mxu1 }
 0x5bf   : > { %v4816_v49 = vadd.f32 %v4815_v10, %v4766_v31  ;;  %v15787_v50 = vadd.f32 %v4911_v0, %v18842_v43  ;;  %4961 = vmatmul.bf16.gmra.mxu0 %v14774_v17  ;;  %5059 = vmatmul.bf16.gmra.mxu2 %v14774_v17  ;;  %v10643_v43 = vld [vmem:[%s18476_s1 + $0xd20] sm:$0xf0]  ;;  %v18846_v0 = vld [vmem:[#allocation36_spill] sm:$0xff] }
 0x5c0   : > { %v10646_v21 = vor.u32 %v11634_v62, %v10643_v43  ;;  %v10897_v62 = vld [vmem:[%s18476_s1 + $0xf00] sm:$0xf]  ;;  %v18848_v43 = vld [vmem:[#allocation37_spill] sm:$0xff] }
 0x5c1   : > { %18843 = vst [vmem:[#allocation33_spill] sm:$0xff] %v15787_v50  ;;  %v15791_v44 = vadd.f32 %v4816_v49, %v18844_v63  ;;  %5010 = vmatmul.bf16.gmra.mxu1 %v14777_v11  ;;  %5108 = vmatmul.bf16.gmra.mxu3 %v14777_v11  ;;  %v10641_v49 = vld [vmem:[%s18476_s1 + $0xd00] sm:$0xf] }
 0x5c2   : > { %v4864_v17 = vpop.f32.mrf.mxu2  ;;  %6238 = vmatpush.bf16.msra.mxu2 %v10646_v21  ;;  %v11638_v63 = vld [vmem:[%s18476_s1 + $0xd1c] sm:$0xf0] }
 0x5c3   : > { %18845 = vst [vmem:[#allocation34_spill] sm:$0xff] %v15791_v44  ;;  %v10642_v21 = vor.u32 %v11638_v63, %v10641_v49  ;;  %v11626_v63 = vld [vmem:[%s18476_s1 + $0xcc4] sm:$0xf] }
 0x5c4   : > { %v4913_v11 = vpop.f32.mrf.mxu3  ;;  %v4768_v47 = vpop.f32.mrf.mxu0 }
 0x5c5   : > { %v4914_v27 = vadd.f32 %v4913_v11, %v4864_v17  ;;  %v10898_v17 = vor.u32 %v11702_v48, %v10897_v62  ;;  %6140 = vmatpush.bf16.msra.mxu0 %v10642_v21  ;;  %v11690_v62 = vld [vmem:[%s18476_s1 + $0xec4] sm:$0xf] }
 0x5c6   : > { %v4817_v30 = vpop.f32.mrf.mxu1  ;;  %v10867_v21 = vld [vmem:[%s18476_s1 + $0xee0] sm:$0xf0] }
 0x5c7   : > { %v4818_v31 = vadd.f32 %v4817_v30, %v4768_v47  ;;  %v15809_v10 = vadd.f32 %v4914_v27, %v18846_v0  ;;  %6189 = vmatpush.bf16.msra.mxu1 %v10898_v17  ;;  %v10870_v48 = vor.u32 %v11690_v62, %v10867_v21  ;;  %v11694_v21 = vld [vmem:[%s18476_s1 + $0xedc] sm:$0xf0] }
 0x5c9   : > { %18847 = vst [vmem:[#allocation35_spill] sm:$0xff] %v15809_v10  ;;  %v15821_v52 = vadd.f32 %v4818_v31, %v18848_v43  ;;  %v18850_v10 = vld [vmem:[#allocation38_spill] sm:$0xff]  ;;  %v18852_v31 = vld [vmem:[#allocation39_spill] sm:$0xff]  ;;  %6288 = vmatpush.bf16.msra.mxu3 %v10870_v48 }
 0x5ca   : > { %v4866_v12 = vpop.f32.mrf.mxu2 }
 0x5cb   : > { %18849 = vst [vmem:[#allocation36_spill] sm:$0xff] %v15821_v52  ;;  %v18940_v52 = vld [vmem:[#allocation83_spill] sm:$0xff] }
 0x5cc   : > { %v4915_v11 = vpop.f32.mrf.mxu3  ;;  %v4771_v47 = vpop.f32.mrf.mxu0 }
 0x5cd   : > { %v4916_v27 = vadd.f32 %v4915_v11, %v4866_v12 }
 0x5ce   : > { %v4820_v30 = vpop.f32.mrf.mxu1 }
 0x5cf   : > { %v4821_v0 = vadd.f32 %v4820_v30, %v4771_v47  ;;  %v15827_v44 = vadd.f32 %v4916_v27, %v18850_v10  ;;  %4966 = vmatmul.bf16.gmra.mxu0 %v14822_v9  ;;  %5064 = vmatmul.bf16.gmra.mxu2 %v14822_v9  ;;  %v10611_v10 = vld [vmem:[%s18476_s1 + $0xce0] sm:$0xf0]  ;;  %v18854_v27 = vld [vmem:[#allocation40_spill] sm:$0xff] }
 0x5d0   : > { %v10614_v43 = vor.u32 %v11626_v63, %v10611_v10  ;;  %v10865_v63 = vld [vmem:[%s18476_s1 + $0xec0] sm:$0xf]  ;;  %v18856_v10 = vld [vmem:[#allocation41_spill] sm:$0xff] }
 0x5d1   : > { %18851 = vst [vmem:[#allocation37_spill] sm:$0xff] %v15827_v44  ;;  %v15831_v49 = vadd.f32 %v4821_v0, %v18852_v31  ;;  %5015 = vmatmul.bf16.gmra.mxu1 %v14825_v23  ;;  %5113 = vmatmul.bf16.gmra.mxu3 %v14825_v23  ;;  %v10609_v0 = vld [vmem:[%s18476_s1 + $0xcc0] sm:$0xf] }
 0x5d2   : > { %v4869_v9 = vpop.f32.mrf.mxu2  ;;  %6239 = vmatpush.bf16.msra.mxu2 %v10614_v43  ;;  %v11630_v31 = vld [vmem:[%s18476_s1 + $0xcdc] sm:$0xf0] }
 0x5d3   : > { %18853 = vst [vmem:[#allocation38_spill] sm:$0xff] %v15831_v49  ;;  %v10610_v43 = vor.u32 %v11630_v31, %v10609_v0  ;;  %v11618_v31 = vld [vmem:[%s18476_s1 + $0xc84] sm:$0xf] }
 0x5d4   : > { %v4918_v23 = vpop.f32.mrf.mxu3  ;;  %v4773_v17 = vpop.f32.mrf.mxu0 }
 0x5d5   : > { %v4919_v12 = vadd.f32 %v4918_v23, %v4869_v9  ;;  %v10866_v9 = vor.u32 %v11694_v21, %v10865_v63  ;;  %6141 = vmatpush.bf16.msra.mxu0 %v10610_v43  ;;  %v11682_v63 = vld [vmem:[%s18476_s1 + $0xe84] sm:$0xf] }
 0x5d6   : > { %v4822_v11 = vpop.f32.mrf.mxu1  ;;  %v10835_v43 = vld [vmem:[%s18476_s1 + $0xea0] sm:$0xf0] }
 0x5d7   : > { %v4823_v47 = vadd.f32 %v4822_v11, %v4773_v17  ;;  %v15849_v30 = vadd.f32 %v4919_v12, %v18854_v27  ;;  %6190 = vmatpush.bf16.msra.mxu1 %v10866_v9  ;;  %v10838_v21 = vor.u32 %v11682_v63, %v10835_v43  ;;  %v11686_v43 = vld [vmem:[%s18476_s1 + $0xe9c] sm:$0xf0] }
 0x5d9   : > { %18855 = vst [vmem:[#allocation39_spill] sm:$0xff] %v15849_v30  ;;  %v15861_v62 = vadd.f32 %v4823_v47, %v18856_v10  ;;  %v18858_v30 = vld [vmem:[#allocation42_spill] sm:$0xff]  ;;  %v18860_v47 = vld [vmem:[#allocation43_spill] sm:$0xff]  ;;  %6289 = vmatpush.bf16.msra.mxu3 %v10838_v21 }
 0x5da   : > { %v4871_v48 = vpop.f32.mrf.mxu2 }
 0x5db   : > { %18857 = vst [vmem:[#allocation40_spill] sm:$0xff] %v15861_v62  ;;  %v18932_v62 = vld [vmem:[#allocation79_spill] sm:$0xff] }
 0x5dc   : > { %v4920_v23 = vpop.f32.mrf.mxu3  ;;  %v4776_v17 = vpop.f32.mrf.mxu0 }
 0x5dd   : > { %v4921_v12 = vadd.f32 %v4920_v23, %v4871_v48 }
 0x5de   : > { %v4825_v11 = vpop.f32.mrf.mxu1 }
 0x5df   : > { %v4826_v27 = vadd.f32 %v4825_v11, %v4776_v17  ;;  %v15867_v49 = vadd.f32 %v4921_v12, %v18858_v30  ;;  %4971 = vmatmul.bf16.gmra.mxu0 %v14870_v29  ;;  %5069 = vmatmul.bf16.gmra.mxu2 %v14870_v29  ;;  %v10579_v30 = vld [vmem:[%s18476_s1 + $0xca0] sm:$0xf0]  ;;  %v18862_v12 = vld [vmem:[#allocation44_spill] sm:$0xff] }
 0x5e0   : > { %v10582_v10 = vor.u32 %v11618_v31, %v10579_v30  ;;  %v10833_v31 = vld [vmem:[%s18476_s1 + $0xe80] sm:$0xf]  ;;  %v18864_v30 = vld [vmem:[#allocation45_spill] sm:$0xff] }
 0x5e1   : > { %18859 = vst [vmem:[#allocation41_spill] sm:$0xff] %v15867_v49  ;;  %v15871_v0 = vadd.f32 %v4826_v27, %v18860_v47  ;;  %5020 = vmatmul.bf16.gmra.mxu1 %v14873_v1  ;;  %5118 = vmatmul.bf16.gmra.mxu3 %v14873_v1  ;;  %v10577_v27 = vld [vmem:[%s18476_s1 + $0xc80] sm:$0xf] }
 0x5e2   : > { %v4874_v29 = vpop.f32.mrf.mxu2  ;;  %6240 = vmatpush.bf16.msra.mxu2 %v10582_v10  ;;  %v11622_v47 = vld [vmem:[%s18476_s1 + $0xc9c] sm:$0xf0] }
 0x5e3   : > { %18861 = vst [vmem:[#allocation42_spill] sm:$0xff] %v15871_v0  ;;  %v10578_v10 = vor.u32 %v11622_v47, %v10577_v27  ;;  %v11610_v47 = vld [vmem:[%s18476_s1 + $0xc44] sm:$0xf] }
 0x5e4   : > { %v4923_v1 = vpop.f32.mrf.mxu3  ;;  %v4778_v9 = vpop.f32.mrf.mxu0 }
 0x5e5   : > { %v4924_v48 = vadd.f32 %v4923_v1, %v4874_v29  ;;  %v10834_v29 = vor.u32 %v11686_v43, %v10833_v31  ;;  %6142 = vmatpush.bf16.msra.mxu0 %v10578_v10  ;;  %v11674_v31 = vld [vmem:[%s18476_s1 + $0xe44] sm:$0xf] }
 0x5e6   : > { %v4827_v23 = vpop.f32.mrf.mxu1  ;;  %v10803_v10 = vld [vmem:[%s18476_s1 + $0xe60] sm:$0xf0] }
 0x5e7   : > { %v4828_v17 = vadd.f32 %v4827_v23, %v4778_v9  ;;  %v15889_v11 = vadd.f32 %v4924_v48, %v18862_v12  ;;  %6191 = vmatpush.bf16.msra.mxu1 %v10834_v29  ;;  %v10806_v43 = vor.u32 %v11674_v31, %v10803_v10  ;;  %v11678_v10 = vld [vmem:[%s18476_s1 + $0xe5c] sm:$0xf0] }
 0x5e9   : > { %18863 = vst [vmem:[#allocation43_spill] sm:$0xff] %v15889_v11  ;;  %v15901_v63 = vadd.f32 %v4828_v17, %v18864_v30  ;;  %v18866_v11 = vld [vmem:[#allocation46_spill] sm:$0xff]  ;;  %v18868_v17 = vld [vmem:[#allocation47_spill] sm:$0xff]  ;;  %6290 = vmatpush.bf16.msra.mxu3 %v10806_v43 }
 0x5ea   : > { %v4876_v21 = vpop.f32.mrf.mxu2 }
 0x5eb   : > { %18865 = vst [vmem:[#allocation44_spill] sm:$0xff] %v15901_v63  ;;  %v18924_v63 = vld [vmem:[#allocation75_spill] sm:$0xff] }
 0x5ec   : > { %v4925_v1 = vpop.f32.mrf.mxu3  ;;  %v4781_v9 = vpop.f32.mrf.mxu0 }
 0x5ed   : > { %v4926_v48 = vadd.f32 %v4925_v1, %v4876_v21 }
 0x5ee   : > { %v4830_v23 = vpop.f32.mrf.mxu1 }
 0x5ef   : > { %v4831_v12 = vadd.f32 %v4830_v23, %v4781_v9  ;;  %v15907_v0 = vadd.f32 %v4926_v48, %v18866_v11  ;;  %4976 = vmatmul.bf16.gmra.mxu0 %v14918_v3  ;;  %5074 = vmatmul.bf16.gmra.mxu2 %v14918_v3  ;;  %v10547_v11 = vld [vmem:[%s18476_s1 + $0xc60] sm:$0xf0]  ;;  %v18870_v48 = vld [vmem:[#allocation48_spill] sm:$0xff] }
 0x5f0   : > { %v10550_v30 = vor.u32 %v11610_v47, %v10547_v11  ;;  %v10801_v47 = vld [vmem:[%s18476_s1 + $0xe40] sm:$0xf]  ;;  %v18872_v11 = vld [vmem:[#allocation49_spill] sm:$0xff] }
 0x5f1   : > { %18867 = vst [vmem:[#allocation45_spill] sm:$0xff] %v15907_v0  ;;  %v15911_v27 = vadd.f32 %v4831_v12, %v18868_v17  ;;  %5025 = vmatmul.bf16.gmra.mxu1 %v14921_v32  ;;  %5123 = vmatmul.bf16.gmra.mxu3 %v14921_v32  ;;  %v10545_v12 = vld [vmem:[%s18476_s1 + $0xc40] sm:$0xf] }
 0x5f2   : > { %v4879_v3 = vpop.f32.mrf.mxu2  ;;  %6241 = vmatpush.bf16.msra.mxu2 %v10550_v30  ;;  %v11614_v17 = vld [vmem:[%s18476_s1 + $0xc5c] sm:$0xf0] }
 0x5f3   : > { %18869 = vst [vmem:[#allocation46_spill] sm:$0xff] %v15911_v27  ;;  %v10546_v30 = vor.u32 %v11614_v17, %v10545_v12  ;;  %v11602_v17 = vld [vmem:[%s18476_s1 + $0xc04] sm:$0xf] }
 0x5f4   : > { %v4928_v32 = vpop.f32.mrf.mxu3  ;;  %v4783_v29 = vpop.f32.mrf.mxu0 }
 0x5f5   : > { %v4929_v21 = vadd.f32 %v4928_v32, %v4879_v3  ;;  %v10802_v3 = vor.u32 %v11678_v10, %v10801_v47  ;;  %6143 = vmatpush.bf16.msra.mxu0 %v10546_v30  ;;  %v11666_v47 = vld [vmem:[%s18476_s1 + $0xe04] sm:$0xf] }
 0x5f6   : > { %v4832_v1 = vpop.f32.mrf.mxu1  ;;  %v10771_v30 = vld [vmem:[%s18476_s1 + $0xe20] sm:$0xf0] }
 0x5f7   : > { %v4833_v9 = vadd.f32 %v4832_v1, %v4783_v29  ;;  %v15929_v23 = vadd.f32 %v4929_v21, %v18870_v48  ;;  %6192 = vmatpush.bf16.msra.mxu1 %v10802_v3  ;;  %v10774_v10 = vor.u32 %v11666_v47, %v10771_v30  ;;  %v11670_v30 = vld [vmem:[%s18476_s1 + $0xe1c] sm:$0xf0] }
 0x5f9   : > { %18871 = vst [vmem:[#allocation47_spill] sm:$0xff] %v15929_v23  ;;  %v15941_v31 = vadd.f32 %v4833_v9, %v18872_v11  ;;  %v18874_v23 = vld [vmem:[#allocation50_spill] sm:$0xff]  ;;  %v18876_v9 = vld [vmem:[#allocation51_spill] sm:$0xff]  ;;  %6291 = vmatpush.bf16.msra.mxu3 %v10774_v10 }
 0x5fa   : > { %v4881_v43 = vpop.f32.mrf.mxu2 }
 0x5fb   : > { %18873 = vst [vmem:[#allocation48_spill] sm:$0xff] %v15941_v31  ;;  %v18916_v31 = vld [vmem:[#allocation71_spill] sm:$0xff] }
 0x5fc   : > { %v4930_v32 = vpop.f32.mrf.mxu3  ;;  %v4786_v29 = vpop.f32.mrf.mxu0 }
 0x5fd   : > { %v4931_v21 = vadd.f32 %v4930_v32, %v4881_v43 }
 0x5fe   : > { %v4835_v1 = vpop.f32.mrf.mxu1 }
 0x5ff   : > { %v4836_v48 = vadd.f32 %v4835_v1, %v4786_v29  ;;  %v15947_v27 = vadd.f32 %v4931_v21, %v18874_v23  ;;  %4981 = vmatmul.bf16.gmra.mxu0 %v14966_v45  ;;  %5079 = vmatmul.bf16.gmra.mxu2 %v14966_v45  ;;  %v10515_v23 = vld [vmem:[%s18476_s1 + $0xc20] sm:$0xf0]  ;;  %v18878_v21 = vld [vmem:[#allocation52_spill] sm:$0xff] }
 0x600   : > { %v10518_v11 = vor.u32 %v11602_v17, %v10515_v23  ;;  %v10769_v17 = vld [vmem:[%s18476_s1 + $0xe00] sm:$0xf]  ;;  %v18880_v23 = vld [vmem:[#allocation53_spill] sm:$0xff] }
 0x601   : > { %18875 = vst [vmem:[#allocation49_spill] sm:$0xff] %v15947_v27  ;;  %v15951_v12 = vadd.f32 %v4836_v48, %v18876_v9  ;;  %5030 = vmatmul.bf16.gmra.mxu1 %v14969_v37  ;;  %5128 = vmatmul.bf16.gmra.mxu3 %v14969_v37  ;;  %v10513_v48 = vld [vmem:[%s18476_s1 + $0xc00] sm:$0xf] }
 0x602   : > { %v4884_v45 = vpop.f32.mrf.mxu2  ;;  %6242 = vmatpush.bf16.msra.mxu2 %v10518_v11  ;;  %v11606_v9 = vld [vmem:[%s18476_s1 + $0xc1c] sm:$0xf0] }
 0x603   : > { %18877 = vst [vmem:[#allocation50_spill] sm:$0xff] %v15951_v12  ;;  %v10514_v11 = vor.u32 %v11606_v9, %v10513_v48  ;;  %v11659_v9 = vld [vmem:[%s18476_s1 + $0xdcc] sm:$0xf] }
 0x604   : > { %v4933_v37 = vpop.f32.mrf.mxu3  ;;  %v4788_v3 = vpop.f32.mrf.mxu0 }
 0x605   : > { %v4934_v43 = vadd.f32 %v4933_v37, %v4884_v45  ;;  %v10770_v45 = vor.u32 %v11670_v30, %v10769_v17  ;;  %6144 = vmatpush.bf16.msra.mxu0 %v10514_v11  ;;  %v11723_v17 = vld [vmem:[%s18476_s1 + $0xfcc] sm:$0xf] }
 0x606   : > { %v4837_v32 = vpop.f32.mrf.mxu1  ;;  %v11003_v11 = vld [vmem:[%s18476_s1 + $0xfe8] sm:$0xf0] }
 0x607   : > { %v4838_v29 = vadd.f32 %v4837_v32, %v4788_v3  ;;  %v15969_v1 = vadd.f32 %v4934_v43, %v18878_v21  ;;  %6193 = vmatpush.bf16.msra.mxu1 %v10770_v45  ;;  %v11006_v30 = vor.u32 %v11723_v17, %v11003_v11  ;;  %v11727_v11 = vld [vmem:[%s18476_s1 + $0xfe4] sm:$0xf0] }
 0x609   : > { %18879 = vst [vmem:[#allocation51_spill] sm:$0xff] %v15969_v1  ;;  %v15981_v47 = vadd.f32 %v4838_v29, %v18880_v23  ;;  %v18882_v1 = vld [vmem:[#allocation54_spill] sm:$0xff]  ;;  %v18884_v29 = vld [vmem:[#allocation55_spill] sm:$0xff]  ;;  %6480 = vmatpush.bf16.msrb.mxu3 %v11006_v30 }
 0x60a   : > { %v4886_v10 = vpop.f32.mrf.mxu2 }
 0x60b   : > { %18881 = vst [vmem:[#allocation52_spill] sm:$0xff] %v15981_v47  ;;  %v18908_v47 = vld [vmem:[#allocation67_spill] sm:$0xff] }
 0x60c   : > { %v4935_v37 = vpop.f32.mrf.mxu3  ;;  %v4791_v3 = vpop.f32.mrf.mxu0 }
 0x60d   : > { %v4936_v43 = vadd.f32 %v4935_v37, %v4886_v10 }
 0x60e   : > { %v4840_v32 = vpop.f32.mrf.mxu1 }
 0x60f   : > { %v4841_v21 = vadd.f32 %v4840_v32, %v4791_v3  ;;  %v15987_v12 = vadd.f32 %v4936_v43, %v18882_v1  ;;  %4986 = vmatmul.bf16.gmra.mxu0 %v15014_v41  ;;  %5084 = vmatmul.bf16.gmra.mxu2 %v15014_v41  ;;  %v10747_v1 = vld [vmem:[%s18476_s1 + $0xde8] sm:$0xf0]  ;;  %v18886_v43 = vld [vmem:[#allocation56_spill] sm:$0xff] }
 0x610   : > { %v10750_v23 = vor.u32 %v11659_v9, %v10747_v1  ;;  %v11001_v9 = vld [vmem:[%s18476_s1 + $0xfc8] sm:$0xf]  ;;  %v18888_v1 = vld [vmem:[#allocation57_spill] sm:$0xff] }
 0x611   : > { %18883 = vst [vmem:[#allocation53_spill] sm:$0xff] %v15987_v12  ;;  %v15991_v48 = vadd.f32 %v4841_v21, %v18884_v29  ;;  %5035 = vmatmul.bf16.gmra.mxu1 %v15017_v4  ;;  %5133 = vmatmul.bf16.gmra.mxu3 %v15017_v4  ;;  %v10745_v21 = vld [vmem:[%s18476_s1 + $0xdc8] sm:$0xf] }
 0x612   : > { %v4889_v41 = vpop.f32.mrf.mxu2  ;;  %6431 = vmatpush.bf16.msrb.mxu2 %v10750_v23  ;;  %v11663_v29 = vld [vmem:[%s18476_s1 + $0xde4] sm:$0xf0] }
 0x613   : > { %18885 = vst [vmem:[#allocation54_spill] sm:$0xff] %v15991_v48  ;;  %v10746_v23 = vor.u32 %v11663_v29, %v10745_v21  ;;  %v11651_v29 = vld [vmem:[%s18476_s1 + $0xd8c] sm:$0xf] }
 0x614   : > { %v4938_v4 = vpop.f32.mrf.mxu3  ;;  %v4793_v45 = vpop.f32.mrf.mxu0 }
 0x615   : > { %v4939_v10 = vadd.f32 %v4938_v4, %v4889_v41  ;;  %v11002_v41 = vor.u32 %v11727_v11, %v11001_v9  ;;  %6333 = vmatpush.bf16.msrb.mxu0 %v10746_v23  ;;  %v11715_v9 = vld [vmem:[%s18476_s1 + $0xf8c] sm:$0xf] }
 0x616   : > { %v4842_v37 = vpop.f32.mrf.mxu1 }
 0x617   : > { %v4843_v3 = vadd.f32 %v4842_v37, %v4793_v45  ;;  %v16009_v32 = vadd.f32 %v4939_v10, %v18886_v43  ;;  %6382 = vmatpush.bf16.msrb.mxu1 %v11002_v41 }
 0x619   : > { %18887 = vst [vmem:[#allocation55_spill] sm:$0xff] %v16009_v32  ;;  %v16021_v17 = vadd.f32 %v4843_v3, %v18888_v1  ;;  %v18890_v32 = vld [vmem:[#allocation58_spill] sm:$0xff]  ;;  %v18892_v3 = vld [vmem:[#allocation59_spill] sm:$0xff] }
 0x61a   : > { %v4891_v30 = vpop.f32.mrf.mxu2 }
 0x61b   : > { %18889 = vst [vmem:[#allocation56_spill] sm:$0xff] %v16021_v17  ;;  %v18900_v17 = vld [vmem:[#allocation63_spill] sm:$0xff] }
 0x61c   : > { %v4940_v4 = vpop.f32.mrf.mxu3  ;;  %v4796_v45 = vpop.f32.mrf.mxu0 }
 0x61d   : > { %v4941_v10 = vadd.f32 %v4940_v4, %v4891_v30 }
 0x61e   : > { %v4845_v37 = vpop.f32.mrf.mxu1 }
 0x61f   : > { %v4846_v43 = vadd.f32 %v4845_v37, %v4796_v45  ;;  %v16027_v48 = vadd.f32 %v4941_v10, %v18890_v32  ;;  %4991 = vmatmul.bf16.gmra.mxu0 %v15062_v26  ;;  %5089 = vmatmul.bf16.gmra.mxu2 %v15062_v26  ;;  %v10715_v32 = vld [vmem:[%s18476_s1 + $0xda8] sm:$0xf0]  ;;  %v18894_v10 = vld [vmem:[#allocation60_spill] sm:$0xff] }
 0x620   : > { %v10718_v1 = vor.u32 %v11651_v29, %v10715_v32  ;;  %v10971_v26 = vld [vmem:[%s18476_s1 + $0xfa8] sm:$0xf0]  ;;  %v10969_v29 = vld [vmem:[%s18476_s1 + $0xf88] sm:$0xf]  ;;  %v18896_v32 = vld [vmem:[#allocation61_spill] sm:$0xff] }
 0x621   : > { %18891 = vst [vmem:[#allocation57_spill] sm:$0xff] %v16027_v48  ;;  %v16031_v21 = vadd.f32 %v4846_v43, %v18892_v3  ;;  %5040 = vmatmul.bf16.gmra.mxu1 %v15065_v14  ;;  %5138 = vmatmul.bf16.gmra.mxu3 %v15065_v14  ;;  %v10974_v23 = vor.u32 %v11715_v9, %v10971_v26  ;;  %v10713_v43 = vld [vmem:[%s18476_s1 + $0xd88] sm:$0xf] }
 0x622   : > { %v4894_v14 = vpop.f32.mrf.mxu2  ;;  %6432 = vmatpush.bf16.msrb.mxu2 %v10718_v1  ;;  %v11655_v3 = vld [vmem:[%s18476_s1 + $0xda4] sm:$0xf0]  ;;  %v10449_v1 = vld [vmem:[%s12211_s5 + $0x180] sm:$0xf] }
 0x623   : > { %18893 = vst [vmem:[#allocation58_spill] sm:$0xff] %v16031_v21  ;;  %6481 = vmatpush.bf16.msrb.mxu3 %v10974_v23  ;;  %v11587_v26 = vld [vmem:[%s12211_s5 + $0x184] sm:$0xf0] }
 0x624   : > { %v4943_v11 = vpop.f32.mrf.mxu3  ;;  %v4798_v41 = vpop.f32.mrf.mxu0  ;;  %v11719_v23 = vld [vmem:[%s18476_s1 + $0xfa4] sm:$0xf0] }
 0x625   : > { %v4944_v30 = vadd.f32 %v4943_v11, %v4894_v14  ;;  %v10714_v14 = vor.u32 %v11655_v3, %v10713_v43  ;;  %v11586_v11 = vld [vmem:[%s12211_s5 + $0x184] sm:$0xf] }
 0x626   : > { %v4847_v4 = vpop.f32.mrf.mxu1  ;;  %v18898_v43 = vld [vmem:[#allocation62_spill] sm:$0xff] }
 0x627   : > { %v4848_v45 = vadd.f32 %v4847_v4, %v4798_v41  ;;  %v16049_v37 = vadd.f32 %v4944_v30, %v18894_v10  ;;  %v10451_v41 = vld [vmem:[%s12211_s5 + $0x188] sm:$0xf0]  ;;  %v10970_v30 = vor.u32 %v11719_v23, %v10969_v29  ;;  %6334 = vmatpush.bf16.msrb.mxu0 %v10714_v14  ;;  %v16070_v10 = vor.u32 %v11587_v26, %v10449_v1 }
 0x628   : > { %v16072_v48 = vor.u32 %v11586_v11, %v10451_v41  ;;  %v11707_v29 = vld [vmem:[%s18476_s1 + $0xf4c] sm:$0xf] }
 0x629   : > { %18895 = vst [vmem:[#allocation59_spill] sm:$0xff] %v16049_v37  ;;  %v16061_v9 = vadd.f32 %v4848_v45, %v18896_v32  ;;  %6383 = vmatpush.bf16.msrb.mxu1 %v10970_v30 }
 0x62a   : > { %v4896_v4 = vpop.f32.mrf.mxu2 }
 0x62b   : > { %18897 = vst [vmem:[#allocation60_spill] sm:$0xff] %v16061_v9 }
 0x62c   : > { %v4945_v37 = vpop.f32.mrf.mxu3  ;;  %v4957_v21 = vpop.f32.mrf.mxu0 }
 0x62d   : > { %v4946_v45 = vadd.f32 %v4945_v37, %v4896_v4  ;;  %v11643_v37 = vld [vmem:[%s18476_s1 + $0xd4c] sm:$0xf]  ;;  %v18902_v4 = vld [vmem:[#allocation64_spill] sm:$0xff] }
 0x62e   : > { %v5006_v32 = vpop.f32.mrf.mxu1 }
 0x62f   : > { %v5007_v9 = vadd.f32 %v5006_v32, %v4957_v21  ;;  %v16075_v3 = vadd.f32 %v4946_v45, %v18898_v43  ;;  %6145 = vmatmul.bf16.vlgmr.msra.gmra.mxu0 %v16070_v10  ;;  %6243 = vmatmul.bf16.vlgmr.msra.gmra.mxu2 %v16070_v10  ;;  %v10683_v21 = vld [vmem:[%s18476_s1 + $0xd68] sm:$0xf0]  ;;  %v10681_v32 = vld [vmem:[%s18476_s1 + $0xd48] sm:$0xf] }
 0x630   : > { %v11647_v43 = vld [vmem:[%s18476_s1 + $0xd64] sm:$0xf0] }
 0x631   : > { %18899 = vst [vmem:[#allocation61_spill] sm:$0xff] %v16075_v3  ;;  %v16079_v12 = vadd.f32 %v5007_v9, %v18900_v17  ;;  %6194 = vmatmul.bf16.vlgmr.msra.gmra.mxu1 %v16072_v48  ;;  %6292 = vmatmul.bf16.vlgmr.msra.gmra.mxu3 %v16072_v48  ;;  %v10686_v17 = vor.u32 %v11643_v37, %v10683_v21  ;;  %v10939_v9 = vld [vmem:[%s18476_s1 + $0xf68] sm:$0xf0]  ;;  %v10937_v37 = vld [vmem:[%s18476_s1 + $0xf48] sm:$0xf]  ;;  %v18904_v21 = vld [vmem:[#allocation65_spill] sm:$0xff] }
 0x632   : > { %v5055_v1 = vpop.f32.mrf.mxu2  ;;  %v10942_v26 = vor.u32 %v11707_v29, %v10939_v9  ;;  %v11589_v9 = vld [vmem:[%s12211_s5 + $0x194] sm:$0xf0] }
 0x633   : > { %18901 = vst [vmem:[#allocation62_spill] sm:$0xff] %v16079_v12  ;;  %6433 = vmatpush.bf16.msrb.mxu2 %v10686_v17  ;;  %v10457_v17 = vld [vmem:[%s12211_s5 + $0x190] sm:$0xf] }
 0x634   : > { %v5104_v14 = vpop.f32.mrf.mxu3  ;;  %v4959_v23 = vpop.f32.mrf.mxu0  ;;  %6482 = vmatpush.bf16.msrb.mxu3 %v10942_v26  ;;  %v11711_v26 = vld [vmem:[%s18476_s1 + $0xf64] sm:$0xf0] }
 0x635   : > { %v5105_v11 = vadd.f32 %v5104_v14, %v5055_v1  ;;  %v10682_v1 = vor.u32 %v11647_v43, %v10681_v32  ;;  %v11588_v14 = vld [vmem:[%s12211_s5 + $0x194] sm:$0xf]  ;;  %v18906_v32 = vld [vmem:[#allocation66_spill] sm:$0xff] }
 0x636   : > { %v5008_v41 = vpop.f32.mrf.mxu1 }
 0x637   : > { %v5009_v30 = vadd.f32 %v5008_v41, %v4959_v23  ;;  %v16097_v45 = vadd.f32 %v5105_v11, %v18902_v4  ;;  %v10459_v23 = vld [vmem:[%s12211_s5 + $0x198] sm:$0xf0]  ;;  %v10938_v11 = vor.u32 %v11711_v26, %v10937_v37  ;;  %6335 = vmatpush.bf16.msrb.mxu0 %v10682_v1  ;;  %v16118_v4 = vor.u32 %v11589_v9, %v10457_v17  ;;  %v11699_v37 = vld [vmem:[%s18476_s1 + $0xf0c] sm:$0xf] }
 0x638   : > { %v16120_v3 = vor.u32 %v11588_v14, %v10459_v23 }
 0x639   : > { %18903 = vst [vmem:[#allocation63_spill] sm:$0xff] %v16097_v45  ;;  %v16109_v29 = vadd.f32 %v5009_v30, %v18904_v21  ;;  %6384 = vmatpush.bf16.msrb.mxu1 %v10938_v11 }
 0x63a   : > { %v5057_v41 = vpop.f32.mrf.mxu2 }
 0x63b   : > { %18905 = vst [vmem:[#allocation64_spill] sm:$0xff] %v16109_v29 }
 0x63c   : > { %v5106_v45 = vpop.f32.mrf.mxu3  ;;  %v4962_v12 = vpop.f32.mrf.mxu0 }
 0x63d   : > { %v5107_v30 = vadd.f32 %v5106_v45, %v5057_v41  ;;  %v11635_v45 = vld [vmem:[%s18476_s1 + $0xd0c] sm:$0xf]  ;;  %v18910_v41 = vld [vmem:[#allocation68_spill] sm:$0xff] }
 0x63e   : > { %v5011_v21 = vpop.f32.mrf.mxu1 }
 0x63f   : > { %v5012_v29 = vadd.f32 %v5011_v21, %v4962_v12  ;;  %v16123_v43 = vadd.f32 %v5107_v30, %v18906_v32  ;;  %6150 = vmatmul.bf16.gmra.mxu0 %v16118_v4  ;;  %6248 = vmatmul.bf16.gmra.mxu2 %v16118_v4  ;;  %v10651_v12 = vld [vmem:[%s18476_s1 + $0xd28] sm:$0xf0]  ;;  %v10649_v21 = vld [vmem:[%s18476_s1 + $0xd08] sm:$0xf] }
 0x640   : > { %v11639_v32 = vld [vmem:[%s18476_s1 + $0xd24] sm:$0xf0] }
 0x641   : > { %18907 = vst [vmem:[#allocation65_spill] sm:$0xff] %v16123_v43  ;;  %v16127_v27 = vadd.f32 %v5012_v29, %v18908_v47  ;;  %6199 = vmatmul.bf16.gmra.mxu1 %v16120_v3  ;;  %6297 = vmatmul.bf16.gmra.mxu3 %v16120_v3  ;;  %v10654_v47 = vor.u32 %v11635_v45, %v10651_v12  ;;  %v10907_v29 = vld [vmem:[%s18476_s1 + $0xf28] sm:$0xf0]  ;;  %v10905_v45 = vld [vmem:[%s18476_s1 + $0xf08] sm:$0xf]  ;;  %v18912_v12 = vld [vmem:[#allocation69_spill] sm:$0xff] }
 0x642   : > { %v5060_v17 = vpop.f32.mrf.mxu2  ;;  %v10910_v9 = vor.u32 %v11699_v37, %v10907_v29  ;;  %v11591_v29 = vld [vmem:[%s12211_s5 + $0x1a4] sm:$0xf0] }
 0x643   : > { %18909 = vst [vmem:[#allocation66_spill] sm:$0xff] %v16127_v27  ;;  %6434 = vmatpush.bf16.msrb.mxu2 %v10654_v47  ;;  %v10465_v47 = vld [vmem:[%s12211_s5 + $0x1a0] sm:$0xf] }
 0x644   : > { %v5109_v1 = vpop.f32.mrf.mxu3  ;;  %v4964_v26 = vpop.f32.mrf.mxu0  ;;  %6483 = vmatpush.bf16.msrb.mxu3 %v10910_v9  ;;  %v11703_v9 = vld [vmem:[%s18476_s1 + $0xf24] sm:$0xf0] }
 0x645   : > { %v5110_v14 = vadd.f32 %v5109_v1, %v5060_v17  ;;  %v10650_v17 = vor.u32 %v11639_v32, %v10649_v21  ;;  %v11590_v1 = vld [vmem:[%s12211_s5 + $0x1a4] sm:$0xf] }
 0x646   : > { %v5013_v23 = vpop.f32.mrf.mxu1  ;;  %v18914_v21 = vld [vmem:[#allocation70_spill] sm:$0xff] }
 0x647   : > { %v5014_v11 = vadd.f32 %v5013_v23, %v4964_v26  ;;  %v16145_v30 = vadd.f32 %v5110_v14, %v18910_v41  ;;  %v10467_v26 = vld [vmem:[%s12211_s5 + $0x1a8] sm:$0xf0]  ;;  %v10906_v14 = vor.u32 %v11703_v9, %v10905_v45  ;;  %6336 = vmatpush.bf16.msrb.mxu0 %v10650_v17  ;;  %v16166_v41 = vor.u32 %v11591_v29, %v10465_v47 }
 0x648   : > { %v16168_v43 = vor.u32 %v11590_v1, %v10467_v26  ;;  %v11691_v45 = vld [vmem:[%s18476_s1 + $0xecc] sm:$0xf] }
 0x649   : > { %18911 = vst [vmem:[#allocation67_spill] sm:$0xff] %v16145_v30  ;;  %v16157_v37 = vadd.f32 %v5014_v11, %v18912_v12  ;;  %6385 = vmatpush.bf16.msrb.mxu1 %v10906_v14 }
 0x64a   : > { %v5062_v23 = vpop.f32.mrf.mxu2 }
 0x64b   : > { %18913 = vst [vmem:[#allocation68_spill] sm:$0xff] %v16157_v37 }
 0x64c   : > { %v5111_v30 = vpop.f32.mrf.mxu3  ;;  %v4967_v27 = vpop.f32.mrf.mxu0 }
 0x64d   : > { %v5112_v11 = vadd.f32 %v5111_v30, %v5062_v23  ;;  %v11627_v30 = vld [vmem:[%s18476_s1 + $0xccc] sm:$0xf]  ;;  %v18918_v23 = vld [vmem:[#allocation72_spill] sm:$0xff] }
 0x64e   : > { %v5016_v12 = vpop.f32.mrf.mxu1 }
 0x64f   : > { %v5017_v37 = vadd.f32 %v5016_v12, %v4967_v27  ;;  %v16171_v32 = vadd.f32 %v5112_v11, %v18914_v21  ;;  %6155 = vmatmul.bf16.gmra.mxu0 %v16166_v41  ;;  %6253 = vmatmul.bf16.gmra.mxu2 %v16166_v41  ;;  %v10619_v27 = vld [vmem:[%s18476_s1 + $0xce8] sm:$0xf0]  ;;  %v10617_v12 = vld [vmem:[%s18476_s1 + $0xcc8] sm:$0xf] }
 0x650   : > { %v11631_v21 = vld [vmem:[%s18476_s1 + $0xce4] sm:$0xf0] }
 0x651   : > { %18915 = vst [vmem:[#allocation69_spill] sm:$0xff] %v16171_v32  ;;  %v16175_v0 = vadd.f32 %v5017_v37, %v18916_v31  ;;  %6204 = vmatmul.bf16.gmra.mxu1 %v16168_v43  ;;  %6302 = vmatmul.bf16.gmra.mxu3 %v16168_v43  ;;  %v10622_v31 = vor.u32 %v11627_v30, %v10619_v27  ;;  %v10875_v37 = vld [vmem:[%s18476_s1 + $0xee8] sm:$0xf0]  ;;  %v10873_v30 = vld [vmem:[%s18476_s1 + $0xec8] sm:$0xf]  ;;  %v18920_v27 = vld [vmem:[#allocation73_spill] sm:$0xff] }
 0x652   : > { %v5065_v47 = vpop.f32.mrf.mxu2  ;;  %v10878_v29 = vor.u32 %v11691_v45, %v10875_v37  ;;  %v11593_v37 = vld [vmem:[%s12211_s5 + $0x1b4] sm:$0xf0] }
 0x653   : > { %18917 = vst [vmem:[#allocation70_spill] sm:$0xff] %v16175_v0  ;;  %6435 = vmatpush.bf16.msrb.mxu2 %v10622_v31  ;;  %v10473_v31 = vld [vmem:[%s12211_s5 + $0x1b0] sm:$0xf] }
 0x654   : > { %v5114_v17 = vpop.f32.mrf.mxu3  ;;  %v4969_v9 = vpop.f32.mrf.mxu0  ;;  %6484 = vmatpush.bf16.msrb.mxu3 %v10878_v29  ;;  %v11695_v29 = vld [vmem:[%s18476_s1 + $0xee4] sm:$0xf0] }
 0x655   : > { %v5115_v1 = vadd.f32 %v5114_v17, %v5065_v47  ;;  %v10618_v47 = vor.u32 %v11631_v21, %v10617_v12  ;;  %v11592_v17 = vld [vmem:[%s12211_s5 + $0x1b4] sm:$0xf]  ;;  %v18922_v12 = vld [vmem:[#allocation74_spill] sm:$0xff] }
 0x656   : > { %v5018_v26 = vpop.f32.mrf.mxu1 }
 0x657   : > { %v5019_v14 = vadd.f32 %v5018_v26, %v4969_v9  ;;  %v16193_v11 = vadd.f32 %v5115_v1, %v18918_v23  ;;  %v10475_v9 = vld [vmem:[%s12211_s5 + $0x1b8] sm:$0xf0]  ;;  %v10874_v1 = vor.u32 %v11695_v29, %v10873_v30  ;;  %6337 = vmatpush.bf16.msrb.mxu0 %v10618_v47  ;;  %v16214_v23 = vor.u32 %v11593_v37, %v10473_v31  ;;  %v11683_v30 = vld [vmem:[%s18476_s1 + $0xe8c] sm:$0xf] }
 0x658   : > { %v16216_v32 = vor.u32 %v11592_v17, %v10475_v9 }
 0x659   : > { %18919 = vst [vmem:[#allocation71_spill] sm:$0xff] %v16193_v11  ;;  %v16205_v45 = vadd.f32 %v5019_v14, %v18920_v27  ;;  %6386 = vmatpush.bf16.msrb.mxu1 %v10874_v1 }
 0x65a   : > { %v5067_v26 = vpop.f32.mrf.mxu2 }
 0x65b   : > { %18921 = vst [vmem:[#allocation72_spill] sm:$0xff] %v16205_v45 }
 0x65c   : > { %v5116_v11 = vpop.f32.mrf.mxu3  ;;  %v4972_v0 = vpop.f32.mrf.mxu0 }
 0x65d   : > { %v5117_v14 = vadd.f32 %v5116_v11, %v5067_v26  ;;  %v11619_v11 = vld [vmem:[%s18476_s1 + $0xc8c] sm:$0xf]  ;;  %v18926_v26 = vld [vmem:[#allocation76_spill] sm:$0xff] }
 0x65e   : > { %v5021_v27 = vpop.f32.mrf.mxu1 }
 0x65f   : > { %v5022_v45 = vadd.f32 %v5021_v27, %v4972_v0  ;;  %v16219_v21 = vadd.f32 %v5117_v14, %v18922_v12  ;;  %6160 = vmatmul.bf16.gmra.mxu0 %v16214_v23  ;;  %6258 = vmatmul.bf16.gmra.mxu2 %v16214_v23  ;;  %v10587_v0 = vld [vmem:[%s18476_s1 + $0xca8] sm:$0xf0]  ;;  %v10585_v27 = vld [vmem:[%s18476_s1 + $0xc88] sm:$0xf] }
 0x660   : > { %v11623_v12 = vld [vmem:[%s18476_s1 + $0xca4] sm:$0xf0] }
 0x661   : > { %18923 = vst [vmem:[#allocation73_spill] sm:$0xff] %v16219_v21  ;;  %v16223_v49 = vadd.f32 %v5022_v45, %v18924_v63  ;;  %6209 = vmatmul.bf16.gmra.mxu1 %v16216_v32  ;;  %6307 = vmatmul.bf16.gmra.mxu3 %v16216_v32  ;;  %v10590_v63 = vor.u32 %v11619_v11, %v10587_v0  ;;  %v10843_v45 = vld [vmem:[%s18476_s1 + $0xea8] sm:$0xf0]  ;;  %v10841_v11 = vld [vmem:[%s18476_s1 + $0xe88] sm:$0xf]  ;;  %v18928_v0 = vld [vmem:[#allocation77_spill] sm:$0xff] }
 0x662   : > { %v5070_v31 = vpop.f32.mrf.mxu2  ;;  %v10846_v37 = vor.u32 %v11683_v30, %v10843_v45  ;;  %v11595_v45 = vld [vmem:[%s12211_s5 + $0x1c4] sm:$0xf0] }
 0x663   : > { %18925 = vst [vmem:[#allocation74_spill] sm:$0xff] %v16223_v49  ;;  %6436 = vmatpush.bf16.msrb.mxu2 %v10590_v63  ;;  %v10481_v63 = vld [vmem:[%s12211_s5 + $0x1c0] sm:$0xf] }
 0x664   : > { %v5119_v47 = vpop.f32.mrf.mxu3  ;;  %v4974_v29 = vpop.f32.mrf.mxu0  ;;  %6485 = vmatpush.bf16.msrb.mxu3 %v10846_v37  ;;  %v11687_v37 = vld [vmem:[%s18476_s1 + $0xea4] sm:$0xf0] }
 0x665   : > { %v5120_v17 = vadd.f32 %v5119_v47, %v5070_v31  ;;  %v10586_v31 = vor.u32 %v11623_v12, %v10585_v27  ;;  %v11594_v47 = vld [vmem:[%s12211_s5 + $0x1c4] sm:$0xf] }
 0x666   : > { %v5023_v9 = vpop.f32.mrf.mxu1  ;;  %v18930_v27 = vld [vmem:[#allocation78_spill] sm:$0xff] }
 0x667   : > { %v5024_v1 = vadd.f32 %v5023_v9, %v4974_v29  ;;  %v16241_v14 = vadd.f32 %v5120_v17, %v18926_v26  ;;  %v10483_v29 = vld [vmem:[%s12211_s5 + $0x1c8] sm:$0xf0]  ;;  %v10842_v17 = vor.u32 %v11687_v37, %v10841_v11  ;;  %6338 = vmatpush.bf16.msrb.mxu0 %v10586_v31  ;;  %v16262_v26 = vor.u32 %v11595_v45, %v10481_v63 }
 0x668   : > { %v16264_v21 = vor.u32 %v11594_v47, %v10483_v29  ;;  %v11675_v11 = vld [vmem:[%s18476_s1 + $0xe4c] sm:$0xf] }
 0x669   : > { %18927 = vst [vmem:[#allocation75_spill] sm:$0xff] %v16241_v14  ;;  %v16253_v30 = vadd.f32 %v5024_v1, %v18928_v0  ;;  %6387 = vmatpush.bf16.msrb.mxu1 %v10842_v17 }
 0x66a   : > { %v5072_v9 = vpop.f32.mrf.mxu2 }
 0x66b   : > { %18929 = vst [vmem:[#allocation76_spill] sm:$0xff] %v16253_v30 }
 0x66c   : > { %v5121_v14 = vpop.f32.mrf.mxu3  ;;  %v4977_v49 = vpop.f32.mrf.mxu0 }
 0x66d   : > { %v5122_v1 = vadd.f32 %v5121_v14, %v5072_v9  ;;  %v11611_v14 = vld [vmem:[%s18476_s1 + $0xc4c] sm:$0xf]  ;;  %v18934_v9 = vld [vmem:[#allocation80_spill] sm:$0xff] }
 0x66e   : > { %v5026_v0 = vpop.f32.mrf.mxu1 }
 0x66f   : > { %v5027_v30 = vadd.f32 %v5026_v0, %v4977_v49  ;;  %v16267_v12 = vadd.f32 %v5122_v1, %v18930_v27  ;;  %6165 = vmatmul.bf16.gmra.mxu0 %v16262_v26  ;;  %6263 = vmatmul.bf16.gmra.mxu2 %v16262_v26  ;;  %v10555_v49 = vld [vmem:[%s18476_s1 + $0xc68] sm:$0xf0]  ;;  %v10553_v0 = vld [vmem:[%s18476_s1 + $0xc48] sm:$0xf] }
 0x670   : > { %v11615_v27 = vld [vmem:[%s18476_s1 + $0xc64] sm:$0xf0] }
 0x671   : > { %18931 = vst [vmem:[#allocation77_spill] sm:$0xff] %v16267_v12  ;;  %v16271_v44 = vadd.f32 %v5027_v30, %v18932_v62  ;;  %6214 = vmatmul.bf16.gmra.mxu1 %v16264_v21  ;;  %6312 = vmatmul.bf16.gmra.mxu3 %v16264_v21  ;;  %v10558_v62 = vor.u32 %v11611_v14, %v10555_v49  ;;  %v10811_v30 = vld [vmem:[%s18476_s1 + $0xe68] sm:$0xf0]  ;;  %v10809_v14 = vld [vmem:[%s18476_s1 + $0xe48] sm:$0xf]  ;;  %v18936_v49 = vld [vmem:[#allocation81_spill] sm:$0xff] }
 0x672   : > { %v5075_v63 = vpop.f32.mrf.mxu2  ;;  %v10814_v45 = vor.u32 %v11675_v11, %v10811_v30  ;;  %v11597_v30 = vld [vmem:[%s12211_s5 + $0x1d4] sm:$0xf0] }
 0x673   : > { %18933 = vst [vmem:[#allocation78_spill] sm:$0xff] %v16271_v44  ;;  %6437 = vmatpush.bf16.msrb.mxu2 %v10558_v62  ;;  %v10489_v62 = vld [vmem:[%s12211_s5 + $0x1d0] sm:$0xf] }
 0x674   : > { %v5124_v31 = vpop.f32.mrf.mxu3  ;;  %v4979_v37 = vpop.f32.mrf.mxu0  ;;  %6486 = vmatpush.bf16.msrb.mxu3 %v10814_v45  ;;  %v11679_v45 = vld [vmem:[%s18476_s1 + $0xe64] sm:$0xf0] }
 0x675   : > { %v5125_v47 = vadd.f32 %v5124_v31, %v5075_v63  ;;  %v10554_v63 = vor.u32 %v11615_v27, %v10553_v0  ;;  %v11596_v31 = vld [vmem:[%s12211_s5 + $0x1d4] sm:$0xf]  ;;  %v18938_v0 = vld [vmem:[#allocation82_spill] sm:$0xff] }
 0x676   : > { %v5028_v29 = vpop.f32.mrf.mxu1 }
 0x677   : > { %v5029_v17 = vadd.f32 %v5028_v29, %v4979_v37  ;;  %v16289_v1 = vadd.f32 %v5125_v47, %v18934_v9  ;;  %v10491_v37 = vld [vmem:[%s12211_s5 + $0x1d8] sm:$0xf0]  ;;  %v10810_v47 = vor.u32 %v11679_v45, %v10809_v14  ;;  %6339 = vmatpush.bf16.msrb.mxu0 %v10554_v63  ;;  %v16310_v9 = vor.u32 %v11597_v30, %v10489_v62  ;;  %v11667_v14 = vld [vmem:[%s18476_s1 + $0xe0c] sm:$0xf] }
 0x678   : > { %v16312_v12 = vor.u32 %v11596_v31, %v10491_v37 }
 0x679   : > { %18935 = vst [vmem:[#allocation79_spill] sm:$0xff] %v16289_v1  ;;  %v16301_v11 = vadd.f32 %v5029_v17, %v18936_v49  ;;  %6388 = vmatpush.bf16.msrb.mxu1 %v10810_v47 }
 0x67a   : > { %v5077_v29 = vpop.f32.mrf.mxu2 }
 0x67b   : > { %18937 = vst [vmem:[#allocation80_spill] sm:$0xff] %v16301_v11 }
 0x67c   : > { %v5126_v1 = vpop.f32.mrf.mxu3  ;;  %v4982_v44 = vpop.f32.mrf.mxu0 }
 0x67d   : > { %v5127_v17 = vadd.f32 %v5126_v1, %v5077_v29  ;;  %v11603_v1 = vld [vmem:[%s18476_s1 + $0xc0c] sm:$0xf]  ;;  %v18942_v29 = vld [vmem:[#allocation84_spill] sm:$0xff] }
 0x67e   : > { %v5031_v49 = vpop.f32.mrf.mxu1 }
 0x67f   : > { %v5032_v11 = vadd.f32 %v5031_v49, %v4982_v44  ;;  %v16315_v27 = vadd.f32 %v5127_v17, %v18938_v0  ;;  %6170 = vmatmul.bf16.gmra.mxu0 %v16310_v9  ;;  %6268 = vmatmul.bf16.gmra.mxu2 %v16310_v9  ;;  %v10523_v44 = vld [vmem:[%s18476_s1 + $0xc28] sm:$0xf0]  ;;  %v10521_v49 = vld [vmem:[%s18476_s1 + $0xc08] sm:$0xf] }
 0x680   : > { %v11607_v0 = vld [vmem:[%s18476_s1 + $0xc24] sm:$0xf0] }
 0x681   : > { %18939 = vst [vmem:[#allocation81_spill] sm:$0xff] %v16315_v27  ;;  %v16319_v50 = vadd.f32 %v5032_v11, %v18940_v52  ;;  %6219 = vmatmul.bf16.gmra.mxu1 %v16312_v12  ;;  %6317 = vmatmul.bf16.gmra.mxu3 %v16312_v12  ;;  %v10526_v52 = vor.u32 %v11603_v1, %v10523_v44  ;;  %v10779_v11 = vld [vmem:[%s18476_s1 + $0xe28] sm:$0xf0]  ;;  %v10777_v1 = vld [vmem:[%s18476_s1 + $0xe08] sm:$0xf]  ;;  %v18944_v44 = vld [vmem:[#allocation85_spill] sm:$0xff] }
 0x682   : > { %v5080_v62 = vpop.f32.mrf.mxu2  ;;  %v10782_v30 = vor.u32 %v11667_v14, %v10779_v11  ;;  %v11599_v11 = vld [vmem:[%s12211_s5 + $0x1e4] sm:$0xf0] }
 0x683   : > { %18941 = vst [vmem:[#allocation82_spill] sm:$0xff] %v16319_v50  ;;  %6438 = vmatpush.bf16.msrb.mxu2 %v10526_v52  ;;  %v10497_v52 = vld [vmem:[%s12211_s5 + $0x1e0] sm:$0xf] }
 0x684   : > { %v5129_v63 = vpop.f32.mrf.mxu3  ;;  %v4984_v45 = vpop.f32.mrf.mxu0  ;;  %6487 = vmatpush.bf16.msrb.mxu3 %v10782_v30  ;;  %v11671_v30 = vld [vmem:[%s18476_s1 + $0xe24] sm:$0xf0] }
 0x685   : > { %v5130_v31 = vadd.f32 %v5129_v63, %v5080_v62  ;;  %v10522_v62 = vor.u32 %v11607_v0, %v10521_v49  ;;  %v11598_v63 = vld [vmem:[%s12211_s5 + $0x1e4] sm:$0xf] }
 0x686   : > { %v5033_v37 = vpop.f32.mrf.mxu1  ;;  %v18946_v49 = vld [vmem:[#allocation86_spill] sm:$0xff] }
 0x687   : > { %v5034_v47 = vadd.f32 %v5033_v37, %v4984_v45  ;;  %v16337_v17 = vadd.f32 %v5130_v31, %v18942_v29  ;;  %v10499_v45 = vld [vmem:[%s12211_s5 + $0x1e8] sm:$0xf0]  ;;  %v10778_v31 = vor.u32 %v11671_v30, %v10777_v1  ;;  %6340 = vmatpush.bf16.msrb.mxu0 %v10522_v62  ;;  %v16358_v29 = vor.u32 %v11599_v11, %v10497_v52  ;;  %v11011_v52 = vld [vmem:[%s18476_s1 + $0xff0] sm:$0xf0] }
 0x688   : > { %v16360_v27 = vor.u32 %v11598_v63, %v10499_v45 }
 0x689   : > { %18943 = vst [vmem:[#allocation83_spill] sm:$0xff] %v16337_v17  ;;  %v16349_v14 = vadd.f32 %v5034_v47, %v18944_v44  ;;  %6389 = vmatpush.bf16.msrb.mxu1 %v10778_v31 }
 0x68a   : > { %v5082_v37 = vpop.f32.mrf.mxu2 }
 0x68b   : > { %18945 = vst [vmem:[#allocation84_spill] sm:$0xff] %v16349_v14 }
 0x68c   : > { %v5131_v17 = vpop.f32.mrf.mxu3  ;;  %v4987_v50 = vpop.f32.mrf.mxu0 }
 0x68d   : > { %v5132_v47 = vadd.f32 %v5131_v17, %v5082_v37  ;;  %v11660_v17 = vld [vmem:[%s18476_s1 + $0xdd4] sm:$0xf] }
 0x68e   : > { %v5036_v44 = vpop.f32.mrf.mxu1  ;;  %v18950_v37 = vld [vmem:[#allocation88_spill] sm:$0xff] }
 0x68f   : > { %v5037_v14 = vadd.f32 %v5036_v44, %v4987_v50  ;;  %v16363_v0 = vadd.f32 %v5132_v47, %v18946_v49  ;;  %6175 = vmatmul.bf16.gmra.mxu0 %v16358_v29  ;;  %6273 = vmatmul.bf16.gmra.mxu2 %v16358_v29  ;;  %v10755_v50 = vld [vmem:[%s18476_s1 + $0xdf0] sm:$0xf0]  ;;  %v10505_v44 = vld [vmem:[%s12211_s5 + $0x1f0] sm:$0xf]  ;;  %v18952_v49 = vld [vmem:[#allocation89_spill] sm:$0xff] }
 0x691   : > { %18947 = vst [vmem:[#allocation85_spill] sm:$0xff] %v16363_v0  ;;  %v16367_v5 = vadd.f32 %v5037_v14, %v18948_v2  ;;  %6224 = vmatmul.bf16.gmra.mxu1 %v16360_v27  ;;  %6322 = vmatmul.bf16.gmra.mxu3 %v16360_v27  ;;  %v11724_v2 = vld [vmem:[%s18476_s1 + $0xfd4] sm:$0xf]  ;;  %v10758_v14 = vor.u32 %v11660_v17, %v10755_v50  ;;  %v11601_v17 = vld [vmem:[%s12211_s5 + $0x1f4] sm:$0xf0] }
 0x692   : > { %v5085_v1 = vpop.f32.mrf.mxu2  ;;  %v11014_v30 = vor.u32 %v11724_v2, %v11011_v52  ;;  %v11600_v50 = vld [vmem:[%s12211_s5 + $0x1f4] sm:$0xf]  ;;  %v10507_v0 = vld [vmem:[%s12211_s5 + $0x1f8] sm:$0xf0]  ;;  %v11664_v2 = vld [vmem:[%s18476_s1 + $0xdec] sm:$0xf0] }
 0x693   : > { %18949 = vst [vmem:[#allocation86_spill] sm:$0xff] %v16367_v5  ;;  %6627 = vmatpush.bf16.msra.mxu2 %v10758_v14  ;;  %v10754_v14 = vor.u32 %v11664_v2, %v10753_v34  ;;  %v11728_v52 = vld [vmem:[%s18476_s1 + $0xfec] sm:$0xf0] }
 0x694   : > { %v5134_v11 = vpop.f32.mrf.mxu3  ;;  %v4989_v62 = vpop.f32.mrf.mxu0  ;;  %6676 = vmatpush.bf16.msra.mxu3 %v11014_v30 }
 0x695   : > { %v5135_v63 = vadd.f32 %v5134_v11, %v5085_v1  ;;  %v11009_v1 = vld [vmem:[%s18476_s1 + $0xfd0] sm:$0xf]  ;;  %6529 = vmatpush.bf16.msra.mxu0 %v10754_v14 }
 0x696   : > { %v5038_v45 = vpop.f32.mrf.mxu1  ;;  %v11010_v30 = vor.u32 %v11728_v52, %v11009_v1 }
 0x697   : > { %v5039_v31 = vadd.f32 %v5038_v45, %v4989_v62  ;;  %v16385_v47 = vadd.f32 %v5135_v63, %v18950_v37  ;;  %v16406_v62 = vor.u32 %v11601_v17, %v10505_v44  ;;  %v11716_v44 = vld [vmem:[%s18476_s1 + $0xf94] sm:$0xf] }
 0x698   : > { %6578 = vmatpush.bf16.msra.mxu1 %v11010_v30  ;;  %v10979_v17 = vld [vmem:[%s18476_s1 + $0xfb0] sm:$0xf0] }
 0x699   : > { %18951 = vst [vmem:[#allocation87_spill] sm:$0xff] %v16385_v47  ;;  %v16389_v5 = vadd.f32 %v5039_v31, %v18952_v49  ;;  %v16408_v31 = vor.u32 %v11600_v50, %v10507_v0  ;;  %v11652_v0 = vld [vmem:[%s18476_s1 + $0xd94] sm:$0xf]  ;;  %v10982_v1 = vor.u32 %v11716_v44, %v10979_v17 }
 0x69a   : > { %v5087_v11 = vpop.f32.mrf.mxu2 }
 0x69b   : > { %18953 = vst [vmem:[#allocation88_spill] sm:$0xff] %v16389_v5  ;;  %6677 = vmatpush.bf16.msra.mxu3 %v10982_v1 }
 0x69c   : > { %v5136_v63 = vpop.f32.mrf.mxu3  ;;  %v4992_v45 = vpop.f32.mrf.mxu0 }
 0x69d   : > { %v5137_v37 = vadd.f32 %v5136_v63, %v5087_v11  ;;  %v18957_v63 = vld [vmem:[#allocation90_spill] sm:$0xff] }
 0x69e   : > { %v5041_v49 = vpop.f32.mrf.mxu1 }
 0x69f   : > { %v5042_v5 = vadd.f32 %v5041_v49, %v4992_v45  ;;  %v16411_v47 = vadd.f32 %v5137_v37, %v15068_v42  ;;  %6180 = vmatmul.bf16.gmra.mxu0 %v16406_v62  ;;  %6278 = vmatmul.bf16.gmra.mxu2 %v16406_v62  ;;  %v10723_v42 = vld [vmem:[%s18476_s1 + $0xdb0] sm:$0xf0]  ;;  %v10721_v37 = vld [vmem:[%s18476_s1 + $0xd90] sm:$0xf] }
 0x6a0   : > { %v11656_v49 = vld [vmem:[%s18476_s1 + $0xdac] sm:$0xf0] }
 0x6a1   : > { %18954 = vst [vmem:[#allocation89_spill] sm:$0xff] %v16411_v47  ;;  %v16415_v34 = vadd.f32 %v5042_v5, %v15070_v57  ;;  %6229 = vmatmul.bf16.gmra.mxu1 %v16408_v31  ;;  %6327 = vmatmul.bf16.gmra.mxu3 %v16408_v31  ;;  %v10726_v5 = vor.u32 %v11652_v0, %v10723_v42  ;;  %v10977_v0 = vld [vmem:[%s18476_s1 + $0xf90] sm:$0xf]  ;;  %v18969_v47 = vld [vmem:[#allocation98_spill] sm:$0xff] }
 0x6a2   : > { %v5090_v57 = vpop.f32.mrf.mxu2  ;;  %v10722_v42 = vor.u32 %v11656_v49, %v10721_v37  ;;  %v11644_v37 = vld [vmem:[%s18476_s1 + $0xd54] sm:$0xf] }
 0x6a3   : > { %18955 = vst [vmem:[#allocation100_spill] sm:$0xff] %v16415_v34  ;;  %6628 = vmatpush.bf16.msra.mxu2 %v10726_v5  ;;  %v10691_v49 = vld [vmem:[%s18476_s1 + $0xd70] sm:$0xf0] }
 0x6a4   : > { %v5139_v50 = vpop.f32.mrf.mxu3  ;;  %v4994_v2 = vpop.f32.mrf.mxu0  ;;  %6530 = vmatpush.bf16.msra.mxu0 %v10722_v42 }
 0x6a5   : > { %v5140_v14 = vadd.f32 %v5139_v50, %v5090_v57 }
 0x6a6   : > { %v5043_v52 = vpop.f32.mrf.mxu1 }
 0x6a7   : > { %v5044_v11 = vadd.f32 %v5043_v52, %v4994_v2  ;;  %v16433_v30 = vadd.f32 %v5140_v14, %v15090_v40  ;;  %v11720_v40 = vld [vmem:[%s18476_s1 + $0xfac] sm:$0xf0]  ;;  %v18959_v14 = vld [vmem:[#allocation91_spill] sm:$0xff] }
 0x6a8   : > { %v10978_v57 = vor.u32 %v11720_v40, %v10977_v0  ;;  %v11708_v0 = vld [vmem:[%s18476_s1 + $0xf54] sm:$0xf]  ;;  %v10694_v40 = vor.u32 %v11644_v37, %v10691_v49  ;;  %v10689_v37 = vld [vmem:[%s18476_s1 + $0xd50] sm:$0xf] }
 0x6a9   : > { %18956 = vst [vmem:[#allocation101_spill] sm:$0xff] %v16433_v30  ;;  %v16436_v45 = vadd.f32 %v5044_v11, %v18957_v63  ;;  %v18961_v11 = vld [vmem:[#allocation92_spill] sm:$0xff] }
 0x6aa   : > { %v5092_v44 = vpop.f32.mrf.mxu2  ;;  %6579 = vmatpush.bf16.msra.mxu1 %v10978_v57  ;;  %6629 = vmatpush.bf16.msra.mxu2 %v10694_v40  ;;  %v11648_v49 = vld [vmem:[%s18476_s1 + $0xd6c] sm:$0xf0] }
 0x6ab   : > { %18958 = vst [vmem:[#allocation90_spill] sm:$0xff] %v16436_v45  ;;  %v11712_v40 = vld [vmem:[%s18476_s1 + $0xf6c] sm:$0xf0] }
 0x6ac   : > { %v5141_v5 = vpop.f32.mrf.mxu3  ;;  %v6146_v17 = vpop.f32.mrf.mxu0  ;;  %v18965_v30 = vld [vmem:[#allocation96_spill] sm:$0xff] }
 0x6ad   : > { %v5142_v50 = vadd.f32 %v5141_v5, %v5092_v44  ;;  %v10947_v44 = vld [vmem:[%s18476_s1 + $0xf70] sm:$0xf0] }
 0x6ae   : > { %v6195_v2 = vpop.f32.mrf.mxu1 }
 0x6af   : > { %v6196_v1 = vadd.f32 %v6195_v2, %v6146_v17  ;;  %v16451_v52 = vadd.f32 %v5142_v50, %v18959_v14  ;;  %6341 = vmatmul.bf16.vlgmr.msrb.gmra.mxu0 %v16070_v10  ;;  %6439 = vmatmul.bf16.vlgmr.msrb.gmra.mxu2 %v16070_v10  ;;  %v10950_v17 = vor.u32 %v11708_v0, %v10947_v44  ;;  %v18962_v14 = vld [vmem:[#allocation93_spill] sm:$0xff]  ;;  %v10945_v0 = vld [vmem:[%s18476_s1 + $0xf50] sm:$0xf] }
 0x6b1   : > { %18960 = vst [vmem:[#allocation91_spill] sm:$0xff] %v16451_v52  ;;  %v16455_v63 = vadd.f32 %v6196_v1, %v18961_v11  ;;  %6390 = vmatmul.bf16.vlgmr.msrb.gmra.mxu1 %v16072_v48  ;;  %6488 = vmatmul.bf16.vlgmr.msrb.gmra.mxu3 %v16072_v48 }
 0x6b2   : > { %v6244_v42 = vpop.f32.mrf.mxu2  ;;  %6678 = vmatpush.bf16.msra.mxu3 %v10950_v17 }
 0x6b4   : > { %v6293_v57 = vpop.f32.mrf.mxu3  ;;  %v6148_v5 = vpop.f32.mrf.mxu0 }
 0x6b5   : > { %v6294_v50 = vadd.f32 %v6293_v57, %v6244_v42  ;;  %v10690_v42 = vor.u32 %v11648_v49, %v10689_v37  ;;  %v11636_v37 = vld [vmem:[%s18476_s1 + $0xd14] sm:$0xf] }
 0x6b6   : > { %v6197_v2 = vpop.f32.mrf.mxu1  ;;  %v11700_v49 = vld [vmem:[%s18476_s1 + $0xf14] sm:$0xf] }
 0x6b7   : > { %v6198_v1 = vadd.f32 %v6197_v2, %v6148_v5  ;;  %v16473_v11 = vadd.f32 %v6294_v50, %v18962_v14  ;;  %6531 = vmatpush.bf16.msra.mxu0 %v10690_v42  ;;  %v10915_v42 = vld [vmem:[%s18476_s1 + $0xf30] sm:$0xf0] }
 0x6b9   : > { %v16476_v52 = vadd.f32 %v6198_v1, %v15141_v16  ;;  %v10946_v16 = vor.u32 %v11712_v40, %v10945_v0 }
 0x6ba   : > { %v6246_v44 = vpop.f32.mrf.mxu2 }
 0x6bb   : > { %6580 = vmatpush.bf16.msra.mxu1 %v10946_v16  ;;  %v10918_v16 = vor.u32 %v11700_v49, %v10915_v42  ;;  %v10913_v49 = vld [vmem:[%s18476_s1 + $0xf10] sm:$0xf] }
 0x6bc   : > { %v6295_v57 = vpop.f32.mrf.mxu3  ;;  %v6151_v5 = vpop.f32.mrf.mxu0 }
 0x6bd   : > { %v6296_v17 = vadd.f32 %v6295_v57, %v6246_v44  ;;  %6679 = vmatpush.bf16.msra.mxu3 %v10918_v16 }
 0x6be   : > { %v6200_v50 = vpop.f32.mrf.mxu1 }
 0x6bf   : > { %v6201_v2 = vadd.f32 %v6200_v50, %v6151_v5  ;;  %v16491_v1 = vadd.f32 %v6296_v17, %v15147_v15  ;;  %6346 = vmatmul.bf16.gmra.mxu0 %v16118_v4  ;;  %6444 = vmatmul.bf16.gmra.mxu2 %v16118_v4  ;;  %v10659_v15 = vld [vmem:[%s18476_s1 + $0xd30] sm:$0xf0] }
 0x6c0   : > { %v10662_v0 = vor.u32 %v11636_v37, %v10659_v15  ;;  %v10657_v37 = vld [vmem:[%s18476_s1 + $0xd10] sm:$0xf] }
 0x6c1   : > { %v16495_v14 = vadd.f32 %v6201_v2, %v15151_v24  ;;  %6395 = vmatmul.bf16.gmra.mxu1 %v16120_v3  ;;  %6493 = vmatmul.bf16.gmra.mxu3 %v16120_v3  ;;  %v11640_v15 = vld [vmem:[%s18476_s1 + $0xd2c] sm:$0xf0] }
 0x6c2   : > { %v6249_v24 = vpop.f32.mrf.mxu2  ;;  %6630 = vmatpush.bf16.msra.mxu2 %v10662_v0 }
 0x6c4   : > { %v6298_v40 = vpop.f32.mrf.mxu3  ;;  %v6153_v44 = vpop.f32.mrf.mxu0 }
 0x6c5   : > { %v6299_v57 = vadd.f32 %v6298_v40, %v6249_v24  ;;  %v10658_v24 = vor.u32 %v11640_v15, %v10657_v37  ;;  %v11628_v37 = vld [vmem:[%s18476_s1 + $0xcd4] sm:$0xf] }
 0x6c6   : > { %v6202_v5 = vpop.f32.mrf.mxu1  ;;  %v11692_v15 = vld [vmem:[%s18476_s1 + $0xed4] sm:$0xf] }
 0x6c7   : > { %v6203_v17 = vadd.f32 %v6202_v5, %v6153_v44  ;;  %v16513_v50 = vadd.f32 %v6299_v57, %v15169_v53  ;;  %v11704_v53 = vld [vmem:[%s18476_s1 + $0xf2c] sm:$0xf0]  ;;  %6532 = vmatpush.bf16.msra.mxu0 %v10658_v24  ;;  %v10883_v24 = vld [vmem:[%s18476_s1 + $0xef0] sm:$0xf0] }
 0x6c9   : > { %v16516_v2 = vadd.f32 %v6203_v17, %v15181_v6  ;;  %v10914_v6 = vor.u32 %v11704_v53, %v10913_v49 }
 0x6ca   : > { %v6251_v0 = vpop.f32.mrf.mxu2 }
 0x6cb   : > { %6581 = vmatpush.bf16.msra.mxu1 %v10914_v6  ;;  %v10886_v6 = vor.u32 %v11692_v15, %v10883_v24  ;;  %v10881_v15 = vld [vmem:[%s18476_s1 + $0xed0] sm:$0xf] }
 0x6cc   : > { %v6300_v42 = vpop.f32.mrf.mxu3  ;;  %v6156_v40 = vpop.f32.mrf.mxu0 }
 0x6cd   : > { %v6301_v44 = vadd.f32 %v6300_v42, %v6251_v0  ;;  %6680 = vmatpush.bf16.msra.mxu3 %v10886_v6 }
 0x6ce   : > { %v6205_v16 = vpop.f32.mrf.mxu1 }
 0x6cf   : > { %v6206_v57 = vadd.f32 %v6205_v16, %v6156_v40  ;;  %v16531_v5 = vadd.f32 %v6301_v44, %v15187_v7  ;;  %6351 = vmatmul.bf16.gmra.mxu0 %v16166_v41  ;;  %6449 = vmatmul.bf16.gmra.mxu2 %v16166_v41  ;;  %v10627_v7 = vld [vmem:[%s18476_s1 + $0xcf0] sm:$0xf0] }
 0x6d0   : > { %v10630_v49 = vor.u32 %v11628_v37, %v10627_v7  ;;  %v10625_v37 = vld [vmem:[%s18476_s1 + $0xcd0] sm:$0xf] }
 0x6d1   : > { %v16535_v17 = vadd.f32 %v6206_v57, %v15191_v56  ;;  %6400 = vmatmul.bf16.gmra.mxu1 %v16168_v43  ;;  %6498 = vmatmul.bf16.gmra.mxu3 %v16168_v43  ;;  %v11632_v7 = vld [vmem:[%s18476_s1 + $0xcec] sm:$0xf0] }
 0x6d2   : > { %v6254_v56 = vpop.f32.mrf.mxu2  ;;  %6631 = vmatpush.bf16.msra.mxu2 %v10630_v49 }
 0x6d4   : > { %v6303_v53 = vpop.f32.mrf.mxu3  ;;  %v6158_v0 = vpop.f32.mrf.mxu0 }
 0x6d5   : > { %v6304_v42 = vadd.f32 %v6303_v53, %v6254_v56  ;;  %v10626_v56 = vor.u32 %v11632_v7, %v10625_v37  ;;  %v11620_v37 = vld [vmem:[%s18476_s1 + $0xc94] sm:$0xf] }
 0x6d6   : > { %v6207_v40 = vpop.f32.mrf.mxu1  ;;  %v11684_v7 = vld [vmem:[%s18476_s1 + $0xe94] sm:$0xf] }
 0x6d7   : > { %v6208_v44 = vadd.f32 %v6207_v40, %v6158_v0  ;;  %v16553_v16 = vadd.f32 %v6304_v42, %v15209_v54  ;;  %v11696_v54 = vld [vmem:[%s18476_s1 + $0xeec] sm:$0xf0]  ;;  %6533 = vmatpush.bf16.msra.mxu0 %v10626_v56  ;;  %v10851_v56 = vld [vmem:[%s18476_s1 + $0xeb0] sm:$0xf0] }
 0x6d9   : > { %v16556_v57 = vadd.f32 %v6208_v44, %v15221_v59  ;;  %v10882_v59 = vor.u32 %v11696_v54, %v10881_v15 }
 0x6da   : > { %v6256_v49 = vpop.f32.mrf.mxu2 }
 0x6db   : > { %6582 = vmatpush.bf16.msra.mxu1 %v10882_v59  ;;  %v10854_v59 = vor.u32 %v11684_v7, %v10851_v56  ;;  %v10849_v7 = vld [vmem:[%s18476_s1 + $0xe90] sm:$0xf] }
 0x6dc   : > { %v6305_v24 = vpop.f32.mrf.mxu3  ;;  %v6161_v53 = vpop.f32.mrf.mxu0 }
 0x6dd   : > { %v6306_v0 = vadd.f32 %v6305_v24, %v6256_v49  ;;  %6681 = vmatpush.bf16.msra.mxu3 %v10854_v59 }
 0x6de   : > { %v6210_v6 = vpop.f32.mrf.mxu1 }
 0x6df   : > { %v6211_v42 = vadd.f32 %v6210_v6, %v6161_v53  ;;  %v16571_v40 = vadd.f32 %v6306_v0, %v15227_v28  ;;  %6356 = vmatmul.bf16.gmra.mxu0 %v16214_v23  ;;  %6454 = vmatmul.bf16.gmra.mxu2 %v16214_v23  ;;  %v10595_v28 = vld [vmem:[%s18476_s1 + $0xcb0] sm:$0xf0] }
 0x6e0   : > { %v10598_v15 = vor.u32 %v11620_v37, %v10595_v28  ;;  %v10593_v37 = vld [vmem:[%s18476_s1 + $0xc90] sm:$0xf] }
 0x6e1   : > { %v16575_v44 = vadd.f32 %v6211_v42, %v15231_v22  ;;  %6405 = vmatmul.bf16.gmra.mxu1 %v16216_v32  ;;  %6503 = vmatmul.bf16.gmra.mxu3 %v16216_v32  ;;  %v11624_v28 = vld [vmem:[%s18476_s1 + $0xcac] sm:$0xf0] }
 0x6e2   : > { %v6259_v22 = vpop.f32.mrf.mxu2  ;;  %6632 = vmatpush.bf16.msra.mxu2 %v10598_v15 }
 0x6e4   : > { %v6308_v54 = vpop.f32.mrf.mxu3  ;;  %v6163_v49 = vpop.f32.mrf.mxu0 }
 0x6e5   : > { %v6309_v24 = vadd.f32 %v6308_v54, %v6259_v22  ;;  %v10594_v22 = vor.u32 %v11624_v28, %v10593_v37  ;;  %v11612_v37 = vld [vmem:[%s18476_s1 + $0xc54] sm:$0xf] }
 0x6e6   : > { %v6212_v53 = vpop.f32.mrf.mxu1  ;;  %v11676_v28 = vld [vmem:[%s18476_s1 + $0xe54] sm:$0xf] }
 0x6e7   : > { %v6213_v0 = vadd.f32 %v6212_v53, %v6163_v49  ;;  %v16593_v6 = vadd.f32 %v6309_v24, %v15249_v35  ;;  %v11688_v35 = vld [vmem:[%s18476_s1 + $0xeac] sm:$0xf0]  ;;  %6534 = vmatpush.bf16.msra.mxu0 %v10594_v22  ;;  %v10819_v22 = vld [vmem:[%s18476_s1 + $0xe70] sm:$0xf0] }
 0x6e9   : > { %v16596_v42 = vadd.f32 %v6213_v0, %v15261_v51  ;;  %v10850_v51 = vor.u32 %v11688_v35, %v10849_v7 }
 0x6ea   : > { %v6261_v15 = vpop.f32.mrf.mxu2 }
 0x6eb   : > { %6583 = vmatpush.bf16.msra.mxu1 %v10850_v51  ;;  %v10822_v51 = vor.u32 %v11676_v28, %v10819_v22  ;;  %v10817_v28 = vld [vmem:[%s18476_s1 + $0xe50] sm:$0xf] }
 0x6ec   : > { %v6310_v56 = vpop.f32.mrf.mxu3  ;;  %v6166_v54 = vpop.f32.mrf.mxu0 }
 0x6ed   : > { %v6311_v49 = vadd.f32 %v6310_v56, %v6261_v15  ;;  %6682 = vmatpush.bf16.msra.mxu3 %v10822_v51 }
 0x6ee   : > { %v6215_v59 = vpop.f32.mrf.mxu1 }
 0x6ef   : > { %v6216_v24 = vadd.f32 %v6215_v59, %v6166_v54  ;;  %v16611_v53 = vadd.f32 %v6311_v49, %v15267_v33  ;;  %6361 = vmatmul.bf16.gmra.mxu0 %v16262_v26  ;;  %6459 = vmatmul.bf16.gmra.mxu2 %v16262_v26  ;;  %v10563_v33 = vld [vmem:[%s18476_s1 + $0xc70] sm:$0xf0] }
 0x6f0   : > { %v10566_v7 = vor.u32 %v11612_v37, %v10563_v33  ;;  %v10561_v37 = vld [vmem:[%s18476_s1 + $0xc50] sm:$0xf] }
 0x6f1   : > { %v16615_v0 = vadd.f32 %v6216_v24, %v15271_v61  ;;  %6410 = vmatmul.bf16.gmra.mxu1 %v16264_v21  ;;  %6508 = vmatmul.bf16.gmra.mxu3 %v16264_v21  ;;  %v11616_v33 = vld [vmem:[%s18476_s1 + $0xc6c] sm:$0xf0] }
 0x6f2   : > { %v6264_v61 = vpop.f32.mrf.mxu2  ;;  %6633 = vmatpush.bf16.msra.mxu2 %v10566_v7 }
 0x6f4   : > { %v6313_v35 = vpop.f32.mrf.mxu3  ;;  %v6168_v15 = vpop.f32.mrf.mxu0 }
 0x6f5   : > { %v6314_v56 = vadd.f32 %v6313_v35, %v6264_v61  ;;  %v10562_v61 = vor.u32 %v11616_v33, %v10561_v37  ;;  %v11604_v37 = vld [vmem:[%s18476_s1 + $0xc14] sm:$0xf] }
 0x6f6   : > { %v6217_v54 = vpop.f32.mrf.mxu1  ;;  %v11668_v33 = vld [vmem:[%s18476_s1 + $0xe14] sm:$0xf] }
 0x6f7   : > { %v6218_v49 = vadd.f32 %v6217_v54, %v6168_v15  ;;  %v16633_v59 = vadd.f32 %v6314_v56, %v15289_v38  ;;  %v11680_v38 = vld [vmem:[%s18476_s1 + $0xe6c] sm:$0xf0]  ;;  %6535 = vmatpush.bf16.msra.mxu0 %v10562_v61  ;;  %v10787_v61 = vld [vmem:[%s18476_s1 + $0xe30] sm:$0xf0] }
 0x6f9   : > { %v16636_v24 = vadd.f32 %v6218_v49, %v15301_v20  ;;  %v10818_v20 = vor.u32 %v11680_v38, %v10817_v28 }
 0x6fa   : > { %v6266_v7 = vpop.f32.mrf.mxu2 }
 0x6fb   : > { %6584 = vmatpush.bf16.msra.mxu1 %v10818_v20  ;;  %v10790_v20 = vor.u32 %v11668_v33, %v10787_v61  ;;  %v10785_v33 = vld [vmem:[%s18476_s1 + $0xe10] sm:$0xf] }
 0x6fc   : > { %v6315_v22 = vpop.f32.mrf.mxu3  ;;  %v6171_v35 = vpop.f32.mrf.mxu0 }
 0x6fd   : > { %v6316_v15 = vadd.f32 %v6315_v22, %v6266_v7  ;;  %6683 = vmatpush.bf16.msra.mxu3 %v10790_v20 }
 0x6fe   : > { %v6220_v51 = vpop.f32.mrf.mxu1 }
 0x6ff   : > { %v6221_v56 = vadd.f32 %v6220_v51, %v6171_v35  ;;  %v16651_v54 = vadd.f32 %v6316_v15, %v15307_v55  ;;  %6366 = vmatmul.bf16.gmra.mxu0 %v16310_v9  ;;  %6464 = vmatmul.bf16.gmra.mxu2 %v16310_v9  ;;  %v10531_v55 = vld [vmem:[%s18476_s1 + $0xc30] sm:$0xf0] }
 0x700   : > { %v10534_v28 = vor.u32 %v11604_v37, %v10531_v55  ;;  %v10529_v37 = vld [vmem:[%s18476_s1 + $0xc10] sm:$0xf] }
 0x701   : > { %v16655_v49 = vadd.f32 %v6221_v56, %v15311_v36  ;;  %6415 = vmatmul.bf16.gmra.mxu1 %v16312_v12  ;;  %6513 = vmatmul.bf16.gmra.mxu3 %v16312_v12  ;;  %v11608_v55 = vld [vmem:[%s18476_s1 + $0xc2c] sm:$0xf0] }
 0x702   : > { %v6269_v36 = vpop.f32.mrf.mxu2  ;;  %6634 = vmatpush.bf16.msra.mxu2 %v10534_v28 }
 0x704   : > { %v6318_v38 = vpop.f32.mrf.mxu3  ;;  %v6173_v7 = vpop.f32.mrf.mxu0 }
 0x705   : > { %v6319_v22 = vadd.f32 %v6318_v38, %v6269_v36  ;;  %v10530_v36 = vor.u32 %v11608_v55, %v10529_v37  ;;  %v11661_v37 = vld [vmem:[%s18476_s1 + $0xddc] sm:$0xf] }
 0x706   : > { %v6222_v35 = vpop.f32.mrf.mxu1  ;;  %v11725_v55 = vld [vmem:[%s18476_s1 + $0xfdc] sm:$0xf] }
 0x707   : > { %v6223_v15 = vadd.f32 %v6222_v35, %v6173_v7  ;;  %v16673_v51 = vadd.f32 %v6319_v22, %v15329_v58  ;;  %v11672_v58 = vld [vmem:[%s18476_s1 + $0xe2c] sm:$0xf0]  ;;  %6536 = vmatpush.bf16.msra.mxu0 %v10530_v36  ;;  %v11019_v36 = vld [vmem:[%s18476_s1 + $0xff8] sm:$0xf0] }
 0x709   : > { %v16676_v56 = vadd.f32 %v6223_v15, %v15341_v46  ;;  %v10786_v46 = vor.u32 %v11672_v58, %v10785_v33 }
 0x70a   : > { %v6271_v28 = vpop.f32.mrf.mxu2 }
 0x70b   : > { %6585 = vmatpush.bf16.msra.mxu1 %v10786_v46  ;;  %v11022_v46 = vor.u32 %v11725_v55, %v11019_v36  ;;  %v11017_v55 = vld [vmem:[%s18476_s1 + $0xfd8] sm:$0xf] }
 0x70c   : > { %v6320_v61 = vpop.f32.mrf.mxu3  ;;  %v6176_v38 = vpop.f32.mrf.mxu0 }
 0x70d   : > { %v6321_v7 = vadd.f32 %v6320_v61, %v6271_v28  ;;  %6872 = vmatpush.bf16.msrb.mxu3 %v11022_v46 }
 0x70e   : > { %v6225_v20 = vpop.f32.mrf.mxu1 }
 0x70f   : > { %v6226_v22 = vadd.f32 %v6225_v20, %v6176_v38  ;;  %v16691_v35 = vadd.f32 %v6321_v7, %v15347_v8  ;;  %6371 = vmatmul.bf16.gmra.mxu0 %v16358_v29  ;;  %6469 = vmatmul.bf16.gmra.mxu2 %v16358_v29  ;;  %v10763_v8 = vld [vmem:[%s18476_s1 + $0xdf8] sm:$0xf0] }
 0x710   : > { %v10766_v33 = vor.u32 %v11661_v37, %v10763_v8  ;;  %v10761_v37 = vld [vmem:[%s18476_s1 + $0xdd8] sm:$0xf] }
 0x711   : > { %v16695_v15 = vadd.f32 %v6226_v22, %v15351_v19  ;;  %6420 = vmatmul.bf16.gmra.mxu1 %v16360_v27  ;;  %6518 = vmatmul.bf16.gmra.mxu3 %v16360_v27  ;;  %v11665_v8 = vld [vmem:[%s18476_s1 + $0xdf4] sm:$0xf0] }
 0x712   : > { %v6274_v19 = vpop.f32.mrf.mxu2  ;;  %6823 = vmatpush.bf16.msrb.mxu2 %v10766_v33 }
 0x714   : > { %v6323_v58 = vpop.f32.mrf.mxu3  ;;  %v6178_v28 = vpop.f32.mrf.mxu0 }
 0x715   : > { %v6324_v61 = vadd.f32 %v6323_v58, %v6274_v19  ;;  %v10762_v19 = vor.u32 %v11665_v8, %v10761_v37  ;;  %v11653_v8 = vld [vmem:[%s18476_s1 + $0xd9c] sm:$0xf] }
 0x716   : > { %v6227_v38 = vpop.f32.mrf.mxu1 }
 0x717   : > { %v6228_v7 = vadd.f32 %v6227_v38, %v6178_v28  ;;  %v16713_v20 = vadd.f32 %v6324_v61, %v15369_v25  ;;  %v11729_v25 = vld [vmem:[%s18476_s1 + $0xff4] sm:$0xf0]  ;;  %6725 = vmatpush.bf16.msrb.mxu0 %v10762_v19 }
 0x719   : > { %v16716_v22 = vadd.f32 %v6228_v7, %v15381_v13  ;;  %v11018_v13 = vor.u32 %v11729_v25, %v11017_v55  ;;  %v18963_v7 = vld [vmem:[#allocation94_spill] sm:$0xff]  ;;  %v11717_v55 = vld [vmem:[%s18476_s1 + $0xf9c] sm:$0xf] }
 0x71a   : > { %v6276_v33 = vpop.f32.mrf.mxu2 }
 0x71b   : > { %6774 = vmatpush.bf16.msrb.mxu1 %v11018_v13 }
 0x71c   : > { %v6325_v36 = vpop.f32.mrf.mxu3  ;;  %v6181_v58 = vpop.f32.mrf.mxu0 }
 0x71d   : > { %v6326_v28 = vadd.f32 %v6325_v36, %v6276_v33  ;;  %v10987_v33 = vld [vmem:[%s18476_s1 + $0xfb8] sm:$0xf0] }
 0x71e   : > { %v6230_v46 = vpop.f32.mrf.mxu1 }
 0x71f   : > { %v6231_v61 = vadd.f32 %v6230_v46, %v6181_v58  ;;  %v16731_v38 = vadd.f32 %v6326_v28, %v15387_v60  ;;  %6376 = vmatmul.bf16.gmra.mxu0 %v16406_v62  ;;  %6474 = vmatmul.bf16.gmra.mxu2 %v16406_v62  ;;  %v10731_v60 = vld [vmem:[%s18476_s1 + $0xdb8] sm:$0xf0]  ;;  %v10990_v58 = vor.u32 %v11717_v55, %v10987_v33  ;;  %v10985_v55 = vld [vmem:[%s18476_s1 + $0xf98] sm:$0xf] }
 0x720   : > { %v10734_v25 = vor.u32 %v11653_v8, %v10731_v60  ;;  %v10729_v8 = vld [vmem:[%s18476_s1 + $0xd98] sm:$0xf] }
 0x721   : > { %v16735_v37 = vadd.f32 %v6231_v61, %v18963_v7  ;;  %6425 = vmatmul.bf16.gmra.mxu1 %v16408_v31  ;;  %6523 = vmatmul.bf16.gmra.mxu3 %v16408_v31  ;;  %v18964_v7 = vld [vmem:[#allocation95_spill] sm:$0xff]  ;;  %v11657_v60 = vld [vmem:[%s18476_s1 + $0xdb4] sm:$0xf0] }
 0x722   : > { %v6279_v19 = vpop.f32.mrf.mxu2  ;;  %6824 = vmatpush.bf16.msrb.mxu2 %v10734_v25  ;;  %6873 = vmatpush.bf16.msrb.mxu3 %v10990_v58  ;;  %v11721_v25 = vld [vmem:[%s18476_s1 + $0xfb4] sm:$0xf0] }
 0x724   : > { %v6328_v13 = vpop.f32.mrf.mxu3  ;;  %v6183_v36 = vpop.f32.mrf.mxu0 }
 0x725   : > { %v6329_v28 = vadd.f32 %v6328_v13, %v6279_v19  ;;  %v10730_v19 = vor.u32 %v11657_v60, %v10729_v8  ;;  %v11645_v60 = vld [vmem:[%s18476_s1 + $0xd5c] sm:$0xf] }
 0x726   : > { %v6232_v46 = vpop.f32.mrf.mxu1 }
 0x727   : > { %v6233_v61 = vadd.f32 %v6232_v46, %v6183_v36  ;;  %v16753_v45 = vadd.f32 %v6329_v28, %v18964_v7  ;;  %6726 = vmatpush.bf16.msrb.mxu0 %v10730_v19  ;;  %v11709_v19 = vld [vmem:[%s18476_s1 + $0xf5c] sm:$0xf] }
 0x729   : > { %v16756_v34 = vadd.f32 %v6233_v61, %v18965_v30  ;;  %v10986_v30 = vor.u32 %v11721_v25, %v10985_v55  ;;  %v18967_v61 = vld [vmem:[#allocation97_spill] sm:$0xff] }
 0x72a   : > { %v6281_v33 = vpop.f32.mrf.mxu2  ;;  %v10699_v55 = vld [vmem:[%s18476_s1 + $0xd78] sm:$0xf0] }
 0x72b   : > { %18966 = vst [vmem:[#allocation92_spill] sm:$0xff] %v16756_v34  ;;  %6775 = vmatpush.bf16.msrb.mxu1 %v10986_v30  ;;  %v10702_v25 = vor.u32 %v11645_v60, %v10699_v55  ;;  %v10697_v60 = vld [vmem:[%s18476_s1 + $0xd58] sm:$0xf] }
 0x72c   : > { %v6330_v13 = vpop.f32.mrf.mxu3  ;;  %v6342_v36 = vpop.f32.mrf.mxu0  ;;  %v11649_v55 = vld [vmem:[%s18476_s1 + $0xd74] sm:$0xf0] }
 0x72d   : > { %v6331_v58 = vadd.f32 %v6330_v13, %v6281_v33  ;;  %v10955_v33 = vld [vmem:[%s18476_s1 + $0xf78] sm:$0xf0]  ;;  %6825 = vmatpush.bf16.msrb.mxu2 %v10702_v25  ;;  %v11713_v25 = vld [vmem:[%s18476_s1 + $0xf74] sm:$0xf0] }
 0x72e   : > { %v6391_v28 = vpop.f32.mrf.mxu1 }
 0x72f   : > { %v6392_v46 = vadd.f32 %v6391_v28, %v6342_v36  ;;  %v16771_v7 = vadd.f32 %v6331_v58, %v18967_v61  ;;  %6537 = vmatmul.bf16.vlgmr.msra.gmra.mxu0 %v16070_v10  ;;  %6635 = vmatmul.bf16.vlgmr.msra.gmra.mxu2 %v16070_v10  ;;  %v10958_v36 = vor.u32 %v11709_v19, %v10955_v33  ;;  %v18971_v61 = vld [vmem:[#allocation99_spill] sm:$0xff]  ;;  %v10953_v19 = vld [vmem:[%s18476_s1 + $0xf58] sm:$0xf] }
 0x731   : > { %18968 = vst [vmem:[#allocation93_spill] sm:$0xff] %v16771_v7  ;;  %v16775_v8 = vadd.f32 %v6392_v46, %v18969_v47  ;;  %6586 = vmatmul.bf16.vlgmr.msra.gmra.mxu1 %v16072_v48  ;;  %6684 = vmatmul.bf16.vlgmr.msra.gmra.mxu3 %v16072_v48  ;;  %v18973_v7 = vld [vmem:[#allocation2_spill] sm:$0xff] }
 0x732   : > { %v6440_v47 = vpop.f32.mrf.mxu2  ;;  %6874 = vmatpush.bf16.msrb.mxu3 %v10958_v36 }
 0x733   : > { %18970 = vst [vmem:[#allocation94_spill] sm:$0xff] %v16775_v8 }
 0x734   : > { %v6489_v30 = vpop.f32.mrf.mxu3  ;;  %v6344_v13 = vpop.f32.mrf.mxu0 }
 0x735   : > { %v6490_v58 = vadd.f32 %v6489_v30, %v6440_v47  ;;  %v10698_v47 = vor.u32 %v11649_v55, %v10697_v60  ;;  %v11637_v55 = vld [vmem:[%s18476_s1 + $0xd1c] sm:$0xf] }
 0x736   : > { %v6393_v28 = vpop.f32.mrf.mxu1 }
 0x737   : > { %v6394_v46 = vadd.f32 %v6393_v28, %v6344_v13  ;;  %v16793_v8 = vadd.f32 %v6490_v58, %v18971_v61  ;;  %6727 = vmatpush.bf16.msrb.mxu0 %v10698_v47  ;;  %v11701_v47 = vld [vmem:[%s18476_s1 + $0xf1c] sm:$0xf] }
 0x739   : > { %18972 = vst [vmem:[#allocation95_spill] sm:$0xff] %v16793_v8  ;;  %v16796_v34 = vadd.f32 %v6394_v46, %v18973_v7  ;;  %v10954_v7 = vor.u32 %v11713_v25, %v10953_v19  ;;  %v18975_v46 = vld [vmem:[#allocation3_spill] sm:$0xff]  ;;  %v10667_v19 = vld [vmem:[%s18476_s1 + $0xd38] sm:$0xf0] }
 0x73a   : > { %v6442_v33 = vpop.f32.mrf.mxu2  ;;  %v10670_v25 = vor.u32 %v11637_v55, %v10667_v19  ;;  %v10665_v55 = vld [vmem:[%s18476_s1 + $0xd18] sm:$0xf] }
 0x73b   : > { %18974 = vst [vmem:[#allocation96_spill] sm:$0xff] %v16796_v34  ;;  %6776 = vmatpush.bf16.msrb.mxu1 %v10954_v7  ;;  %v18977_v34 = vld [vmem:[#allocation4_spill] sm:$0xff]  ;;  %v11641_v19 = vld [vmem:[%s18476_s1 + $0xd34] sm:$0xf0] }
 0x73c   : > { %v6491_v30 = vpop.f32.mrf.mxu3  ;;  %v6347_v13 = vpop.f32.mrf.mxu0  ;;  %6826 = vmatpush.bf16.msrb.mxu2 %v10670_v25  ;;  %v11705_v25 = vld [vmem:[%s18476_s1 + $0xf34] sm:$0xf0] }
 0x73d   : > { %v6492_v36 = vadd.f32 %v6491_v30, %v6442_v33  ;;  %v10923_v33 = vld [vmem:[%s18476_s1 + $0xf38] sm:$0xf0] }
 0x73e   : > { %v6396_v58 = vpop.f32.mrf.mxu1 }
 0x73f   : > { %v6397_v28 = vadd.f32 %v6396_v58, %v6347_v13  ;;  %v16811_v61 = vadd.f32 %v6492_v36, %v18975_v46  ;;  %6542 = vmatmul.bf16.gmra.mxu0 %v16118_v4  ;;  %6640 = vmatmul.bf16.gmra.mxu2 %v16118_v4  ;;  %v10926_v13 = vor.u32 %v11701_v47, %v10923_v33  ;;  %v18979_v46 = vld [vmem:[#allocation5_spill] sm:$0xff] }
 0x740   : > { %v10921_v47 = vld [vmem:[%s18476_s1 + $0xf18] sm:$0xf] }
 0x741   : > { %18976 = vst [vmem:[#allocation97_spill] sm:$0xff] %v16811_v61  ;;  %v16815_v60 = vadd.f32 %v6397_v28, %v18977_v34  ;;  %6591 = vmatmul.bf16.gmra.mxu1 %v16120_v3  ;;  %6689 = vmatmul.bf16.gmra.mxu3 %v16120_v3  ;;  %v18981_v61 = vld [vmem:[#allocation6_spill] sm:$0xff] }
 0x742   : > { %v6445_v34 = vpop.f32.mrf.mxu2  ;;  %6875 = vmatpush.bf16.msrb.mxu3 %v10926_v13 }
 0x743   : > { %18978 = vst [vmem:[#allocation98_spill] sm:$0xff] %v16815_v60 }
 0x744   : > { %v6494_v7 = vpop.f32.mrf.mxu3  ;;  %v6349_v30 = vpop.f32.mrf.mxu0 }
 0x745   : > { %v6495_v36 = vadd.f32 %v6494_v7, %v6445_v34  ;;  %v10666_v34 = vor.u32 %v11641_v19, %v10665_v55  ;;  %v11629_v19 = vld [vmem:[%s18476_s1 + $0xcdc] sm:$0xf] }
 0x746   : > { %v6398_v58 = vpop.f32.mrf.mxu1 }
 0x747   : > { %v6399_v28 = vadd.f32 %v6398_v58, %v6349_v30  ;;  %v16833_v60 = vadd.f32 %v6495_v36, %v18979_v46  ;;  %6728 = vmatpush.bf16.msrb.mxu0 %v10666_v34  ;;  %v11693_v34 = vld [vmem:[%s18476_s1 + $0xedc] sm:$0xf] }
 0x749   : > { %18980 = vst [vmem:[#allocation99_spill] sm:$0xff] %v16833_v60  ;;  %v16836_v8 = vadd.f32 %v6399_v28, %v18981_v61  ;;  %v10922_v61 = vor.u32 %v11705_v25, %v10921_v47  ;;  %v18983_v28 = vld [vmem:[#allocation7_spill] sm:$0xff]  ;;  %v10635_v47 = vld [vmem:[%s18476_s1 + $0xcf8] sm:$0xf0] }
 0x74a   : > { %v6447_v33 = vpop.f32.mrf.mxu2  ;;  %v10638_v25 = vor.u32 %v11629_v19, %v10635_v47  ;;  %v10633_v19 = vld [vmem:[%s18476_s1 + $0xcd8] sm:$0xf] }
 0x74b   : > { %18982 = vst [vmem:[#allocation2_spill] sm:$0xff] %v16836_v8  ;;  %6777 = vmatpush.bf16.msrb.mxu1 %v10922_v61  ;;  %v18985_v8 = vld [vmem:[#allocation8_spill] sm:$0xff]  ;;  %v11633_v47 = vld [vmem:[%s18476_s1 + $0xcf4] sm:$0xf0] }
 0x74c   : > { %v6496_v7 = vpop.f32.mrf.mxu3  ;;  %v6352_v30 = vpop.f32.mrf.mxu0  ;;  %6827 = vmatpush.bf16.msrb.mxu2 %v10638_v25  ;;  %v11697_v25 = vld [vmem:[%s18476_s1 + $0xef4] sm:$0xf0] }
 0x74d   : > { %v6497_v13 = vadd.f32 %v6496_v7, %v6447_v33  ;;  %v10891_v33 = vld [vmem:[%s18476_s1 + $0xef8] sm:$0xf0] }
 0x74e   : > { %v6401_v36 = vpop.f32.mrf.mxu1 }
 0x74f   : > { %v6402_v58 = vadd.f32 %v6401_v36, %v6352_v30  ;;  %v16851_v46 = vadd.f32 %v6497_v13, %v18983_v28  ;;  %6547 = vmatmul.bf16.gmra.mxu0 %v16166_v41  ;;  %6645 = vmatmul.bf16.gmra.mxu2 %v16166_v41  ;;  %v10894_v30 = vor.u32 %v11693_v34, %v10891_v33  ;;  %v18987_v28 = vld [vmem:[#allocation9_spill] sm:$0xff] }
 0x750   : > { %v10889_v34 = vld [vmem:[%s18476_s1 + $0xed8] sm:$0xf] }
 0x751   : > { %18984 = vst [vmem:[#allocation3_spill] sm:$0xff] %v16851_v46  ;;  %v16855_v55 = vadd.f32 %v6402_v58, %v18985_v8  ;;  %6596 = vmatmul.bf16.gmra.mxu1 %v16168_v43  ;;  %6694 = vmatmul.bf16.gmra.mxu3 %v16168_v43  ;;  %v18989_v46 = vld [vmem:[#allocation10_spill] sm:$0xff] }
 0x752   : > { %v6450_v8 = vpop.f32.mrf.mxu2  ;;  %6876 = vmatpush.bf16.msrb.mxu3 %v10894_v30 }
 0x753   : > { %18986 = vst [vmem:[#allocation4_spill] sm:$0xff] %v16855_v55 }
 0x754   : > { %v6499_v61 = vpop.f32.mrf.mxu3  ;;  %v6354_v7 = vpop.f32.mrf.mxu0 }
 0x755   : > { %v6500_v13 = vadd.f32 %v6499_v61, %v6450_v8  ;;  %v10634_v8 = vor.u32 %v11633_v47, %v10633_v19  ;;  %v11621_v47 = vld [vmem:[%s18476_s1 + $0xc9c] sm:$0xf] }
 0x756   : > { %v6403_v36 = vpop.f32.mrf.mxu1 }
 0x757   : > { %v6404_v58 = vadd.f32 %v6403_v36, %v6354_v7  ;;  %v16873_v55 = vadd.f32 %v6500_v13, %v18987_v28  ;;  %6729 = vmatpush.bf16.msrb.mxu0 %v10634_v8  ;;  %v11685_v8 = vld [vmem:[%s18476_s1 + $0xe9c] sm:$0xf] }
 0x759   : > { %18988 = vst [vmem:[#allocation5_spill] sm:$0xff] %v16873_v55  ;;  %v16876_v60 = vadd.f32 %v6404_v58, %v18989_v46  ;;  %v10890_v46 = vor.u32 %v11697_v25, %v10889_v34  ;;  %v18991_v58 = vld [vmem:[#allocation11_spill] sm:$0xff]  ;;  %v10603_v34 = vld [vmem:[%s18476_s1 + $0xcb8] sm:$0xf0] }
 0x75a   : > { %v6452_v33 = vpop.f32.mrf.mxu2  ;;  %v10606_v25 = vor.u32 %v11621_v47, %v10603_v34  ;;  %v10601_v47 = vld [vmem:[%s18476_s1 + $0xc98] sm:$0xf] }
 0x75b   : > { %18990 = vst [vmem:[#allocation6_spill] sm:$0xff] %v16876_v60  ;;  %6778 = vmatpush.bf16.msrb.mxu1 %v10890_v46  ;;  %v18993_v60 = vld [vmem:[#allocation12_spill] sm:$0xff]  ;;  %v11625_v34 = vld [vmem:[%s18476_s1 + $0xcb4] sm:$0xf0] }
 0x75c   : > { %v6501_v61 = vpop.f32.mrf.mxu3  ;;  %v6357_v7 = vpop.f32.mrf.mxu0  ;;  %6828 = vmatpush.bf16.msrb.mxu2 %v10606_v25  ;;  %v11689_v25 = vld [vmem:[%s18476_s1 + $0xeb4] sm:$0xf0] }
 0x75d   : > { %v6502_v30 = vadd.f32 %v6501_v61, %v6452_v33  ;;  %v10859_v33 = vld [vmem:[%s18476_s1 + $0xeb8] sm:$0xf0] }
 0x75e   : > { %v6406_v13 = vpop.f32.mrf.mxu1 }
 0x75f   : > { %v6407_v36 = vadd.f32 %v6406_v13, %v6357_v7  ;;  %v16891_v28 = vadd.f32 %v6502_v30, %v18991_v58  ;;  %6552 = vmatmul.bf16.gmra.mxu0 %v16214_v23  ;;  %6650 = vmatmul.bf16.gmra.mxu2 %v16214_v23  ;;  %v10862_v7 = vor.u32 %v11685_v8, %v10859_v33  ;;  %v18995_v58 = vld [vmem:[#allocation13_spill] sm:$0xff] }
 0x760   : > { %v10857_v8 = vld [vmem:[%s18476_s1 + $0xe98] sm:$0xf] }
 0x761   : > { %18992 = vst [vmem:[#allocation7_spill] sm:$0xff] %v16891_v28  ;;  %v16895_v19 = vadd.f32 %v6407_v36, %v18993_v60  ;;  %6601 = vmatmul.bf16.gmra.mxu1 %v16216_v32  ;;  %6699 = vmatmul.bf16.gmra.mxu3 %v16216_v32  ;;  %v18997_v28 = vld [vmem:[#allocation14_spill] sm:$0xff] }
 0x762   : > { %v6455_v60 = vpop.f32.mrf.mxu2  ;;  %6877 = vmatpush.bf16.msrb.mxu3 %v10862_v7 }
 0x763   : > { %18994 = vst [vmem:[#allocation8_spill] sm:$0xff] %v16895_v19 }
 0x764   : > { %v6504_v46 = vpop.f32.mrf.mxu3  ;;  %v6359_v61 = vpop.f32.mrf.mxu0 }
 0x765   : > { %v6505_v30 = vadd.f32 %v6504_v46, %v6455_v60  ;;  %v10602_v60 = vor.u32 %v11625_v34, %v10601_v47  ;;  %v11613_v34 = vld [vmem:[%s18476_s1 + $0xc5c] sm:$0xf] }
 0x766   : > { %v6408_v13 = vpop.f32.mrf.mxu1 }
 0x767   : > { %v6409_v36 = vadd.f32 %v6408_v13, %v6359_v61  ;;  %v16913_v19 = vadd.f32 %v6505_v30, %v18995_v58  ;;  %6730 = vmatpush.bf16.msrb.mxu0 %v10602_v60  ;;  %v11677_v60 = vld [vmem:[%s18476_s1 + $0xe5c] sm:$0xf] }
 0x769   : > { %18996 = vst [vmem:[#allocation9_spill] sm:$0xff] %v16913_v19  ;;  %v16916_v55 = vadd.f32 %v6409_v36, %v18997_v28  ;;  %v10858_v28 = vor.u32 %v11689_v25, %v10857_v8  ;;  %v18999_v36 = vld [vmem:[#allocation15_spill] sm:$0xff]  ;;  %v10571_v8 = vld [vmem:[%s18476_s1 + $0xc78] sm:$0xf0] }
 0x76a   : > { %v6457_v33 = vpop.f32.mrf.mxu2  ;;  %v10574_v25 = vor.u32 %v11613_v34, %v10571_v8  ;;  %v10569_v34 = vld [vmem:[%s18476_s1 + $0xc58] sm:$0xf] }
 0x76b   : > { %18998 = vst [vmem:[#allocation10_spill] sm:$0xff] %v16916_v55  ;;  %6779 = vmatpush.bf16.msrb.mxu1 %v10858_v28  ;;  %v19001_v55 = vld [vmem:[#allocation16_spill] sm:$0xff]  ;;  %v11617_v8 = vld [vmem:[%s18476_s1 + $0xc74] sm:$0xf0] }
 0x76c   : > { %v6506_v46 = vpop.f32.mrf.mxu3  ;;  %v6362_v61 = vpop.f32.mrf.mxu0  ;;  %6829 = vmatpush.bf16.msrb.mxu2 %v10574_v25  ;;  %v11681_v25 = vld [vmem:[%s18476_s1 + $0xe74] sm:$0xf0] }
 0x76d   : > { %v6507_v7 = vadd.f32 %v6506_v46, %v6457_v33  ;;  %v10827_v33 = vld [vmem:[%s18476_s1 + $0xe78] sm:$0xf0] }
 0x76e   : > { %v6411_v30 = vpop.f32.mrf.mxu1 }
 0x76f   : > { %v6412_v13 = vadd.f32 %v6411_v30, %v6362_v61  ;;  %v16931_v58 = vadd.f32 %v6507_v7, %v18999_v36  ;;  %6557 = vmatmul.bf16.gmra.mxu0 %v16262_v26  ;;  %6655 = vmatmul.bf16.gmra.mxu2 %v16262_v26  ;;  %v10830_v61 = vor.u32 %v11677_v60, %v10827_v33  ;;  %v19003_v36 = vld [vmem:[#allocation17_spill] sm:$0xff] }
 0x770   : > { %v10825_v60 = vld [vmem:[%s18476_s1 + $0xe58] sm:$0xf] }
 0x771   : > { %19000 = vst [vmem:[#allocation11_spill] sm:$0xff] %v16931_v58  ;;  %v16935_v47 = vadd.f32 %v6412_v13, %v19001_v55  ;;  %6606 = vmatmul.bf16.gmra.mxu1 %v16264_v21  ;;  %6704 = vmatmul.bf16.gmra.mxu3 %v16264_v21  ;;  %v19005_v58 = vld [vmem:[#allocation18_spill] sm:$0xff] }
 0x772   : > { %v6460_v55 = vpop.f32.mrf.mxu2  ;;  %6878 = vmatpush.bf16.msrb.mxu3 %v10830_v61 }
 0x773   : > { %19002 = vst [vmem:[#allocation12_spill] sm:$0xff] %v16935_v47 }
 0x774   : > { %v6509_v28 = vpop.f32.mrf.mxu3  ;;  %v6364_v46 = vpop.f32.mrf.mxu0 }
 0x775   : > { %v6510_v7 = vadd.f32 %v6509_v28, %v6460_v55  ;;  %v10570_v55 = vor.u32 %v11617_v8, %v10569_v34  ;;  %v11605_v8 = vld [vmem:[%s18476_s1 + $0xc1c] sm:$0xf] }
 0x776   : > { %v6413_v30 = vpop.f32.mrf.mxu1 }
 0x777   : > { %v6414_v13 = vadd.f32 %v6413_v30, %v6364_v46  ;;  %v16953_v47 = vadd.f32 %v6510_v7, %v19003_v36  ;;  %6731 = vmatpush.bf16.msrb.mxu0 %v10570_v55  ;;  %v11669_v55 = vld [vmem:[%s18476_s1 + $0xe1c] sm:$0xf] }
 0x779   : > { %19004 = vst [vmem:[#allocation13_spill] sm:$0xff] %v16953_v47  ;;  %v16956_v19 = vadd.f32 %v6414_v13, %v19005_v58  ;;  %v10826_v58 = vor.u32 %v11681_v25, %v10825_v60  ;;  %v19007_v13 = vld [vmem:[#allocation19_spill] sm:$0xff]  ;;  %v10539_v60 = vld [vmem:[%s18476_s1 + $0xc38] sm:$0xf0] }
 0x77a   : > { %v6462_v33 = vpop.f32.mrf.mxu2  ;;  %v10542_v25 = vor.u32 %v11605_v8, %v10539_v60  ;;  %v10537_v8 = vld [vmem:[%s18476_s1 + $0xc18] sm:$0xf] }
 0x77b   : > { %19006 = vst [vmem:[#allocation14_spill] sm:$0xff] %v16956_v19  ;;  %6780 = vmatpush.bf16.msrb.mxu1 %v10826_v58  ;;  %v19009_v19 = vld [vmem:[#allocation20_spill] sm:$0xff]  ;;  %v11609_v60 = vld [vmem:[%s18476_s1 + $0xc34] sm:$0xf0] }
 0x77c   : > { %v6511_v28 = vpop.f32.mrf.mxu3  ;;  %v6367_v46 = vpop.f32.mrf.mxu0  ;;  %6830 = vmatpush.bf16.msrb.mxu2 %v10542_v25  ;;  %v11673_v25 = vld [vmem:[%s18476_s1 + $0xe34] sm:$0xf0] }
 0x77d   : > { %v6512_v61 = vadd.f32 %v6511_v28, %v6462_v33  ;;  %v10795_v33 = vld [vmem:[%s18476_s1 + $0xe38] sm:$0xf0] }
 0x77e   : > { %v6416_v7 = vpop.f32.mrf.mxu1 }
 0x77f   : > { %v6417_v30 = vadd.f32 %v6416_v7, %v6367_v46  ;;  %v16971_v36 = vadd.f32 %v6512_v61, %v19007_v13  ;;  %6562 = vmatmul.bf16.gmra.mxu0 %v16310_v9  ;;  %6660 = vmatmul.bf16.gmra.mxu2 %v16310_v9  ;;  %v10798_v46 = vor.u32 %v11669_v55, %v10795_v33  ;;  %v19011_v13 = vld [vmem:[#allocation21_spill] sm:$0xff] }
 0x780   : > { %v10793_v55 = vld [vmem:[%s18476_s1 + $0xe18] sm:$0xf] }
 0x781   : > { %19008 = vst [vmem:[#allocation15_spill] sm:$0xff] %v16971_v36  ;;  %v16975_v34 = vadd.f32 %v6417_v30, %v19009_v19  ;;  %6611 = vmatmul.bf16.gmra.mxu1 %v16312_v12  ;;  %6709 = vmatmul.bf16.gmra.mxu3 %v16312_v12 }
 0x782   : > { %v6465_v19 = vpop.f32.mrf.mxu2  ;;  %6879 = vmatpush.bf16.msrb.mxu3 %v10798_v46 }
 0x783   : > { %19010 = vst [vmem:[#allocation16_spill] sm:$0xff] %v16975_v34 }
 0x784   : > { %v6514_v58 = vpop.f32.mrf.mxu3  ;;  %v6369_v28 = vpop.f32.mrf.mxu0 }
 0x785   : > { %v6515_v61 = vadd.f32 %v6514_v58, %v6465_v19  ;;  %v10538_v19 = vor.u32 %v11609_v60, %v10537_v8 }
 0x786   : > { %v6418_v7 = vpop.f32.mrf.mxu1 }
 0x787   : > { %v6419_v30 = vadd.f32 %v6418_v7, %v6369_v28  ;;  %v16993_v34 = vadd.f32 %v6515_v61, %v19011_v13  ;;  %6732 = vmatpush.bf16.msrb.mxu0 %v10538_v19 }
 0x789   : > { %19012 = vst [vmem:[#allocation17_spill] sm:$0xff] %v16993_v34  ;;  %v16996_v36 = vadd.f32 %v6419_v30, %v15661_v39  ;;  %v10794_v39 = vor.u32 %v11673_v25, %v10793_v55  ;;  %v19014_v30 = vld [vmem:[#allocation22_spill] sm:$0xff]  ;;  %v19021_v34 = vld [vmem:[#allocation25_spill] sm:$0xff] }
 0x78a   : > { %v6467_v33 = vpop.f32.mrf.mxu2 }
 0x78b   : > { %19013 = vst [vmem:[#allocation18_spill] sm:$0xff] %v16996_v36  ;;  %6781 = vmatpush.bf16.msrb.mxu1 %v10794_v39  ;;  %v19016_v36 = vld [vmem:[#allocation23_spill] sm:$0xff] }
 0x78c   : > { %v6516_v58 = vpop.f32.mrf.mxu3  ;;  %v6372_v28 = vpop.f32.mrf.mxu0 }
 0x78d   : > { %v6517_v46 = vadd.f32 %v6516_v58, %v6467_v33  ;;  %v19018_v58 = vld [vmem:[#allocation24_spill] sm:$0xff] }
 0x78e   : > { %v6421_v61 = vpop.f32.mrf.mxu1 }
 0x78f   : > { %v6422_v7 = vadd.f32 %v6421_v61, %v6372_v28  ;;  %v17011_v13 = vadd.f32 %v6517_v46, %v19014_v30  ;;  %6567 = vmatmul.bf16.gmra.mxu0 %v16358_v29  ;;  %6665 = vmatmul.bf16.gmra.mxu2 %v16358_v29 }
 0x791   : > { %19015 = vst [vmem:[#allocation19_spill] sm:$0xff] %v17011_v13  ;;  %v17015_v8 = vadd.f32 %v6422_v7, %v19016_v36  ;;  %6616 = vmatmul.bf16.gmra.mxu1 %v16360_v27  ;;  %6714 = vmatmul.bf16.gmra.mxu3 %v16360_v27 }
 0x792   : > { %v6470_v60 = vpop.f32.mrf.mxu2 }
 0x793   : > { %19017 = vst [vmem:[#allocation20_spill] sm:$0xff] %v17015_v8 }
 0x794   : > { %v6519_v55 = vpop.f32.mrf.mxu3  ;;  %v6374_v19 = vpop.f32.mrf.mxu0 }
 0x795   : > { %v6520_v25 = vadd.f32 %v6519_v55, %v6470_v60  ;;  %v19023_v60 = vld [vmem:[#allocation26_spill] sm:$0xff] }
 0x796   : > { %v6423_v33 = vpop.f32.mrf.mxu1 }
 0x797   : > { %v6424_v39 = vadd.f32 %v6423_v33, %v6374_v19  ;;  %v17021_v28 = vadd.f32 %v6520_v25, %v19018_v58  ;;  %v19025_v58 = vld [vmem:[#allocation27_spill] sm:$0xff] }
 0x799   : > { %19019 = vst [vmem:[#allocation21_spill] sm:$0xff] %v17021_v28  ;;  %v17024_v46 = vadd.f32 %v6424_v39, %v15701_v18 }
 0x79a   : > { %v6472_v36 = vpop.f32.mrf.mxu2 }
 0x79b   : > { %19020 = vst [vmem:[#allocation22_spill] sm:$0xff] %v17024_v46  ;;  %v19029_v46 = vld [vmem:[#allocation29_spill] sm:$0xff] }
 0x79c   : > { %v6521_v61 = vpop.f32.mrf.mxu3  ;;  %v6377_v7 = vpop.f32.mrf.mxu0 }
 0x79d   : > { %v6522_v30 = vadd.f32 %v6521_v61, %v6472_v36  ;;  %v19027_v36 = vld [vmem:[#allocation28_spill] sm:$0xff] }
 0x79e   : > { %v6426_v8 = vpop.f32.mrf.mxu1 }
 0x79f   : > { %v6427_v13 = vadd.f32 %v6426_v8, %v6377_v7  ;;  %v17027_v47 = vadd.f32 %v6522_v30, %v19021_v34  ;;  %6572 = vmatmul.bf16.gmra.mxu0 %v16406_v62  ;;  %6670 = vmatmul.bf16.gmra.mxu2 %v16406_v62 }
 0x7a1   : > { %19022 = vst [vmem:[#allocation23_spill] sm:$0xff] %v17027_v47  ;;  %v17031_v55 = vadd.f32 %v6427_v13, %v19023_v60  ;;  %6621 = vmatmul.bf16.gmra.mxu1 %v16408_v31  ;;  %6719 = vmatmul.bf16.gmra.mxu3 %v16408_v31 }
 0x7a2   : > { %v6475_v18 = vpop.f32.mrf.mxu2 }
 0x7a3   : > { %19024 = vst [vmem:[#allocation24_spill] sm:$0xff] %v17031_v55 }
 0x7a4   : > { %v6524_v19 = vpop.f32.mrf.mxu3  ;;  %v6379_v25 = vpop.f32.mrf.mxu0 }
 0x7a5   : > { %v6525_v33 = vadd.f32 %v6524_v19, %v6475_v18  ;;  %v19031_v18 = vld [vmem:[#allocation30_spill] sm:$0xff] }
 0x7a6   : > { %v6428_v39 = vpop.f32.mrf.mxu1 }
 0x7a7   : > { %v6429_v8 = vadd.f32 %v6428_v39, %v6379_v25  ;;  %v17037_v34 = vadd.f32 %v6525_v33, %v19025_v58  ;;  %v7049_v25 = vmul.f32 %v16455_v63, %v16455_v63  ;;  %v19033_v63 = vld [vmem:[#allocation32_spill] sm:$0xff] }
 0x7a9   : > { %19026 = vst [vmem:[#allocation25_spill] sm:$0xff] %v17037_v34  ;;  %v17040_v61 = vadd.f32 %v6429_v8, %v19027_v36  ;;  %v19044_v34 = vld [vmem:[#allocation95_spill] sm:$0xff] }
 0x7aa   : > { %v6477_v13 = vpop.f32.mrf.mxu2 }
 0x7ab   : > { %19028 = vst [vmem:[#allocation26_spill] sm:$0xff] %v17040_v61 }
 0x7ac   : > { %v6526_v7 = vpop.f32.mrf.mxu3  ;;  %v6538_v30 = vpop.f32.mrf.mxu0 }
 0x7ad   : > { %v6527_v60 = vadd.f32 %v6526_v7, %v6477_v13  ;;  %v19032_v13 = vld [vmem:[#allocation31_spill] sm:$0xff] }
 0x7ae   : > { %v6587_v55 = vpop.f32.mrf.mxu1 }
 0x7af   : > { %v6588_v47 = vadd.f32 %v6587_v55, %v6538_v30  ;;  %v17043_v28 = vadd.f32 %v6527_v60, %v19029_v46  ;;  %6733 = vmatmul.bf16.vlgmr.msrb.gmra.mxu0 %v16070_v10  ;;  %6831 = vmatmul.bf16.vlgmr.msrb.gmra.mxu2 %v16070_v10  ;;  %v7050_v10 = vmul.f32 %v16473_v11, %v16473_v11 }
 0x7b0   : > { %v7054_v60 = vmul.f32 %v16491_v1, %v16491_v1  ;;  %v17079_v11 = vmul.f32 %v16535_v17, %v16535_v17  ;;  %v17099_v17 = vmul.f32 %v16575_v44, %v16575_v44  ;;  %v17116_v44 = vmul.f32 %v16611_v53, %v16611_v53 }
 0x7b1   : > { %19030 = vst [vmem:[#allocation27_spill] sm:$0xff] %v17043_v28  ;;  %v6925_v19 = vadd.f32 %v6588_v47, %v19031_v18  ;;  %6782 = vmatmul.bf16.vlgmr.msrb.gmra.mxu1 %v16072_v48  ;;  %6880 = vmatmul.bf16.vlgmr.msrb.gmra.mxu3 %v16072_v48  ;;  %v7053_v48 = vmul.f32 %v16476_v52, %v16476_v52 }
 0x7b2   : > { %v6636_v39 = vpop.f32.mrf.mxu2  ;;  %v7057_v18 = vmul.f32 %v16495_v14, %v16495_v14  ;;  %v17075_v52 = vmul.f32 %v16531_v5, %v16531_v5  ;;  %v17083_v14 = vmul.f32 %v16553_v16, %v16553_v16  ;;  %v17103_v16 = vmul.f32 %v16593_v6, %v16593_v6 }
 0x7b3   : > { %v7113_v33 = vmul.f32 %v6925_v19, %v6925_v19  ;;  %v17067_v19 = vmul.f32 %v16513_v50, %v16513_v50  ;;  %v17087_v50 = vmul.f32 %v16556_v57, %v16556_v57  ;;  %v17107_v57 = vmul.f32 %v16596_v42, %v16596_v42 }
 0x7b4   : > { %v6685_v55 = vpop.f32.mrf.mxu3  ;;  %v6540_v46 = vpop.f32.mrf.mxu0  ;;  %v17132_v53 = vmul.f32 %v16636_v24, %v16636_v24  ;;  %v19035_v24 = vld [vmem:[#allocation34_spill] sm:$0xff] }
 0x7b5   : > { %v17052_v8 = vadd.f32 %v7113_v33, %v7049_v25  ;;  %v6686_v58 = vadd.f32 %v6685_v55, %v6636_v39  ;;  %v17071_v33 = vmul.f32 %v16516_v2, %v16516_v2  ;;  %v17091_v2 = vmul.f32 %v16571_v40, %v16571_v40 }
 0x7b6   : > { %v6589_v36 = vpop.f32.mrf.mxu1 }
 0x7b7   : > { %11787 = vrsqrt.f32 %v17052_v8  ;;  %v6590_v47 = vadd.f32 %v6589_v36, %v6540_v46  ;;  %v6926_v7 = vadd.f32 %v6686_v58, %v19032_v13  ;;  %v11753_v36 = vld [vmem:[%s18477_s2 + $0xb8] sm:$0xff]  ;;  %v17123_v13 = vmul.f32 %v16615_v0, %v16615_v0 }
 0x7b8   : > { %8395 = vmatpush.bf16.msra.mxu2 %v11753_v36  ;;  %vm7248_vm0 = vcmp.eq.f32.partialorder %v17052_v8, inf  ;;  %vm7250_vm1 = vcmp.eq.f32.partialorder %v17052_v8, 0.0 }
 0x7b9   : > { %v6933_v30 = vadd.f32 %v6590_v47, %v19033_v63  ;;  %v7114_v25 = vmul.f32 %v6926_v7, %v6926_v7  ;;  %v17127_v7 = vmul.f32 %v16633_v59, %v16633_v59  ;;  %v19034_v63 = vld [vmem:[#allocation33_spill] sm:$0xff]  ;;  %v17143_v59 = vmul.f32 %v16655_v49, %v16655_v49 }
 0x7ba   : > { %v6638_v5 = vpop.f32.mrf.mxu2 }
 0x7bb   : > { %v7117_v1 = vmul.f32 %v6933_v30, %v6933_v30  ;;  %v17093_v39 = vadd.f32 %v7114_v25, %v7050_v10  ;;  %v17147_v25 = vmul.f32 %v16673_v51, %v16673_v51  ;;  %v17163_v51 = vmul.f32 %v16695_v15, %v16695_v15 }
 0x7bc   : > { %v6687_v40 = vpop.f32.mrf.mxu3  ;;  %v6543_v58 = vpop.f32.mrf.mxu0 }
 0x7bd   : > { %v17095_v55 = vpop.eup %11787  ;;  %v17109_v46 = vadd.f32 %v7117_v1, %v7053_v48  ;;  %11789 = vrsqrt.f32 %v17093_v39  ;;  %v6688_v6 = vadd.f32 %v6687_v40, %v6638_v5  ;;  %v17136_v48 = vmul.f32 %v16651_v54, %v16651_v54 }
 0x7be   : > { %v6592_v47 = vpop.f32.mrf.mxu1  ;;  %v7242_v42 = vmul.f32 %v17095_v55, %v17052_v8  ;;  %v17154_v54 = vmul.f32 %v16676_v56, %v16676_v56  ;;  %v17158_v5 = vmul.f32 %v16691_v35, %v16691_v35  ;;  %v17175_v35 = vmul.f32 %v16731_v38, %v16731_v38 }
 0x7bf   : > { %11791 = vrsqrt.f32 %v17109_v46  ;;  %v6593_v10 = vadd.f32 %v6592_v47, %v6543_v58  ;;  %v6934_v30 = vadd.f32 %v6688_v6, %v19034_v63  ;;  %6738 = vmatmul.bf16.gmra.mxu0 %v16118_v4  ;;  %6836 = vmatmul.bf16.gmra.mxu2 %v16118_v4  ;;  %v17167_v58 = vmul.f32 %v16713_v20, %v16713_v20  ;;  %v11761_v20 = vld [vmem:[%s18477_s2 + $0xf8] sm:$0xff] }
 0x7c0   : > { %v7243_v0 = vmul.f32 %v17095_v55, %v7242_v42  ;;  %v17171_v4 = vmul.f32 %v16716_v22, %v16716_v22  ;;  %v17188_v42 = vmul.f32 %v16753_v45, %v16753_v45  ;;  %v19040_v45 = vld [vmem:[#allocation93_spill] sm:$0xff]  ;;  %8444 = vmatpush.bf16.msra.mxu3 %v11761_v20  ;;  %v19046_v20 = vld [vmem:[#allocation96_spill] sm:$0xff]  ;;  %vm7260_vm2 = vcmp.eq.f32.partialorder %v17093_v39, inf }
 0x7c1   : > { %v6941_v1 = vadd.f32 %v6593_v10, %v19035_v24  ;;  %6787 = vmatmul.bf16.gmra.mxu1 %v16120_v3  ;;  %v7118_v49 = vmul.f32 %v6934_v30, %v6934_v30  ;;  %6885 = vmatmul.bf16.gmra.mxu3 %v16120_v3  ;;  %v17179_v3 = vmul.f32 %v16735_v37, %v16735_v37  ;;  %v19038_v10 = vld [vmem:[#allocation92_spill] sm:$0xff]  ;;  %v11737_v30 = vld [vmem:[%s18477_s2 + $0x38] sm:$0xff]  ;;  %vm7296_vm3 = vcmp.eq.f32.partialorder %v17109_v46, inf }
 0x7c2   : > { %v7244_v40 = vmul.f32 0.5, %v7243_v0  ;;  %v6641_v6 = vpop.f32.mrf.mxu2  ;;  %19037 = vst [vmem:[#allocation29_spill] sm:$0xff] %v17188_v42  ;;  %v17192_v38 = vmul.f32 %v19038_v10, %v19038_v10  ;;  %v11745_v0 = vld [vmem:[%s18477_s2 + $0x78] sm:$0xff]  ;;  %8297 = vmatpush.bf16.msra.mxu0 %v11737_v30  ;;  %v17221_v42 = vmul.f32 %v19046_v20, %v19046_v20  ;;  %vm7298_vm4 = vcmp.eq.f32.partialorder %v17109_v46, 0.0 }
 0x7c3   : > { %v7121_v56 = vmul.f32 %v6941_v1, %v6941_v1  ;;  %v11790_v36 = vpop.eup %11789  ;;  %19036 = vst [vmem:[#allocation28_spill] sm:$0xff] %v17179_v3  ;;  %v17181_v15 = vadd.f32 %v7118_v49, %v7054_v60  ;;  %v17205_v1 = vmul.f32 %v19040_v45, %v19040_v45  ;;  %8346 = vmatpush.bf16.msra.mxu1 %v11745_v0  ;;  %v19045_v45 = vld [vmem:[#allocation35_spill] sm:$0xff]  ;;  %v19048_v3 = vld [vmem:[#allocation36_spill] sm:$0xff]  ;;  %vm7262_vm5 = vcmp.eq.f32.partialorder %v17093_v39, 0.0 }
 0x7c4   : > { %v7245_v47 = vsub.f32 1.5, %v7244_v40  ;;  %19039 = vst [vmem:[#allocation30_spill] sm:$0xff] %v17192_v38  ;;  %v6690_v37 = vpop.f32.mrf.mxu3  ;;  %v6545_v60 = vpop.f32.mrf.mxu0  ;;  %v7254_v24 = vmul.f32 %v11790_v36, %v17093_v39  ;;  %v17215_v38 = vmul.f32 %v19044_v34, %v19044_v34 }
 0x7c5   : > { %v11792_v22 = vpop.eup %11791  ;;  %v17194_v63 = vadd.f32 %v7121_v56, %v7057_v18  ;;  %19041 = vst [vmem:[#allocation31_spill] sm:$0xff] %v17205_v1  ;;  %11793 = vrsqrt.f32 %v17181_v15  ;;  %v6691_v18 = vadd.f32 %v6690_v37, %v6641_v6  ;;  %v19042_v56 = vld [vmem:[#allocation94_spill] sm:$0xff]  ;;  %vm7308_vm6 = vcmp.eq.f32.partialorder %v17181_v15, inf }
 0x7c6   : > { %v6594_v49 = vpop.f32.mrf.mxu1  ;;  %v7290_v40 = vmul.f32 %v11792_v22, %v17109_v46  ;;  %v17211_v10 = vmul.f32 %v19042_v56, %v19042_v56  ;;  %v7255_v61 = vmul.f32 %v11790_v36, %v7254_v24  ;;  %v7246_v6 = vmul.f32 %v17095_v55, %v7245_v47  ;;  %19047 = vst [vmem:[#allocation33_spill] sm:$0xff] %v17221_v42 }
 0x7c7   : > { %v6595_v28 = vadd.f32 %v6594_v49, %v6545_v60  ;;  %v6942_v1 = vadd.f32 %v6691_v18, %v19045_v45  ;;  %11795 = vrsqrt.f32 %v17194_v63  ;;  %v19049_v60 = vld [vmem:[#allocation97_spill] sm:$0xff]  ;;  %v7251_v55 = vand.u32 2147483648, %v17052_v8 }
 0x7c8   : > { %19043 = vst [vmem:[#allocation32_spill] sm:$0xff] %v17211_v10  ;;  %v7291_v37 = vmul.f32 %v11792_v22, %v7290_v40  ;;  %v7256_v10 = vmul.f32 0.5, %v7255_v61  ;;  %v17227_v30 = vmul.f32 %v19049_v60, %v19049_v60  ;;  %vm7310_vm7 = vcmp.eq.f32.partialorder %v17181_v15, 0.0 }
 0x7c9   : > { %v6949_v56 = vadd.f32 %v6595_v28, %v19048_v3  ;;  %v7122_v34 = vmul.f32 %v6942_v1, %v6942_v1  ;;  %v7247_v3 = vmul.f32 %v7246_v6, %v17052_v8  ;;  %vm7344_vm8 = vcmp.eq.f32.partialorder %v17194_v63, inf }
 0x7ca   : > { %19050 = vst [vmem:[#allocation34_spill] sm:$0xff] %v17227_v30  ;;  %v7292_v0 = vmul.f32 0.5, %v7291_v37  ;;  %v7257_v47 = vsub.f32 1.5, %v7256_v10  ;;  %v6643_v61 = vpop.f32.mrf.mxu2  ;;  %v11752_v37 = vld [vmem:[%s18477_s2 + $0xb0] sm:$0xff]  ;;  %vm7346_vm9 = vcmp.eq.f32.partialorder %v17194_v63, 0.0 }
 0x7cb   : > { %v7125_v24 = vmul.f32 %v6949_v56, %v6949_v56  ;;  %v11794_v18 = vpop.eup %11793  ;;  %v17233_v28 = vadd.f32 %v7122_v34, %v17067_v19  ;;  %8396 = vmatpush.bf16.msra.mxu2 %v11752_v37  ;;  %v7299_v34 = vand.u32 2147483648, %v17109_v46 }
 0x7cc   : > { %v7293_v49 = vsub.f32 1.5, %v7292_v0  ;;  %v6692_v40 = vpop.f32.mrf.mxu3  ;;  %v6548_v45 = vpop.f32.mrf.mxu0  ;;  %v7258_v10 = vmul.f32 %v11790_v36, %v7257_v47  ;;  %v7302_v19 = vmul.f32 %v11794_v18, %v17181_v15  ;;  %v7249_v36 = vsel %vm7248_vm0, %v17052_v8, %v7247_v3 }
 0x7cd   : > { %v17238_v1 = vadd.f32 %v7125_v24, %v17071_v33  ;;  %v6693_v20 = vadd.f32 %v6692_v40, %v6643_v61  ;;  %11797 = vrsqrt.f32 %v17233_v28  ;;  %v11796_v33 = vpop.eup %11795  ;;  %v19051_v24 = vld [vmem:[#allocation37_spill] sm:$0xff]  ;;  %v19052_v61 = vld [vmem:[#allocation38_spill] sm:$0xff]  ;;  %vm7356_vm11 = vcmp.eq.f32.partialorder %v17233_v28, inf }
 0x7ce   : > { %v6597_v56 = vpop.f32.mrf.mxu1  ;;  %v7294_v6 = vmul.f32 %v11792_v22, %v7293_v49  ;;  %v7303_v0 = vmul.f32 %v11794_v18, %v7302_v19  ;;  %v7338_v47 = vmul.f32 %v11796_v33, %v17194_v63  ;;  %v7259_v40 = vmul.f32 %v7258_v10, %v17093_v39 }
 0x7cf   : > { %v6598_v60 = vadd.f32 %v6597_v56, %v6548_v45  ;;  %11799 = vrsqrt.f32 %v17238_v1  ;;  %v6950_v30 = vadd.f32 %v6693_v20, %v19051_v24  ;;  %6743 = vmatmul.bf16.gmra.mxu0 %v16166_v41  ;;  %6841 = vmatmul.bf16.gmra.mxu2 %v16166_v41  ;;  %v7263_v19 = vand.u32 2147483648, %v17093_v39 }
 0x7d0   : > { %v7295_v22 = vmul.f32 %v7294_v6, %v17109_v46  ;;  %v7304_v45 = vmul.f32 0.5, %v7303_v0  ;;  %v7339_v20 = vmul.f32 %v11796_v33, %v7338_v47  ;;  %v17268_v6 = vsel %vm7250_vm1, %v7251_v55, %v7249_v36  ;;  %v11760_v0 = vld [vmem:[%s18477_s2 + $0xf0] sm:$0xff] }
 0x7d1   : > { %v6957_v49 = vadd.f32 %v6598_v60, %v19052_v61  ;;  %6792 = vmatmul.bf16.gmra.mxu1 %v16168_v43  ;;  %v7126_v37 = vmul.f32 %v6950_v30, %v6950_v30  ;;  %6890 = vmatmul.bf16.gmra.mxu3 %v16168_v43  ;;  %v7261_v47 = vsel %vm7260_vm2, %v17093_v39, %v7259_v40  ;;  %v19053_v40 = vld [vmem:[#allocation39_spill] sm:$0xff]  ;;  %vm7392_vm10 = vcmp.eq.f32.partialorder %v17238_v1, inf }
 0x7d2   : > { %v7297_v3 = vsel %vm7296_vm3, %v17109_v46, %v7295_v22  ;;  %v7305_v10 = vsub.f32 1.5, %v7304_v45  ;;  %v6646_v60 = vpop.f32.mrf.mxu2  ;;  %v7340_v8 = vmul.f32 0.5, %v7339_v20  ;;  %v11744_v22 = vld [vmem:[%s18477_s2 + $0x70] sm:$0xff]  ;;  %8445 = vmatpush.bf16.msra.mxu3 %v11760_v0  ;;  %v17305_v42 = vsel %vm7262_vm5, %v7263_v19, %v7261_v47 }
 0x7d3   : > { %v7129_v56 = vmul.f32 %v6957_v49, %v6957_v49  ;;  %v17272_v41 = vsel %vm7298_vm4, %v7299_v34, %v7297_v3  ;;  %v11798_v30 = vpop.eup %11797  ;;  %v17275_v43 = vadd.f32 %v7126_v37, %v17075_v52  ;;  %v11736_v52 = vld [vmem:[%s18477_s2 + $0x30] sm:$0xff]  ;;  %8347 = vmatpush.bf16.msra.mxu1 %v11744_v22  ;;  %vm7394_vm12 = vcmp.eq.f32.partialorder %v17238_v1, 0.0 }
 0x7d4   : > { %v6695_v34 = vpop.f32.mrf.mxu3  ;;  %v6550_v36 = vpop.f32.mrf.mxu0  ;;  %v7306_v61 = vmul.f32 %v11794_v18, %v7305_v10  ;;  %v7350_v49 = vmul.f32 %v11798_v30, %v17233_v28  ;;  %v7341_v37 = vsub.f32 1.5, %v7340_v8  ;;  %8298 = vmatpush.bf16.msra.mxu0 %v11736_v52  ;;  %v7311_v10 = vand.u32 2147483648, %v17181_v15  ;;  %v19054_v0 = vld [vmem:[#allocation40_spill] sm:$0xff] }
 0x7d5   : > { %v11800_v55 = vpop.eup %11799  ;;  %v17284_v46 = vadd.f32 %v7129_v56, %v17079_v11  ;;  %v6696_v45 = vadd.f32 %v6695_v34, %v6646_v60  ;;  %11801 = vrsqrt.f32 %v17275_v43  ;;  %vm7358_vm13 = vcmp.eq.f32.partialorder %v17233_v28, 0.0 }
 0x7d6   : > { %v6599_v11 = vpop.f32.mrf.mxu1  ;;  %v7386_v3 = vmul.f32 %v11800_v55, %v17238_v1  ;;  %v7307_v56 = vmul.f32 %v7306_v61, %v17181_v15  ;;  %v7351_v24 = vmul.f32 %v11798_v30, %v7350_v49  ;;  %v7342_v60 = vmul.f32 %v11796_v33, %v7341_v37 }
 0x7d7   : > { %v6600_v20 = vadd.f32 %v6599_v11, %v6550_v36  ;;  %v6958_v18 = vadd.f32 %v6696_v45, %v19053_v40  ;;  %11803 = vrsqrt.f32 %v17284_v46  ;;  %v7347_v40 = vand.u32 2147483648, %v17194_v63 }
 0x7d8   : > { %v7387_v34 = vmul.f32 %v11800_v55, %v7386_v3  ;;  %v7309_v36 = vsel %vm7308_vm6, %v17181_v15, %v7307_v56  ;;  %v7352_v52 = vmul.f32 0.5, %v7351_v24  ;;  %v7343_v49 = vmul.f32 %v7342_v60, %v17194_v63  ;;  %v11751_v56 = vld [vmem:[%s18477_s2 + $0xa8] sm:$0xff] }
 0x7d9   : > { %v6965_v8 = vadd.f32 %v6600_v20, %v19054_v0  ;;  %v7130_v22 = vmul.f32 %v6958_v18, %v6958_v18  ;;  %v17310_v61 = vsel %vm7310_vm7, %v7311_v10, %v7309_v36  ;;  %8397 = vmatpush.bf16.msra.mxu2 %v11751_v56  ;;  %v19055_v36 = vld [vmem:[#allocation41_spill] sm:$0xff]  ;;  %vm7404_vm14 = vcmp.eq.f32.partialorder %v17275_v43, inf }
 0x7da   : > { %v7388_v45 = vmul.f32 0.5, %v7387_v34  ;;  %v8010_v33 = vpack.c.bf16 %v17310_v61, %v17305_v42  ;;  %v7353_v37 = vsub.f32 1.5, %v7352_v52  ;;  %v6648_v47 = vpop.f32.mrf.mxu2  ;;  %v7345_v0 = vsel %vm7344_vm8, %v17194_v63, %v7343_v49  ;;  %v11759_v63 = vld [vmem:[%s18477_s2 + $0xe8] sm:$0xff] }
 0x7db   : > { %v7133_v11 = vmul.f32 %v6965_v8, %v6965_v8  ;;  %v11802_v39 = vpop.eup %11801  ;;  %v17317_v19 = vadd.f32 %v7130_v22, %v17083_v14  ;;  %8446 = vmatpush.bf16.msra.mxu3 %v11759_v63  ;;  %vm7406_vm15 = vcmp.eq.f32.partialorder %v17275_v43, 0.0  ;;  %vm7440_vm0 = vcmp.eq.f32.partialorder %v17284_v46, inf  ;;  %v19087_v61 = vld [vmem:[#allocation31_spill] sm:$0xff] }
 0x7dc   : > { %v7389_v15 = vsub.f32 1.5, %v7388_v45  ;;  %v6697_v3 = vpop.f32.mrf.mxu3  ;;  %v6553_v20 = vpop.f32.mrf.mxu0  ;;  %v7354_v18 = vmul.f32 %v11798_v30, %v7353_v37  ;;  %v7398_v14 = vmul.f32 %v11802_v39, %v17275_v43  ;;  %v19056_v45 = vld [vmem:[#allocation42_spill] sm:$0xff]  ;;  %vm7442_vm1 = vcmp.eq.f32.partialorder %v17284_v46, 0.0 }
 0x7dd   : > { %v17322_v24 = vadd.f32 %v7133_v11, %v17087_v50  ;;  %v6698_v10 = vadd.f32 %v6697_v3, %v6648_v47  ;;  %v11804_v22 = vpop.eup %11803  ;;  %vm7452_vm4 = vcmp.eq.f32.partialorder %v17317_v19, inf  ;;  %vm7454_vm5 = vcmp.eq.f32.partialorder %v17317_v19, 0.0 }
 0x7de   : > { %v6602_v60 = vpop.f32.mrf.mxu1  ;;  %v7390_v34 = vmul.f32 %v11800_v55, %v7389_v15  ;;  %v7399_v8 = vmul.f32 %v11802_v39, %v7398_v14  ;;  %v7395_v55 = vand.u32 2147483648, %v17238_v1  ;;  %v7355_v49 = vmul.f32 %v7354_v18, %v17233_v28 }
 0x7df   : > { %v6603_v50 = vadd.f32 %v6602_v60, %v6553_v20  ;;  %11805 = vrsqrt.f32 %v17322_v24  ;;  %v6966_v30 = vadd.f32 %v6698_v10, %v19055_v36  ;;  %6748 = vmatmul.bf16.gmra.mxu0 %v16214_v23  ;;  %6846 = vmatmul.bf16.gmra.mxu2 %v16214_v23  ;;  %v17348_v15 = vsel %vm7346_vm9, %v7347_v40, %v7345_v0 }
 0x7e0   : > { %v7391_v52 = vmul.f32 %v7390_v34, %v17238_v1  ;;  %v7400_v37 = vmul.f32 0.5, %v7399_v8  ;;  %v7434_v20 = vmul.f32 %v11804_v22, %v17284_v46  ;;  %11807 = vrsqrt.f32 %v17317_v19  ;;  %v11743_v8 = vld [vmem:[%s18477_s2 + $0x68] sm:$0xff] }
 0x7e1   : > { %v6973_v11 = vadd.f32 %v6603_v50, %v19056_v45  ;;  %6797 = vmatmul.bf16.gmra.mxu1 %v16216_v32  ;;  %v7134_v47 = vmul.f32 %v6966_v30, %v6966_v30  ;;  %6895 = vmatmul.bf16.gmra.mxu3 %v16216_v32  ;;  %v7357_v36 = vsel %vm7356_vm11, %v17233_v28, %v7355_v49  ;;  %v7407_v49 = vand.u32 2147483648, %v17275_v43 }
 0x7e2   : > { %v7393_v3 = vsel %vm7392_vm10, %v17238_v1, %v7391_v52  ;;  %v7401_v18 = vsub.f32 1.5, %v7400_v37  ;;  %v6651_v32 = vpop.f32.mrf.mxu2  ;;  %v7359_v1 = vand.u32 2147483648, %v17233_v28  ;;  %v7435_v10 = vmul.f32 %v11804_v22, %v7434_v20  ;;  %8348 = vmatpush.bf16.msra.mxu1 %v11743_v8 }
 0x7e3   : > { %v7137_v56 = vmul.f32 %v6973_v11, %v6973_v11  ;;  %v17354_v23 = vsel %vm7394_vm12, %v7395_v55, %v7393_v3  ;;  %v17358_v14 = vadd.f32 %v7134_v47, %v17091_v2  ;;  %v11735_v2 = vld [vmem:[%s18477_s2 + $0x28] sm:$0xff]  ;;  %v7443_v28 = vand.u32 2147483648, %v17284_v46 }
 0x7e4   : > { %v6700_v50 = vpop.f32.mrf.mxu3  ;;  %v6555_v0 = vpop.f32.mrf.mxu0  ;;  %v7402_v30 = vmul.f32 %v11802_v39, %v7401_v18  ;;  %v7436_v55 = vmul.f32 0.5, %v7435_v10  ;;  %8299 = vmatpush.bf16.msra.mxu0 %v11735_v2  ;;  %v19057_v39 = vld [vmem:[#allocation43_spill] sm:$0xff]  ;;  %v19058_v18 = vld [vmem:[#allocation44_spill] sm:$0xff]  ;;  %v17389_v63 = vsel %vm7358_vm13, %v7359_v1, %v7357_v36  ;;  %vm7488_vm2 = vcmp.eq.f32.partialorder %v17322_v24, inf }
 0x7e5   : > { %v11806_v60 = vpop.eup %11805  ;;  %v17367_v34 = vadd.f32 %v7137_v56, %v17099_v17  ;;  %v6701_v52 = vadd.f32 %v6700_v50, %v6651_v32  ;;  %11809 = vrsqrt.f32 %v17358_v14  ;;  %vm7490_vm3 = vcmp.eq.f32.partialorder %v17322_v24, 0.0 }
 0x7e6   : > { %v6604_v17 = vpop.f32.mrf.mxu1  ;;  %v7482_v45 = vmul.f32 %v11806_v60, %v17322_v24  ;;  %v7403_v37 = vmul.f32 %v7402_v30, %v17275_v43  ;;  %v7437_v3 = vsub.f32 1.5, %v7436_v55  ;;  %v11808_v56 = vpop.eup %11807  ;;  %vm7500_vm6 = vcmp.eq.f32.partialorder %v17358_v14, inf }
 0x7e7   : > { %v6605_v11 = vadd.f32 %v6604_v17, %v6555_v0  ;;  %v6974_v47 = vadd.f32 %v6701_v52, %v19057_v39  ;;  %11811 = vrsqrt.f32 %v17367_v34  ;;  %v7446_v1 = vmul.f32 %v11808_v56, %v17317_v19 }
 0x7e8   : > { %v7483_v20 = vmul.f32 %v11806_v60, %v7482_v45  ;;  %v7405_v10 = vsel %vm7404_vm14, %v17275_v43, %v7403_v37  ;;  %v7438_v2 = vmul.f32 %v11804_v22, %v7437_v3  ;;  %vm7502_vm7 = vcmp.eq.f32.partialorder %v17358_v14, 0.0 }
 0x7e9   : > { %v6981_v32 = vadd.f32 %v6605_v11, %v19058_v18  ;;  %v7138_v50 = vmul.f32 %v6974_v47, %v6974_v47  ;;  %v17396_v0 = vsel %vm7406_vm15, %v7407_v49, %v7405_v10  ;;  %v11750_v49 = vld [vmem:[%s18477_s2 + $0xa0] sm:$0xff]  ;;  %v7447_v39 = vmul.f32 %v11808_v56, %v7446_v1 }
 0x7ea   : > { %v7484_v8 = vmul.f32 0.5, %v7483_v20  ;;  %v6653_v17 = vpop.f32.mrf.mxu2  ;;  %v7439_v55 = vmul.f32 %v7438_v2, %v17284_v46  ;;  %v7491_v18 = vand.u32 2147483648, %v17322_v24  ;;  %8398 = vmatpush.bf16.msra.mxu2 %v11750_v49  ;;  %vm7536_vm8 = vcmp.eq.f32.partialorder %v17367_v34, inf }
 0x7eb   : > { %v7141_v30 = vmul.f32 %v6981_v32, %v6981_v32  ;;  %v11810_v36 = vpop.eup %11809  ;;  %v17403_v43 = vadd.f32 %v7138_v50, %v17103_v16  ;;  %v7448_v50 = vmul.f32 0.5, %v7447_v39  ;;  %vm7538_vm9 = vcmp.eq.f32.partialorder %v17367_v34, 0.0 }
 0x7ec   : > { %v7485_v45 = vsub.f32 1.5, %v7484_v8  ;;  %v6702_v11 = vpop.f32.mrf.mxu3  ;;  %v6558_v37 = vpop.f32.mrf.mxu0  ;;  %v7494_v16 = vmul.f32 %v11810_v36, %v17358_v14  ;;  %v7441_v10 = vsel %vm7440_vm0, %v17284_v46, %v7439_v55  ;;  %v19059_v8 = vld [vmem:[#allocation45_spill] sm:$0xff] }
 0x7ed   : > { %v17408_v22 = vadd.f32 %v7141_v30, %v17107_v57  ;;  %v6703_v47 = vadd.f32 %v6702_v11, %v6653_v17  ;;  %11813 = vrsqrt.f32 %v17403_v43  ;;  %v11812_v57 = vpop.eup %11811  ;;  %v19060_v17 = vld [vmem:[#allocation46_spill] sm:$0xff]  ;;  %v7449_v11 = vsub.f32 1.5, %v7448_v50 }
 0x7ee   : > { %v6607_v3 = vpop.f32.mrf.mxu1  ;;  %v7486_v20 = vmul.f32 %v11806_v60, %v7485_v45  ;;  %v7495_v2 = vmul.f32 %v11810_v36, %v7494_v16  ;;  %v7530_v60 = vmul.f32 %v11812_v57, %v17367_v34  ;;  %v17432_v49 = vsel %vm7442_vm1, %v7443_v28, %v7441_v10  ;;  %v11758_v28 = vld [vmem:[%s18477_s2 + $0xe0] sm:$0xff] }
 0x7ef   : > { %v6608_v32 = vadd.f32 %v6607_v3, %v6558_v37  ;;  %v6982_v30 = vadd.f32 %v6703_v47, %v19059_v8  ;;  %6753 = vmatmul.bf16.gmra.mxu0 %v16262_v26  ;;  %11815 = vrsqrt.f32 %v17408_v22  ;;  %6851 = vmatmul.bf16.gmra.mxu2 %v16262_v26  ;;  %v7450_v3 = vmul.f32 %v11808_v56, %v7449_v11 }
 0x7f0   : > { %v7487_v1 = vmul.f32 %v7486_v20, %v17322_v24  ;;  %v7496_v55 = vmul.f32 0.5, %v7495_v2  ;;  %v7531_v16 = vmul.f32 %v11812_v57, %v7530_v60  ;;  %v11742_v2 = vld [vmem:[%s18477_s2 + $0x60] sm:$0xff]  ;;  %8447 = vmatpush.bf16.msra.mxu3 %v11758_v28  ;;  %vm7584_vm10 = vcmp.eq.f32.partialorder %v17408_v22, inf }
 0x7f1   : > { %v6989_v45 = vadd.f32 %v6608_v32, %v19060_v17  ;;  %6802 = vmatmul.bf16.gmra.mxu1 %v16264_v21  ;;  %v7142_v37 = vmul.f32 %v6982_v30, %v6982_v30  ;;  %6900 = vmatmul.bf16.gmra.mxu3 %v16264_v21  ;;  %v7451_v8 = vmul.f32 %v7450_v3, %v17317_v19  ;;  %vm7586_vm11 = vcmp.eq.f32.partialorder %v17408_v22, 0.0 }
 0x7f2   : > { %v7489_v39 = vsel %vm7488_vm2, %v17322_v24, %v7487_v1  ;;  %v7497_v20 = vsub.f32 1.5, %v7496_v55  ;;  %v6656_v46 = vpop.f32.mrf.mxu2  ;;  %v7532_v24 = vmul.f32 0.5, %v7531_v16  ;;  %8349 = vmatpush.bf16.msra.mxu1 %v11742_v2  ;;  %vm7548_vm12 = vcmp.eq.f32.partialorder %v17403_v43, inf }
 0x7f3   : > { %v7145_v47 = vmul.f32 %v6989_v45, %v6989_v45  ;;  %v17439_v26 = vsel %vm7490_vm3, %v7491_v18, %v7489_v39  ;;  %v17441_v32 = vpop.eup %11813  ;;  %v17444_v21 = vadd.f32 %v7142_v37, %v17116_v44  ;;  %v11734_v44 = vld [vmem:[%s18477_s2 + $0x20] sm:$0xff]  ;;  %v7455_v45 = vand.u32 2147483648, %v17317_v19  ;;  %v19061_v39 = vld [vmem:[#allocation47_spill] sm:$0xff] }
 0x7f4   : > { %v6705_v56 = vpop.f32.mrf.mxu3  ;;  %v6560_v50 = vpop.f32.mrf.mxu0  ;;  %v7498_v30 = vmul.f32 %v11810_v36, %v7497_v20  ;;  %v7542_v1 = vmul.f32 %v17441_v32, %v17403_v43  ;;  %v7533_v11 = vsub.f32 1.5, %v7532_v24  ;;  %8300 = vmatpush.bf16.msra.mxu0 %v11734_v44  ;;  %v7453_v37 = vsel %vm7452_vm4, %v17317_v19, %v7451_v8 }
 0x7f5   : > { %v17453_v18 = vadd.f32 %v7145_v47, %v17123_v13  ;;  %v11816_v60 = vpop.eup %11815  ;;  %v6706_v17 = vadd.f32 %v6705_v56, %v6656_v46  ;;  %v7503_v47 = vand.u32 2147483648, %v17358_v14  ;;  %v19062_v46 = vld [vmem:[#allocation48_spill] sm:$0xff]  ;;  %11817 = vrsqrt.f32 %v17444_v21 }
 0x7f6   : > { %v6609_v13 = vpop.f32.mrf.mxu1  ;;  %v7499_v36 = vmul.f32 %v7498_v30, %v17358_v14  ;;  %v7534_v3 = vmul.f32 %v11812_v57, %v7533_v11  ;;  %v7578_v20 = vmul.f32 %v11816_v60, %v17408_v22  ;;  %v7543_v56 = vmul.f32 %v17441_v32, %v7542_v1  ;;  %v19063_v30 = vld [vmem:[#allocation98_spill] sm:$0xff]  ;;  %v19064_v1 = vld [vmem:[#allocation99_spill] sm:$0xff] }
 0x7f7   : > { %v6610_v55 = vadd.f32 %v6609_v13, %v6560_v50  ;;  %v6990_v16 = vadd.f32 %v6706_v17, %v19061_v39  ;;  %v17480_v44 = vsel %vm7454_vm5, %v7455_v45, %v7453_v37  ;;  %v17486_v57 = vmul.f32 %v19063_v30, %v19063_v30 }
 0x7f8   : > { %v7501_v24 = vsel %vm7500_vm6, %v17358_v14, %v7499_v36  ;;  %v7579_v8 = vmul.f32 %v11816_v60, %v7578_v20  ;;  %v7544_v13 = vmul.f32 0.5, %v7543_v56  ;;  %v17492_v11 = vmul.f32 %v19064_v1, %v19064_v1  ;;  %v11749_v20 = vld [vmem:[%s18477_s2 + $0x98] sm:$0xff]  ;;  %v19067_v1 = vld [vmem:[#allocation50_spill] sm:$0xff] }
 0x7f9   : > { %v6997_v28 = vadd.f32 %v6610_v55, %v19062_v46  ;;  %v7146_v50 = vmul.f32 %v6990_v16, %v6990_v16  ;;  %v17482_v2 = vsel %vm7502_vm7, %v7503_v47, %v7501_v24  ;;  %v19065_v55 = vld [vmem:[#allocation2_spill] sm:$0xff]  ;;  %v7535_v46 = vmul.f32 %v7534_v3, %v17367_v34  ;;  %8399 = vmatpush.bf16.msra.mxu2 %v11749_v20  ;;  %v19066_v3 = vld [vmem:[#allocation49_spill] sm:$0xff] }
 0x7fa   : > { %v17496_v19 = vmul.f32 %v19065_v55, %v19065_v55  ;;  %v6658_v37 = vpop.f32.mrf.mxu2  ;;  %v7580_v36 = vmul.f32 0.5, %v7579_v8  ;;  %11819 = vrsqrt.f32 %v17453_v18  ;;  %v7539_v8 = vand.u32 2147483648, %v17367_v34 }
 0x7fb   : > { %v7149_v17 = vmul.f32 %v6997_v28, %v6997_v28  ;;  %v17499_v45 = vadd.f32 %v7146_v50, %v17127_v7  ;;  %v7545_v28 = vsub.f32 1.5, %v7544_v13  ;;  %vm7550_vm13 = vcmp.eq.f32.partialorder %v17403_v43, 0.0 }
 0x7fc   : > { %v6707_v16 = vpop.f32.mrf.mxu3  ;;  %v6563_v47 = vpop.f32.mrf.mxu0  ;;  %v7581_v7 = vsub.f32 1.5, %v7580_v36  ;;  %v11741_v36 = vld [vmem:[%s18477_s2 + $0x58] sm:$0xff]  ;;  %vm7596_vm14 = vcmp.eq.f32.partialorder %v17444_v21, inf  ;;  %vm7598_vm15 = vcmp.eq.f32.partialorder %v17444_v21, 0.0  ;;  %vm7632_vm0 = vcmp.eq.f32.partialorder %v17453_v18, inf }
 0x7fd   : > { %v17502_v39 = vadd.f32 %v7149_v17, %v17132_v53  ;;  %v6708_v24 = vadd.f32 %v6707_v16, %v6658_v37  ;;  %v11818_v53 = vpop.eup %11817  ;;  %v11733_v37 = vld [vmem:[%s18477_s2 + $0x18] sm:$0xff]  ;;  %v7587_v16 = vand.u32 2147483648, %v17408_v22  ;;  %8350 = vmatpush.bf16.msra.mxu1 %v11741_v36  ;;  %vm7634_vm1 = vcmp.eq.f32.partialorder %v17453_v18, 0.0 }
 0x7fe   : > { %v6612_v56 = vpop.f32.mrf.mxu1  ;;  %v7582_v17 = vmul.f32 %v11816_v60, %v7581_v7  ;;  %v7590_v13 = vmul.f32 %v11818_v53, %v17444_v21  ;;  %v7537_v60 = vsel %vm7536_vm8, %v17367_v34, %v7535_v46  ;;  %8301 = vmatpush.bf16.msra.mxu0 %v11733_v37  ;;  %v7551_v7 = vand.u32 2147483648, %v17403_v43  ;;  %v11740_v34 = vld [vmem:[%s18477_s2 + $0x50] sm:$0xff] }
 0x7ff   : > { %v6613_v50 = vadd.f32 %v6612_v56, %v6563_v47  ;;  %v6998_v30 = vadd.f32 %v6708_v24, %v19066_v3  ;;  %6758 = vmatmul.bf16.gmra.mxu0 %v16310_v9  ;;  %11821 = vrsqrt.f32 %v17502_v39  ;;  %6856 = vmatmul.bf16.gmra.mxu2 %v16310_v9  ;;  %v7546_v47 = vmul.f32 %v17441_v32, %v7545_v28  ;;  %v11757_v28 = vld [vmem:[%s18477_s2 + $0xd8] sm:$0xff] }
 0x800   : > { %v7583_v9 = vmul.f32 %v7582_v17, %v17408_v22  ;;  %v7591_v24 = vmul.f32 %v11818_v53, %v7590_v13  ;;  %11823 = vrsqrt.f32 %v17499_v45  ;;  %v17539_v32 = vpop.eup %11819  ;;  %8448 = vmatpush.bf16.msra.mxu3 %v11757_v28  ;;  %v7635_v28 = vand.u32 2147483648, %v17453_v18 }
 0x801   : > { %v7005_v55 = vadd.f32 %v6613_v50, %v19067_v1  ;;  %6807 = vmatmul.bf16.gmra.mxu1 %v16312_v12  ;;  %v7150_v20 = vmul.f32 %v6998_v30, %v6998_v30  ;;  %6905 = vmatmul.bf16.gmra.mxu3 %v16312_v12  ;;  %v17549_v50 = vsel %vm7538_vm9, %v7539_v8, %v7537_v60  ;;  %v11732_v1 = vld [vmem:[%s18477_s2 + $0x10] sm:$0xff]  ;;  %vm7680_vm2 = vcmp.eq.f32.partialorder %v17502_v39, inf }
 0x802   : > { %v6661_v46 = vpop.f32.mrf.mxu2  ;;  %v7585_v3 = vsel %vm7584_vm10, %v17408_v22, %v7583_v9  ;;  %v7592_v30 = vmul.f32 0.5, %v7591_v24  ;;  %v7599_v24 = vand.u32 2147483648, %v17444_v21  ;;  %8302 = vmatpush.bf16.msra.mxu0 %v11732_v1  ;;  %8351 = vmatpush.bf16.msra.mxu1 %v11740_v34  ;;  %v11739_v1 = vld [vmem:[%s18477_s2 + $0x48] sm:$0xff]  ;;  %vm7682_vm3 = vcmp.eq.f32.partialorder %v17502_v39, 0.0 }
 0x803   : > { %v7153_v56 = vmul.f32 %v7005_v55, %v7005_v55  ;;  %v17542_v12 = vadd.f32 %v7150_v20, %v17136_v48  ;;  %v17566_v8 = vsel %vm7586_vm11, %v7587_v16, %v7585_v3  ;;  %v7547_v55 = vmul.f32 %v7546_v47, %v17403_v43  ;;  %v19068_v47 = vld [vmem:[#allocation51_spill] sm:$0xff] }
 0x804   : > { %v6710_v48 = vpop.f32.mrf.mxu3  ;;  %v6565_v13 = vpop.f32.mrf.mxu0  ;;  %v7593_v9 = vsub.f32 1.5, %v7592_v30  ;;  %v19069_v30 = vld [vmem:[#allocation52_spill] sm:$0xff]  ;;  %vm7644_vm4 = vcmp.eq.f32.partialorder %v17499_v45, inf  ;;  %vm7646_vm5 = vcmp.eq.f32.partialorder %v17499_v45, 0.0 }
 0x805   : > { %v17556_v17 = vadd.f32 %v7153_v56, %v17143_v59  ;;  %v7626_v59 = vmul.f32 %v17539_v32, %v17453_v18  ;;  %v11822_v37 = vpop.eup %11821  ;;  %v6711_v36 = vadd.f32 %v6710_v48, %v6661_v46  ;;  %11825 = vrsqrt.f32 %v17542_v12 }
 0x806   : > { %v6614_v60 = vpop.f32.mrf.mxu1  ;;  %v7674_v16 = vmul.f32 %v11822_v37, %v17502_v39  ;;  %v7594_v46 = vmul.f32 %v11818_v53, %v7593_v9  ;;  %v11824_v48 = vpop.eup %11823  ;;  %v7549_v34 = vsel %vm7548_vm12, %v17403_v43, %v7547_v55  ;;  %8352 = vmatpush.bf16.msra.mxu1 %v11739_v1  ;;  %v11730_v43 = vld [vmem:[%s18477_s2] sm:$0xff]  ;;  %vm7692_vm6 = vcmp.eq.f32.partialorder %v17542_v12, inf }
 0x807   : > { %v6615_v56 = vadd.f32 %v6614_v60, %v6565_v13  ;;  %v7627_v22 = vmul.f32 %v17539_v32, %v7626_v59  ;;  %v7006_v3 = vadd.f32 %v6711_v36, %v19068_v47  ;;  %v11731_v13 = vld [vmem:[%s18477_s2 + $0x8] sm:$0xff]  ;;  %v7638_v9 = vmul.f32 %v11824_v48, %v17499_v45 }
 0x808   : > { %v7675_v59 = vmul.f32 %v11822_v37, %v7674_v16  ;;  %v7595_v60 = vmul.f32 %v7594_v46, %v17444_v21  ;;  %11827 = vrsqrt.f32 %v17556_v17  ;;  %8303 = vmatpush.bf16.msra.mxu0 %v11731_v13  ;;  %v17600_v16 = vsel %vm7550_vm13, %v7551_v7, %v7549_v34  ;;  %v11738_v7 = vld [vmem:[%s18477_s2 + $0x40] sm:$0xff] }
 0x809   : > { %v7013_v20 = vadd.f32 %v6615_v56, %v19069_v30  ;;  %v7628_v53 = vmul.f32 0.5, %v7627_v22  ;;  %v7154_v36 = vmul.f32 %v7006_v3, %v7006_v3  ;;  %v7639_v46 = vmul.f32 %v11824_v48, %v7638_v9 }
 0x80a   : > { %v7676_v30 = vmul.f32 0.5, %v7675_v59  ;;  %v6663_v22 = vpop.f32.mrf.mxu2  ;;  %v7597_v3 = vsel %vm7596_vm14, %v17444_v21, %v7595_v60  ;;  %8353 = vmatpush.bf16.msra.mxu1 %v11738_v7  ;;  %vm7694_vm7 = vcmp.eq.f32.partialorder %v17542_v12, 0.0  ;;  %vm7728_vm8 = vcmp.eq.f32.partialorder %v17556_v17, inf }
 0x80b   : > { %v7157_v56 = vmul.f32 %v7013_v20, %v7013_v20  ;;  %v7629_v47 = vsub.f32 1.5, %v7628_v53  ;;  %v17596_v55 = vadd.f32 %v7154_v36, %v17147_v25  ;;  %v11826_v20 = vpop.eup %11825  ;;  %v11748_v25 = vld [vmem:[%s18477_s2 + $0x90] sm:$0xff]  ;;  %v17619_v34 = vsel %vm7598_vm15, %v7599_v24, %v7597_v3  ;;  %v19070_v24 = vld [vmem:[#allocation53_spill] sm:$0xff] }
 0x80c   : > { %v6712_v1 = vpop.f32.mrf.mxu3  ;;  %v6568_v53 = vpop.f32.mrf.mxu0  ;;  %v7677_v59 = vsub.f32 1.5, %v7676_v30  ;;  %v7686_v14 = vmul.f32 %v11826_v20, %v17542_v12  ;;  %8400 = vmatpush.bf16.msra.mxu2 %v11748_v25  ;;  %8304 = vmatpush.bf16.msra.mxu0 %v11730_v43  ;;  %vm7730_vm9 = vcmp.eq.f32.partialorder %v17556_v17, 0.0 }
 0x80d   : > { %v17606_v13 = vadd.f32 %v7157_v56, %v17154_v54  ;;  %v7630_v54 = vmul.f32 %v17539_v32, %v7629_v47  ;;  %v6713_v36 = vadd.f32 %v6712_v1, %v6663_v22  ;;  %v7640_v56 = vmul.f32 0.5, %v7639_v46  ;;  %v19071_v22 = vld [vmem:[#allocation54_spill] sm:$0xff] }
 0x80e   : > { %v6617_v60 = vpop.f32.mrf.mxu1  ;;  %v7678_v40 = vmul.f32 %v11822_v37, %v7677_v59  ;;  %v11828_v21 = vpop.eup %11827  ;;  %v7687_v30 = vmul.f32 %v11826_v20, %v7686_v14  ;;  %v7683_v1 = vand.u32 2147483648, %v17502_v39  ;;  %vm7740_vm12 = vcmp.eq.f32.partialorder %v17596_v55, inf }
 0x80f   : > { %v6618_v10 = vadd.f32 %v6617_v60, %v6568_v53  ;;  %v7631_v52 = vmul.f32 %v7630_v54, %v17453_v18  ;;  %v7014_v32 = vadd.f32 %v6713_v36, %v19070_v24  ;;  %6763 = vmatmul.bf16.gmra.mxu0 %v16358_v29  ;;  %v7641_v47 = vsub.f32 1.5, %v7640_v56  ;;  %6861 = vmatmul.bf16.gmra.mxu2 %v16358_v29 }
 0x810   : > { %11829 = vrsqrt.f32 %v17606_v13  ;;  %v7679_v46 = vmul.f32 %v7678_v40, %v17502_v39  ;;  %v7688_v25 = vmul.f32 0.5, %v7687_v30  ;;  %vm7776_vm10 = vcmp.eq.f32.partialorder %v17606_v13, inf }
 0x811   : > { %v7021_v3 = vadd.f32 %v6618_v10, %v19071_v22  ;;  %6812 = vmatmul.bf16.gmra.mxu1 %v16360_v27  ;;  %v7633_v37 = vsel %vm7632_vm0, %v17453_v18, %v7631_v52  ;;  %v7158_v53 = vmul.f32 %v7014_v32, %v7014_v32  ;;  %6910 = vmatmul.bf16.gmra.mxu3 %v16360_v27  ;;  %11831 = vrsqrt.f32 %v17596_v55 }
 0x812   : > { %v7642_v14 = vmul.f32 %v11824_v48, %v7641_v47  ;;  %v17644_v29 = vsel %vm7634_vm1, %v7635_v28, %v7633_v37  ;;  %v7681_v40 = vsel %vm7680_vm2, %v17502_v39, %v7679_v46  ;;  %v7722_v52 = vmul.f32 %v11828_v21, %v17556_v17  ;;  %v6666_v27 = vpop.f32.mrf.mxu2  ;;  %v11756_v48 = vld [vmem:[%s18477_s2 + $0xd0] sm:$0xff]  ;;  %v19072_v37 = vld [vmem:[#allocation55_spill] sm:$0xff] }
 0x813   : > { %v7161_v10 = vmul.f32 %v7021_v3, %v7021_v3  ;;  %v17651_v43 = vadd.f32 %v7158_v53, %v17158_v5  ;;  %v17658_v7 = vsel %vm7682_vm3, %v7683_v1, %v7681_v40  ;;  %v7689_v28 = vsub.f32 1.5, %v7688_v25  ;;  %8449 = vmatpush.bf16.msra.mxu3 %v11756_v48  ;;  %v19073_v53 = vld [vmem:[#allocation56_spill] sm:$0xff] }
 0x814   : > { %v7643_v18 = vmul.f32 %v7642_v14, %v17499_v45  ;;  %v6715_v59 = vpop.f32.mrf.mxu3  ;;  %v6570_v36 = vpop.f32.mrf.mxu0  ;;  %v7723_v60 = vmul.f32 %v11828_v21, %v7722_v52  ;;  %v7647_v39 = vand.u32 2147483648, %v17499_v45  ;;  %v7695_v14 = vand.u32 2147483648, %v17542_v12 }
 0x815   : > { %v17662_v54 = vadd.f32 %v7161_v10, %v17163_v51  ;;  %v6716_v24 = vadd.f32 %v6715_v59, %v6666_v27  ;;  %v7690_v47 = vmul.f32 %v11826_v20, %v7689_v28  ;;  %11833 = vrsqrt.f32 %v17651_v43 }
 0x816   : > { %v11830_v56 = vpop.eup %11829  ;;  %v6619_v32 = vpop.f32.mrf.mxu1  ;;  %v7645_v51 = vsel %vm7644_vm4, %v17499_v45, %v7643_v18  ;;  %v7724_v22 = vmul.f32 0.5, %v7723_v60  ;;  %v19074_v60 = vld [vmem:[#allocation3_spill] sm:$0xff]  ;;  %vm7778_vm11 = vcmp.eq.f32.partialorder %v17606_v13, 0.0  ;;  %vm7742_vm13 = vcmp.eq.f32.partialorder %v17596_v55, 0.0 }
 0x817   : > { %v6620_v30 = vadd.f32 %v6619_v32, %v6570_v36  ;;  %v7770_v3 = vmul.f32 %v11830_v56, %v17606_v13  ;;  %v7022_v46 = vadd.f32 %v6716_v24, %v19072_v37  ;;  %v7691_v1 = vmul.f32 %v7690_v47, %v17542_v12  ;;  %v11832_v36 = vpop.eup %11831  ;;  %v19075_v32 = vld [vmem:[#allocation4_spill] sm:$0xff] }
 0x818   : > { %v7725_v25 = vsub.f32 1.5, %v7724_v22  ;;  %v17681_v52 = vsel %vm7646_vm5, %v7647_v39, %v7645_v51  ;;  %v17689_v24 = vmul.f32 %v19074_v60, %v19074_v60  ;;  %v17693_v47 = vmul.f32 %v19075_v32, %v19075_v32 }
 0x819   : > { %v7029_v20 = vadd.f32 %v6620_v30, %v19073_v53  ;;  %v7771_v10 = vmul.f32 %v11830_v56, %v7770_v3  ;;  %v7162_v40 = vmul.f32 %v7022_v46, %v7022_v46  ;;  %v7693_v27 = vsel %vm7692_vm6, %v17542_v12, %v7691_v1 }
 0x81a   : > { %v17685_v18 = vsel %vm7694_vm7, %v7695_v14, %v7693_v27  ;;  %v7726_v28 = vmul.f32 %v11828_v21, %v7725_v25  ;;  %v6668_v12 = vpop.f32.mrf.mxu2  ;;  %v7734_v37 = vmul.f32 %v11832_v36, %v17596_v55  ;;  %11835 = vrsqrt.f32 %v17662_v54 }
 0x81b   : > { %v7165_v48 = vmul.f32 %v7029_v20, %v7029_v20  ;;  %v7772_v59 = vmul.f32 0.5, %v7771_v10  ;;  %v17696_v45 = vadd.f32 %v7162_v40, %v17167_v58  ;;  %v7731_v53 = vand.u32 2147483648, %v17556_v17  ;;  %v11834_v25 = vpop.eup %11833  ;;  %v19076_v10 = vld [vmem:[#allocation57_spill] sm:$0xff] }
 0x81c   : > { %v6717_v21 = vpop.f32.mrf.mxu3  ;;  %v6573_v51 = vpop.f32.mrf.mxu0  ;;  %v7727_v22 = vmul.f32 %v7726_v28, %v17556_v17  ;;  %v7735_v14 = vmul.f32 %v11832_v36, %v7734_v37  ;;  %v7782_v60 = vmul.f32 %v11834_v25, %v17651_v43  ;;  %vm7788_vm14 = vcmp.eq.f32.partialorder %v17651_v43, inf }
 0x81d   : > { %v17701_v30 = vadd.f32 %v7165_v48, %v17171_v4  ;;  %v7773_v3 = vsub.f32 1.5, %v7772_v59  ;;  %v6718_v46 = vadd.f32 %v6717_v21, %v6668_v12  ;;  %v11747_v4 = vld [vmem:[%s18477_s2 + $0x88] sm:$0xff]  ;;  %v19077_v48 = vld [vmem:[#allocation58_spill] sm:$0xff]  ;;  %v7779_v12 = vand.u32 2147483648, %v17606_v13 }
 0x81e   : > { %v6622_v1 = vpop.f32.mrf.mxu1  ;;  %v7729_v27 = vsel %vm7728_vm8, %v17556_v17, %v7727_v22  ;;  %v7736_v59 = vmul.f32 0.5, %v7735_v14  ;;  %8401 = vmatpush.bf16.msra.mxu2 %v11747_v4  ;;  %v11755_v17 = vld [vmem:[%s18477_s2 + $0xc8] sm:$0xff]  ;;  %vm7790_vm15 = vcmp.eq.f32.partialorder %v17651_v43, 0.0  ;;  %vm7824_vm0 = vcmp.eq.f32.partialorder %v17662_v54, inf }
 0x81f   : > { %v6623_v58 = vadd.f32 %v6622_v1, %v6573_v51  ;;  %v7774_v20 = vmul.f32 %v11830_v56, %v7773_v3  ;;  %v7030_v40 = vadd.f32 %v6718_v46, %v19076_v10  ;;  %6768 = vmatmul.bf16.gmra.mxu0 %v16406_v62  ;;  %11837 = vrsqrt.f32 %v17701_v30  ;;  %6866 = vmatmul.bf16.gmra.mxu2 %v16406_v62 }
 0x820   : > { %v7737_v22 = vsub.f32 1.5, %v7736_v59  ;;  %v7783_v62 = vmul.f32 %v11834_v25, %v7782_v60  ;;  %v11836_v3 = vpop.eup %11835  ;;  %11839 = vrsqrt.f32 %v17696_v45  ;;  %8450 = vmatpush.bf16.msra.mxu3 %v11755_v17  ;;  %vm7872_vm1 = vcmp.eq.f32.partialorder %v17701_v30, inf }
 0x821   : > { %v7037_v28 = vadd.f32 %v6623_v58, %v19077_v48  ;;  %6817 = vmatmul.bf16.gmra.mxu1 %v16408_v31  ;;  %v7775_v56 = vmul.f32 %v7774_v20, %v17606_v13  ;;  %v7166_v32 = vmul.f32 %v7030_v40, %v7030_v40  ;;  %6915 = vmatmul.bf16.gmra.mxu3 %v16408_v31  ;;  %v19078_v58 = vld [vmem:[#allocation28_spill] sm:$0xff]  ;;  %vm7826_vm2 = vcmp.eq.f32.partialorder %v17662_v54, 0.0 }
 0x822   : > { %v6671_v46 = vpop.f32.mrf.mxu2  ;;  %v17732_v31 = vsel %vm7730_vm9, %v7731_v53, %v7729_v27  ;;  %v7738_v10 = vmul.f32 %v11832_v36, %v7737_v22  ;;  %v7743_v53 = vand.u32 2147483648, %v17596_v55  ;;  %v7818_v27 = vmul.f32 %v11836_v3, %v17662_v54 }
 0x823   : > { %v7169_v21 = vmul.f32 %v7037_v28, %v7037_v28  ;;  %v7777_v51 = vsel %vm7776_vm10, %v17606_v13, %v7775_v56  ;;  %v17728_v37 = vadd.f32 %v7166_v32, %v17175_v35  ;;  %v7784_v35 = vmul.f32 0.5, %v7783_v62  ;;  %v19079_v32 = vld [vmem:[#allocation59_spill] sm:$0xff] }
 0x824   : > { %v17734_v1 = vsel %vm7778_vm11, %v7779_v12, %v7777_v51  ;;  %v6720_v20 = vpop.f32.mrf.mxu3  ;;  %v6575_v13 = vpop.f32.mrf.mxu0  ;;  %v7739_v59 = vmul.f32 %v7738_v10, %v17596_v55  ;;  %v19080_v51 = vld [vmem:[#allocation60_spill] sm:$0xff]  ;;  %v7791_v10 = vand.u32 2147483648, %v17651_v43  ;;  %vm7874_vm3 = vcmp.eq.f32.partialorder %v17701_v30, 0.0 }
 0x825   : > { %v17738_v4 = vadd.f32 %v7169_v21, %v19078_v58  ;;  %v11838_v40 = vpop.eup %11837  ;;  %v6721_v48 = vadd.f32 %v6720_v20, %v6671_v46  ;;  %v7785_v60 = vsub.f32 1.5, %v7784_v35  ;;  %v7819_v21 = vmul.f32 %v11836_v3, %v7818_v27 }
 0x826   : > { %v6624_v28 = vpop.f32.mrf.mxu1  ;;  %v7866_v36 = vmul.f32 %v11838_v40, %v17701_v30  ;;  %11841 = vrsqrt.f32 %v17728_v37  ;;  %v7741_v62 = vsel %vm7740_vm12, %v17596_v55, %v7739_v59  ;;  %v11840_v20 = vpop.eup %11839  ;;  %vm7884_vm4 = vcmp.eq.f32.partialorder %v17728_v37, inf }
 0x827   : > { %v6625_v56 = vadd.f32 %v6624_v28, %v6575_v13  ;;  %v7038_v12 = vadd.f32 %v6721_v48, %v19079_v32  ;;  %v7786_v46 = vmul.f32 %v11834_v25, %v7785_v60  ;;  %v7820_v35 = vmul.f32 0.5, %v7819_v21  ;;  %v19083_v60 = vld [vmem:[#allocation30_spill] sm:$0xff] }
 0x828   : > { %v7867_v58 = vmul.f32 %v11838_v40, %v7866_v36  ;;  %v7830_v27 = vmul.f32 %v11840_v20, %v17696_v45  ;;  %v17766_v25 = vsel %vm7742_vm13, %v7743_v53, %v7741_v62  ;;  %11843 = vrsqrt.f32 %v17738_v4 }
 0x829   : > { %v7045_v22 = vadd.f32 %v6625_v56, %v19080_v51  ;;  %v7170_v13 = vmul.f32 %v7038_v12, %v7038_v12  ;;  %v7787_v28 = vmul.f32 %v7786_v46, %v17651_v43  ;;  %v19081_v56 = vld [vmem:[#allocation29_spill] sm:$0xff]  ;;  %v7821_v59 = vsub.f32 1.5, %v7820_v35 }
 0x82a   : > { %v7868_v17 = vmul.f32 0.5, %v7867_v58  ;;  %v6673_v51 = vpop.f32.mrf.mxu2  ;;  %v7831_v55 = vmul.f32 %v11840_v20, %v7830_v27  ;;  %v19085_v27 = vpack.c.bf16 %v17272_v41, %v17268_v6  ;;  %v7875_v41 = vand.u32 2147483648, %v17701_v30 }
 0x82b   : > { %v7173_v48 = vmul.f32 %v7045_v22, %v7045_v22  ;;  %v17762_v32 = vadd.f32 %v7170_v13, %v19081_v56  ;;  %v11746_v22 = vld [vmem:[%s18477_s2 + $0x80] sm:$0xff]  ;;  %v7789_v46 = vsel %vm7788_vm14, %v17651_v43, %v7787_v28  ;;  %v19084_v28 = vld [vmem:[#allocation61_spill] sm:$0xff]  ;;  %vm7836_vm5 = vcmp.eq.f32.partialorder %v17696_v45, inf }
 0x82c   : > { %v6722_v12 = vpop.f32.mrf.mxu3  ;;  %v6734_v21 = vpop.f32.mrf.mxu0  ;;  %v7869_v58 = vsub.f32 1.5, %v7868_v17  ;;  %v17780_v35 = vsel %vm7790_vm15, %v7791_v10, %v7789_v46  ;;  %8402 = vmatpush.bf16.msra.mxu2 %v11746_v22  ;;  %v7832_v39 = vmul.f32 0.5, %v7831_v55  ;;  %v7827_v10 = vand.u32 2147483648, %v17662_v54 }
 0x82d   : > { %19082 = vst [vmem:[#allocation92_spill] sm:$0xff] %v17762_v32  ;;  %v17770_v36 = vadd.f32 %v7173_v48, %v19083_v60  ;;  %v11842_v53 = vpop.eup %11841  ;;  %v6723_v62 = vadd.f32 %v6722_v12, %v6673_v51  ;;  %v7822_v48 = vmul.f32 %v11836_v3, %v7821_v59  ;;  %v19086_v51 = vld [vmem:[#allocation62_spill] sm:$0xff]  ;;  %vm7886_vm6 = vcmp.eq.f32.partialorder %v17728_v37, 0.0 }
 0x82e   : > { %v6783_v13 = vpop.f32.mrf.mxu1  ;;  %v7870_v14 = vmul.f32 %v11838_v40, %v7869_v58  ;;  %v7878_v3 = vmul.f32 %v11842_v53, %v17728_v37  ;;  %v7833_v12 = vsub.f32 1.5, %v7832_v39  ;;  %v17805_v42 = vpop.eup %11843  ;;  %vm7838_vm7 = vcmp.eq.f32.partialorder %v17696_v45, 0.0 }
 0x82f   : > { %v6784_v56 = vadd.f32 %v6783_v13, %v6734_v21  ;;  %v7046_v17 = vadd.f32 %v6723_v62, %v19084_v28  ;;  %8305 = vmatmul.bf16.vlgmr.msra.gmra.mxu0 %v19085_v27  ;;  %v7823_v43 = vmul.f32 %v7822_v48, %v17662_v54  ;;  %vm7920_vm8 = vcmp.eq.f32.partialorder %v17738_v4, inf }
 0x830   : > { %v7871_v40 = vmul.f32 %v7870_v14, %v17701_v30  ;;  %v7879_v22 = vmul.f32 %v11842_v53, %v7878_v3  ;;  %v11754_v14 = vld [vmem:[%s18477_s2 + $0xc0] sm:$0xff] }
 0x831   : > { %v6927_v59 = vadd.f32 %v6784_v56, %v19086_v51  ;;  %8354 = vmatmul.bf16.vlgmr.msra.gmra.mxu1 %v8010_v33  ;;  %v7174_v21 = vmul.f32 %v7046_v17, %v7046_v17  ;;  %v7825_v6 = vsel %vm7824_vm0, %v17662_v54, %v7823_v43  ;;  %v19091_v54 = vld [vmem:[#allocation5_spill] sm:$0xff]  ;;  %v7834_v43 = vmul.f32 %v11840_v20, %v7833_v12  ;;  %v19093_v3 = vld [vmem:[#allocation6_spill] sm:$0xff]  ;;  %v19094_v51 = vld [vmem:[#allocation7_spill] sm:$0xff] }
 0x832   : > { %v7873_v58 = vsel %vm7872_vm1, %v17701_v30, %v7871_v40  ;;  %v6832_v39 = vpop.f32.mrf.mxu2  ;;  %v17813_v55 = vsel %vm7826_vm2, %v7827_v10, %v7825_v6  ;;  %v7880_v13 = vmul.f32 0.5, %v7879_v22  ;;  %v17819_v48 = vmul.f32 %v19091_v54, %v19091_v54  ;;  %v19092_v30 = vld [vmem:[#allocation32_spill] sm:$0xff]  ;;  %8451 = vmatpush.bf16.msra.mxu3 %v11754_v14  ;;  %v19096_v12 = vld [vmem:[#allocation9_spill] sm:$0xff]  ;;  %v19098_v14 = vld [vmem:[#allocation10_spill] sm:$0xff] }
 0x833   : > { %v7115_v46 = vmul.f32 %v6927_v59, %v6927_v59  ;;  %v17808_v33 = vadd.f32 %v7174_v21, %v19087_v61  ;;  %19089 = vst [vmem:[#allocation94_spill] sm:$0xff] %v17813_v55  ;;  %v17815_v62 = vsel %vm7874_vm3, %v7875_v41, %v7873_v58  ;;  %v17828_v10 = vmul.f32 %v19093_v3, %v19093_v3  ;;  %v19095_v41 = vld [vmem:[#allocation8_spill] sm:$0xff]  ;;  %v19097_v61 = vld [vmem:[#allocation63_spill] sm:$0xff] }
 0x834   : > { %19090 = vst [vmem:[#allocation95_spill] sm:$0xff] %v17815_v62  ;;  %v6881_v28 = vpop.f32.mrf.mxu3  ;;  %v6736_v17 = vpop.f32.mrf.mxu0  ;;  %v17832_v59 = vmul.f32 %v19094_v51, %v19094_v51  ;;  %v7881_v6 = vsub.f32 1.5, %v7880_v13  ;;  %v17836_v22 = vmul.f32 %v19095_v41, %v19095_v41  ;;  %v7914_v20 = vmul.f32 %v17805_v42, %v17738_v4 }
 0x835   : > { %19088 = vst [vmem:[#allocation93_spill] sm:$0xff] %v17808_v33  ;;  %v17822_v56 = vadd.f32 %v7115_v46, %v19092_v30  ;;  %v6882_v40 = vadd.f32 %v6881_v28, %v6832_v39  ;;  %v17843_v58 = vmul.f32 %v19096_v12, %v19096_v12  ;;  %v17849_v13 = vmul.f32 %v19098_v14, %v19098_v14  ;;  %v19099_v30 = vld [vmem:[#allocation11_spill] sm:$0xff] }
 0x836   : > { %v6785_v21 = vpop.f32.mrf.mxu1  ;;  %v7882_v39 = vmul.f32 %v11842_v53, %v7881_v6  ;;  %v17853_v28 = vmul.f32 %v19099_v30, %v19099_v30  ;;  %v7835_v51 = vmul.f32 %v7834_v43, %v17696_v45  ;;  %v7915_v43 = vmul.f32 %v17805_v42, %v7914_v20 }
 0x837   : > { %11845 = vrsqrt.f32 %v17822_v56  ;;  %v6786_v46 = vadd.f32 %v6785_v21, %v6736_v17  ;;  %v6928_v54 = vadd.f32 %v6882_v40, %v19097_v61  ;;  %v19100_v17 = vld [vmem:[#allocation64_spill] sm:$0xff]  ;;  %v19102_v40 = vld [vmem:[#allocation13_spill] sm:$0xff]  ;;  %v19103_v61 = vld [vmem:[#allocation14_spill] sm:$0xff]  ;;  %v7839_v20 = vand.u32 2147483648, %v17696_v45 }
 0x838   : > { %11847 = vrsqrt.f32 %v17770_v36  ;;  %v19101_v21 = vld [vmem:[#allocation12_spill] sm:$0xff]  ;;  %v17863_v53 = vmul.f32 %v19102_v40, %v19102_v40  ;;  %v7883_v12 = vmul.f32 %v7882_v39, %v17728_v37  ;;  %v17868_v14 = vmul.f32 %v19103_v61, %v19103_v61  ;;  %v19104_v40 = vld [vmem:[#allocation33_spill] sm:$0xff] }
 0x839   : > { %v6935_v3 = vadd.f32 %v6786_v46, %v19100_v17  ;;  %v17859_v41 = vmul.f32 %v19101_v21, %v19101_v21  ;;  %v7116_v6 = vmul.f32 %v6928_v54, %v6928_v54  ;;  %v7887_v54 = vand.u32 2147483648, %v17728_v37 }
 0x83a   : > { %v6834_v17 = vpop.f32.mrf.mxu2  ;;  %v7885_v21 = vsel %vm7884_vm4, %v17728_v37, %v7883_v12  ;;  %v7837_v60 = vsel %vm7836_vm5, %v17696_v45, %v7835_v51  ;;  %v7916_v51 = vmul.f32 0.5, %v7915_v43  ;;  %v19107_v37 = vld [vmem:[#allocation65_spill] sm:$0xff]  ;;  %v19113_v43 = vpack.c.bf16 %v17396_v0, %v17389_v63  ;;  %v19120_v0 = vld [vmem:[#allocation20_spill] sm:$0xff] }
 0x83b   : > { %v7119_v30 = vmul.f32 %v6935_v3, %v6935_v3  ;;  %v17873_v46 = vadd.f32 %v7116_v6, %v17215_v38  ;;  %v17888_v9 = vsel %vm7886_vm6, %v7887_v54, %v7885_v21  ;;  %v17900_v62 = vsel %vm7838_vm7, %v7839_v20, %v7837_v60  ;;  %v19110_v21 = vld [vmem:[#allocation16_spill] sm:$0xff]  ;;  %v19116_v60 = vld [vmem:[#allocation18_spill] sm:$0xff] }
 0x83c   : > { %v6883_v61 = vpop.f32.mrf.mxu3  ;;  %v6739_v3 = vpop.f32.mrf.mxu0  ;;  %19105 = vst [vmem:[#allocation35_spill] sm:$0xff] %v17888_v9  ;;  %v17904_v54 = vmul.f32 %v19110_v21, %v19110_v21  ;;  %v17920_v20 = vmul.f32 %v19116_v60, %v19116_v60  ;;  %v7917_v21 = vsub.f32 1.5, %v7916_v51  ;;  %v19127_v9 = vld [vmem:[#allocation23_spill] sm:$0xff]  ;;  %vm7272_vm9 = vcmp.eq.f32.partialorder %v17822_v56, inf }
 0x83d   : > { %v11846_v39 = vpop.eup %11845  ;;  %v17879_v27 = vadd.f32 %v7119_v30, %v19104_v40  ;;  %11849 = vrsqrt.f32 %v17873_v46  ;;  %v6884_v6 = vadd.f32 %v6883_v61, %v6834_v17  ;;  %v19106_v40 = vld [vmem:[#allocation15_spill] sm:$0xff]  ;;  %v19108_v17 = vpack.c.bf16 %v17354_v23, %v17348_v15  ;;  %19109 = vst [vmem:[#allocation96_spill] sm:$0xff] %v17900_v62  ;;  %v19114_v23 = vld [vmem:[#allocation17_spill] sm:$0xff] }
 0x83e   : > { %v17884_v38 = vpop.eup %11847  ;;  %v6788_v12 = vpop.f32.mrf.mxu1  ;;  %v7266_v5 = vmul.f32 %v11846_v39, %v17822_v56  ;;  %v17894_v33 = vmul.f32 %v19106_v40, %v19106_v40  ;;  %19111 = vst [vmem:[#allocation36_spill] sm:$0xff] %v17904_v54  ;;  %v19118_v40 = vld [vmem:[#allocation19_spill] sm:$0xff]  ;;  %vm7274_vm10 = vcmp.eq.f32.partialorder %v17822_v56, 0.0  ;;  %vm7284_vm13 = vcmp.eq.f32.partialorder %v17873_v46, inf }
 0x83f   : > { %11851 = vrsqrt.f32 %v17879_v27  ;;  %v6789_v30 = vadd.f32 %v6788_v12, %v6739_v3  ;;  %v6936_v55 = vadd.f32 %v6884_v6, %v19107_v37  ;;  %8310 = vmatmul.bf16.gmra.mxu0 %v19108_v17  ;;  %v19112_v3 = vld [vmem:[#allocation66_spill] sm:$0xff]  ;;  %v7962_v15 = vmul.f32 %v17884_v38, %v17770_v36  ;;  %19117 = vst [vmem:[#allocation37_spill] sm:$0xff] %v17920_v20 }
 0x840   : > { %v7267_v61 = vmul.f32 %v11846_v39, %v7266_v5  ;;  %v17916_v5 = vmul.f32 %v19114_v23, %v19114_v23  ;;  %v17924_v63 = vmul.f32 %v19118_v40, %v19118_v40  ;;  %v17928_v37 = vmul.f32 %v19120_v0, %v19120_v0  ;;  %v19124_v6 = vld [vmem:[#allocation22_spill] sm:$0xff] }
 0x841   : > { %v6943_v45 = vadd.f32 %v6789_v30, %v19112_v3  ;;  %8359 = vmatmul.bf16.gmra.mxu1 %v19113_v43  ;;  %v7120_v12 = vmul.f32 %v6936_v55, %v6936_v55  ;;  %v19122_v43 = vld [vmem:[#allocation21_spill] sm:$0xff]  ;;  %v17936_v60 = vmul.f32 %v19124_v6, %v19124_v6  ;;  %v19126_v55 = vld [vmem:[#allocation34_spill] sm:$0xff]  ;;  %v17943_v0 = vmul.f32 %v19127_v9, %v19127_v9 }
 0x842   : > { %19115 = vst [vmem:[#allocation97_spill] sm:$0xff] %v17916_v5  ;;  %v7268_v30 = vmul.f32 0.5, %v7267_v61  ;;  %v17932_v23 = vmul.f32 %v19122_v43, %v19122_v43  ;;  %v6837_v40 = vpop.f32.mrf.mxu2  ;;  %v7963_v6 = vmul.f32 %v17884_v38, %v7962_v15  ;;  %v19130_v5 = vld [vmem:[#allocation68_spill] sm:$0xff]  ;;  %vm7320_vm11 = vcmp.eq.f32.partialorder %v17879_v27, inf }
 0x843   : > { %19119 = vst [vmem:[#allocation38_spill] sm:$0xff] %v17924_v63  ;;  %v7123_v17 = vmul.f32 %v6943_v45, %v6943_v45  ;;  %v11850_v3 = vpop.eup %11849  ;;  %v17939_v61 = vadd.f32 %v7120_v12, %v19126_v55  ;;  %vm7322_vm12 = vcmp.eq.f32.partialorder %v17879_v27, 0.0  ;;  %vm7286_vm14 = vcmp.eq.f32.partialorder %v17873_v46, 0.0 }
 0x844   : > { %19121 = vst [vmem:[#allocation39_spill] sm:$0xff] %v17928_v37  ;;  %v7269_v63 = vsub.f32 1.5, %v7268_v30  ;;  %v6886_v45 = vpop.f32.mrf.mxu3  ;;  %v6741_v43 = vpop.f32.mrf.mxu0 }
 0x845   : > { %19123 = vst [vmem:[#allocation40_spill] sm:$0xff] %v17932_v23  ;;  %v11852_v62 = vpop.eup %11851  ;;  %v17946_v51 = vadd.f32 %v7123_v17, %v17486_v57  ;;  %v7278_v23 = vmul.f32 %v11850_v3, %v17873_v46  ;;  %11853 = vrsqrt.f32 %v17939_v61  ;;  %v6887_v12 = vadd.f32 %v6886_v45, %v6837_v40  ;;  %v19129_v17 = vld [vmem:[#allocation67_spill] sm:$0xff] }
 0x846   : > { %19125 = vst [vmem:[#allocation41_spill] sm:$0xff] %v17936_v60  ;;  %v6790_v55 = vpop.f32.mrf.mxu1  ;;  %v7314_v30 = vmul.f32 %v11852_v62, %v17879_v27  ;;  %v7270_v20 = vmul.f32 %v11846_v39, %v7269_v63  ;;  %v7964_v45 = vmul.f32 0.5, %v7963_v6  ;;  %vm7332_vm15 = vcmp.eq.f32.partialorder %v17939_v61, inf }
 0x847   : > { %19128 = vst [vmem:[#allocation42_spill] sm:$0xff] %v17943_v0  ;;  %v6791_v60 = vadd.f32 %v6790_v55, %v6741_v43  ;;  %v7279_v9 = vmul.f32 %v11850_v3, %v7278_v23  ;;  %v7918_v0 = vmul.f32 %v17805_v42, %v7917_v21  ;;  %v6944_v37 = vadd.f32 %v6887_v12, %v19129_v17 }
 0x848   : > { %v7315_v15 = vmul.f32 %v11852_v62, %v7314_v30  ;;  %11855 = vrsqrt.f32 %v17946_v51  ;;  %v7275_v23 = vand.u32 2147483648, %v17822_v56  ;;  %v7323_v12 = vand.u32 2147483648, %v17879_v27 }
 0x849   : > { %v6951_v32 = vadd.f32 %v6791_v60, %v19130_v5  ;;  %v7280_v40 = vmul.f32 0.5, %v7279_v9  ;;  %v7124_v54 = vmul.f32 %v6944_v37, %v6944_v37  ;;  %v7919_v63 = vmul.f32 %v7918_v0, %v17738_v4 }
 0x84a   : > { %v7316_v42 = vmul.f32 0.5, %v7315_v15  ;;  %v6839_v60 = vpop.f32.mrf.mxu2  ;;  %v7271_v37 = vmul.f32 %v7270_v20, %v17822_v56  ;;  %v7965_v17 = vsub.f32 1.5, %v7964_v45  ;;  %v19132_v45 = vpack.c.bf16 %v17439_v26, %v17432_v49 }
 0x84b   : > { %v7127_v21 = vmul.f32 %v6951_v32, %v6951_v32  ;;  %v7281_v39 = vsub.f32 1.5, %v7280_v40  ;;  %v11854_v43 = vpop.eup %11853  ;;  %v17965_v5 = vadd.f32 %v7124_v54, %v17492_v11  ;;  %v7287_v40 = vand.u32 2147483648, %v17873_v46 }
 0x84c   : > { %v7317_v6 = vsub.f32 1.5, %v7316_v42  ;;  %v6888_v32 = vpop.f32.mrf.mxu3  ;;  %v6744_v30 = vpop.f32.mrf.mxu0  ;;  %v7326_v0 = vmul.f32 %v11854_v43, %v17939_v61  ;;  %v7966_v26 = vmul.f32 %v17884_v38, %v7965_v17  ;;  %vm7334_vm0 = vcmp.eq.f32.partialorder %v17939_v61, 0.0 }
 0x84d   : > { %v17971_v55 = vadd.f32 %v7127_v21, %v17496_v19  ;;  %v7282_v9 = vmul.f32 %v11850_v3, %v7281_v39  ;;  %v6889_v15 = vadd.f32 %v6888_v32, %v6839_v60  ;;  %11857 = vrsqrt.f32 %v17965_v5  ;;  %v19131_v3 = vld [vmem:[#allocation69_spill] sm:$0xff] }
 0x84e   : > { %v6793_v11 = vpop.f32.mrf.mxu1  ;;  %v7318_v54 = vmul.f32 %v11852_v62, %v7317_v6  ;;  %v11856_v20 = vpop.eup %11855  ;;  %v7327_v57 = vmul.f32 %v11854_v43, %v7326_v0  ;;  %v17980_v19 = vsel %vm7920_vm8, %v17738_v4, %v7919_v63  ;;  %v7273_v62 = vsel %vm7272_vm9, %v17822_v56, %v7271_v37  ;;  %v19133_v6 = vld [vmem:[#allocation70_spill] sm:$0xff] }
 0x84f   : > { %v6794_v42 = vadd.f32 %v6793_v11, %v6744_v30  ;;  %11859 = vrsqrt.f32 %v17971_v55  ;;  %v6952_v21 = vadd.f32 %v6889_v15, %v19131_v3  ;;  %8315 = vmatmul.bf16.gmra.mxu0 %v19132_v45  ;;  %v7362_v60 = vmul.f32 %v11856_v20, %v17946_v51 }
 0x850   : > { %v7319_v39 = vmul.f32 %v7318_v54, %v17879_v27  ;;  %v19134_v63 = vpack.c.bf16 %v17482_v2, %v17480_v44  ;;  %v7283_v30 = vmul.f32 %v7282_v9, %v17873_v46  ;;  %v7328_v49 = vmul.f32 0.5, %v7327_v57 }
 0x851   : > { %v6959_v32 = vadd.f32 %v6794_v42, %v19133_v6  ;;  %v7128_v0 = vmul.f32 %v6952_v21, %v6952_v21  ;;  %v7363_v15 = vmul.f32 %v11856_v20, %v7362_v60  ;;  %v7276_v54 = vsel %vm7274_vm10, %v7275_v23, %v7273_v62 }
 0x852   : > { %8364 = vmatmul.bf16.gmra.mxu1 %v19134_v63  ;;  %v7321_v37 = vsel %vm7320_vm11, %v17879_v27, %v7319_v39  ;;  %v7329_v2 = vsub.f32 1.5, %v7328_v49  ;;  %v6842_v38 = vpop.f32.mrf.mxu2  ;;  %v7285_v27 = vsel %vm7284_vm13, %v17873_v46, %v7283_v30  ;;  %v19135_v49 = vld [vmem:[#allocation71_spill] sm:$0xff]  ;;  %vm7368_vm1 = vcmp.eq.f32.partialorder %v17946_v51, inf }
 0x853   : > { %v7131_v11 = vmul.f32 %v6959_v32, %v6959_v32  ;;  %v7324_v44 = vsel %vm7322_vm12, %v7323_v12, %v7321_v37  ;;  %v11858_v9 = vpop.eup %11857  ;;  %v18007_v57 = vadd.f32 %v7128_v0, %v17689_v24  ;;  %v7364_v42 = vmul.f32 0.5, %v7363_v15  ;;  %v19136_v37 = vld [vmem:[#allocation72_spill] sm:$0xff] }
 0x854   : > { %v8011_v17 = vpack.c.bf16 %v7324_v44, %v7276_v54  ;;  %v6891_v45 = vpop.f32.mrf.mxu3  ;;  %v6746_v56 = vpop.f32.mrf.mxu0  ;;  %v7330_v23 = vmul.f32 %v11854_v43, %v7329_v2  ;;  %v7374_v12 = vmul.f32 %v11858_v9, %v17965_v5  ;;  %v7335_v32 = vand.u32 2147483648, %v17939_v61 }
 0x855   : > { %v11860_v3 = vpop.eup %11859  ;;  %v18011_v21 = vadd.f32 %v7131_v11, %v17693_v47  ;;  %v6892_v24 = vadd.f32 %v6891_v45, %v6842_v38  ;;  %v7365_v39 = vsub.f32 1.5, %v7364_v42  ;;  %11861 = vrsqrt.f32 %v18007_v57 }
 0x856   : > { %v6795_v62 = vpop.f32.mrf.mxu1  ;;  %8403 = vmatmul.bf16.vlgmr.msra.gmra.mxu2 %v8011_v17  ;;  %v7410_v60 = vmul.f32 %v11860_v3, %v17971_v55  ;;  %v7331_v47 = vmul.f32 %v7330_v23, %v17939_v61  ;;  %v7375_v63 = vmul.f32 %v11858_v9, %v7374_v12  ;;  %v7288_v11 = vsel %vm7286_vm14, %v7287_v40, %v7285_v27 }
 0x857   : > { %v6796_v6 = vadd.f32 %v6795_v62, %v6746_v56  ;;  %v6960_v0 = vadd.f32 %v6892_v24, %v19135_v49  ;;  %v7366_v30 = vmul.f32 %v11856_v20, %v7365_v39  ;;  %11863 = vrsqrt.f32 %v18011_v21 }
 0x858   : > { %v7411_v43 = vmul.f32 %v11860_v3, %v7410_v60  ;;  %v7333_v54 = vsel %vm7332_vm15, %v17939_v61, %v7331_v47  ;;  %v7376_v44 = vmul.f32 0.5, %v7375_v63  ;;  %vm7370_vm2 = vcmp.eq.f32.partialorder %v17946_v51, 0.0 }
 0x859   : > { %v6967_v15 = vadd.f32 %v6796_v6, %v19136_v37  ;;  %v7132_v2 = vmul.f32 %v6960_v0, %v6960_v0  ;;  %v7336_v38 = vsel %vm7334_vm0, %v7335_v32, %v7333_v54  ;;  %v7367_v17 = vmul.f32 %v7366_v30, %v17946_v51  ;;  %v19139_v37 = vld [vmem:[#allocation74_spill] sm:$0xff] }
 0x85a   : > { %v7412_v20 = vmul.f32 0.5, %v7411_v43  ;;  %v8012_v45 = vpack.c.bf16 %v7336_v38, %v7288_v11  ;;  %v7377_v56 = vsub.f32 1.5, %v7376_v44  ;;  %v6844_v40 = vpop.f32.mrf.mxu2  ;;  %v7371_v27 = vand.u32 2147483648, %v17946_v51 }
 0x85b   : > { %v7135_v42 = vmul.f32 %v6967_v15, %v6967_v15  ;;  %v11862_v23 = vpop.eup %11861  ;;  %v18034_v46 = vadd.f32 %v7132_v2, %v17819_v48  ;;  %v18043_v6 = vmul.f32 %v7966_v26, %v17770_v36  ;;  %vm7416_vm3 = vcmp.eq.f32.partialorder %v17971_v55, inf }
 0x85c   : > { %v7413_v12 = vsub.f32 1.5, %v7412_v20  ;;  %v6893_v24 = vpop.f32.mrf.mxu3  ;;  %8452 = vmatmul.bf16.vlgmr.msra.gmra.mxu3 %v8012_v45  ;;  %v6749_v62 = vpop.f32.mrf.mxu0  ;;  %v7378_v39 = vmul.f32 %v11858_v9, %v7377_v56  ;;  %v7422_v60 = vmul.f32 %v11862_v23, %v18007_v57  ;;  %vm7380_vm4 = vcmp.eq.f32.partialorder %v17965_v5, inf  ;;  %v19137_v9 = vld [vmem:[#allocation73_spill] sm:$0xff] }
 0x85d   : > { %v18039_v61 = vadd.f32 %v7135_v42, %v17828_v10  ;;  %v6894_v48 = vadd.f32 %v6893_v24, %v6844_v40  ;;  %v7369_v10 = vsel %vm7368_vm1, %v17946_v51, %v7367_v17  ;;  %v19138_v26 = vpack.c.bf16 %v17566_v8, %v17549_v50  ;;  %v11864_v43 = vpop.eup %11863 }
 0x85e   : > { %v6798_v47 = vpop.f32.mrf.mxu1  ;;  %v7414_v32 = vmul.f32 %v11860_v3, %v7413_v12  ;;  %v7423_v49 = vmul.f32 %v11862_v23, %v7422_v60  ;;  %vm7418_vm5 = vcmp.eq.f32.partialorder %v17971_v55, 0.0  ;;  %v7419_v30 = vand.u32 2147483648, %v17971_v55 }
 0x85f   : > { %v6799_v63 = vadd.f32 %v6798_v47, %v6749_v62  ;;  %11865 = vrsqrt.f32 %v18039_v61  ;;  %v6968_v0 = vadd.f32 %v6894_v48, %v19137_v9  ;;  %8320 = vmatmul.bf16.gmra.mxu0 %v19138_v26  ;;  %v19140_v11 = vpack.c.bf16 %v17619_v34, %v17600_v16 }
 0x860   : > { %v7415_v3 = vmul.f32 %v7414_v32, %v17971_v55  ;;  %v7379_v54 = vmul.f32 %v7378_v39, %v17965_v5  ;;  %vm7382_vm6 = vcmp.eq.f32.partialorder %v17965_v5, 0.0  ;;  %v7424_v44 = vmul.f32 0.5, %v7423_v49 }
 0x861   : > { %v6975_v15 = vadd.f32 %v6799_v63, %v19139_v37  ;;  %v7136_v50 = vmul.f32 %v6968_v0, %v6968_v0  ;;  %v7372_v8 = vsel %vm7370_vm2, %v7371_v27, %v7369_v10  ;;  %v7458_v38 = vmul.f32 %v11864_v43, %v18011_v21  ;;  %v19141_v63 = vld [vmem:[#allocation75_spill] sm:$0xff]  ;;  %v19142_v0 = vld [vmem:[#allocation76_spill] sm:$0xff] }
 0x862   : > { %8369 = vmatmul.bf16.gmra.mxu1 %v19140_v11  ;;  %v7417_v2 = vsel %vm7416_vm3, %v17971_v55, %v7415_v3  ;;  %v7425_v42 = vsub.f32 1.5, %v7424_v44  ;;  %11867 = vrsqrt.f32 %v18034_v46  ;;  %v6847_v34 = vpop.f32.mrf.mxu2  ;;  %v7383_v56 = vand.u32 2147483648, %v17965_v5 }
 0x863   : > { %v7139_v17 = vmul.f32 %v6975_v15, %v6975_v15  ;;  %v7420_v20 = vsel %vm7418_vm5, %v7419_v30, %v7417_v2  ;;  %v18072_v16 = vadd.f32 %v7136_v50, %v17832_v59  ;;  %v7459_v51 = vmul.f32 %v11864_v43, %v7458_v38 }
 0x864   : > { %v8015_v45 = vpack.c.bf16 %v7420_v20, %v7372_v8  ;;  %v6896_v55 = vpop.f32.mrf.mxu3  ;;  %v6751_v12 = vpop.f32.mrf.mxu0  ;;  %v7381_v24 = vsel %vm7380_vm4, %v17965_v5, %v7379_v54  ;;  %v7426_v62 = vmul.f32 %v11862_v23, %v7425_v42  ;;  %vm7428_vm7 = vcmp.eq.f32.partialorder %v18007_v57, inf }
 0x865   : > { %v11866_v40 = vpop.eup %11865  ;;  %v18076_v27 = vadd.f32 %v7139_v17, %v17836_v22  ;;  %v6897_v59 = vadd.f32 %v6896_v55, %v6847_v34  ;;  %v7460_v60 = vmul.f32 0.5, %v7459_v51  ;;  %11869 = vrsqrt.f32 %v18072_v16 }
 0x866   : > { %v6800_v39 = vpop.f32.mrf.mxu1  ;;  %8408 = vmatmul.bf16.gmra.mxu2 %v8015_v45  ;;  %v7506_v48 = vmul.f32 %v11866_v40, %v18039_v61  ;;  %v7427_v22 = vmul.f32 %v7426_v62, %v18007_v57  ;;  %vm7430_vm8 = vcmp.eq.f32.partialorder %v18007_v57, 0.0  ;;  %v7431_v32 = vand.u32 2147483648, %v18007_v57 }
 0x867   : > { %v6801_v47 = vadd.f32 %v6800_v39, %v6751_v12  ;;  %v6976_v10 = vadd.f32 %v6897_v59, %v19141_v63  ;;  %v7461_v23 = vsub.f32 1.5, %v7460_v60  ;;  %vm7464_vm9 = vcmp.eq.f32.partialorder %v18011_v21, inf  ;;  %v19143_v60 = vld [vmem:[#allocation77_spill] sm:$0xff] }
 0x868   : > { %v7507_v49 = vmul.f32 %v11866_v40, %v7506_v48  ;;  %v11868_v9 = vpop.eup %11867  ;;  %v7384_v3 = vsel %vm7382_vm6, %v7383_v56, %v7381_v24  ;;  %v7429_v30 = vsel %vm7428_vm7, %v18007_v57, %v7427_v22  ;;  %vm7466_vm10 = vcmp.eq.f32.partialorder %v18011_v21, 0.0 }
 0x869   : > { %v6983_v26 = vadd.f32 %v6801_v47, %v19142_v0  ;;  %11871 = vrsqrt.f32 %v18076_v27  ;;  %v7140_v37 = vmul.f32 %v6976_v10, %v6976_v10  ;;  %v7432_v15 = vsel %vm7430_vm8, %v7431_v32, %v7429_v30  ;;  %v19145_v32 = vld [vmem:[#allocation78_spill] sm:$0xff] }
 0x86a   : > { %v7462_v11 = vmul.f32 %v11864_v43, %v7461_v23  ;;  %v7508_v54 = vmul.f32 0.5, %v7507_v49  ;;  %v8016_v50 = vpack.c.bf16 %v7432_v15, %v7384_v3  ;;  %v7467_v8 = vand.u32 2147483648, %v18011_v21  ;;  %v6849_v17 = vpop.f32.mrf.mxu2 }
 0x86b   : > { %v7143_v44 = vmul.f32 %v6983_v26, %v6983_v26  ;;  %v7470_v2 = vmul.f32 %v11868_v9, %v18034_v46  ;;  %v11870_v5 = vpop.eup %11869  ;;  %v18100_v38 = vadd.f32 %v7140_v37, %v17843_v58  ;;  %vm7512_vm11 = vcmp.eq.f32.partialorder %v18039_v61, inf }
 0x86c   : > { %v7463_v57 = vmul.f32 %v7462_v11, %v18011_v21  ;;  %v7509_v20 = vsub.f32 1.5, %v7508_v54  ;;  %v6898_v43 = vpop.f32.mrf.mxu3  ;;  %8457 = vmatmul.bf16.gmra.mxu3 %v8016_v50  ;;  %v6754_v34 = vpop.f32.mrf.mxu0  ;;  %vm7514_vm12 = vcmp.eq.f32.partialorder %v18039_v61, 0.0  ;;  %v7518_v56 = vmul.f32 %v11870_v5, %v18072_v16 }
 0x86d   : > { %v18105_v42 = vadd.f32 %v7143_v44, %v17849_v13  ;;  %v7471_v45 = vmul.f32 %v11868_v9, %v7470_v2  ;;  %v6899_v51 = vadd.f32 %v6898_v43, %v6849_v17  ;;  %v7515_v12 = vand.u32 2147483648, %v18039_v61 }
 0x86e   : > { %v6803_v58 = vpop.f32.mrf.mxu1  ;;  %v7510_v55 = vmul.f32 %v11866_v40, %v7509_v20  ;;  %11873 = vrsqrt.f32 %v18100_v38  ;;  %v7465_v13 = vsel %vm7464_vm9, %v18011_v21, %v7463_v57  ;;  %v7519_v39 = vmul.f32 %v11870_v5, %v7518_v56  ;;  %v19147_v56 = vld [vmem:[#allocation79_spill] sm:$0xff] }
 0x86f   : > { %v11872_v24 = vpop.eup %11871  ;;  %v6804_v62 = vadd.f32 %v6803_v58, %v6754_v34  ;;  %v7472_v59 = vmul.f32 0.5, %v7471_v45  ;;  %v6984_v48 = vadd.f32 %v6899_v51, %v19143_v60  ;;  %v19144_v47 = vpack.c.bf16 %v17658_v7, %v17644_v29 }
 0x870   : > { %v7511_v40 = vmul.f32 %v7510_v55, %v18039_v61  ;;  %v7554_v22 = vmul.f32 %v11872_v24, %v18076_v27  ;;  %11875 = vrsqrt.f32 %v18105_v42  ;;  %v19146_v10 = vpack.c.bf16 %v17685_v18, %v17681_v52 }
 0x871   : > { %8325 = vmatmul.bf16.gmra.mxu0 %v19144_v47  ;;  %v6991_v63 = vadd.f32 %v6804_v62, %v19145_v32  ;;  %v7473_v23 = vsub.f32 1.5, %v7472_v59  ;;  %vm7476_vm13 = vcmp.eq.f32.partialorder %v18034_v46, inf  ;;  %v7520_v49 = vmul.f32 0.5, %v7519_v39  ;;  %v19148_v62 = vld [vmem:[#allocation80_spill] sm:$0xff] }
 0x872   : > { %8374 = vmatmul.bf16.gmra.mxu1 %v19146_v10  ;;  %v7144_v0 = vmul.f32 %v6984_v48, %v6984_v48  ;;  %v7468_v29 = vsel %vm7466_vm10, %v7467_v8, %v7465_v13  ;;  %v7513_v7 = vsel %vm7512_vm11, %v18039_v61, %v7511_v40  ;;  %v7555_v26 = vmul.f32 %v11872_v24, %v7554_v22  ;;  %v6852_v11 = vpop.f32.mrf.mxu2 }
 0x873   : > { %v7147_v3 = vmul.f32 %v6991_v63, %v6991_v63  ;;  %v7516_v30 = vsel %vm7514_vm12, %v7515_v12, %v7513_v7  ;;  %v7474_v37 = vmul.f32 %v11868_v9, %v7473_v23  ;;  %v7521_v52 = vsub.f32 1.5, %v7520_v49 }
 0x874   : > { %v18133_v18 = vpop.eup %11873  ;;  %v18136_v15 = vadd.f32 %v7144_v0, %v17853_v28  ;;  %v8019_v54 = vpack.c.bf16 %v7516_v30, %v7468_v29  ;;  %vm7478_vm14 = vcmp.eq.f32.partialorder %v18034_v46, 0.0  ;;  %v7556_v21 = vmul.f32 0.5, %v7555_v26  ;;  %v6901_v50 = vpop.f32.mrf.mxu3 }
 0x875   : > { %vm7922_vm15 = vcmp.eq.f32.partialorder %v17738_v4, 0.0  ;;  %v18141_v44 = vadd.f32 %v7147_v3, %v17859_v41  ;;  %v6756_v61 = vpop.f32.mrf.mxu0  ;;  %v7475_v9 = vmul.f32 %v7474_v37, %v18034_v46  ;;  %v7522_v8 = vmul.f32 %v11870_v5, %v7521_v52 }
 0x876   : > { %v7566_v2 = vmul.f32 %v18133_v18, %v18100_v38  ;;  %v11876_v28 = vpop.eup %11875  ;;  %v6902_v17 = vadd.f32 %v6901_v50, %v6852_v11  ;;  %v6805_v57 = vpop.f32.mrf.mxu1  ;;  %8413 = vmatmul.bf16.gmra.mxu2 %v8019_v54  ;;  %v7479_v20 = vand.u32 2147483648, %v18034_v46  ;;  %vm7524_vm0 = vcmp.eq.f32.partialorder %v18072_v16, inf }
 0x877   : > { %v7557_v43 = vsub.f32 1.5, %v7556_v21  ;;  %vm7968_vm1 = vcmp.eq.f32.partialorder %v17770_v36, inf  ;;  %v6806_v41 = vadd.f32 %v6805_v57, %v6756_v61  ;;  %v7477_v34 = vsel %vm7476_vm13, %v18034_v46, %v7475_v9  ;;  %v19152_v9 = vld [vmem:[#allocation82_spill] sm:$0xff] }
 0x878   : > { %v7523_v5 = vmul.f32 %v7522_v8, %v18072_v16  ;;  %v7602_v45 = vmul.f32 %v11876_v28, %v18105_v42  ;;  %v6992_v51 = vadd.f32 %v6902_v17, %v19147_v56  ;;  %v7527_v58 = vand.u32 2147483648, %v18072_v16 }
 0x879   : > { %v7558_v55 = vmul.f32 %v11872_v24, %v7557_v43  ;;  %v7567_v12 = vmul.f32 %v18133_v18, %v7566_v2  ;;  %v6999_v13 = vadd.f32 %v6806_v41, %v19148_v62  ;;  %vm7526_vm2 = vcmp.eq.f32.partialorder %v18072_v16, 0.0 }
 0x87a   : > { %v7525_v59 = vsel %vm7524_vm0, %v18072_v16, %v7523_v5  ;;  %v7603_v39 = vmul.f32 %v11876_v28, %v7602_v45  ;;  %v7148_v60 = vmul.f32 %v6992_v51, %v6992_v51  ;;  %v7480_v48 = vsel %vm7478_vm14, %v7479_v20, %v7477_v34  ;;  %v6854_v10 = vpop.f32.mrf.mxu2  ;;  %v19154_v45 = vld [vmem:[#allocation36_spill] sm:$0xff] }
 0x87b   : > { %v7528_v47 = vsel %vm7526_vm2, %v7527_v58, %v7525_v59  ;;  %v7568_v40 = vmul.f32 0.5, %v7567_v12  ;;  %v7151_v22 = vmul.f32 %v6999_v13, %v6999_v13  ;;  %11877 = vrsqrt.f32 %v18136_v15 }
 0x87c   : > { %v8020_v32 = vpack.c.bf16 %v7528_v47, %v7480_v48  ;;  %v7604_v63 = vmul.f32 0.5, %v7603_v39  ;;  %v18164_v24 = vadd.f32 %v7148_v60, %v17863_v53  ;;  %v7559_v23 = vmul.f32 %v7558_v55, %v18076_v27  ;;  %v6903_v46 = vpop.f32.mrf.mxu3  ;;  %v19155_v48 = vld [vmem:[#allocation83_spill] sm:$0xff] }
 0x87d   : > { %v7569_v49 = vsub.f32 1.5, %v7568_v40  ;;  %v7971_v16 = vand.u32 2147483648, %v17770_v36  ;;  %v18169_v0 = vadd.f32 %v7151_v22, %v17868_v14  ;;  %v6759_v29 = vpop.f32.mrf.mxu0  ;;  %vm7560_vm3 = vcmp.eq.f32.partialorder %v18076_v27, inf }
 0x87e   : > { %8462 = vmatmul.bf16.gmra.mxu3 %v8020_v32  ;;  %v7605_v7 = vsub.f32 1.5, %v7604_v63  ;;  %v19149_v26 = vand.u32 2147483648, %v17738_v4  ;;  %v6904_v3 = vadd.f32 %v6903_v46, %v6854_v10  ;;  %v6808_v30 = vpop.f32.mrf.mxu1  ;;  %vm7562_vm4 = vcmp.eq.f32.partialorder %v18076_v27, 0.0  ;;  %v19150_v4 = vld [vmem:[#allocation81_spill] sm:$0xff]  ;;  %v19156_v10 = vld [vmem:[#allocation84_spill] sm:$0xff] }
 0x87f   : > { %v7563_v14 = vand.u32 2147483648, %v18076_v27  ;;  %11879 = vrsqrt.f32 %v18141_v44  ;;  %v6809_v37 = vadd.f32 %v6808_v30, %v6759_v29  ;;  %vm7608_vm5 = vcmp.eq.f32.partialorder %v18105_v42, inf }
 0x880   : > { %v18177_v53 = vsel %vm7922_vm15, %v19149_v26, %v17980_v19  ;;  %v7606_v52 = vmul.f32 %v11876_v28, %v7605_v7  ;;  %v7969_v11 = vsel %vm7968_vm1, %v17770_v36, %v18043_v6  ;;  %v7000_v19 = vadd.f32 %v6904_v3, %v19150_v4  ;;  %v19157_v4 = vld [vmem:[#allocation92_spill] sm:$0xff] }
 0x881   : > { %v19151_v54 = vpack.c.bf16 %v17734_v1, %v17732_v31  ;;  %v7561_v21 = vsel %vm7560_vm3, %v18076_v27, %v7559_v23  ;;  %v7570_v50 = vmul.f32 %v18133_v18, %v7569_v49  ;;  %11881 = vrsqrt.f32 %v18169_v0  ;;  %v11878_v61 = vpop.eup %11877 }
 0x882   : > { %vm7970_vm6 = vcmp.eq.f32.partialorder %v17770_v36, 0.0  ;;  %v7007_v8 = vadd.f32 %v6809_v37, %v19152_v9  ;;  %v19153_v6 = vpack.c.bf16 %v17780_v35, %v17766_v25  ;;  %v7607_v2 = vmul.f32 %v7606_v52, %v18105_v42  ;;  %v6857_v43 = vpop.f32.mrf.mxu2 }
 0x883   : > { %8330 = vmatmul.bf16.gmra.mxu0 %v19151_v54  ;;  %vm7610_vm7 = vcmp.eq.f32.partialorder %v18105_v42, 0.0  ;;  %v7611_v31 = vand.u32 2147483648, %v18105_v42  ;;  %v7152_v1 = vmul.f32 %v7000_v19, %v7000_v19  ;;  %vm7572_vm8 = vcmp.eq.f32.partialorder %v18100_v38, inf  ;;  %v19158_v54 = vld [vmem:[#allocation97_spill] sm:$0xff] }
 0x884   : > { %8379 = vmatmul.bf16.gmra.mxu1 %v19153_v6  ;;  %v7575_v18 = vand.u32 2147483648, %v18100_v38  ;;  %v7614_v28 = vmul.f32 %v11878_v61, %v18136_v15  ;;  %v7155_v17 = vmul.f32 %v7007_v8, %v7007_v8  ;;  %v7564_v57 = vsel %vm7562_vm4, %v7563_v14, %v7561_v21  ;;  %v6906_v27 = vpop.f32.mrf.mxu3 }
 0x885   : > { %v7609_v25 = vsel %vm7608_vm5, %v18105_v42, %v7607_v2  ;;  %11883 = vrsqrt.f32 %v18164_v24  ;;  %v11880_v35 = vpop.eup %11879  ;;  %v18212_v20 = vadd.f32 %v7152_v1, %v17894_v33  ;;  %v7571_v34 = vmul.f32 %v7570_v50, %v18100_v38  ;;  %v6761_v51 = vpop.f32.mrf.mxu0  ;;  %v19159_v50 = vld [vmem:[#allocation37_spill] sm:$0xff] }
 0x886   : > { %v7612_v41 = vsel %vm7610_vm7, %v7611_v31, %v7609_v25  ;;  %v7615_v5 = vmul.f32 %v11878_v61, %v7614_v28  ;;  %v18216_v56 = vadd.f32 %v7155_v17, %v19154_v45  ;;  %vm7574_vm9 = vcmp.eq.f32.partialorder %v18100_v38, 0.0  ;;  %v6810_v12 = vpop.f32.mrf.mxu1 }
 0x887   : > { %v8023_v58 = vpack.c.bf16 %v7612_v41, %v7564_v57  ;;  %vm7620_vm10 = vcmp.eq.f32.partialorder %v18136_v15, inf  ;;  %v7650_v42 = vmul.f32 %v11880_v35, %v18141_v44  ;;  %v11882_v55 = vpop.eup %11881  ;;  %v6907_v33 = vadd.f32 %v6906_v27, %v6857_v43 }
 0x888   : > { %v7616_v62 = vmul.f32 0.5, %v7615_v5  ;;  %vm7622_vm11 = vcmp.eq.f32.partialorder %v18136_v15, 0.0  ;;  %11885 = vrsqrt.f32 %v18212_v20  ;;  %v6811_v13 = vadd.f32 %v6810_v12, %v6761_v51  ;;  %v19160_v5 = vld [vmem:[#allocation85_spill] sm:$0xff]  ;;  %v19161_v51 = vld [vmem:[#allocation95_spill] sm:$0xff]  ;;  %v19164_v12 = vld [vmem:[#allocation86_spill] sm:$0xff] }
 0x889   : > { %8418 = vmatmul.bf16.gmra.mxu2 %v8023_v58  ;;  %v7623_v59 = vand.u32 2147483648, %v18136_v15  ;;  %v7651_v39 = vmul.f32 %v11880_v35, %v7650_v42  ;;  %v7698_v60 = vmul.f32 %v11882_v55, %v18169_v0  ;;  %v7008_v47 = vadd.f32 %v6907_v33, %v19155_v48  ;;  %v19162_v58 = vld [vmem:[#allocation94_spill] sm:$0xff] }
 0x88a   : > { %v7573_v40 = vsel %vm7572_vm8, %v18100_v38, %v7571_v34  ;;  %v7617_v22 = vsub.f32 1.5, %v7616_v62  ;;  %vm7656_vm12 = vcmp.eq.f32.partialorder %v18141_v44, inf  ;;  %v7659_v32 = vand.u32 2147483648, %v18141_v44  ;;  %v6859_v36 = vpop.f32.mrf.mxu2 }
 0x88b   : > { %v11884_v63 = vpop.eup %11883  ;;  %v7015_v23 = vadd.f32 %v6811_v13, %v19156_v10  ;;  %v7652_v49 = vmul.f32 0.5, %v7651_v39  ;;  %vm7658_vm13 = vcmp.eq.f32.partialorder %v18141_v44, 0.0  ;;  %v7699_v46 = vmul.f32 %v11882_v55, %v7698_v60  ;;  %v19165_v13 = vld [vmem:[#allocation35_spill] sm:$0xff]  ;;  %v19166_v39 = vld [vmem:[#allocation96_spill] sm:$0xff] }
 0x88c   : > { %v18237_v29 = vsel %vm7970_vm6, %v7971_v16, %v7969_v11  ;;  %v7156_v7 = vmul.f32 %v7008_v47, %v7008_v47  ;;  %v7618_v26 = vmul.f32 %v11878_v61, %v7617_v22  ;;  %vm7704_vm14 = vcmp.eq.f32.partialorder %v18169_v0, inf  ;;  %v6908_v9 = vpop.f32.mrf.mxu3 }
 0x88d   : > { %v7662_v3 = vmul.f32 %v11884_v63, %v18164_v24  ;;  %v8037_v30 = vpack.c.bf16 %v18237_v29, %v18177_v53  ;;  %v7159_v14 = vmul.f32 %v7015_v23, %v7015_v23  ;;  %v7653_v37 = vsub.f32 1.5, %v7652_v49  ;;  %v6764_v8 = vpop.f32.mrf.mxu0 }
 0x88e   : > { %v7700_v52 = vmul.f32 0.5, %v7699_v46  ;;  %11887 = vrsqrt.f32 %v19157_v4  ;;  %v11886_v19 = vpop.eup %11885  ;;  %v18245_v21 = vadd.f32 %v7156_v7, %v19158_v54  ;;  %v7619_v16 = vmul.f32 %v7618_v26, %v18136_v15  ;;  %v6813_v57 = vpop.f32.mrf.mxu1  ;;  %v19168_v46 = vld [vmem:[#allocation93_spill] sm:$0xff]  ;;  %v19169_v7 = vld [vmem:[#allocation38_spill] sm:$0xff] }
 0x88f   : > { %vm7706_vm15 = vcmp.eq.f32.partialorder %v18169_v0, 0.0  ;;  %v7663_v11 = vmul.f32 %v11884_v63, %v7662_v3  ;;  %v18250_v61 = vadd.f32 %v7159_v14, %v19159_v50  ;;  %v7654_v6 = vmul.f32 %v11880_v35, %v7653_v37 }
 0x890   : > { %v7701_v2 = vsub.f32 1.5, %v7700_v52  ;;  %v7710_v31 = vmul.f32 %v11886_v19, %v18212_v20  ;;  %v6909_v1 = vadd.f32 %v6908_v9, %v6859_v36  ;;  %v7576_v28 = vsel %vm7574_vm9, %v7575_v18, %v7573_v40  ;;  %v19171_v52 = vld [vmem:[#allocation39_spill] sm:$0xff] }
 0x891   : > { %v7621_v17 = vsel %vm7620_vm10, %v18136_v15, %v7619_v16  ;;  %v7664_v25 = vmul.f32 0.5, %v7663_v11  ;;  %v6814_v41 = vadd.f32 %v6813_v57, %v6764_v8  ;;  %v7655_v35 = vmul.f32 %v7654_v6, %v18141_v44 }
 0x892   : > { %v7624_v43 = vsel %vm7622_vm11, %v7623_v59, %v7621_v17  ;;  %v7702_v34 = vmul.f32 %v11882_v55, %v7701_v2  ;;  %v7016_v45 = vadd.f32 %v6909_v1, %v19160_v5  ;;  %v19163_v38 = vpack.c.bf16 %v19161_v51, %v19162_v58  ;;  %v6862_v3 = vpop.f32.mrf.mxu2  ;;  %v19172_v1 = vld [vmem:[#allocation87_spill] sm:$0xff] }
 0x893   : > { %v8024_v27 = vpack.c.bf16 %v7624_v43, %v7576_v28  ;;  %v7665_v18 = vsub.f32 1.5, %v7664_v25  ;;  %v7711_v42 = vmul.f32 %v11886_v19, %v7710_v31  ;;  %v7023_v62 = vadd.f32 %v6814_v41, %v19164_v12  ;;  %v19173_v43 = vld [vmem:[#allocation88_spill] sm:$0xff] }
 0x894   : > { %8335 = vmatmul.bf16.gmra.mxu0 %v19163_v38  ;;  %v11888_v33 = vpop.eup %11887  ;;  %v19167_v15 = vpack.c.bf16 %v19165_v13, %v19166_v39  ;;  %v7657_v55 = vsel %vm7656_vm12, %v18141_v44, %v7655_v35  ;;  %v7703_v59 = vmul.f32 %v7702_v34, %v18169_v0  ;;  %v7707_v60 = vand.u32 2147483648, %v18169_v0  ;;  %v6911_v36 = vpop.f32.mrf.mxu3  ;;  %v19175_v12 = vld [vmem:[#allocation40_spill] sm:$0xff] }
 0x895   : > { %v7160_v48 = vmul.f32 %v7016_v45, %v7016_v45  ;;  %8467 = vmatmul.bf16.gmra.mxu3 %v8024_v27  ;;  %v7660_v47 = vsel %vm7658_vm13, %v7659_v32, %v7657_v55  ;;  %v7666_v40 = vmul.f32 %v11884_v63, %v7665_v18  ;;  %v7712_v22 = vmul.f32 0.5, %v7711_v42  ;;  %v19170_v63 = vld [vmem:[#allocation24_spill] sm:$0xff]  ;;  %v6766_v16 = vpop.f32.mrf.mxu0  ;;  %v19174_v18 = vld [vmem:[#allocation25_spill] sm:$0xff] }
 0x896   : > { %8384 = vmatmul.bf16.gmra.mxu1 %v19167_v15  ;;  %v7163_v10 = vmul.f32 %v7023_v62, %v7023_v62  ;;  %v7705_v23 = vsel %vm7704_vm14, %v18169_v0, %v7703_v59  ;;  %v7926_v49 = vmul.f32 %v11888_v33, %v19157_v4  ;;  %11889 = vrsqrt.f32 %v19168_v46  ;;  %v6815_v8 = vpop.f32.mrf.mxu1  ;;  %v19176_v15 = vld [vmem:[#allocation26_spill] sm:$0xff]  ;;  %v19177_v59 = vld [vmem:[#allocation41_spill] sm:$0xff] }
 0x897   : > { %v18284_v26 = vadd.f32 %v7160_v48, %v19169_v7  ;;  %v7708_v14 = vsel %vm7706_vm15, %v7707_v60, %v7705_v23  ;;  %v7667_v44 = vmul.f32 %v7666_v40, %v18164_v24  ;;  %v7713_v32 = vsub.f32 1.5, %v7712_v22 }
 0x898   : > { %v18291_v37 = vmul.f32 %v19170_v63, %v19170_v63  ;;  %v18294_v54 = vadd.f32 %v7163_v10, %v19171_v52  ;;  %v8027_v11 = vpack.c.bf16 %v7708_v14, %v7660_v47  ;;  %v7927_v50 = vmul.f32 %v11888_v33, %v7926_v49  ;;  %v19178_v14 = vld [vmem:[#allocation89_spill] sm:$0xff]  ;;  %v19179_v63 = vld [vmem:[#allocation100_spill] sm:$0xff] }
 0x899   : > { %v6912_v9 = vadd.f32 %v6911_v36, %v6862_v3  ;;  %vm7668_vm0 = vcmp.eq.f32.partialorder %v18164_v24, inf  ;;  %vm7670_vm1 = vcmp.eq.f32.partialorder %v18164_v24, 0.0  ;;  %v7714_v0 = vmul.f32 %v11886_v19, %v7713_v32 }
 0x89a   : > { %v6816_v6 = vadd.f32 %v6815_v8, %v6766_v16  ;;  %8423 = vmatmul.bf16.gmra.mxu2 %v8027_v11  ;;  %v7671_v2 = vand.u32 2147483648, %v18164_v24  ;;  %vm7716_vm2 = vcmp.eq.f32.partialorder %v18212_v20, inf  ;;  %v7928_v31 = vmul.f32 0.5, %v7927_v50  ;;  %v6864_v13 = vpop.f32.mrf.mxu2 }
 0x89b   : > { %v7024_v28 = vadd.f32 %v6912_v9, %v19172_v1  ;;  %v7669_v17 = vsel %vm7668_vm0, %v18164_v24, %v7667_v44  ;;  %v7715_v57 = vmul.f32 %v7714_v0, %v18212_v20  ;;  %11891 = vrsqrt.f32 %v18216_v56 }
 0x89c   : > { %v11890_v25 = vpop.eup %11889  ;;  %v7031_v41 = vadd.f32 %v6816_v6, %v19173_v43  ;;  %vm7718_vm3 = vcmp.eq.f32.partialorder %v18212_v20, 0.0  ;;  %v7719_v19 = vand.u32 2147483648, %v18212_v20  ;;  %v7929_v35 = vsub.f32 1.5, %v7928_v31  ;;  %v6913_v24 = vpop.f32.mrf.mxu3  ;;  %v19180_v6 = vld [vmem:[#allocation42_spill] sm:$0xff] }
 0x89d   : > { %v7164_v34 = vmul.f32 %v7024_v28, %v7024_v28  ;;  %v7717_v5 = vsel %vm7716_vm2, %v18212_v20, %v7715_v57  ;;  %v7974_v45 = vmul.f32 %v11890_v25, %v19168_v46  ;;  %11893 = vrsqrt.f32 %v18250_v61  ;;  %v6769_v48 = vpop.f32.mrf.mxu0 }
 0x89e   : > { %v7167_v27 = vmul.f32 %v7031_v41, %v7031_v41  ;;  %v7672_v51 = vsel %vm7670_vm1, %v7671_v2, %v7669_v17  ;;  %v7720_v58 = vsel %vm7718_vm3, %v7719_v19, %v7717_v5  ;;  %v7930_v38 = vmul.f32 %v11888_v33, %v7929_v35  ;;  %v6818_v40 = vpop.f32.mrf.mxu1 }
 0x89f   : > { %v18314_v42 = vmul.f32 %v19174_v18, %v19174_v18  ;;  %v18317_v62 = vadd.f32 %v7164_v34, %v19175_v12  ;;  %v8028_v39 = vpack.c.bf16 %v7720_v58, %v7672_v51  ;;  %v7975_v20 = vmul.f32 %v11890_v25, %v7974_v45 }
 0x8a0   : > { %v18321_v55 = vmul.f32 %v19176_v15, %v19176_v15  ;;  %v18324_v60 = vadd.f32 %v7167_v27, %v19177_v59  ;;  %vm7932_vm4 = vcmp.eq.f32.partialorder %v19157_v4, inf  ;;  %11895 = vrsqrt.f32 %v18245_v21  ;;  %v19182_v59 = vld [vmem:[#allocation90_spill] sm:$0xff] }
 0x8a1   : > { %v11892_v33 = vpop.eup %11891  ;;  %v6914_v47 = vadd.f32 %v6913_v24, %v6864_v13  ;;  %v7931_v22 = vmul.f32 %v7930_v38, %v19157_v4  ;;  %vm7934_vm5 = vcmp.eq.f32.partialorder %v19157_v4, 0.0  ;;  %v7976_v10 = vmul.f32 0.5, %v7975_v20  ;;  %v19181_v13 = vld [vmem:[#allocation101_spill] sm:$0xff] }
 0x8a2   : > { %v6819_v23 = vadd.f32 %v6818_v40, %v6769_v48  ;;  %v7935_v49 = vand.u32 2147483648, %v19157_v4  ;;  %vm7980_vm6 = vcmp.eq.f32.partialorder %v19168_v46, inf  ;;  %v7746_v7 = vmul.f32 %v11892_v33, %v18216_v56  ;;  %v6867_v1 = vpop.f32.mrf.mxu2 }
 0x8a3   : > { %v11894_v3 = vpop.eup %11893  ;;  %v7032_v44 = vadd.f32 %v6914_v47, %v19178_v14  ;;  %v7977_v32 = vsub.f32 1.5, %v7976_v10  ;;  %vm7982_vm7 = vcmp.eq.f32.partialorder %v19168_v46, 0.0  ;;  %11897 = vrsqrt.f32 %v18284_v26 }
 0x8a4   : > { %8340 = vmatmul.bf16.gmra.mxu0 %v8037_v30  ;;  %v7039_v52 = vadd.f32 %v6819_v23, %v19179_v63  ;;  %v7983_v36 = vand.u32 2147483648, %v19168_v46  ;;  %v7747_v16 = vmul.f32 %v11892_v33, %v7746_v7  ;;  %v7794_v11 = vmul.f32 %v11894_v3, %v18250_v61 }
 0x8a5   : > { %v7168_v50 = vmul.f32 %v7032_v44, %v7032_v44  ;;  %8472 = vmatmul.bf16.gmra.mxu3 %v8028_v39  ;;  %v7933_v9 = vsel %vm7932_vm4, %v19157_v4, %v7931_v22  ;;  %v7978_v53 = vmul.f32 %v11890_v25, %v7977_v32  ;;  %vm7752_vm8 = vcmp.eq.f32.partialorder %v18216_v56, inf  ;;  %v6916_v25 = vpop.f32.mrf.mxu3  ;;  %v6771_v43 = vpop.f32.mrf.mxu0 }
 0x8a6   : > { %v11896_v29 = vpop.eup %11895  ;;  %v7171_v30 = vmul.f32 %v7039_v52, %v7039_v52  ;;  %v7748_v8 = vmul.f32 0.5, %v7747_v16  ;;  %v7795_v0 = vmul.f32 %v11894_v3, %v7794_v11  ;;  %11899 = vrsqrt.f32 %v18294_v54  ;;  %v6820_v27 = vpop.f32.mrf.mxu1 }
 0x8a7   : > { %v18348_v2 = vadd.f32 %v7168_v50, %v19180_v6  ;;  %v7979_v31 = vmul.f32 %v7978_v53, %v19168_v46  ;;  %vm7754_vm9 = vcmp.eq.f32.partialorder %v18216_v56, 0.0  ;;  %v7755_v28 = vand.u32 2147483648, %v18216_v56  ;;  %v19184_v6 = vld [vmem:[#allocation91_spill] sm:$0xff] }
 0x8a8   : > { %v7758_v17 = vmul.f32 %v11896_v29, %v18245_v21  ;;  %v18355_v57 = vadd.f32 %v7171_v30, %v18291_v37  ;;  %v7749_v41 = vsub.f32 1.5, %v7748_v8  ;;  %v7796_v19 = vmul.f32 0.5, %v7795_v0 }
 0x8a9   : > { %vm7800_vm10 = vcmp.eq.f32.partialorder %v18250_v61, inf  ;;  %v11898_v35 = vpop.eup %11897  ;;  %v7936_v34 = vsel %vm7934_vm5, %v7935_v49, %v7933_v9  ;;  %v7981_v5 = vsel %vm7980_vm6, %v19168_v46, %v7979_v31  ;;  %v6917_v45 = vadd.f32 %v6916_v25, %v6867_v1 }
 0x8aa   : > { %v7759_v51 = vmul.f32 %v11896_v29, %v7758_v17  ;;  %v7984_v37 = vsel %vm7982_vm7, %v7983_v36, %v7981_v5  ;;  %v6821_v58 = vadd.f32 %v6820_v27, %v6771_v43  ;;  %v7750_v38 = vmul.f32 %v11892_v33, %v7749_v41  ;;  %v6869_v14 = vpop.f32.mrf.mxu2 }
 0x8ab   : > { %v7797_v18 = vsub.f32 1.5, %v7796_v19  ;;  %v8038_v12 = vpack.c.bf16 %v7984_v37, %v7936_v34  ;;  %v7040_v39 = vadd.f32 %v6917_v45, %v19181_v13  ;;  %v7806_v4 = vmul.f32 %v11898_v35, %v18284_v26 }
 0x8ac   : > { %v7760_v20 = vmul.f32 0.5, %v7759_v51  ;;  %v11900_v15 = vpop.eup %11899  ;;  %v7047_v24 = vadd.f32 %v6821_v58, %v19182_v59  ;;  %v7751_v48 = vmul.f32 %v7750_v38, %v18216_v56  ;;  %11901 = vrsqrt.f32 %v18324_v60 }
 0x8ad   : > { %v7798_v47 = vmul.f32 %v11894_v3, %v7797_v18  ;;  %8389 = vmatmul.bf16.gmra.mxu1 %v8038_v12  ;;  %v7172_v46 = vmul.f32 %v7040_v39, %v7040_v39  ;;  %v7807_v22 = vmul.f32 %v11898_v35, %v7806_v4  ;;  %v7842_v33 = vmul.f32 %v11900_v15, %v18294_v54  ;;  %v6918_v16 = vpop.f32.mrf.mxu3 }
 0x8ae   : > { %v7761_v40 = vsub.f32 1.5, %v7760_v20  ;;  %v7175_v10 = vmul.f32 %v7047_v24, %v7047_v24  ;;  %v7753_v23 = vsel %vm7752_vm8, %v18216_v56, %v7751_v48  ;;  %vm7802_vm11 = vcmp.eq.f32.partialorder %v18250_v61, 0.0 }
 0x8af   : > { %v7799_v49 = vmul.f32 %v7798_v47, %v18250_v61  ;;  %v18377_v7 = vadd.f32 %v7172_v46, %v18314_v42  ;;  %v7803_v3 = vand.u32 2147483648, %v18250_v61  ;;  %v7808_v32 = vmul.f32 0.5, %v7807_v22 }
 0x8b0   : > { %v7762_v44 = vmul.f32 %v11896_v29, %v7761_v40  ;;  %v18381_v63 = vadd.f32 %v7175_v10, %v18321_v55  ;;  %v7756_v52 = vsel %vm7754_vm9, %v7755_v28, %v7753_v23  ;;  %v7843_v11 = vmul.f32 %v11900_v15, %v7842_v33  ;;  %v19183_v29 = vld [vmem:[#allocation27_spill] sm:$0xff] }
 0x8b1   : > { %v7801_v36 = vsel %vm7800_vm10, %v18250_v61, %v7799_v49  ;;  %v6919_v42 = vadd.f32 %v6918_v16, %v6869_v14  ;;  %v7809_v53 = vsub.f32 1.5, %v7808_v32  ;;  %v7112_v8 = vmul.f32 %v19183_v29, %v19183_v29 }
 0x8b2   : > { %v7804_v50 = vsel %vm7802_vm11, %v7803_v3, %v7801_v36  ;;  %v7763_v9 = vmul.f32 %v7762_v44, %v18245_v21  ;;  %v11902_v30 = vpop.eup %11901  ;;  %v7844_v0 = vmul.f32 0.5, %v7843_v11  ;;  %vm7764_vm12 = vcmp.eq.f32.partialorder %v18245_v21, inf }
 0x8b3   : > { %v8031_v55 = vpack.c.bf16 %v7804_v50, %v7756_v52  ;;  %v7048_v56 = vadd.f32 %v6919_v42, %v19184_v6  ;;  %v7810_v31 = vmul.f32 %v11898_v35, %v7809_v53  ;;  %v7890_v61 = vmul.f32 %v11902_v30, %v18324_v60 }
 0x8b4   : > { %vm7766_vm13 = vcmp.eq.f32.partialorder %v18245_v21, 0.0  ;;  %v7767_v1 = vand.u32 2147483648, %v18245_v21  ;;  %v7845_v28 = vsub.f32 1.5, %v7844_v0  ;;  %11903 = vrsqrt.f32 %v18317_v62 }
 0x8b5   : > { %8428 = vmatmul.bf16.gmra.mxu2 %v8031_v55  ;;  %v7176_v17 = vmul.f32 %v7048_v56, %v7048_v56  ;;  %v7765_v25 = vsel %vm7764_vm12, %v18245_v21, %v7763_v9  ;;  %v7811_v43 = vmul.f32 %v7810_v31, %v18284_v26  ;;  %v7891_v41 = vmul.f32 %v11902_v30, %v7890_v61 }
 0x8b6   : > { %vm7812_vm14 = vcmp.eq.f32.partialorder %v18284_v26, inf  ;;  %v7815_v19 = vand.u32 2147483648, %v18284_v26  ;;  %v7846_v35 = vmul.f32 %v11900_v15, %v7845_v28  ;;  %11905 = vrsqrt.f32 %v18348_v2 }
 0x8b7   : > { %v18402_v34 = vadd.f32 %v7176_v17, %v7112_v8  ;;  %v7813_v5 = vsel %vm7812_vm14, %v18284_v26, %v7811_v43  ;;  %vm7814_vm15 = vcmp.eq.f32.partialorder %v18284_v26, 0.0  ;;  %v7892_v45 = vmul.f32 0.5, %v7891_v41 }
 0x8b8   : > { %v7768_v27 = vsel %vm7766_vm13, %v7767_v1, %v7765_v25  ;;  %v7816_v51 = vsel %vm7814_vm15, %v7815_v19, %v7813_v5  ;;  %11907 = vrsqrt.f32 %v18355_v57  ;;  %v7847_v58 = vmul.f32 %v7846_v35, %v18294_v54  ;;  %v8306_v5 = vpop.f32.mrf.mxu0 }
 0x8b9   : > { %v8032_v37 = vpack.c.bf16 %v7816_v51, %v7768_v27  ;;  %v7893_v38 = vsub.f32 1.5, %v7892_v45  ;;  %11909 = vrsqrt.f32 %v18381_v63  ;;  %vm7848_vm0 = vcmp.eq.f32.partialorder %v18294_v54, inf  ;;  %v8355_v51 = vpop.f32.mrf.mxu1 }
 0x8ba   : > { %v11904_v18 = vpop.eup %11903  ;;  %vm7850_vm1 = vcmp.eq.f32.partialorder %v18294_v54, 0.0  ;;  %v7851_v21 = vand.u32 2147483648, %v18294_v54  ;;  %11911 = vrsqrt.f32 %v18377_v7  ;;  %v7849_v26 = vsel %vm7848_vm0, %v18294_v54, %v7847_v58 }
 0x8bb   : > { %8477 = vmatmul.bf16.gmra.mxu3 %v8032_v37  ;;  %v7894_v12 = vmul.f32 %v11902_v30, %v7893_v38  ;;  %v7854_v13 = vmul.f32 %v11904_v18, %v18317_v62  ;;  %vm7896_vm2 = vcmp.eq.f32.partialorder %v18324_v60, inf  ;;  %vm7898_vm3 = vcmp.eq.f32.partialorder %v18324_v60, 0.0 }
 0x8bc   : > { %v11906_v39 = vpop.eup %11905  ;;  %v7899_v24 = vand.u32 2147483648, %v18324_v60  ;;  %11913 = vrsqrt.f32 %v18402_v34  ;;  %v7852_v33 = vsel %vm7850_vm1, %v7851_v21, %v7849_v26  ;;  %vm7860_vm4 = vcmp.eq.f32.partialorder %v18317_v62, inf }
 0x8bd   : > { %v7895_v20 = vmul.f32 %v7894_v12, %v18324_v60  ;;  %v7855_v4 = vmul.f32 %v11904_v18, %v7854_v13  ;;  %v7902_v15 = vmul.f32 %v11906_v39, %v18348_v2  ;;  %vm7862_vm5 = vcmp.eq.f32.partialorder %v18317_v62, 0.0 }
 0x8be   : > { %v11908_v59 = vpop.eup %11907  ;;  %v7863_v30 = vand.u32 2147483648, %v18317_v62  ;;  %vm7908_vm6 = vcmp.eq.f32.partialorder %v18348_v2, inf  ;;  %v7911_v31 = vand.u32 2147483648, %v18348_v2  ;;  %vm7910_vm7 = vcmp.eq.f32.partialorder %v18348_v2, 0.0 }
 0x8bf   : > { %v7897_v48 = vsel %vm7896_vm2, %v18324_v60, %v7895_v20  ;;  %v7856_v47 = vmul.f32 0.5, %v7855_v4  ;;  %v7903_v46 = vmul.f32 %v11906_v39, %v7902_v15  ;;  %v7938_v40 = vmul.f32 %v11908_v59, %v18355_v57  ;;  %v11910_v22 = vpop.eup %11909 }
 0x8c0   : > { %v7900_v10 = vsel %vm7898_vm3, %v7899_v24, %v7897_v48  ;;  %v11912_v44 = vpop.eup %11911  ;;  %v7986_v32 = vmul.f32 %v11910_v22, %v18381_v63  ;;  %vm7944_vm8 = vcmp.eq.f32.partialorder %v18355_v57, inf  ;;  %v7947_v38 = vand.u32 2147483648, %v18355_v57 }
 0x8c1   : > { %v8035_v23 = vpack.c.bf16 %v7900_v10, %v7852_v33  ;;  %v7857_v49 = vsub.f32 1.5, %v7856_v47  ;;  %v7904_v3 = vmul.f32 0.5, %v7903_v46  ;;  %v7939_v14 = vmul.f32 %v11908_v59, %v7938_v40  ;;  %v8308_v47 = vpop.f32.mrf.mxu0  ;;  %v8357_v46 = vpop.f32.mrf.mxu1 }
 0x8c2   : > { %v7950_v60 = vmul.f32 %v11912_v44, %v18377_v7  ;;  %v11914_v11 = vpop.eup %11913  ;;  %v7987_v50 = vmul.f32 %v11910_v22, %v7986_v32  ;;  %vm7992_vm9 = vcmp.eq.f32.partialorder %v18381_v63, inf  ;;  %vm7946_vm10 = vcmp.eq.f32.partialorder %v18355_v57, 0.0 }
 0x8c3   : > { %v7858_v52 = vmul.f32 %v11904_v18, %v7857_v49  ;;  %v7905_v36 = vsub.f32 1.5, %v7904_v3  ;;  %v7940_v16 = vmul.f32 0.5, %v7939_v14  ;;  %v7998_v8 = vmul.f32 %v11914_v11, %v18402_v34 }
 0x8c4   : > { %v7951_v53 = vmul.f32 %v11912_v44, %v7950_v60  ;;  %v7988_v29 = vmul.f32 0.5, %v7987_v50  ;;  %vm7994_vm11 = vcmp.eq.f32.partialorder %v18381_v63, 0.0  ;;  %vm7956_vm12 = vcmp.eq.f32.partialorder %v18377_v7, inf }
 0x8c5   : > { %8433 = vmatmul.bf16.gmra.mxu2 %v8035_v23  ;;  %v7859_v54 = vmul.f32 %v7858_v52, %v18317_v62  ;;  %v7906_v42 = vmul.f32 %v11906_v39, %v7905_v36  ;;  %v7941_v9 = vsub.f32 1.5, %v7940_v16  ;;  %v7999_v1 = vmul.f32 %v11914_v11, %v7998_v8 }
 0x8c6   : > { %v7952_v56 = vmul.f32 0.5, %v7951_v53  ;;  %v7989_v61 = vsub.f32 1.5, %v7988_v29  ;;  %v7959_v15 = vand.u32 2147483648, %v18377_v7  ;;  %vm8004_vm13 = vcmp.eq.f32.partialorder %v18402_v34, inf }
 0x8c7   : > { %v7861_v55 = vsel %vm7860_vm4, %v18317_v62, %v7859_v54  ;;  %v7907_v0 = vmul.f32 %v7906_v42, %v18348_v2  ;;  %v7942_v6 = vmul.f32 %v11908_v59, %v7941_v9  ;;  %v8000_v35 = vmul.f32 0.5, %v7999_v1 }
 0x8c8   : > { %v7953_v25 = vsub.f32 1.5, %v7952_v56  ;;  %v7864_v43 = vsel %vm7862_vm5, %v7863_v30, %v7861_v55  ;;  %v7990_v19 = vmul.f32 %v11910_v22, %v7989_v61  ;;  %v7995_v62 = vand.u32 2147483648, %v18381_v63 }
 0x8c9   : > { %v7909_v28 = vsel %vm7908_vm6, %v18348_v2, %v7907_v0  ;;  %v7943_v17 = vmul.f32 %v7942_v6, %v18355_v57  ;;  %v8001_v2 = vsub.f32 1.5, %v8000_v35  ;;  %vm7958_vm14 = vcmp.eq.f32.partialorder %v18377_v7, 0.0  ;;  %v8311_v22 = vpop.f32.mrf.mxu0  ;;  %v8360_v10 = vpop.f32.mrf.mxu1 }
 0x8ca   : > { %v7912_v41 = vsel %vm7910_vm7, %v7911_v31, %v7909_v28  ;;  %v7954_v27 = vmul.f32 %v11912_v44, %v7953_v25  ;;  %v7991_v58 = vmul.f32 %v7990_v19, %v18381_v63  ;;  %vm8006_vm15 = vcmp.eq.f32.partialorder %v18402_v34, 0.0 }
 0x8cb   : > { %v8036_v45 = vpack.c.bf16 %v7912_v41, %v7864_v43  ;;  %v7945_v37 = vsel %vm7944_vm8, %v18355_v57, %v7943_v17  ;;  %v8002_v13 = vmul.f32 %v11914_v11, %v8001_v2  ;;  %v8007_v57 = vand.u32 2147483648, %v18402_v34 }
 0x8cc   : > { %v7955_v18 = vmul.f32 %v7954_v27, %v18377_v7  ;;  %v7993_v12 = vsel %vm7992_vm9, %v18381_v63, %v7991_v58  ;;  %v7948_v39 = vsel %vm7946_vm10, %v7947_v38, %v7945_v37  ;;  %v8356_v33 = vadd.f32 %v8355_v51, %v8306_v5 }
 0x8cd   : > { %8482 = vmatmul.bf16.gmra.mxu3 %v8036_v45  ;;  %v7996_v21 = vsel %vm7994_vm11, %v7995_v62, %v7993_v12  ;;  %v8003_v4 = vmul.f32 %v8002_v13, %v18402_v34  ;;  %v8358_v44 = vadd.f32 %v8357_v46, %v8308_v47  ;;  %v8361_v42 = vadd.f32 %v8360_v10, %v8311_v22 }
 0x8ce   : > { %v8039_v26 = vpack.c.bf16 %v7996_v21, %v7948_v39  ;;  %v7957_v20 = vsel %vm7956_vm12, %v18377_v7, %v7955_v18 }
 0x8cf   : > { %v8005_v63 = vsel %vm8004_vm13, %v18402_v34, %v8003_v4  ;;  %v7960_v59 = vsel %vm7958_vm14, %v7959_v15, %v7957_v20 }
 0x8d0   : > { %v8008_v24 = vsel %vm8006_vm15, %v8007_v57, %v8005_v63 }
 0x8d1   : > { %v8040_v48 = vpack.c.bf16 %v8008_v24, %v7960_v59  ;;  %v8313_v32 = vpop.f32.mrf.mxu0  ;;  %v8362_v34 = vpop.f32.mrf.mxu1 }
 0x8d2   : > { %v8363_v31 = vadd.f32 %v8362_v34, %v8313_v32 }
 0x8d5   : > { %8438 = vmatmul.bf16.gmra.mxu2 %v8039_v26 }
 0x8d9   : > { %v8404_v40 = vpop.f32.mrf.mxu2  ;;  %v8316_v53 = vpop.f32.mrf.mxu0 }
 0x8da   : > { %v8405_v23 = vadd.f32 %v8404_v40, %v8356_v33  ;;  %v8365_v29 = vpop.f32.mrf.mxu1 }
 0x8db   : > { %v8366_v5 = vadd.f32 %v8365_v29, %v8316_v53 }
 0x8dd   : > { %8487 = vmatmul.bf16.gmra.mxu3 %v8040_v48 }
 0x8df   : > { %v8453_v49 = vpop.f32.mrf.mxu3 }
 0x8e0   : > { %v8454_v3 = vadd.f32 %v8453_v49, %v8405_v23 }
 0x8e1   : > { %v8406_v14 = vpop.f32.mrf.mxu2  ;;  %v8318_v25 = vpop.f32.mrf.mxu0 }
 0x8e2   : > { %v8493_v7 = vmax.f32 %v8454_v3, 1e-07  ;;  %v8407_v52 = vadd.f32 %v8406_v14, %v8358_v44  ;;  %v8367_v41 = vpop.f32.mrf.mxu1 }
 0x8e3   : > { %v8368_v18 = vadd.f32 %v8367_v41, %v8318_v25 }
 0x8e4   : > { %11915 = vlog2.f32 %v8493_v7 }
 0x8e7   : > { %v8455_v36 = vpop.f32.mrf.mxu3 }
 0x8e8   : > { %v8456_v16 = vadd.f32 %v8455_v36, %v8407_v52 }
 0x8e9   : > { %v8409_v60 = vpop.f32.mrf.mxu2  ;;  %v8321_v38 = vpop.f32.mrf.mxu0 }
 0x8ea   : > { %v11916_v11 = vpop.eup %11915  ;;  %v8494_v50 = vmax.f32 %v8456_v16, 1e-07  ;;  %v8410_v9 = vadd.f32 %v8409_v60, %v8361_v42  ;;  %v8370_v12 = vpop.f32.mrf.mxu1 }
 0x8eb   : > { %v8510_v54 = vmul.f32 0.6931472, %v11916_v11  ;;  %v8371_v59 = vadd.f32 %v8370_v12, %v8321_v38 }
 0x8ec   : > { %11917 = vlog2.f32 %v8494_v50 }
 0x8ed   : > { %8541 = vxpose.xlu0.b32.start [1/16] (narrow) %v8510_v54, 104 }
 0x8ef   : > { %v8458_v30 = vpop.f32.mrf.mxu3 }
 0x8f0   : > { %v8459_v8 = vadd.f32 %v8458_v30, %v8410_v9 }
 0x8f1   : > { %v8411_v55 = vpop.f32.mrf.mxu2  ;;  %v8323_v57 = vpop.f32.mrf.mxu0 }
 0x8f2   : > { %v11918_v0 = vpop.eup %11917  ;;  %v8495_v6 = vmax.f32 %v8459_v8, 1e-07  ;;  %v8412_v61 = vadd.f32 %v8411_v55, %v8363_v31  ;;  %v8372_v63 = vpop.f32.mrf.mxu1 }
 0x8f3   : > { %v8512_v56 = vmul.f32 0.6931472, %v11918_v0  ;;  %v8373_v49 = vadd.f32 %v8372_v63, %v8323_v57 }
 0x8f4   : > { %11919 = vlog2.f32 %v8495_v6 }
 0x8f5   : > { %8542 = vxpose.xlu0.b32.cont [2/16] (narrow) %v8512_v56, 104 }
 0x8f7   : > { %v8460_v1 = vpop.f32.mrf.mxu3 }
 0x8f8   : > { %v8461_v28 = vadd.f32 %v8460_v1, %v8412_v61 }
 0x8f9   : > { %v8414_v17 = vpop.f32.mrf.mxu2  ;;  %v8326_v33 = vpop.f32.mrf.mxu0 }
 0x8fa   : > { %v11920_v43 = vpop.eup %11919  ;;  %v8496_v19 = vmax.f32 %v8461_v28, 1e-07  ;;  %v8415_v45 = vadd.f32 %v8414_v17, %v8366_v5  ;;  %v8375_v23 = vpop.f32.mrf.mxu1 }
 0x8fb   : > { %v8514_v35 = vmul.f32 0.6931472, %v11920_v43  ;;  %v8376_v36 = vadd.f32 %v8375_v23, %v8326_v33 }
 0x8fc   : > { %11921 = vlog2.f32 %v8496_v19 }
 0x8fd   : > { %8543 = vxpose.xlu0.b32.cont [3/16] (narrow) %v8514_v35, 104 }
 0x901   : > { %v8463_v27 = vpop.f32.mrf.mxu3  ;;  %v8416_v37 = vpop.f32.mrf.mxu2 }
 0x902   : > { %v8464_v51 = vadd.f32 %v8463_v27, %v8415_v45  ;;  %v11922_v58 = vpop.eup %11921  ;;  %v8417_v13 = vadd.f32 %v8416_v37, %v8368_v18  ;;  %v8328_v16 = vpop.f32.mrf.mxu0 }
 0x903   : > { %v8516_v62 = vmul.f32 0.6931472, %v11922_v58  ;;  %v8377_v60 = vpop.f32.mrf.mxu1 }
 0x904   : > { %v8497_v2 = vmax.f32 %v8464_v51, 1e-07  ;;  %v8378_v29 = vadd.f32 %v8377_v60, %v8328_v16 }
 0x905   : > { %8544 = vxpose.xlu0.b32.cont [4/16] (narrow) %v8516_v62, 104 }
 0x906   : > { %11923 = vlog2.f32 %v8497_v2 }
 0x909   : > { %v8465_v39 = vpop.f32.mrf.mxu3 }
 0x90a   : > { %v8466_v21 = vadd.f32 %v8465_v39, %v8417_v13  ;;  %v8331_v8 = vpop.f32.mrf.mxu0 }
 0x90b   : > { %v8380_v0 = vpop.f32.mrf.mxu1 }
 0x90c   : > { %v11924_v26 = vpop.eup %11923  ;;  %v8498_v20 = vmax.f32 %v8466_v21, 1e-07  ;;  %v8419_v4 = vpop.f32.mrf.mxu2  ;;  %v8381_v41 = vadd.f32 %v8380_v0, %v8331_v8 }
 0x90d   : > { %v8518_v15 = vmul.f32 0.6931472, %v11924_v26  ;;  %v8420_v48 = vadd.f32 %v8419_v4, %v8371_v59 }
 0x90e   : > { %11925 = vlog2.f32 %v8498_v20 }
 0x90f   : > { %8545 = vxpose.xlu0.b32.cont [5/16] (narrow) %v8518_v15, 104 }
 0x912   : > { %v8333_v17 = vpop.f32.mrf.mxu0 }
 0x913   : > { %v8382_v25 = vpop.f32.mrf.mxu1 }
 0x914   : > { %v11926_v24 = vpop.eup %11925  ;;  %v8421_v40 = vpop.f32.mrf.mxu2  ;;  %v8383_v37 = vadd.f32 %v8382_v25, %v8333_v17 }
 0x915   : > { %v8520_v47 = vmul.f32 0.6931472, %v11926_v24  ;;  %v8422_v3 = vadd.f32 %v8421_v40, %v8373_v49 }
 0x917   : > { %8546 = vxpose.xlu0.b32.cont [6/16] (narrow) %v8520_v47, 104 }
 0x918   : > { %v8468_v46 = vpop.f32.mrf.mxu3 }
 0x919   : > { %v8469_v22 = vadd.f32 %v8468_v46, %v8420_v48 }
 0x91a   : > { %v8336_v58 = vpop.f32.mrf.mxu0 }
 0x91b   : > { %v8499_v10 = vmax.f32 %v8469_v22, 1e-07  ;;  %v8385_v2 = vpop.f32.mrf.mxu1 }
 0x91c   : > { %v8386_v26 = vadd.f32 %v8385_v2, %v8336_v58 }
 0x91d   : > { %11927 = vlog2.f32 %v8499_v10  ;;  %v8424_v44 = vpop.f32.mrf.mxu2 }
 0x91e   : > { %v8425_v11 = vadd.f32 %v8424_v44, %v8376_v36 }
 0x920   : > { %v8470_v14 = vpop.f32.mrf.mxu3 }
 0x921   : > { %v8471_v7 = vadd.f32 %v8470_v14, %v8422_v3 }
 0x922   : > { %v8338_v20 = vpop.f32.mrf.mxu0 }
 0x923   : > { %v11928_v32 = vpop.eup %11927  ;;  %v8500_v34 = vmax.f32 %v8471_v7, 1e-07  ;;  %v8387_v4 = vpop.f32.mrf.mxu1 }
 0x924   : > { %v8522_v52 = vmul.f32 0.6931472, %v11928_v32  ;;  %v8388_v46 = vadd.f32 %v8387_v4, %v8338_v20 }
 0x925   : > { %11929 = vlog2.f32 %v8500_v34  ;;  %v8426_v53 = vpop.f32.mrf.mxu2 }
 0x926   : > { %8547 = vxpose.xlu0.b32.cont [7/16] (narrow) %v8522_v52, 104  ;;  %v8427_v55 = vadd.f32 %v8426_v53, %v8378_v29 }
 0x928   : > { %v8473_v50 = vpop.f32.mrf.mxu3 }
 0x929   : > { %v8474_v54 = vadd.f32 %v8473_v50, %v8425_v11 }
 0x92a   : > { %v8341_v40 = vpop.f32.mrf.mxu0 }
 0x92b   : > { %v11930_v42 = vpop.eup %11929  ;;  %v8501_v9 = vmax.f32 %v8474_v54, 1e-07  ;;  %v8390_v33 = vpop.f32.mrf.mxu1 }
 0x92c   : > { %v8524_v30 = vmul.f32 0.6931472, %v11930_v42  ;;  %v8391_v44 = vadd.f32 %v8390_v33, %v8341_v40 }
 0x92d   : > { %11931 = vlog2.f32 %v8501_v9 }
 0x92e   : > { %8548 = vxpose.xlu0.b32.cont [8/16] (narrow) %v8524_v30, 104 }
 0x930   : > { %v8475_v6 = vpop.f32.mrf.mxu3 }
 0x931   : > { %v8476_v56 = vadd.f32 %v8475_v6, %v8427_v55 }
 0x932   : > { %v8343_v36 = vpop.f32.mrf.mxu0 }
 0x933   : > { %v11932_v31 = vpop.eup %11931  ;;  %v8502_v61 = vmax.f32 %v8476_v56, 1e-07  ;;  %v8392_v16 = vpop.f32.mrf.mxu1 }
 0x934   : > { %v8526_v1 = vmul.f32 0.6931472, %v11932_v31  ;;  %v8393_v42 = vadd.f32 %v8392_v16, %v8343_v36 }
 0x935   : > { %11933 = vlog2.f32 %v8502_v61 }
 0x936   : > { %8549 = vxpose.xlu0.b32.cont [9/16] (narrow) %v8526_v1, 104 }
 0x938   : > { %v8429_v28 = vpop.f32.mrf.mxu2 }
 0x939   : > { %v8430_v35 = vadd.f32 %v8429_v28, %v8381_v41 }
 0x93b   : > { %v11934_v43 = vpop.eup %11933 }
 0x93c   : > { %v8528_v19 = vmul.f32 0.6931472, %v11934_v43 }
 0x93e   : > { %v8478_v5 = vpop.f32.mrf.mxu3  ;;  %8550 = vxpose.xlu0.b32.cont [10/16] (narrow) %v8528_v19, 104 }
 0x93f   : > { %v8479_v45 = vadd.f32 %v8478_v5, %v8430_v35 }
 0x940   : > { %v8431_v27 = vpop.f32.mrf.mxu2 }
 0x941   : > { %v8503_v51 = vmax.f32 %v8479_v45, 1e-07  ;;  %v8432_v38 = vadd.f32 %v8431_v27, %v8383_v37 }
 0x943   : > { %11935 = vlog2.f32 %v8503_v51 }
 0x946   : > { %v8480_v62 = vpop.f32.mrf.mxu3 }
 0x947   : > { %v8481_v18 = vadd.f32 %v8480_v62, %v8432_v38 }
 0x948   : > { %v8434_v12 = vpop.f32.mrf.mxu2 }
 0x949   : > { %v11936_v13 = vpop.eup %11935  ;;  %v8504_v39 = vmax.f32 %v8481_v18, 1e-07  ;;  %v8435_v15 = vadd.f32 %v8434_v12, %v8386_v26 }
 0x94a   : > { %v8530_v21 = vmul.f32 0.6931472, %v11936_v13 }
 0x94b   : > { %11937 = vlog2.f32 %v8504_v39 }
 0x94c   : > { %8551 = vxpose.xlu0.b32.cont [11/16] (narrow) %v8530_v21, 104 }
 0x950   : > { %v8483_v57 = vpop.f32.mrf.mxu3  ;;  %v8436_v63 = vpop.f32.mrf.mxu2 }
 0x951   : > { %v11938_v59 = vpop.eup %11937  ;;  %v8484_v24 = vadd.f32 %v8483_v57, %v8435_v15  ;;  %v8437_v22 = vadd.f32 %v8436_v63, %v8388_v46 }
 0x952   : > { %v8532_v48 = vmul.f32 0.6931472, %v11938_v59 }
 0x953   : > { %v8505_v47 = vmax.f32 %v8484_v24, 1e-07 }
 0x954   : > { %8552 = vxpose.xlu0.b32.cont [12/16] (narrow) %v8532_v48, 104 }
 0x955   : > { %11939 = vlog2.f32 %v8505_v47 }
 0x958   : > { %v8485_v10 = vpop.f32.mrf.mxu3  ;;  %v8439_v49 = vpop.f32.mrf.mxu2 }
 0x959   : > { %v8486_v23 = vadd.f32 %v8485_v10, %v8437_v22  ;;  %v8440_v32 = vadd.f32 %v8439_v49, %v8391_v44 }
 0x95b   : > { %v11940_v3 = vpop.eup %11939  ;;  %v8506_v14 = vmax.f32 %v8486_v23, 1e-07 }
 0x95c   : > { %v8534_v7 = vmul.f32 0.6931472, %v11940_v3 }
 0x95d   : > { %11941 = vlog2.f32 %v8506_v14 }
 0x95e   : > { %8553 = vxpose.xlu0.b32.cont [13/16] (narrow) %v8534_v7, 104 }
 0x960   : > { %v8488_v34 = vpop.f32.mrf.mxu3  ;;  %v8441_v50 = vpop.f32.mrf.mxu2 }
 0x961   : > { %v8489_v52 = vadd.f32 %v8488_v34, %v8440_v32  ;;  %v8442_v9 = vadd.f32 %v8441_v50, %v8393_v42 }
 0x963   : > { %v11942_v60 = vpop.eup %11941  ;;  %v8507_v11 = vmax.f32 %v8489_v52, 1e-07 }
 0x964   : > { %v8536_v54 = vmul.f32 0.6931472, %v11942_v60 }
 0x965   : > { %11943 = vlog2.f32 %v8507_v11 }
 0x966   : > { %8554 = vxpose.xlu0.b32.cont [14/16] (narrow) %v8536_v54, 104 }
 0x968   : > { %v8490_v53 = vpop.f32.mrf.mxu3 }
 0x969   : > { %v8491_v30 = vadd.f32 %v8490_v53, %v8442_v9 }
 0x96b   : > { %v11944_v29 = vpop.eup %11943  ;;  %v8508_v8 = vmax.f32 %v8491_v30, 1e-07 }
 0x96c   : > { %v8538_v55 = vmul.f32 0.6931472, %v11944_v29 }
 0x96d   : > { %11945 = vlog2.f32 %v8508_v8 }
 0x96e   : > { %8555 = vxpose.xlu0.b32.cont [15/16] (narrow) %v8538_v55, 104 }
 0x973   : > { %v11946_v0 = vpop.eup %11945 }
 0x974   : > { %v8540_v6 = vmul.f32 0.6931472, %v11946_v0 }
 0x976   : > { %8556 = vxpose.xlu0.b32.end [16/16] (narrow) %v8540_v6, 104 }
 0x9a2   : > { %v8557_v56 = vpop.trf.xlu0 }
 0x9a3   : > { %8573 = vst [vmem:[%s197_s25] sm:$0xff] %v8557_v56 }
 0x9aa   : > { %v8558_v31 = vpop.trf.xlu0 }
 0x9ab   : > { %8574 = vst [vmem:[%s197_s25 + $0x8] sm:$0xff] %v8558_v31 }
 0x9b2   : > { %v8559_v61 = vpop.trf.xlu0 }
 0x9b3   : > { %8575 = vst [vmem:[%s197_s25 + $0x10] sm:$0xff] %v8559_v61 }
 0x9ba   : > { %v8560_v1 = vpop.trf.xlu0 }
 0x9bb   : > { %8576 = vst [vmem:[%s197_s25 + $0x18] sm:$0xff] %v8560_v1 }
 0x9c2   : > { %v8561_v28 = vpop.trf.xlu0 }
 0x9c3   : > { %8577 = vst [vmem:[%s197_s25 + $0x20] sm:$0xff] %v8561_v28 }
 0x9ca   : > { %v8562_v17 = vpop.trf.xlu0 }
 0x9cb   : > { %8578 = vst [vmem:[%s197_s25 + $0x28] sm:$0xff] %v8562_v17 }
 0x9d2   : > { %v8563_v25 = vpop.trf.xlu0 }
 0x9d3   : > { %8579 = vst [vmem:[%s197_s25 + $0x30] sm:$0xff] %v8563_v25 }
 0x9da   : > { %v8564_v43 = vpop.trf.xlu0 }
 0x9db   : > { %8580 = vst [vmem:[%s197_s25 + $0x38] sm:$0xff] %v8564_v43 }
 0x9e2   : > { %v8565_v41 = vpop.trf.xlu0 }
 0x9e3   : > { %8581 = vst [vmem:[%s197_s25 + $0x40] sm:$0xff] %v8565_v41 }
 0x9ea   : > { %v8566_v19 = vpop.trf.xlu0 }
 0x9eb   : > { %8582 = vst [vmem:[%s197_s25 + $0x48] sm:$0xff] %v8566_v19 }
 0x9f2   : > { %v8567_v35 = vpop.trf.xlu0 }
 0x9f3   : > { %8583 = vst [vmem:[%s197_s25 + $0x50] sm:$0xff] %v8567_v35 }
 0x9fa   : > { %v8568_v5 = vpop.trf.xlu0 }
 0x9fb   : > { %8584 = vst [vmem:[%s197_s25 + $0x58] sm:$0xff] %v8568_v5 }
 0xa02   : > { %v8569_v45 = vpop.trf.xlu0 }
 0xa03   : > { %8585 = vst [vmem:[%s197_s25 + $0x60] sm:$0xf] %v8569_v45 }
 0xa04 PF: > { %s13_s14 = sadd.s32 1, %s11969_s14   ;;  %s19185_s12 = smov %s11965_s13 }
 0xa05   : > { %p10_p5 = scmp.ge.s32.totalorder %s13_s14, 4   ;;  %s19186_s13 = smov %s19188_s15 }
 0xa07   :  { %12 = sbr.rel (!%p10_p5) target bundleno = 2 (0x2), region = 65 }

</bundles_post_ra>
